<compile_context>
chip_gen: v7x
topology: tpu7x:2x2x1
jax: 0.10.0
libtpu: 0.0.40
codegen_flags: <defaults>
</compile_context>

<pallas_src>
import functools
import math

import numpy as np
import jax
import jax.numpy as jnp
from jax import lax
from jax.experimental import pallas as pl
from jax.experimental.pallas import tpu as pltpu

F32 = jnp.float32
BF16 = jnp.bfloat16
LRELU_SLOPE = 0.1
sr2sr = {"32k": 32000, "40k": 40000, "48k": 48000}


# --------------------------------------------------------------------------
# Pallas kernels
# --------------------------------------------------------------------------
def _conv1d_body(x_ref, w_ref, b_ref, o_ref, K, dil, pre_lrelu):
    """x_ref: (1, Cin, Tp); w_ref: (K, Cout, Cin); b_ref: (Cout,1) or None."""
    Cout, T_out = o_ref.shape[1], o_ref.shape[2]
    x = x_ref[0]                                        # (Cin, Tp) f32
    if pre_lrelu:
        x = jnp.where(x >= 0, x, x * LRELU_SLOPE)
    xb = x.astype(BF16)
    if b_ref is not None:
        acc = jnp.broadcast_to(b_ref[...], (Cout, T_out)).astype(jnp.float32)
    else:
        acc = jnp.zeros((Cout, T_out), jnp.float32)
    for k in range(K):                                  # static unrolled taps
        acc = acc + jnp.dot(w_ref[k].astype(BF16),
                            xb[:, k * dil:k * dil + T_out],
                            preferred_element_type=jnp.float32)
    o_ref[0] = acc


def _conv1d_bias_kernel(x_ref, w_ref, b_ref, o_ref, *, K, dil, pre_lrelu):
    _conv1d_body(x_ref, w_ref, b_ref, o_ref, K, dil, pre_lrelu)


def _conv1d_nobias_kernel(x_ref, w_ref, o_ref, *, K, dil, pre_lrelu):
    _conv1d_body(x_ref, w_ref, None, o_ref, K, dil, pre_lrelu)


def conv1d(x, w, b=None, padding=0, dilation=1, pre_lrelu=False):
    """Direct NCW conv (stride 1).  x: (B,Cin,T); w: (Cout,Cin,K) torch layout."""
    x = x.astype(F32)
    B, Cin, T = x.shape
    Cout, _, K = w.shape
    if padding > 0:
        x = jnp.pad(x, ((0, 0), (0, 0), (padding, padding)))
    Tp = T + 2 * padding
    T_out = Tp - dilation * (K - 1)
    wk = jnp.transpose(w, (2, 0, 1)).astype(F32)        # (K, Cout, Cin)

    in_specs = [pl.BlockSpec((1, Cin, Tp), lambda bb: (bb, 0, 0)),
                pl.BlockSpec((K, Cout, Cin), lambda bb: (0, 0, 0))]
    args = [x, wk]
    if b is not None:
        in_specs.append(pl.BlockSpec((Cout, 1), lambda bb: (0, 0)))
        args.append(b.reshape(Cout, 1).astype(F32))
        kern = functools.partial(_conv1d_bias_kernel, K=K, dil=dilation,
                                 pre_lrelu=pre_lrelu)
    else:
        kern = functools.partial(_conv1d_nobias_kernel, K=K, dil=dilation,
                                 pre_lrelu=pre_lrelu)
    return pl.pallas_call(
        kern,
        out_shape=jax.ShapeDtypeStruct((B, Cout, T_out), F32),
        grid=(B,),
        in_specs=in_specs,
        out_specs=pl.BlockSpec((1, Cout, T_out), lambda bb: (bb, 0, 0)),
        compiler_params=pltpu.CompilerParams(dimension_semantics=("parallel",)),
    )(*args)


def _linear_ncw_kernel(x_ref, w_ref, b_ref, o_ref):
    """x_ref: (1, T, Din); w_ref: (Dout, Din); out: (1, Dout, T) lane-dense."""
    x = x_ref[0]
    o_ref[0] = lax.dot_general(
        w_ref[...].astype(BF16), x.astype(BF16),
        (((1,), (1,)), ((), ())), preferred_element_type=jnp.float32) + b_ref[...]


def linear_ncw(x_btd, w, b):
    """torch Linear applied to (B,T,Din), output in NCW (B,Dout,T)."""
    B, T, Din = x_btd.shape
    Dout = w.shape[0]
    return pl.pallas_call(
        _linear_ncw_kernel,
        out_shape=jax.ShapeDtypeStruct((B, Dout, T), F32),
        grid=(B,),
        in_specs=[pl.BlockSpec((1, T, Din), lambda bb: (bb, 0, 0)),
                  pl.BlockSpec((Dout, Din), lambda bb: (0, 0)),
                  pl.BlockSpec((Dout, 1), lambda bb: (0, 0))],
        out_specs=pl.BlockSpec((1, Dout, T), lambda bb: (bb, 0, 0)),
        compiler_params=pltpu.CompilerParams(dimension_semantics=("parallel",)),
    )(x_btd.astype(F32), w.astype(F32), b.reshape(Dout, 1).astype(F32))


def _attn_kernel(lens_ref, q_ref, k_ref, v_ref, o_ref, *, scale):
    """Per (batch, head) fused attention; mask rebuilt in-kernel from lengths."""
    b = pl.program_id(0)
    L = lens_ref[b]
    q = q_ref[0]                                        # (d, T)
    k = k_ref[0]
    v = v_ref[0]
    T = q.shape[1]
    qs = (q * scale).astype(BF16)                       # fold scale into q
    s = lax.dot_general(qs, k.astype(BF16), (((0,), (0,)), ((), ())),
                        preferred_element_type=jnp.float32)        # (Tq, Tk)
    row = lax.broadcasted_iota(jnp.int32, (T, T), 0)
    col = lax.broadcasted_iota(jnp.int32, (T, T), 1)
    s = jnp.where((row < L) & (col < L), s, -1e4)
    s = s - jnp.max(s, axis=-1, keepdims=True)
    p = jnp.exp(s)
    p = p * pl.reciprocal(jnp.sum(p, axis=-1, keepdims=True), approx=True)
    o_ref[0] = lax.dot_general(v.astype(BF16), p.astype(BF16),
                               (((1,), (1,)), ((), ())),
                               preferred_element_type=jnp.float32)  # (d, Tq)


def attention_ncw(qkv, lengths, n_heads, h):
    """qkv: (B, 3h, T) channels [q|k|v]; heads split via BlockSpec index maps."""
    B, _, T = qkv.shape
    kch = h // n_heads
    scale = 1.0 / math.sqrt(kch)
    kern = functools.partial(_attn_kernel, scale=scale)
    gs = pltpu.PrefetchScalarGridSpec(
        num_scalar_prefetch=1,
        grid=(B, n_heads),
        in_specs=[
            pl.BlockSpec((1, kch, T), lambda b, hd, lens: (b, hd, 0)),
            pl.BlockSpec((1, kch, T), lambda b, hd, lens: (b, n_heads + hd, 0)),
            pl.BlockSpec((1, kch, T), lambda b, hd, lens: (b, 2 * n_heads + hd, 0)),
        ],
        out_specs=pl.BlockSpec((1, kch, T), lambda b, hd, lens: (b, hd, 0)),
    )
    return pl.pallas_call(
        kern,
        out_shape=jax.ShapeDtypeStruct((B, h, T), F32),
        grid_spec=gs,
        compiler_params=pltpu.CompilerParams(
            dimension_semantics=("parallel", "parallel")),
    )(lengths.astype(jnp.int32), qkv, qkv, qkv)


def _add_ln_kernel(x_ref, y_ref, g_ref, b_ref, o_ref):
    """Fused residual add + LayerNorm over the channel (sublane) axis, NCW."""
    z = x_ref[0] + y_ref[0]                             # (C, T)
    mu = jnp.mean(z, axis=0, keepdims=True)
    zc = z - mu
    var = jnp.mean(zc * zc, axis=0, keepdims=True)
    o_ref[0] = zc * lax.rsqrt(var + 1e-5) * g_ref[...] + b_ref[...]


def add_layernorm_ncw(x, y, gamma, beta):
    B, C, T = x.shape
    return pl.pallas_call(
        _add_ln_kernel,
        out_shape=jax.ShapeDtypeStruct((B, C, T), F32),
        grid=(B,),
        in_specs=[pl.BlockSpec((1, C, T), lambda b: (b, 0, 0)),
                  pl.BlockSpec((1, C, T), lambda b: (b, 0, 0)),
                  pl.BlockSpec((C, 1), lambda b: (0, 0)),
                  pl.BlockSpec((C, 1), lambda b: (0, 0))],
        out_specs=pl.BlockSpec((1, C, T), lambda b: (b, 0, 0)),
        compiler_params=pltpu.CompilerParams(dimension_semantics=("parallel",)),
    )(x.astype(F32), y.astype(F32),
      gamma.reshape(C, 1).astype(F32), beta.reshape(C, 1).astype(F32))


def _wn_layer_kernel(xp_ref, sk_ref, gl_ref, m_ref, win_ref, bin_ref, wrs_ref,
                     brs_ref, xo_ref, so_ref, *, K, hid, last):
    """Fused WaveNet layer: K-tap in-conv + cond + gate + 1x1 res_skip + residual."""
    T = so_ref.shape[2]
    pad = (K - 1) // 2
    xp = xp_ref[0]                                      # (h, T + K - 1)
    acc = jnp.broadcast_to(bin_ref[...] + gl_ref[0], (2 * hid, T)).astype(jnp.float32)
    xb = xp.astype(BF16)
    for k in range(K):
        acc = acc + jnp.dot(win_ref[k].astype(BF16), xb[:, k:k + T],
                            preferred_element_type=jnp.float32)
    acts = jnp.tanh(acc[:hid]) * jax.nn.sigmoid(acc[hid:])          # (h, T)
    rs = jnp.dot(wrs_ref[...].astype(BF16), acts.astype(BF16),
                 preferred_element_type=jnp.float32) + brs_ref[...]
    mask = m_ref[0]                                     # (1, T)
    x_cur = xp[:, pad:pad + T]
    if last:
        xo_ref[0] = x_cur                               # unused downstream
        so_ref[0] = (sk_ref[0] + rs) * mask
    else:
        xo_ref[0] = (x_cur + rs[:hid]) * mask
        so_ref[0] = sk_ref[0] + rs[hid:]


def wn_layer(xp, skip, gl, mask, w_in, b_in, w_rs, b_rs, *, K, hid, last, T):
    B = xp.shape[0]
    Tp = xp.shape[2]
    outc = w_rs.shape[0]
    kern = functools.partial(_wn_layer_kernel, K=K, hid=hid, last=last)
    return pl.pallas_call(
        kern,
        out_shape=(jax.ShapeDtypeStruct((B, hid, T), F32),
                   jax.ShapeDtypeStruct((B, hid, T), F32)),
        grid=(B,),
        in_specs=[
            pl.BlockSpec((1, hid, Tp), lambda b: (b, 0, 0)),
            pl.BlockSpec((1, hid, T), lambda b: (b, 0, 0)),
            pl.BlockSpec((1, 2 * hid, 1), lambda b: (b, 0, 0)),
            pl.BlockSpec((1, 1, T), lambda b: (b, 0, 0)),
            pl.BlockSpec((K, 2 * hid, hid), lambda b: (0, 0, 0)),
            pl.BlockSpec((2 * hid, 1), lambda b: (0, 0)),
            pl.BlockSpec((outc, hid), lambda b: (0, 0)),
            pl.BlockSpec((outc, 1), lambda b: (0, 0)),
        ],
        out_specs=(pl.BlockSpec((1, hid, T), lambda b: (b, 0, 0)),
                   pl.BlockSpec((1, hid, T), lambda b: (b, 0, 0))),
        compiler_params=pltpu.CompilerParams(dimension_semantics=("parallel",)),
    )(xp.astype(F32), skip.astype(F32), gl.astype(F32), mask.astype(F32),
      w_in.astype(F32), b_in.astype(F32), w_rs.astype(F32), b_rs.astype(F32))


# --------------------------------------------------------------------------
# conv variants / helpers
# --------------------------------------------------------------------------
def conv_transpose1d(x, w, b, stride, padding, pre_lrelu=False):
    """x: (B,Cin,T), w: (Cin,Cout,K) torch ConvTranspose1d layout."""
    # TODO(synk): polyphase decomposition would avoid multiplying stuffed zeros.
    B, Cin, T = x.shape
    _, Cout, K = w.shape
    xz = jnp.zeros((B, Cin, (T - 1) * stride + 1), F32).at[:, :, ::stride].set(x)
    w_conv = jnp.flip(w, axis=-1).transpose(1, 0, 2)    # (Cout, Cin, K)
    return conv1d(xz, w_conv, b, padding=K - 1 - padding, pre_lrelu=pre_lrelu)


def strided_conv1d_cin1(x, w, b, stride, padding):
    """Strided conv specialised to Cin=1 (noise_convs): tap-gather + 1x1 conv."""
    B, _, T = x.shape
    Cout, _, K = w.shape
    if stride == 1:
        return conv1d(x, w, b, padding=padding)
    xp = jnp.pad(x[:, 0, :], ((0, 0), (padding, padding)))
    Tp = T + 2 * padding
    T_out = (Tp - K) // stride + 1
    idx = (jnp.arange(T_out) * stride)[None, :] + jnp.arange(K)[:, None]  # (K,T_out)
    taps = xp[:, idx]                                   # (B, K, T_out)
    w1 = w.reshape(Cout, K, 1)                          # taps act as channels
    return conv1d(taps, w1, b, padding=0)


def leaky_relu(x, slope=LRELU_SLOPE):
    return jnp.where(x >= 0, x, x * slope)


def sequence_mask(lengths, max_len):
    return (jnp.arange(max_len)[None, :] < lengths[:, None]).astype(F32)


# --------------------------------------------------------------------------
# parameter construction (deterministic, synthetic)
# --------------------------------------------------------------------------
class PG:
    def __init__(self, seed):
        self.key = jax.random.PRNGKey(seed)

    def __call__(self, *shape, scale=0.1):
        self.key, sub = jax.random.split(self.key)
        return jax.random.normal(sub, shape, dtype=F32) * scale


CFG = dict(
    spec_channels=64, segment_size=4, inter_channels=8, hidden_channels=16,
    filter_channels=32, n_heads=2, n_layers=2, kernel_size=3, p_dropout=0.0,
    resblock="1", resblock_kernel_sizes=[3, 5],
    resblock_dilation_sizes=[[1, 3, 5], [1, 3, 5]],
    upsample_rates=[2, 2], upsample_initial_channel=16,
    upsample_kernel_sizes=[4, 4], spk_embed_dim=4, gin_channels=8, sr="32k",
    is_half=False,
)


def init_params(cfg, seed=0):
    pg = PG(seed)
    h = cfg["hidden_channels"]; inter = cfg["inter_channels"]
    gin = cfg["gin_channels"]; filt = cfg["filter_channels"]
    k = cfg["kernel_size"]
    p = {"emb_g": pg(cfg["spk_embed_dim"], gin)}

    enc_p = dict(
        emb_phone_w=pg(h, 768), emb_phone_b=pg(h), emb_pitch=pg(256, h),
        layers=[], proj_w=pg(2 * inter, h, 1), proj_b=pg(2 * inter),
    )
    for _ in range(cfg["n_layers"]):
        enc_p["layers"].append(dict(
            q_w=pg(h, h, 1), q_b=pg(h), k_w=pg(h, h, 1), k_b=pg(h),
            v_w=pg(h, h, 1), v_b=pg(h), o_w=pg(h, h, 1), o_b=pg(h),
            n1_g=jnp.ones((h,), F32), n1_b=jnp.zeros((h,), F32),
            ffn1_w=pg(filt, h, k), ffn1_b=pg(filt),
            ffn2_w=pg(h, filt, k), ffn2_b=pg(h),
            n2_g=jnp.ones((h,), F32), n2_b=jnp.zeros((h,), F32),
        ))
    p["enc_p"] = enc_p

    def wn_params(hid, kernel, n_layers):
        d = dict(cond_w=pg(2 * hid * n_layers, gin, 1), cond_b=pg(2 * hid * n_layers),
                 in_w=[], in_b=[], rs_w=[], rs_b=[])
        for i in range(n_layers):
            d["in_w"].append(pg(2 * hid, hid, kernel)); d["in_b"].append(pg(2 * hid))
            out_c = 2 * hid if i < n_layers - 1 else hid
            d["rs_w"].append(pg(out_c, hid, 1)); d["rs_b"].append(pg(out_c))
        return d

    p["enc_q"] = dict(pre_w=pg(h, cfg["spec_channels"], 1), pre_b=pg(h),
                      wn=wn_params(h, 5, 16),
                      proj_w=pg(2 * inter, h, 1), proj_b=pg(2 * inter))

    half = inter // 2
    p["flow"] = [dict(pre_w=pg(h, half, 1), pre_b=pg(h),
                      wn=wn_params(h, 5, 3),
                      post_w=pg(half, h, 1), post_b=pg(half))
                 for _ in range(4)]

    uic = cfg["upsample_initial_channel"]
    rates = cfg["upsample_rates"]; uks = cfg["upsample_kernel_sizes"]
    dec = dict(conv_pre_w=pg(uic, inter, 7), conv_pre_b=pg(uic),
               cond_w=pg(uic, gin, 1), cond_b=pg(uic),
               src_lin_w=pg(1, 1), src_lin_b=pg(1),
               ups=[], noise_convs=[], resblocks=[])
    for i, (u, ku) in enumerate(zip(rates, uks)):
        cin = uic // (2 ** i); cout = uic // (2 ** (i + 1))
        dec["ups"].append(dict(w=pg(cin, cout, ku), b=pg(cout)))
        if i + 1 < len(rates):
            s0 = int(np.prod(rates[i + 1:]))
            dec["noise_convs"].append(dict(w=pg(cout, 1, s0 * 2), b=pg(cout)))
        else:
            dec["noise_convs"].append(dict(w=pg(cout, 1, 1), b=pg(cout)))
        for kr, dils in zip(cfg["resblock_kernel_sizes"],
                            cfg["resblock_dilation_sizes"]):
            rb = dict(c1_w=[], c1_b=[], c2_w=[], c2_b=[])
            for _ in dils:
                rb["c1_w"].append(pg(cout, cout, kr)); rb["c1_b"].append(pg(cout))
                rb["c2_w"].append(pg(cout, cout, kr)); rb["c2_b"].append(pg(cout))
            dec["resblocks"].append(rb)
    ch_last = uic // (2 ** len(rates))
    dec["conv_post_w"] = pg(1, ch_last, 7)
    p["dec"] = dec
    return p


# --------------------------------------------------------------------------
# sub-modules
# --------------------------------------------------------------------------
def text_encoder(p, phone, pitch, lengths, cfg):
    h = cfg["hidden_channels"]; n_heads = cfg["n_heads"]
    B, T, _ = phone.shape
    x = linear_ncw(phone, p["emb_phone_w"], p["emb_phone_b"])       # (B, h, T)
    pe = jnp.transpose(p["emb_pitch"][pitch], (0, 2, 1))            # (B, h, T)
    x = (x + pe) * math.sqrt(h)
    x = leaky_relu(x, 0.1)
    x_mask = sequence_mask(lengths, T)[:, None, :]                  # (B, 1, T)
    x = x * x_mask
    pad = cfg["kernel_size"] // 2

    for lp in p["layers"]:
        # fused QKV projection (one 1x1 conv with concatenated weights)
        qkv_w = jnp.concatenate([lp["q_w"], lp["k_w"], lp["v_w"]], axis=0)
        qkv_b = jnp.concatenate([lp["q_b"], lp["k_b"], lp["v_b"]], axis=0)
        qkv = conv1d(x, qkv_w, qkv_b)                               # (B, 3h, T)
        # TODO(synk): relative positional bias (window_size=10) of
        # attentions.MultiHeadAttention is omitted; plain scaled-dot attention.
        attn = attention_ncw(qkv, lengths, n_heads, h)
        y = conv1d(attn, lp["o_w"], lp["o_b"])
        x = add_layernorm_ncw(x, y, lp["n1_g"], lp["n1_b"])
        y = conv1d(x * x_mask, lp["ffn1_w"], lp["ffn1_b"], padding=pad)
        y = jnp.maximum(y, 0.0)
        y = conv1d(y * x_mask, lp["ffn2_w"], lp["ffn2_b"], padding=pad)
        y = y * x_mask
        x = add_layernorm_ncw(x, y, lp["n2_g"], lp["n2_b"])
    x = x * x_mask
    stats = conv1d(x, p["proj_w"], p["proj_b"]) * x_mask
    m, logs = jnp.split(stats, 2, axis=1)
    return m, logs, x_mask


def wn_forward(wp, x, x_mask, g, hid, kernel, n_layers):
    # 1x1 cond conv over a length-1 time axis -> degenerate for MXU; plain VPU.
    g_all = (jnp.einsum("oc,bct->bot", wp["cond_w"][:, :, 0], g)
             + wp["cond_b"][None, :, None])                         # (B, 2h*L, 1)
    skip = jnp.zeros_like(x)
    pad = (kernel - 1) // 2
    B, _, T = x.shape
    for i in range(n_layers):
        last = i == n_layers - 1
        xp = jnp.pad(x, ((0, 0), (0, 0), (pad, pad)))
        gl = g_all[:, i * 2 * hid:(i + 1) * 2 * hid, :]
        w_in = jnp.transpose(wp["in_w"][i], (2, 0, 1))              # (K, 2h, h)
        b_in = wp["in_b"][i].reshape(-1, 1)
        w_rs = wp["rs_w"][i][:, :, 0]                               # (outc, h)
        b_rs = wp["rs_b"][i].reshape(-1, 1)
        x, skip = wn_layer(xp, skip, gl, x_mask, w_in, b_in, w_rs, b_rs,
                           K=kernel, hid=hid, last=last, T=T)
    return skip


def posterior_encoder(p, y, y_lengths, g, cfg, key):
    h = cfg["hidden_channels"]
    B, _, T = y.shape
    y_mask = sequence_mask(y_lengths, T)[:, None, :]
    x = conv1d(y, p["pre_w"], p["pre_b"]) * y_mask
    x = wn_forward(p["wn"], x, y_mask, g, h, 5, 16)
    stats = conv1d(x, p["proj_w"], p["proj_b"]) * y_mask
    m, logs = jnp.split(stats, 2, axis=1)
    z = (m + jax.random.normal(key, m.shape, F32) * jnp.exp(logs)) * y_mask
    return z, m, logs, y_mask


def flow_forward(flows, x, x_mask, g, cfg):
    h = cfg["hidden_channels"]; half = cfg["inter_channels"] // 2
    for fp in flows:
        x0, x1 = x[:, :half, :], x[:, half:, :]
        hdn = conv1d(x0, fp["pre_w"], fp["pre_b"]) * x_mask
        hdn = wn_forward(fp["wn"], hdn, x_mask, g, h, 5, 3)
        m = conv1d(hdn, fp["post_w"], fp["post_b"]) * x_mask
        x1 = m + x1 * x_mask                              # mean_only -> logs = 0
        x = jnp.concatenate([x0, x1], axis=1)
        x = jnp.flip(x, axis=1)                           # Flip flow
    return x


def rand_slice_segments(z, y_lengths, segment_size, key):
    B, d, _ = z.shape
    ids_str_max = (y_lengths - segment_size + 1).astype(F32)
    r = jax.random.uniform(key, (B,))
    ids_str = (r * ids_str_max).astype(jnp.int32)
    z_slice = jax.vmap(lambda zb, s: lax.dynamic_slice(zb, (0, s), (d, segment_size)))(z, ids_str)
    return z_slice, ids_str


def slice_segments2(x, ids_str, segment_size):
    return jax.vmap(lambda xb, s: lax.dynamic_slice(xb, (s,), (segment_size,)))(x, ids_str)


def source_module(dp, f0, upp, sr_val, key):
    """SourceModuleHnNSF with harmonic_num=0 -> (B, 1, T*upp). Pure VPU math."""
    B, T = f0.shape
    # TODO(synk): SineGen uses no random initial phase and nearest upsampling.
    f0_up = jnp.repeat(f0, upp, axis=1)
    rad = (f0_up / sr_val) % 1.0
    phase = jnp.cumsum(rad, axis=1)
    sine = jnp.sin(2.0 * np.pi * phase) * 0.1             # sine_amp = 0.1
    uv = (f0_up > 0.0).astype(F32)                        # voiced_threshold = 0
    noise_amp = uv * 0.003 + (1.0 - uv) * (0.1 / 3.0)
    noise = noise_amp * jax.random.normal(key, sine.shape, F32)
    sine = sine * uv + noise
    merged = jnp.tanh(sine * dp["src_lin_w"][0, 0] + dp["src_lin_b"][0])
    return merged[:, None, :]


def resblock1(rb, x, k, dils):
    for j, d in enumerate(dils):
        xt = conv1d(x, rb["c1_w"][j], rb["c1_b"][j], padding=(k * d - d) // 2,
                    dilation=d, pre_lrelu=True)
        xt = conv1d(xt, rb["c2_w"][j], rb["c2_b"][j], padding=(k - 1) // 2,
                    dilation=1, pre_lrelu=True)
        x = xt + x
    return x


def generator_nsf(dp, x, f0, g, cfg, key):
    rates = cfg["upsample_rates"]; uks = cfg["upsample_kernel_sizes"]
    num_kernels = len(cfg["resblock_kernel_sizes"])
    upp = int(np.prod(rates))
    sr_val = sr2sr[cfg["sr"]] if isinstance(cfg["sr"], str) else cfg["sr"]

    har = source_module(dp, f0, upp, sr_val, key)         # (B, 1, T*upp)
    x = conv1d(x, dp["conv_pre_w"], dp["conv_pre_b"], padding=3)
    cond = (jnp.einsum("oc,bct->bot", dp["cond_w"][:, :, 0], g)
            + dp["cond_b"][None, :, None])
    x = x + cond
    for i, (u, ku) in enumerate(zip(rates, uks)):
        # leaky_relu fused into the conv kernel (lrelu(0)=0, so zero-stuff safe)
        x = conv_transpose1d(x, dp["ups"][i]["w"], dp["ups"][i]["b"],
                             stride=u, padding=(ku - u) // 2, pre_lrelu=True)
        nc = dp["noise_convs"][i]
        if i + 1 < len(rates):
            s0 = int(np.prod(rates[i + 1:]))
            x_source = strided_conv1d_cin1(har, nc["w"], nc["b"], s0, s0 // 2)
        else:
            x_source = strided_conv1d_cin1(har, nc["w"], nc["b"], 1, 0)
        x = x + x_source
        xs = None
        for j in range(num_kernels):
            kr = cfg["resblock_kernel_sizes"][j]
            dl = cfg["resblock_dilation_sizes"][j]
            r = resblock1(dp["resblocks"][i * num_kernels + j], x, kr, dl)
            xs = r if xs is None else xs + r
        x = xs / num_kernels
    x = conv1d(x, dp["conv_post_w"], None, padding=3, pre_lrelu=True)
    return jnp.tanh(x)


# --------------------------------------------------------------------------
# top-level forward (mirrors SynthesizerTrnMs768NSFsid.forward)
# --------------------------------------------------------------------------
def synthesizer_forward(params, cfg, phone, phone_lengths, pitch, pitchf, y,
                        y_lengths, ds, rng):
    k_q, k_slice, k_noise = jax.random.split(rng, 3)
    g = params["emb_g"][ds][:, :, None]                   # (B, gin, 1)
    m_p, logs_p, x_mask = text_encoder(params["enc_p"], phone, pitch, phone_lengths, cfg)
    z, m_q, logs_q, y_mask = posterior_encoder(params["enc_q"], y, y_lengths, g, cfg, k_q)
    z_p = flow_forward(params["flow"], z, y_mask, g, cfg)
    z_slice, ids_slice = rand_slice_segments(z, y_lengths, cfg["segment_size"], k_slice)
    pitchf_slice = slice_segments2(pitchf, ids_slice, cfg["segment_size"])
    o = generator_nsf(params["dec"], z_slice, pitchf_slice, g, cfg, k_noise)
    return o, ids_slice, x_mask, y_mask, (z, z_p, m_p, logs_p, m_q, logs_q)


if __name__ == "__main__":
    cfg = CFG
    params = init_params(cfg, seed=0)

    key = jax.random.PRNGKey(0)
    kp, kpi, kpf, ky, kr = jax.random.split(key, 5)

    B, T = 2, 8
    phone = jax.random.normal(kp, (B, T, 768), F32)
    phone_lengths = jnp.array([T, T - 2], jnp.int32)
    pitch = jax.random.randint(kpi, (B, T), 1, 256)
    pitchf = jax.random.uniform(kpf, (B, T), F32, 80.0, 400.0)
    y = jax.random.normal(ky, (B, cfg["spec_channels"], T), F32)
    y_lengths = jnp.array([T, T - 2], jnp.int32)
    ds = jnp.array([0, 3], jnp.int32)

    @jax.jit
    def fwd(prm, ph, ph_len, pt, ptf, yy, yy_len, dss, rng):
        return synthesizer_forward(prm, CFG, ph, ph_len, pt, ptf, yy, yy_len, dss, rng)

    out = fwd(params, phone, phone_lengths, pitch, pitchf, y, y_lengths, ds, kr)
    out = jax.block_until_ready(out)
    o, ids_slice, x_mask, y_mask, extras = out
    assert o.shape == (B, 1, cfg["segment_size"] * int(np.prod(cfg["upsample_rates"])))
    assert extras[0].shape == (B, cfg["inter_channels"], T)
    print("KERNEL_OK")
</pallas_src>

<mosaic_0001>
module attributes {stable_mosaic.version = 11 : i64} {
  func.func @_conv1d_bias_kernel(%arg0: i32, %arg1: memref<1x64x8xf32, #tpu.memory_space<vmem>>, %arg2: memref<1x16x64xf32, #tpu.memory_space<vmem>>, %arg3: memref<16x1xf32, #tpu.memory_space<vmem>>, %arg4: memref<1x16x8xf32, #tpu.memory_space<vmem>>) attributes {dimension_semantics = [#tpu.dimension_semantics<parallel>], iteration_bounds = array<i64: 2>, scalar_prefetch = 0 : i64, scratch_operands = 0 : i64, tpu.core_type = #tpu.core_type<tc>, window_params = [{transform_indices = @transform_0, window_bounds = array<i64: 1, 64, 8>}, {pipeline_mode = #tpu.pipeline_mode<synchronous>, transform_indices = @transform_1, window_bounds = array<i64: 1, 16, 64>}, {pipeline_mode = #tpu.pipeline_mode<synchronous>, transform_indices = @transform_2, window_bounds = array<i64: 16, 1>}, {transform_indices = @transform_3, window_bounds = array<i64: 1, 16, 8>}]} {
    %c0 = arith.constant 0 : index
    %c0_0 = arith.constant 0 : index
    %c0_1 = arith.constant 0 : index
    %0 = vector.load %arg1[%c0, %c0_0, %c0_1] : memref<1x64x8xf32, #tpu.memory_space<vmem>>, vector<1x64x8xf32>
    %1 = vector.shape_cast %0 : vector<1x64x8xf32> to vector<64x8xf32>
    %2 = arith.truncf %1 : vector<64x8xf32> to vector<64x8xbf16>
    %c0_2 = arith.constant 0 : index
    %c0_3 = arith.constant 0 : index
    %3 = vector.load %arg3[%c0_2, %c0_3] : memref<16x1xf32, #tpu.memory_space<vmem>>, vector<16x1xf32>
    %4 = vector.shape_cast %3 : vector<16x1xf32> to vector<16x1xf32>
    %5 = vector.broadcast %4 : vector<16x1xf32> to vector<16x8xf32>
    %c0_4 = arith.constant 0 : index
    %c0_5 = arith.constant 0 : index
    %c0_6 = arith.constant 0 : index
    %6 = vector.load %arg2[%c0_4, %c0_5, %c0_6] : memref<1x16x64xf32, #tpu.memory_space<vmem>>, vector<1x16x64xf32>
    %7 = vector.shape_cast %6 : vector<1x16x64xf32> to vector<16x64xf32>
    %8 = arith.truncf %7 : vector<16x64xf32> to vector<16x64xbf16>
    %cst = arith.constant dense<0.000000e+00> : vector<16x8xf32>
    %9 = tpu.matmul %8, %2, %cst {dimension_numbers = #tpu.dot_dimension_numbers<[1], [0], [0], [1], [0, 0, 1, 1], [], []>} : vector<16x64xbf16>, vector<64x8xbf16>, vector<16x8xf32> -> vector<16x8xf32>
    %10 = arith.addf %5, %9 : vector<16x8xf32>
    %c0_7 = arith.constant 0 : index
    %c0_8 = arith.constant 0 : index
    %c0_9 = arith.constant 0 : index
    %11 = vector.load %arg4[%c0_7, %c0_8, %c0_9] : memref<1x16x8xf32, #tpu.memory_space<vmem>>, vector<1x16x8xf32>
    %12 = vector.shape_cast %11 : vector<1x16x8xf32> to vector<16x8xf32>
    %13 = vector.shape_cast %10 : vector<16x8xf32> to vector<1x16x8xf32>
    tpu.vector_store %arg4[%c0_7, %c0_8, %c0_9], %13 {strides = array<i32>} : memref<1x16x8xf32, #tpu.memory_space<vmem>>, vector<1x16x8xf32>,
    return
  }
  func.func @transform_0(%arg0: i32) -> (i32, i32, i32) {
    %c0_i32 = arith.constant 0 : i32
    %c0_i32_0 = arith.constant 0 : i32
    %c0_i32_1 = arith.constant 0 : i32
    return %arg0, %c0_i32, %c0_i32_0 : i32, i32, i32
  }
  func.func @transform_1(%arg0: i32) -> (i32, i32, i32) {
    %c0_i32 = arith.constant 0 : i32
    %c0_i32_0 = arith.constant 0 : i32
    %c0_i32_1 = arith.constant 0 : i32
    %c0_i32_2 = arith.constant 0 : i32
    return %c0_i32, %c0_i32_0, %c0_i32_1 : i32, i32, i32
  }
  func.func @transform_2(%arg0: i32) -> (i32, i32) {
    %c0_i32 = arith.constant 0 : i32
    %c0_i32_0 = arith.constant 0 : i32
    %c0_i32_1 = arith.constant 0 : i32
    return %c0_i32, %c0_i32_0 : i32, i32
  }
  func.func @transform_3(%arg0: i32) -> (i32, i32, i32) {
    %c0_i32 = arith.constant 0 : i32
    %c0_i32_0 = arith.constant 0 : i32
    %c0_i32_1 = arith.constant 0 : i32
    return %arg0, %c0_i32, %c0_i32_0 : i32, i32, i32
  }
}

module attributes {stable_mosaic.version = 11 : i64} {
  func.func @_conv1d_bias_kernel(%arg0: i32, %arg1: memref<1x16x8xf32, #tpu.memory_space<vmem>>, %arg2: memref<1x16x16xf32, #tpu.memory_space<vmem>>, %arg3: memref<16x1xf32, #tpu.memory_space<vmem>>, %arg4: memref<1x16x8xf32, #tpu.memory_space<vmem>>) attributes {dimension_semantics = [#tpu.dimension_semantics<parallel>], iteration_bounds = array<i64: 2>, scalar_prefetch = 0 : i64, scratch_operands = 0 : i64, tpu.core_type = #tpu.core_type<tc>, window_params = [{transform_indices = @transform_0, window_bounds = array<i64: 1, 16, 8>}, {pipeline_mode = #tpu.pipeline_mode<synchronous>, transform_indices = @transform_1, window_bounds = array<i64: 1, 16, 16>}, {pipeline_mode = #tpu.pipeline_mode<synchronous>, transform_indices = @transform_2, window_bounds = array<i64: 16, 1>}, {transform_indices = @transform_3, window_bounds = array<i64: 1, 16, 8>}]} {
    %c0 = arith.constant 0 : index
    %c0_0 = arith.constant 0 : index
    %c0_1 = arith.constant 0 : index
    %0 = vector.load %arg1[%c0, %c0_0, %c0_1] : memref<1x16x8xf32, #tpu.memory_space<vmem>>, vector<1x16x8xf32>
    %1 = vector.shape_cast %0 : vector<1x16x8xf32> to vector<16x8xf32>
    %2 = arith.truncf %1 : vector<16x8xf32> to vector<16x8xbf16>
    %c0_2 = arith.constant 0 : index
    %c0_3 = arith.constant 0 : index
    %3 = vector.load %arg3[%c0_2, %c0_3] : memref<16x1xf32, #tpu.memory_space<vmem>>, vector<16x1xf32>
    %4 = vector.shape_cast %3 : vector<16x1xf32> to vector<16x1xf32>
    %5 = vector.broadcast %4 : vector<16x1xf32> to vector<16x8xf32>
    %c0_4 = arith.constant 0 : index
    %c0_5 = arith.constant 0 : index
    %c0_6 = arith.constant 0 : index
    %6 = vector.load %arg2[%c0_4, %c0_5, %c0_6] : memref<1x16x16xf32, #tpu.memory_space<vmem>>, vector<1x16x16xf32>
    %7 = vector.shape_cast %6 : vector<1x16x16xf32> to vector<16x16xf32>
    %8 = arith.truncf %7 : vector<16x16xf32> to vector<16x16xbf16>
    %cst = arith.constant dense<0.000000e+00> : vector<16x8xf32>
    %9 = tpu.matmul %8, %2, %cst {dimension_numbers = #tpu.dot_dimension_numbers<[1], [0], [0], [1], [0, 0, 1, 1], [], []>} : vector<16x16xbf16>, vector<16x8xbf16>, vector<16x8xf32> -> vector<16x8xf32>
    %10 = arith.addf %5, %9 : vector<16x8xf32>
    %c0_7 = arith.constant 0 : index
    %c0_8 = arith.constant 0 : index
    %c0_9 = arith.constant 0 : index
    %11 = vector.load %arg4[%c0_7, %c0_8, %c0_9] : memref<1x16x8xf32, #tpu.memory_space<vmem>>, vector<1x16x8xf32>
    %12 = vector.shape_cast %11 : vector<1x16x8xf32> to vector<16x8xf32>
    %13 = vector.shape_cast %10 : vector<16x8xf32> to vector<1x16x8xf32>
    tpu.vector_store %arg4[%c0_7, %c0_8, %c0_9], %13 {strides = array<i32>} : memref<1x16x8xf32, #tpu.memory_space<vmem>>, vector<1x16x8xf32>,
    return
  }
  func.func @transform_0(%arg0: i32) -> (i32, i32, i32) {
    %c0_i32 = arith.constant 0 : i32
    %c0_i32_0 = arith.constant 0 : i32
    %c0_i32_1 = arith.constant 0 : i32
    return %arg0, %c0_i32, %c0_i32_0 : i32, i32, i32
  }
  func.func @transform_1(%arg0: i32) -> (i32, i32, i32) {
    %c0_i32 = arith.constant 0 : i32
    %c0_i32_0 = arith.constant 0 : i32
    %c0_i32_1 = arith.constant 0 : i32
    %c0_i32_2 = arith.constant 0 : i32
    return %c0_i32, %c0_i32_0, %c0_i32_1 : i32, i32, i32
  }
  func.func @transform_2(%arg0: i32) -> (i32, i32) {
    %c0_i32 = arith.constant 0 : i32
    %c0_i32_0 = arith.constant 0 : i32
    %c0_i32_1 = arith.constant 0 : i32
    return %c0_i32, %c0_i32_0 : i32, i32
  }
  func.func @transform_3(%arg0: i32) -> (i32, i32, i32) {
    %c0_i32 = arith.constant 0 : i32
    %c0_i32_0 = arith.constant 0 : i32
    %c0_i32_1 = arith.constant 0 : i32
    return %arg0, %c0_i32, %c0_i32_0 : i32, i32, i32
  }
}

module attributes {stable_mosaic.version = 11 : i64} {
  func.func @_wn_layer_kernel(%arg0: i32, %arg1: memref<1x16x12xf32, #tpu.memory_space<vmem>>, %arg2: memref<1x16x8xf32, #tpu.memory_space<vmem>>, %arg3: memref<1x32x1xf32, #tpu.memory_space<vmem>>, %arg4: memref<1x1x8xf32, #tpu.memory_space<vmem>>, %arg5: memref<5x32x16xf32, #tpu.memory_space<vmem>>, %arg6: memref<32x1xf32, #tpu.memory_space<vmem>>, %arg7: memref<16x16xf32, #tpu.memory_space<vmem>>, %arg8: memref<16x1xf32, #tpu.memory_space<vmem>>, %arg9: memref<1x16x8xf32, #tpu.memory_space<vmem>>, %arg10: memref<1x16x8xf32, #tpu.memory_space<vmem>>) attributes {dimension_semantics = [#tpu.dimension_semantics<parallel>], iteration_bounds = array<i64: 2>, scalar_prefetch = 0 : i64, scratch_operands = 0 : i64, tpu.core_type = #tpu.core_type<tc>, window_params = [{transform_indices = @transform_0, window_bounds = array<i64: 1, 16, 12>}, {transform_indices = @transform_1, window_bounds = array<i64: 1, 16, 8>}, {transform_indices = @transform_2, window_bounds = array<i64: 1, 32, 1>}, {transform_indices = @transform_3, window_bounds = array<i64: 1, 1, 8>}, {pipeline_mode = #tpu.pipeline_mode<synchronous>, transform_indices = @transform_4, window_bounds = array<i64: 5, 32, 16>}, {pipeline_mode = #tpu.pipeline_mode<synchronous>, transform_indices = @transform_5, window_bounds = array<i64: 32, 1>}, {pipeline_mode = #tpu.pipeline_mode<synchronous>, transform_indices = @transform_6, window_bounds = array<i64: 16, 16>}, {pipeline_mode = #tpu.pipeline_mode<synchronous>, transform_indices = @transform_7, window_bounds = array<i64: 16, 1>}, {transform_indices = @transform_8, window_bounds = array<i64: 1, 16, 8>}, {transform_indices = @transform_9, window_bounds = array<i64: 1, 16, 8>}]} {
    %c0 = arith.constant 0 : index
    %c0_0 = arith.constant 0 : index
    %c0_1 = arith.constant 0 : index
    %0 = vector.load %arg1[%c0, %c0_0, %c0_1] : memref<1x16x12xf32, #tpu.memory_space<vmem>>, vector<1x16x12xf32>
    %1 = vector.shape_cast %0 : vector<1x16x12xf32> to vector<16x12xf32>
    %c0_2 = arith.constant 0 : index
    %c0_3 = arith.constant 0 : index
    %2 = vector.load %arg6[%c0_2, %c0_3] : memref<32x1xf32, #tpu.memory_space<vmem>>, vector<32x1xf32>
    %c0_4 = arith.constant 0 : index
    %c0_5 = arith.constant 0 : index
    %c0_6 = arith.constant 0 : index
    %3 = vector.load %arg3[%c0_4, %c0_5, %c0_6] : memref<1x32x1xf32, #tpu.memory_space<vmem>>, vector<1x32x1xf32>
    %4 = vector.shape_cast %3 : vector<1x32x1xf32> to vector<32x1xf32>
    %5 = arith.addf %2, %4 : vector<32x1xf32>
    %6 = vector.shape_cast %5 : vector<32x1xf32> to vector<32x1xf32>
    %7 = vector.broadcast %6 : vector<32x1xf32> to vector<32x8xf32>
    %8 = arith.truncf %1 : vector<16x12xf32> to vector<16x12xbf16>
    %c0_7 = arith.constant 0 : index
    %c0_8 = arith.constant 0 : index
    %c0_9 = arith.constant 0 : index
    %9 = vector.load %arg5[%c0_7, %c0_8, %c0_9] : memref<5x32x16xf32, #tpu.memory_space<vmem>>, vector<1x32x16xf32>
    %10 = vector.shape_cast %9 : vector<1x32x16xf32> to vector<32x16xf32>
    %11 = arith.truncf %10 : vector<32x16xf32> to vector<32x16xbf16>
    %12 = vector.extract_strided_slice %8 {offsets = [0, 0], sizes = [16, 8], strides = [1, 1]} : vector<16x12xbf16> to vector<16x8xbf16>
    %cst = arith.constant dense<0.000000e+00> : vector<32x8xf32>
    %13 = tpu.matmul %11, %12, %cst {dimension_numbers = #tpu.dot_dimension_numbers<[1], [0], [0], [1], [0, 0, 1, 1], [], []>} : vector<32x16xbf16>, vector<16x8xbf16>, vector<32x8xf32> -> vector<32x8xf32>
    %14 = arith.addf %7, %13 : vector<32x8xf32>
    %c1 = arith.constant 1 : index
    %c0_10 = arith.constant 0 : index
    %c0_11 = arith.constant 0 : index
    %15 = vector.load %arg5[%c1, %c0_10, %c0_11] : memref<5x32x16xf32, #tpu.memory_space<vmem>>, vector<1x32x16xf32>
    %16 = vector.shape_cast %15 : vector<1x32x16xf32> to vector<32x16xf32>
    %17 = arith.truncf %16 : vector<32x16xf32> to vector<32x16xbf16>
    %18 = vector.extract_strided_slice %8 {offsets = [0, 1], sizes = [16, 8], strides = [1, 1]} : vector<16x12xbf16> to vector<16x8xbf16>
    %cst_12 = arith.constant dense<0.000000e+00> : vector<32x8xf32>
    %19 = tpu.matmul %17, %18, %cst_12 {dimension_numbers = #tpu.dot_dimension_numbers<[1], [0], [0], [1], [0, 0, 1, 1], [], []>} : vector<32x16xbf16>, vector<16x8xbf16>, vector<32x8xf32> -> vector<32x8xf32>
    %20 = arith.addf %14, %19 : vector<32x8xf32>
    %c2 = arith.constant 2 : index
    %c0_13 = arith.constant 0 : index
    %c0_14 = arith.constant 0 : index
    %21 = vector.load %arg5[%c2, %c0_13, %c0_14] : memref<5x32x16xf32, #tpu.memory_space<vmem>>, vector<1x32x16xf32>
    %22 = vector.shape_cast %21 : vector<1x32x16xf32> to vector<32x16xf32>
    %23 = arith.truncf %22 : vector<32x16xf32> to vector<32x16xbf16>
    %24 = vector.extract_strided_slice %8 {offsets = [0, 2], sizes = [16, 8], strides = [1, 1]} : vector<16x12xbf16> to vector<16x8xbf16>
    %cst_15 = arith.constant dense<0.000000e+00> : vector<32x8xf32>
    %25 = tpu.matmul %23, %24, %cst_15 {dimension_numbers = #tpu.dot_dimension_numbers<[1], [0], [0], [1], [0, 0, 1, 1], [], []>} : vector<32x16xbf16>, vector<16x8xbf16>, vector<32x8xf32> -> vector<32x8xf32>
    %26 = arith.addf %20, %25 : vector<32x8xf32>
    %c3 = arith.constant 3 : index
    %c0_16 = arith.constant 0 : index
    %c0_17 = arith.constant 0 : index
    %27 = vector.load %arg5[%c3, %c0_16, %c0_17] : memref<5x32x16xf32, #tpu.memory_space<vmem>>, vector<1x32x16xf32>
    %28 = vector.shape_cast %27 : vector<1x32x16xf32> to vector<32x16xf32>
    %29 = arith.truncf %28 : vector<32x16xf32> to vector<32x16xbf16>
    %30 = vector.extract_strided_slice %8 {offsets = [0, 3], sizes = [16, 8], strides = [1, 1]} : vector<16x12xbf16> to vector<16x8xbf16>
    %cst_18 = arith.constant dense<0.000000e+00> : vector<32x8xf32>
    %31 = tpu.matmul %29, %30, %cst_18 {dimension_numbers = #tpu.dot_dimension_numbers<[1], [0], [0], [1], [0, 0, 1, 1], [], []>} : vector<32x16xbf16>, vector<16x8xbf16>, vector<32x8xf32> -> vector<32x8xf32>
    %32 = arith.addf %26, %31 : vector<32x8xf32>
    %c4 = arith.constant 4 : index
    %c0_19 = arith.constant 0 : index
    %c0_20 = arith.constant 0 : index
    %33 = vector.load %arg5[%c4, %c0_19, %c0_20] : memref<5x32x16xf32, #tpu.memory_space<vmem>>, vector<1x32x16xf32>
    %34 = vector.shape_cast %33 : vector<1x32x16xf32> to vector<32x16xf32>
    %35 = arith.truncf %34 : vector<32x16xf32> to vector<32x16xbf16>
    %36 = vector.extract_strided_slice %8 {offsets = [0, 4], sizes = [16, 8], strides = [1, 1]} : vector<16x12xbf16> to vector<16x8xbf16>
    %cst_21 = arith.constant dense<0.000000e+00> : vector<32x8xf32>
    %37 = tpu.matmul %35, %36, %cst_21 {dimension_numbers = #tpu.dot_dimension_numbers<[1], [0], [0], [1], [0, 0, 1, 1], [], []>} : vector<32x16xbf16>, vector<16x8xbf16>, vector<32x8xf32> -> vector<32x8xf32>
    %38 = arith.addf %32, %37 : vector<32x8xf32>
    %39 = vector.extract_strided_slice %38 {offsets = [0, 0], sizes = [16, 8], strides = [1, 1]} : vector<32x8xf32> to vector<16x8xf32>
    %40 = math.tanh %39 : vector<16x8xf32>
    %41 = vector.extract_strided_slice %38 {offsets = [16, 0], sizes = [16, 8], strides = [1, 1]} : vector<32x8xf32> to vector<16x8xf32>
    %42 = arith.negf %41 : vector<16x8xf32>
    %43 = math.exp %42 : vector<16x8xf32>
    %cst_22 = arith.constant 1.000000e+00 : f32
    %44 = vector.broadcast %cst_22 : f32 to vector<16x8xf32>
    %45 = arith.addf %44, %43 : vector<16x8xf32>
    %46 = arith.divf %44, %45 : vector<16x8xf32>
    %47 = arith.mulf %40, %46 : vector<16x8xf32>
    %c0_23 = arith.constant 0 : index
    %c0_24 = arith.constant 0 : index
    %48 = vector.load %arg7[%c0_23, %c0_24] : memref<16x16xf32, #tpu.memory_space<vmem>>, vector<16x16xf32>
    %49 = arith.truncf %48 : vector<16x16xf32> to vector<16x16xbf16>
    %50 = arith.truncf %47 : vector<16x8xf32> to vector<16x8xbf16>
    %cst_25 = arith.constant dense<0.000000e+00> : vector<16x8xf32>
    %51 = tpu.matmul %49, %50, %cst_25 {dimension_numbers = #tpu.dot_dimension_numbers<[1], [0], [0], [1], [0, 0, 1, 1], [], []>} : vector<16x16xbf16>, vector<16x8xbf16>, vector<16x8xf32> -> vector<16x8xf32>
    %c0_26 = arith.constant 0 : index
    %c0_27 = arith.constant 0 : index
    %52 = vector.load %arg8[%c0_26, %c0_27] : memref<16x1xf32, #tpu.memory_space<vmem>>, vector<16x1xf32>
    %53 = vector.broadcast %52 : vector<16x1xf32> to vector<16x8xf32>
    %54 = arith.addf %51, %53 : vector<16x8xf32>
    %c0_28 = arith.constant 0 : index
    %c0_29 = arith.constant 0 : index
    %c0_30 = arith.constant 0 : index
    %55 = vector.load %arg4[%c0_28, %c0_29, %c0_30] : memref<1x1x8xf32, #tpu.memory_space<vmem>>, vector<1x1x8xf32>
    %56 = vector.shape_cast %55 : vector<1x1x8xf32> to vector<1x8xf32>
    %57 = vector.extract_strided_slice %1 {offsets = [0, 2], sizes = [16, 8], strides = [1, 1]} : vector<16x12xf32> to vector<16x8xf32>
    %c0_31 = arith.constant 0 : index
    %c0_32 = arith.constant 0 : index
    %c0_33 = arith.constant 0 : index
    %58 = vector.load %arg9[%c0_31, %c0_32, %c0_33] : memref<1x16x8xf32, #tpu.memory_space<vmem>>, vector<1x16x8xf32>
    %59 = vector.shape_cast %58 : vector<1x16x8xf32> to vector<16x8xf32>
    %60 = vector.shape_cast %57 : vector<16x8xf32> to vector<1x16x8xf32>
    tpu.vector_store %arg9[%c0_31, %c0_32, %c0_33], %60 {strides = array<i32>} : memref<1x16x8xf32, #tpu.memory_space<vmem>>, vector<1x16x8xf32>,
    %c0_34 = arith.constant 0 : index
    %c0_35 = arith.constant 0 : index
    %c0_36 = arith.constant 0 : index
    %61 = vector.load %arg2[%c0_34, %c0_35, %c0_36] : memref<1x16x8xf32, #tpu.memory_space<vmem>>, vector<1x16x8xf32>
    %62 = vector.shape_cast %61 : vector<1x16x8xf32> to vector<16x8xf32>
    %63 = arith.addf %62, %54 : vector<16x8xf32>
    %64 = vector.broadcast %56 : vector<1x8xf32> to vector<16x8xf32>
    %65 = arith.mulf %63, %64 : vector<16x8xf32>
    %c0_37 = arith.constant 0 : index
    %c0_38 = arith.constant 0 : index
    %c0_39 = arith.constant 0 : index
    %66 = vector.load %arg10[%c0_37, %c0_38, %c0_39] : memref<1x16x8xf32, #tpu.memory_space<vmem>>, vector<1x16x8xf32>
    %67 = vector.shape_cast %66 : vector<1x16x8xf32> to vector<16x8xf32>
    %68 = vector.shape_cast %65 : vector<16x8xf32> to vector<1x16x8xf32>
    tpu.vector_store %arg10[%c0_37, %c0_38, %c0_39], %68 {strides = array<i32>} : memref<1x16x8xf32, #tpu.memory_space<vmem>>, vector<1x16x8xf32>,
    return
  }
  func.func @transform_0(%arg0: i32) -> (i32, i32, i32) {
    %c0_i32 = arith.constant 0 : i32
    %c0_i32_0 = arith.constant 0 : i32
    %c0_i32_1 = arith.constant 0 : i32
    return %arg0, %c0_i32, %c0_i32_0 : i32, i32, i32
  }
  func.func @transform_1(%arg0: i32) -> (i32, i32, i32) {
    %c0_i32 = arith.constant 0 : i32
    %c0_i32_0 = arith.constant 0 : i32
    %c0_i32_1 = arith.constant 0 : i32
    return %arg0, %c0_i32, %c0_i32_0 : i32, i32, i32
  }
  func.func @transform_2(%arg0: i32) -> (i32, i32, i32) {
    %c0_i32 = arith.constant 0 : i32
    %c0_i32_0 = arith.constant 0 : i32
    %c0_i32_1 = arith.constant 0 : i32
    return %arg0, %c0_i32, %c0_i32_0 : i32, i32, i32
  }
  func.func @transform_3(%arg0: i32) -> (i32, i32, i32) {
    %c0_i32 = arith.constant 0 : i32
    %c0_i32_0 = arith.constant 0 : i32
    %c0_i32_1 = arith.constant 0 : i32
    return %arg0, %c0_i32, %c0_i32_0 : i32, i32, i32
  }
  func.func @transform_4(%arg0: i32) -> (i32, i32, i32) {
    %c0_i32 = arith.constant 0 : i32
    %c0_i32_0 = arith.constant 0 : i32
    %c0_i32_1 = arith.constant 0 : i32
    %c0_i32_2 = arith.constant 0 : i32
    return %c0_i32, %c0_i32_0, %c0_i32_1 : i32, i32, i32
  }
  func.func @transform_5(%arg0: i32) -> (i32, i32) {
    %c0_i32 = arith.constant 0 : i32
    %c0_i32_0 = arith.constant 0 : i32
    %c0_i32_1 = arith.constant 0 : i32
    return %c0_i32, %c0_i32_0 : i32, i32
  }
  func.func @transform_6(%arg0: i32) -> (i32, i32) {
    %c0_i32 = arith.constant 0 : i32
    %c0_i32_0 = arith.constant 0 : i32
    %c0_i32_1 = arith.constant 0 : i32
    return %c0_i32, %c0_i32_0 : i32, i32
  }
  func.func @transform_7(%arg0: i32) -> (i32, i32) {
    %c0_i32 = arith.constant 0 : i32
    %c0_i32_0 = arith.constant 0 : i32
    %c0_i32_1 = arith.constant 0 : i32
    return %c0_i32, %c0_i32_0 : i32, i32
  }
  func.func @transform_8(%arg0: i32) -> (i32, i32, i32) {
    %c0_i32 = arith.constant 0 : i32
    %c0_i32_0 = arith.constant 0 : i32
    %c0_i32_1 = arith.constant 0 : i32
    return %arg0, %c0_i32, %c0_i32_0 : i32, i32, i32
  }
  func.func @transform_9(%arg0: i32) -> (i32, i32, i32) {
    %c0_i32 = arith.constant 0 : i32
    %c0_i32_0 = arith.constant 0 : i32
    %c0_i32_1 = arith.constant 0 : i32
    return %arg0, %c0_i32, %c0_i32_0 : i32, i32, i32
  }
}

module attributes {stable_mosaic.version = 11 : i64} {
  func.func @_wn_layer_kernel(%arg0: i32, %arg1: memref<1x16x12xf32, #tpu.memory_space<vmem>>, %arg2: memref<1x16x8xf32, #tpu.memory_space<vmem>>, %arg3: memref<1x32x1xf32, #tpu.memory_space<vmem>>, %arg4: memref<1x1x8xf32, #tpu.memory_space<vmem>>, %arg5: memref<5x32x16xf32, #tpu.memory_space<vmem>>, %arg6: memref<32x1xf32, #tpu.memory_space<vmem>>, %arg7: memref<32x16xf32, #tpu.memory_space<vmem>>, %arg8: memref<32x1xf32, #tpu.memory_space<vmem>>, %arg9: memref<1x16x8xf32, #tpu.memory_space<vmem>>, %arg10: memref<1x16x8xf32, #tpu.memory_space<vmem>>) attributes {dimension_semantics = [#tpu.dimension_semantics<parallel>], iteration_bounds = array<i64: 2>, scalar_prefetch = 0 : i64, scratch_operands = 0 : i64, tpu.core_type = #tpu.core_type<tc>, window_params = [{transform_indices = @transform_0, window_bounds = array<i64: 1, 16, 12>}, {transform_indices = @transform_1, window_bounds = array<i64: 1, 16, 8>}, {transform_indices = @transform_2, window_bounds = array<i64: 1, 32, 1>}, {transform_indices = @transform_3, window_bounds = array<i64: 1, 1, 8>}, {pipeline_mode = #tpu.pipeline_mode<synchronous>, transform_indices = @transform_4, window_bounds = array<i64: 5, 32, 16>}, {pipeline_mode = #tpu.pipeline_mode<synchronous>, transform_indices = @transform_5, window_bounds = array<i64: 32, 1>}, {pipeline_mode = #tpu.pipeline_mode<synchronous>, transform_indices = @transform_6, window_bounds = array<i64: 32, 16>}, {pipeline_mode = #tpu.pipeline_mode<synchronous>, transform_indices = @transform_7, window_bounds = array<i64: 32, 1>}, {transform_indices = @transform_8, window_bounds = array<i64: 1, 16, 8>}, {transform_indices = @transform_9, window_bounds = array<i64: 1, 16, 8>}]} {
    %c0 = arith.constant 0 : index
    %c0_0 = arith.constant 0 : index
    %c0_1 = arith.constant 0 : index
    %0 = vector.load %arg1[%c0, %c0_0, %c0_1] : memref<1x16x12xf32, #tpu.memory_space<vmem>>, vector<1x16x12xf32>
    %1 = vector.shape_cast %0 : vector<1x16x12xf32> to vector<16x12xf32>
    %c0_2 = arith.constant 0 : index
    %c0_3 = arith.constant 0 : index
    %2 = vector.load %arg6[%c0_2, %c0_3] : memref<32x1xf32, #tpu.memory_space<vmem>>, vector<32x1xf32>
    %c0_4 = arith.constant 0 : index
    %c0_5 = arith.constant 0 : index
    %c0_6 = arith.constant 0 : index
    %3 = vector.load %arg3[%c0_4, %c0_5, %c0_6] : memref<1x32x1xf32, #tpu.memory_space<vmem>>, vector<1x32x1xf32>
    %4 = vector.shape_cast %3 : vector<1x32x1xf32> to vector<32x1xf32>
    %5 = arith.addf %2, %4 : vector<32x1xf32>
    %6 = vector.shape_cast %5 : vector<32x1xf32> to vector<32x1xf32>
    %7 = vector.broadcast %6 : vector<32x1xf32> to vector<32x8xf32>
    %8 = arith.truncf %1 : vector<16x12xf32> to vector<16x12xbf16>
    %c0_7 = arith.constant 0 : index
    %c0_8 = arith.constant 0 : index
    %c0_9 = arith.constant 0 : index
    %9 = vector.load %arg5[%c0_7, %c0_8, %c0_9] : memref<5x32x16xf32, #tpu.memory_space<vmem>>, vector<1x32x16xf32>
    %10 = vector.shape_cast %9 : vector<1x32x16xf32> to vector<32x16xf32>
    %11 = arith.truncf %10 : vector<32x16xf32> to vector<32x16xbf16>
    %12 = vector.extract_strided_slice %8 {offsets = [0, 0], sizes = [16, 8], strides = [1, 1]} : vector<16x12xbf16> to vector<16x8xbf16>
    %cst = arith.constant dense<0.000000e+00> : vector<32x8xf32>
    %13 = tpu.matmul %11, %12, %cst {dimension_numbers = #tpu.dot_dimension_numbers<[1], [0], [0], [1], [0, 0, 1, 1], [], []>} : vector<32x16xbf16>, vector<16x8xbf16>, vector<32x8xf32> -> vector<32x8xf32>
    %14 = arith.addf %7, %13 : vector<32x8xf32>
    %c1 = arith.constant 1 : index
    %c0_10 = arith.constant 0 : index
    %c0_11 = arith.constant 0 : index
    %15 = vector.load %arg5[%c1, %c0_10, %c0_11] : memref<5x32x16xf32, #tpu.memory_space<vmem>>, vector<1x32x16xf32>
    %16 = vector.shape_cast %15 : vector<1x32x16xf32> to vector<32x16xf32>
    %17 = arith.truncf %16 : vector<32x16xf32> to vector<32x16xbf16>
    %18 = vector.extract_strided_slice %8 {offsets = [0, 1], sizes = [16, 8], strides = [1, 1]} : vector<16x12xbf16> to vector<16x8xbf16>
    %cst_12 = arith.constant dense<0.000000e+00> : vector<32x8xf32>
    %19 = tpu.matmul %17, %18, %cst_12 {dimension_numbers = #tpu.dot_dimension_numbers<[1], [0], [0], [1], [0, 0, 1, 1], [], []>} : vector<32x16xbf16>, vector<16x8xbf16>, vector<32x8xf32> -> vector<32x8xf32>
    %20 = arith.addf %14, %19 : vector<32x8xf32>
    %c2 = arith.constant 2 : index
    %c0_13 = arith.constant 0 : index
    %c0_14 = arith.constant 0 : index
    %21 = vector.load %arg5[%c2, %c0_13, %c0_14] : memref<5x32x16xf32, #tpu.memory_space<vmem>>, vector<1x32x16xf32>
    %22 = vector.shape_cast %21 : vector<1x32x16xf32> to vector<32x16xf32>
    %23 = arith.truncf %22 : vector<32x16xf32> to vector<32x16xbf16>
    %24 = vector.extract_strided_slice %8 {offsets = [0, 2], sizes = [16, 8], strides = [1, 1]} : vector<16x12xbf16> to vector<16x8xbf16>
    %cst_15 = arith.constant dense<0.000000e+00> : vector<32x8xf32>
    %25 = tpu.matmul %23, %24, %cst_15 {dimension_numbers = #tpu.dot_dimension_numbers<[1], [0], [0], [1], [0, 0, 1, 1], [], []>} : vector<32x16xbf16>, vector<16x8xbf16>, vector<32x8xf32> -> vector<32x8xf32>
    %26 = arith.addf %20, %25 : vector<32x8xf32>
    %c3 = arith.constant 3 : index
    %c0_16 = arith.constant 0 : index
    %c0_17 = arith.constant 0 : index
    %27 = vector.load %arg5[%c3, %c0_16, %c0_17] : memref<5x32x16xf32, #tpu.memory_space<vmem>>, vector<1x32x16xf32>
    %28 = vector.shape_cast %27 : vector<1x32x16xf32> to vector<32x16xf32>
    %29 = arith.truncf %28 : vector<32x16xf32> to vector<32x16xbf16>
    %30 = vector.extract_strided_slice %8 {offsets = [0, 3], sizes = [16, 8], strides = [1, 1]} : vector<16x12xbf16> to vector<16x8xbf16>
    %cst_18 = arith.constant dense<0.000000e+00> : vector<32x8xf32>
    %31 = tpu.matmul %29, %30, %cst_18 {dimension_numbers = #tpu.dot_dimension_numbers<[1], [0], [0], [1], [0, 0, 1, 1], [], []>} : vector<32x16xbf16>, vector<16x8xbf16>, vector<32x8xf32> -> vector<32x8xf32>
    %32 = arith.addf %26, %31 : vector<32x8xf32>
    %c4 = arith.constant 4 : index
    %c0_19 = arith.constant 0 : index
    %c0_20 = arith.constant 0 : index
    %33 = vector.load %arg5[%c4, %c0_19, %c0_20] : memref<5x32x16xf32, #tpu.memory_space<vmem>>, vector<1x32x16xf32>
    %34 = vector.shape_cast %33 : vector<1x32x16xf32> to vector<32x16xf32>
    %35 = arith.truncf %34 : vector<32x16xf32> to vector<32x16xbf16>
    %36 = vector.extract_strided_slice %8 {offsets = [0, 4], sizes = [16, 8], strides = [1, 1]} : vector<16x12xbf16> to vector<16x8xbf16>
    %cst_21 = arith.constant dense<0.000000e+00> : vector<32x8xf32>
    %37 = tpu.matmul %35, %36, %cst_21 {dimension_numbers = #tpu.dot_dimension_numbers<[1], [0], [0], [1], [0, 0, 1, 1], [], []>} : vector<32x16xbf16>, vector<16x8xbf16>, vector<32x8xf32> -> vector<32x8xf32>
    %38 = arith.addf %32, %37 : vector<32x8xf32>
    %39 = vector.extract_strided_slice %38 {offsets = [0, 0], sizes = [16, 8], strides = [1, 1]} : vector<32x8xf32> to vector<16x8xf32>
    %40 = math.tanh %39 : vector<16x8xf32>
    %41 = vector.extract_strided_slice %38 {offsets = [16, 0], sizes = [16, 8], strides = [1, 1]} : vector<32x8xf32> to vector<16x8xf32>
    %42 = arith.negf %41 : vector<16x8xf32>
    %43 = math.exp %42 : vector<16x8xf32>
    %cst_22 = arith.constant 1.000000e+00 : f32
    %44 = vector.broadcast %cst_22 : f32 to vector<16x8xf32>
    %45 = arith.addf %44, %43 : vector<16x8xf32>
    %46 = arith.divf %44, %45 : vector<16x8xf32>
    %47 = arith.mulf %40, %46 : vector<16x8xf32>
    %c0_23 = arith.constant 0 : index
    %c0_24 = arith.constant 0 : index
    %48 = vector.load %arg7[%c0_23, %c0_24] : memref<32x16xf32, #tpu.memory_space<vmem>>, vector<32x16xf32>
    %49 = arith.truncf %48 : vector<32x16xf32> to vector<32x16xbf16>
    %50 = arith.truncf %47 : vector<16x8xf32> to vector<16x8xbf16>
    %cst_25 = arith.constant dense<0.000000e+00> : vector<32x8xf32>
    %51 = tpu.matmul %49, %50, %cst_25 {dimension_numbers = #tpu.dot_dimension_numbers<[1], [0], [0], [1], [0, 0, 1, 1], [], []>} : vector<32x16xbf16>, vector<16x8xbf16>, vector<32x8xf32> -> vector<32x8xf32>
    %c0_26 = arith.constant 0 : index
    %c0_27 = arith.constant 0 : index
    %52 = vector.load %arg8[%c0_26, %c0_27] : memref<32x1xf32, #tpu.memory_space<vmem>>, vector<32x1xf32>
    %53 = vector.broadcast %52 : vector<32x1xf32> to vector<32x8xf32>
    %54 = arith.addf %51, %53 : vector<32x8xf32>
    %c0_28 = arith.constant 0 : index
    %c0_29 = arith.constant 0 : index
    %c0_30 = arith.constant 0 : index
    %55 = vector.load %arg4[%c0_28, %c0_29, %c0_30] : memref<1x1x8xf32, #tpu.memory_space<vmem>>, vector<1x1x8xf32>
    %56 = vector.shape_cast %55 : vector<1x1x8xf32> to vector<1x8xf32>
    %57 = vector.extract_strided_slice %1 {offsets = [0, 2], sizes = [16, 8], strides = [1, 1]} : vector<16x12xf32> to vector<16x8xf32>
    %58 = vector.extract_strided_slice %54 {offsets = [0, 0], sizes = [16, 8], strides = [1, 1]} : vector<32x8xf32> to vector<16x8xf32>
    %59 = arith.addf %57, %58 : vector<16x8xf32>
    %60 = vector.broadcast %56 : vector<1x8xf32> to vector<16x8xf32>
    %61 = arith.mulf %59, %60 : vector<16x8xf32>
    %c0_31 = arith.constant 0 : index
    %c0_32 = arith.constant 0 : index
    %c0_33 = arith.constant 0 : index
    %62 = vector.load %arg9[%c0_31, %c0_32, %c0_33] : memref<1x16x8xf32, #tpu.memory_space<vmem>>, vector<1x16x8xf32>
    %63 = vector.shape_cast %62 : vector<1x16x8xf32> to vector<16x8xf32>
    %64 = vector.shape_cast %61 : vector<16x8xf32> to vector<1x16x8xf32>
    tpu.vector_store %arg9[%c0_31, %c0_32, %c0_33], %64 {strides = array<i32>} : memref<1x16x8xf32, #tpu.memory_space<vmem>>, vector<1x16x8xf32>,
    %c0_34 = arith.constant 0 : index
    %c0_35 = arith.constant 0 : index
    %c0_36 = arith.constant 0 : index
    %65 = vector.load %arg2[%c0_34, %c0_35, %c0_36] : memref<1x16x8xf32, #tpu.memory_space<vmem>>, vector<1x16x8xf32>
    %66 = vector.shape_cast %65 : vector<1x16x8xf32> to vector<16x8xf32>
    %67 = vector.extract_strided_slice %54 {offsets = [16, 0], sizes = [16, 8], strides = [1, 1]} : vector<32x8xf32> to vector<16x8xf32>
    %68 = arith.addf %66, %67 : vector<16x8xf32>
    %c0_37 = arith.constant 0 : index
    %c0_38 = arith.constant 0 : index
    %c0_39 = arith.constant 0 : index
    %69 = vector.load %arg10[%c0_37, %c0_38, %c0_39] : memref<1x16x8xf32, #tpu.memory_space<vmem>>, vector<1x16x8xf32>
    %70 = vector.shape_cast %69 : vector<1x16x8xf32> to vector<16x8xf32>
    %71 = vector.shape_cast %68 : vector<16x8xf32> to vector<1x16x8xf32>
    tpu.vector_store %arg10[%c0_37, %c0_38, %c0_39], %71 {strides = array<i32>} : memref<1x16x8xf32, #tpu.memory_space<vmem>>, vector<1x16x8xf32>,
    return
  }
  func.func @transform_0(%arg0: i32) -> (i32, i32, i32) {
    %c0_i32 = arith.constant 0 : i32
    %c0_i32_0 = arith.constant 0 : i32
    %c0_i32_1 = arith.constant 0 : i32
    return %arg0, %c0_i32, %c0_i32_0 : i32, i32, i32
  }
  func.func @transform_1(%arg0: i32) -> (i32, i32, i32) {
    %c0_i32 = arith.constant 0 : i32
    %c0_i32_0 = arith.constant 0 : i32
    %c0_i32_1 = arith.constant 0 : i32
    return %arg0, %c0_i32, %c0_i32_0 : i32, i32, i32
  }
  func.func @transform_2(%arg0: i32) -> (i32, i32, i32) {
    %c0_i32 = arith.constant 0 : i32
    %c0_i32_0 = arith.constant 0 : i32
    %c0_i32_1 = arith.constant 0 : i32
    return %arg0, %c0_i32, %c0_i32_0 : i32, i32, i32
  }
  func.func @transform_3(%arg0: i32) -> (i32, i32, i32) {
    %c0_i32 = arith.constant 0 : i32
    %c0_i32_0 = arith.constant 0 : i32
    %c0_i32_1 = arith.constant 0 : i32
    return %arg0, %c0_i32, %c0_i32_0 : i32, i32, i32
  }
  func.func @transform_4(%arg0: i32) -> (i32, i32, i32) {
    %c0_i32 = arith.constant 0 : i32
    %c0_i32_0 = arith.constant 0 : i32
    %c0_i32_1 = arith.constant 0 : i32
    %c0_i32_2 = arith.constant 0 : i32
    return %c0_i32, %c0_i32_0, %c0_i32_1 : i32, i32, i32
  }
  func.func @transform_5(%arg0: i32) -> (i32, i32) {
    %c0_i32 = arith.constant 0 : i32
    %c0_i32_0 = arith.constant 0 : i32
    %c0_i32_1 = arith.constant 0 : i32
    return %c0_i32, %c0_i32_0 : i32, i32
  }
  func.func @transform_6(%arg0: i32) -> (i32, i32) {
    %c0_i32 = arith.constant 0 : i32
    %c0_i32_0 = arith.constant 0 : i32
    %c0_i32_1 = arith.constant 0 : i32
    return %c0_i32, %c0_i32_0 : i32, i32
  }
  func.func @transform_7(%arg0: i32) -> (i32, i32) {
    %c0_i32 = arith.constant 0 : i32
    %c0_i32_0 = arith.constant 0 : i32
    %c0_i32_1 = arith.constant 0 : i32
    return %c0_i32, %c0_i32_0 : i32, i32
  }
  func.func @transform_8(%arg0: i32) -> (i32, i32, i32) {
    %c0_i32 = arith.constant 0 : i32
    %c0_i32_0 = arith.constant 0 : i32
    %c0_i32_1 = arith.constant 0 : i32
    return %arg0, %c0_i32, %c0_i32_0 : i32, i32, i32
  }
  func.func @transform_9(%arg0: i32) -> (i32, i32, i32) {
    %c0_i32 = arith.constant 0 : i32
    %c0_i32_0 = arith.constant 0 : i32
    %c0_i32_1 = arith.constant 0 : i32
    return %arg0, %c0_i32, %c0_i32_0 : i32, i32, i32
  }
}

module attributes {stable_mosaic.version = 11 : i64} {
  func.func @_conv1d_bias_kernel(%arg0: i32, %arg1: memref<1x4x8xf32, #tpu.memory_space<vmem>>, %arg2: memref<1x16x4xf32, #tpu.memory_space<vmem>>, %arg3: memref<16x1xf32, #tpu.memory_space<vmem>>, %arg4: memref<1x16x8xf32, #tpu.memory_space<vmem>>) attributes {dimension_semantics = [#tpu.dimension_semantics<parallel>], iteration_bounds = array<i64: 2>, scalar_prefetch = 0 : i64, scratch_operands = 0 : i64, tpu.core_type = #tpu.core_type<tc>, window_params = [{transform_indices = @transform_0, window_bounds = array<i64: 1, 4, 8>}, {pipeline_mode = #tpu.pipeline_mode<synchronous>, transform_indices = @transform_1, window_bounds = array<i64: 1, 16, 4>}, {pipeline_mode = #tpu.pipeline_mode<synchronous>, transform_indices = @transform_2, window_bounds = array<i64: 16, 1>}, {transform_indices = @transform_3, window_bounds = array<i64: 1, 16, 8>}]} {
    %c0 = arith.constant 0 : index
    %c0_0 = arith.constant 0 : index
    %c0_1 = arith.constant 0 : index
    %0 = vector.load %arg1[%c0, %c0_0, %c0_1] : memref<1x4x8xf32, #tpu.memory_space<vmem>>, vector<1x4x8xf32>
    %1 = vector.shape_cast %0 : vector<1x4x8xf32> to vector<4x8xf32>
    %2 = arith.truncf %1 : vector<4x8xf32> to vector<4x8xbf16>
    %c0_2 = arith.constant 0 : index
    %c0_3 = arith.constant 0 : index
    %3 = vector.load %arg3[%c0_2, %c0_3] : memref<16x1xf32, #tpu.memory_space<vmem>>, vector<16x1xf32>
    %4 = vector.shape_cast %3 : vector<16x1xf32> to vector<16x1xf32>
    %5 = vector.broadcast %4 : vector<16x1xf32> to vector<16x8xf32>
    %c0_4 = arith.constant 0 : index
    %c0_5 = arith.constant 0 : index
    %c0_6 = arith.constant 0 : index
    %6 = vector.load %arg2[%c0_4, %c0_5, %c0_6] : memref<1x16x4xf32, #tpu.memory_space<vmem>>, vector<1x16x4xf32>
    %7 = vector.shape_cast %6 : vector<1x16x4xf32> to vector<16x4xf32>
    %8 = arith.truncf %7 : vector<16x4xf32> to vector<16x4xbf16>
    %cst = arith.constant dense<0.000000e+00> : vector<16x8xf32>
    %9 = tpu.matmul %8, %2, %cst {dimension_numbers = #tpu.dot_dimension_numbers<[1], [0], [0], [1], [0, 0, 1, 1], [], []>} : vector<16x4xbf16>, vector<4x8xbf16>, vector<16x8xf32> -> vector<16x8xf32>
    %10 = arith.addf %5, %9 : vector<16x8xf32>
    %c0_7 = arith.constant 0 : index
    %c0_8 = arith.constant 0 : index
    %c0_9 = arith.constant 0 : index
    %11 = vector.load %arg4[%c0_7, %c0_8, %c0_9] : memref<1x16x8xf32, #tpu.memory_space<vmem>>, vector<1x16x8xf32>
    %12 = vector.shape_cast %11 : vector<1x16x8xf32> to vector<16x8xf32>
    %13 = vector.shape_cast %10 : vector<16x8xf32> to vector<1x16x8xf32>
    tpu.vector_store %arg4[%c0_7, %c0_8, %c0_9], %13 {strides = array<i32>} : memref<1x16x8xf32, #tpu.memory_space<vmem>>, vector<1x16x8xf32>,
    return
  }
  func.func @transform_0(%arg0: i32) -> (i32, i32, i32) {
    %c0_i32 = arith.constant 0 : i32
    %c0_i32_0 = arith.constant 0 : i32
    %c0_i32_1 = arith.constant 0 : i32
    return %arg0, %c0_i32, %c0_i32_0 : i32, i32, i32
  }
  func.func @transform_1(%arg0: i32) -> (i32, i32, i32) {
    %c0_i32 = arith.constant 0 : i32
    %c0_i32_0 = arith.constant 0 : i32
    %c0_i32_1 = arith.constant 0 : i32
    %c0_i32_2 = arith.constant 0 : i32
    return %c0_i32, %c0_i32_0, %c0_i32_1 : i32, i32, i32
  }
  func.func @transform_2(%arg0: i32) -> (i32, i32) {
    %c0_i32 = arith.constant 0 : i32
    %c0_i32_0 = arith.constant 0 : i32
    %c0_i32_1 = arith.constant 0 : i32
    return %c0_i32, %c0_i32_0 : i32, i32
  }
  func.func @transform_3(%arg0: i32) -> (i32, i32, i32) {
    %c0_i32 = arith.constant 0 : i32
    %c0_i32_0 = arith.constant 0 : i32
    %c0_i32_1 = arith.constant 0 : i32
    return %arg0, %c0_i32, %c0_i32_0 : i32, i32, i32
  }
}

module attributes {stable_mosaic.version = 11 : i64} {
  func.func @_conv1d_bias_kernel(%arg0: i32, %arg1: memref<1x16x8xf32, #tpu.memory_space<vmem>>, %arg2: memref<1x4x16xf32, #tpu.memory_space<vmem>>, %arg3: memref<4x1xf32, #tpu.memory_space<vmem>>, %arg4: memref<1x4x8xf32, #tpu.memory_space<vmem>>) attributes {dimension_semantics = [#tpu.dimension_semantics<parallel>], iteration_bounds = array<i64: 2>, scalar_prefetch = 0 : i64, scratch_operands = 0 : i64, tpu.core_type = #tpu.core_type<tc>, window_params = [{transform_indices = @transform_0, window_bounds = array<i64: 1, 16, 8>}, {pipeline_mode = #tpu.pipeline_mode<synchronous>, transform_indices = @transform_1, window_bounds = array<i64: 1, 4, 16>}, {pipeline_mode = #tpu.pipeline_mode<synchronous>, transform_indices = @transform_2, window_bounds = array<i64: 4, 1>}, {transform_indices = @transform_3, window_bounds = array<i64: 1, 4, 8>}]} {
    %c0 = arith.constant 0 : index
    %c0_0 = arith.constant 0 : index
    %c0_1 = arith.constant 0 : index
    %0 = vector.load %arg1[%c0, %c0_0, %c0_1] : memref<1x16x8xf32, #tpu.memory_space<vmem>>, vector<1x16x8xf32>
    %1 = vector.shape_cast %0 : vector<1x16x8xf32> to vector<16x8xf32>
    %2 = arith.truncf %1 : vector<16x8xf32> to vector<16x8xbf16>
    %c0_2 = arith.constant 0 : index
    %c0_3 = arith.constant 0 : index
    %3 = vector.load %arg3[%c0_2, %c0_3] : memref<4x1xf32, #tpu.memory_space<vmem>>, vector<4x1xf32>
    %4 = vector.shape_cast %3 : vector<4x1xf32> to vector<4x1xf32>
    %5 = vector.broadcast %4 : vector<4x1xf32> to vector<4x8xf32>
    %c0_4 = arith.constant 0 : index
    %c0_5 = arith.constant 0 : index
    %c0_6 = arith.constant 0 : index
    %6 = vector.load %arg2[%c0_4, %c0_5, %c0_6] : memref<1x4x16xf32, #tpu.memory_space<vmem>>, vector<1x4x16xf32>
    %7 = vector.shape_cast %6 : vector<1x4x16xf32> to vector<4x16xf32>
    %8 = arith.truncf %7 : vector<4x16xf32> to vector<4x16xbf16>
    %cst = arith.constant dense<0.000000e+00> : vector<4x8xf32>
    %9 = tpu.matmul %8, %2, %cst {dimension_numbers = #tpu.dot_dimension_numbers<[1], [0], [0], [1], [0, 0, 1, 1], [], []>} : vector<4x16xbf16>, vector<16x8xbf16>, vector<4x8xf32> -> vector<4x8xf32>
    %10 = arith.addf %5, %9 : vector<4x8xf32>
    %c0_7 = arith.constant 0 : index
    %c0_8 = arith.constant 0 : index
    %c0_9 = arith.constant 0 : index
    %11 = vector.load %arg4[%c0_7, %c0_8, %c0_9] : memref<1x4x8xf32, #tpu.memory_space<vmem>>, vector<1x4x8xf32>
    %12 = vector.shape_cast %11 : vector<1x4x8xf32> to vector<4x8xf32>
    %13 = vector.shape_cast %10 : vector<4x8xf32> to vector<1x4x8xf32>
    tpu.vector_store %arg4[%c0_7, %c0_8, %c0_9], %13 {strides = array<i32>} : memref<1x4x8xf32, #tpu.memory_space<vmem>>, vector<1x4x8xf32>,
    return
  }
  func.func @transform_0(%arg0: i32) -> (i32, i32, i32) {
    %c0_i32 = arith.constant 0 : i32
    %c0_i32_0 = arith.constant 0 : i32
    %c0_i32_1 = arith.constant 0 : i32
    return %arg0, %c0_i32, %c0_i32_0 : i32, i32, i32
  }
  func.func @transform_1(%arg0: i32) -> (i32, i32, i32) {
    %c0_i32 = arith.constant 0 : i32
    %c0_i32_0 = arith.constant 0 : i32
    %c0_i32_1 = arith.constant 0 : i32
    %c0_i32_2 = arith.constant 0 : i32
    return %c0_i32, %c0_i32_0, %c0_i32_1 : i32, i32, i32
  }
  func.func @transform_2(%arg0: i32) -> (i32, i32) {
    %c0_i32 = arith.constant 0 : i32
    %c0_i32_0 = arith.constant 0 : i32
    %c0_i32_1 = arith.constant 0 : i32
    return %c0_i32, %c0_i32_0 : i32, i32
  }
  func.func @transform_3(%arg0: i32) -> (i32, i32, i32) {
    %c0_i32 = arith.constant 0 : i32
    %c0_i32_0 = arith.constant 0 : i32
    %c0_i32_1 = arith.constant 0 : i32
    return %arg0, %c0_i32, %c0_i32_0 : i32, i32, i32
  }
}

module attributes {stable_mosaic.version = 11 : i64} {
  func.func @_conv1d_bias_kernel(%arg0: i32, %arg1: memref<1x8x10xf32, #tpu.memory_space<vmem>>, %arg2: memref<7x16x8xf32, #tpu.memory_space<vmem>>, %arg3: memref<16x1xf32, #tpu.memory_space<vmem>>, %arg4: memref<1x16x4xf32, #tpu.memory_space<vmem>>) attributes {dimension_semantics = [#tpu.dimension_semantics<parallel>], iteration_bounds = array<i64: 2>, scalar_prefetch = 0 : i64, scratch_operands = 0 : i64, tpu.core_type = #tpu.core_type<tc>, window_params = [{transform_indices = @transform_0, window_bounds = array<i64: 1, 8, 10>}, {pipeline_mode = #tpu.pipeline_mode<synchronous>, transform_indices = @transform_1, window_bounds = array<i64: 7, 16, 8>}, {pipeline_mode = #tpu.pipeline_mode<synchronous>, transform_indices = @transform_2, window_bounds = array<i64: 16, 1>}, {transform_indices = @transform_3, window_bounds = array<i64: 1, 16, 4>}]} {
    %c0 = arith.constant 0 : index
    %c0_0 = arith.constant 0 : index
    %c0_1 = arith.constant 0 : index
    %0 = vector.load %arg1[%c0, %c0_0, %c0_1] : memref<1x8x10xf32, #tpu.memory_space<vmem>>, vector<1x8x10xf32>
    %1 = vector.shape_cast %0 : vector<1x8x10xf32> to vector<8x10xf32>
    %2 = arith.truncf %1 : vector<8x10xf32> to vector<8x10xbf16>
    %c0_2 = arith.constant 0 : index
    %c0_3 = arith.constant 0 : index
    %3 = vector.load %arg3[%c0_2, %c0_3] : memref<16x1xf32, #tpu.memory_space<vmem>>, vector<16x1xf32>
    %4 = vector.shape_cast %3 : vector<16x1xf32> to vector<16x1xf32>
    %5 = vector.broadcast %4 : vector<16x1xf32> to vector<16x4xf32>
    %c0_4 = arith.constant 0 : index
    %c0_5 = arith.constant 0 : index
    %c0_6 = arith.constant 0 : index
    %6 = vector.load %arg2[%c0_4, %c0_5, %c0_6] : memref<7x16x8xf32, #tpu.memory_space<vmem>>, vector<1x16x8xf32>
    %7 = vector.shape_cast %6 : vector<1x16x8xf32> to vector<16x8xf32>
    %8 = arith.truncf %7 : vector<16x8xf32> to vector<16x8xbf16>
    %9 = vector.extract_strided_slice %2 {offsets = [0, 0], sizes = [8, 4], strides = [1, 1]} : vector<8x10xbf16> to vector<8x4xbf16>
    %cst = arith.constant dense<0.000000e+00> : vector<16x4xf32>
    %10 = tpu.matmul %8, %9, %cst {dimension_numbers = #tpu.dot_dimension_numbers<[1], [0], [0], [1], [0, 0, 1, 1], [], []>} : vector<16x8xbf16>, vector<8x4xbf16>, vector<16x4xf32> -> vector<16x4xf32>
    %11 = arith.addf %5, %10 : vector<16x4xf32>
    %c1 = arith.constant 1 : index
    %c0_7 = arith.constant 0 : index
    %c0_8 = arith.constant 0 : index
    %12 = vector.load %arg2[%c1, %c0_7, %c0_8] : memref<7x16x8xf32, #tpu.memory_space<vmem>>, vector<1x16x8xf32>
    %13 = vector.shape_cast %12 : vector<1x16x8xf32> to vector<16x8xf32>
    %14 = arith.truncf %13 : vector<16x8xf32> to vector<16x8xbf16>
    %15 = vector.extract_strided_slice %2 {offsets = [0, 1], sizes = [8, 4], strides = [1, 1]} : vector<8x10xbf16> to vector<8x4xbf16>
    %cst_9 = arith.constant dense<0.000000e+00> : vector<16x4xf32>
    %16 = tpu.matmul %14, %15, %cst_9 {dimension_numbers = #tpu.dot_dimension_numbers<[1], [0], [0], [1], [0, 0, 1, 1], [], []>} : vector<16x8xbf16>, vector<8x4xbf16>, vector<16x4xf32> -> vector<16x4xf32>
    %17 = arith.addf %11, %16 : vector<16x4xf32>
    %c2 = arith.constant 2 : index
    %c0_10 = arith.constant 0 : index
    %c0_11 = arith.constant 0 : index
    %18 = vector.load %arg2[%c2, %c0_10, %c0_11] : memref<7x16x8xf32, #tpu.memory_space<vmem>>, vector<1x16x8xf32>
    %19 = vector.shape_cast %18 : vector<1x16x8xf32> to vector<16x8xf32>
    %20 = arith.truncf %19 : vector<16x8xf32> to vector<16x8xbf16>
    %21 = vector.extract_strided_slice %2 {offsets = [0, 2], sizes = [8, 4], strides = [1, 1]} : vector<8x10xbf16> to vector<8x4xbf16>
    %cst_12 = arith.constant dense<0.000000e+00> : vector<16x4xf32>
    %22 = tpu.matmul %20, %21, %cst_12 {dimension_numbers = #tpu.dot_dimension_numbers<[1], [0], [0], [1], [0, 0, 1, 1], [], []>} : vector<16x8xbf16>, vector<8x4xbf16>, vector<16x4xf32> -> vector<16x4xf32>
    %23 = arith.addf %17, %22 : vector<16x4xf32>
    %c3 = arith.constant 3 : index
    %c0_13 = arith.constant 0 : index
    %c0_14 = arith.constant 0 : index
    %24 = vector.load %arg2[%c3, %c0_13, %c0_14] : memref<7x16x8xf32, #tpu.memory_space<vmem>>, vector<1x16x8xf32>
    %25 = vector.shape_cast %24 : vector<1x16x8xf32> to vector<16x8xf32>
    %26 = arith.truncf %25 : vector<16x8xf32> to vector<16x8xbf16>
    %27 = vector.extract_strided_slice %2 {offsets = [0, 3], sizes = [8, 4], strides = [1, 1]} : vector<8x10xbf16> to vector<8x4xbf16>
    %cst_15 = arith.constant dense<0.000000e+00> : vector<16x4xf32>
    %28 = tpu.matmul %26, %27, %cst_15 {dimension_numbers = #tpu.dot_dimension_numbers<[1], [0], [0], [1], [0, 0, 1, 1], [], []>} : vector<16x8xbf16>, vector<8x4xbf16>, vector<16x4xf32> -> vector<16x4xf32>
    %29 = arith.addf %23, %28 : vector<16x4xf32>
    %c4 = arith.constant 4 : index
    %c0_16 = arith.constant 0 : index
    %c0_17 = arith.constant 0 : index
    %30 = vector.load %arg2[%c4, %c0_16, %c0_17] : memref<7x16x8xf32, #tpu.memory_space<vmem>>, vector<1x16x8xf32>
    %31 = vector.shape_cast %30 : vector<1x16x8xf32> to vector<16x8xf32>
    %32 = arith.truncf %31 : vector<16x8xf32> to vector<16x8xbf16>
    %33 = vector.extract_strided_slice %2 {offsets = [0, 4], sizes = [8, 4], strides = [1, 1]} : vector<8x10xbf16> to vector<8x4xbf16>
    %cst_18 = arith.constant dense<0.000000e+00> : vector<16x4xf32>
    %34 = tpu.matmul %32, %33, %cst_18 {dimension_numbers = #tpu.dot_dimension_numbers<[1], [0], [0], [1], [0, 0, 1, 1], [], []>} : vector<16x8xbf16>, vector<8x4xbf16>, vector<16x4xf32> -> vector<16x4xf32>
    %35 = arith.addf %29, %34 : vector<16x4xf32>
    %c5 = arith.constant 5 : index
    %c0_19 = arith.constant 0 : index
    %c0_20 = arith.constant 0 : index
    %36 = vector.load %arg2[%c5, %c0_19, %c0_20] : memref<7x16x8xf32, #tpu.memory_space<vmem>>, vector<1x16x8xf32>
    %37 = vector.shape_cast %36 : vector<1x16x8xf32> to vector<16x8xf32>
    %38 = arith.truncf %37 : vector<16x8xf32> to vector<16x8xbf16>
    %39 = vector.extract_strided_slice %2 {offsets = [0, 5], sizes = [8, 4], strides = [1, 1]} : vector<8x10xbf16> to vector<8x4xbf16>
    %cst_21 = arith.constant dense<0.000000e+00> : vector<16x4xf32>
    %40 = tpu.matmul %38, %39, %cst_21 {dimension_numbers = #tpu.dot_dimension_numbers<[1], [0], [0], [1], [0, 0, 1, 1], [], []>} : vector<16x8xbf16>, vector<8x4xbf16>, vector<16x4xf32> -> vector<16x4xf32>
    %41 = arith.addf %35, %40 : vector<16x4xf32>
    %c6 = arith.constant 6 : index
    %c0_22 = arith.constant 0 : index
    %c0_23 = arith.constant 0 : index
    %42 = vector.load %arg2[%c6, %c0_22, %c0_23] : memref<7x16x8xf32, #tpu.memory_space<vmem>>, vector<1x16x8xf32>
    %43 = vector.shape_cast %42 : vector<1x16x8xf32> to vector<16x8xf32>
    %44 = arith.truncf %43 : vector<16x8xf32> to vector<16x8xbf16>
    %45 = vector.extract_strided_slice %2 {offsets = [0, 6], sizes = [8, 4], strides = [1, 1]} : vector<8x10xbf16> to vector<8x4xbf16>
    %cst_24 = arith.constant dense<0.000000e+00> : vector<16x4xf32>
    %46 = tpu.matmul %44, %45, %cst_24 {dimension_numbers = #tpu.dot_dimension_numbers<[1], [0], [0], [1], [0, 0, 1, 1], [], []>} : vector<16x8xbf16>, vector<8x4xbf16>, vector<16x4xf32> -> vector<16x4xf32>
    %47 = arith.addf %41, %46 : vector<16x4xf32>
    %c0_25 = arith.constant 0 : index
    %c0_26 = arith.constant 0 : index
    %c0_27 = arith.constant 0 : index
    %48 = vector.load %arg4[%c0_25, %c0_26, %c0_27] : memref<1x16x4xf32, #tpu.memory_space<vmem>>, vector<1x16x4xf32>
    %49 = vector.shape_cast %48 : vector<1x16x4xf32> to vector<16x4xf32>
    %50 = vector.shape_cast %47 : vector<16x4xf32> to vector<1x16x4xf32>
    tpu.vector_store %arg4[%c0_25, %c0_26, %c0_27], %50 {strides = array<i32>} : memref<1x16x4xf32, #tpu.memory_space<vmem>>, vector<1x16x4xf32>,
    return
  }
  func.func @transform_0(%arg0: i32) -> (i32, i32, i32) {
    %c0_i32 = arith.constant 0 : i32
    %c0_i32_0 = arith.constant 0 : i32
    %c0_i32_1 = arith.constant 0 : i32
    return %arg0, %c0_i32, %c0_i32_0 : i32, i32, i32
  }
  func.func @transform_1(%arg0: i32) -> (i32, i32, i32) {
    %c0_i32 = arith.constant 0 : i32
    %c0_i32_0 = arith.constant 0 : i32
    %c0_i32_1 = arith.constant 0 : i32
    %c0_i32_2 = arith.constant 0 : i32
    return %c0_i32, %c0_i32_0, %c0_i32_1 : i32, i32, i32
  }
  func.func @transform_2(%arg0: i32) -> (i32, i32) {
    %c0_i32 = arith.constant 0 : i32
    %c0_i32_0 = arith.constant 0 : i32
    %c0_i32_1 = arith.constant 0 : i32
    return %c0_i32, %c0_i32_0 : i32, i32
  }
  func.func @transform_3(%arg0: i32) -> (i32, i32, i32) {
    %c0_i32 = arith.constant 0 : i32
    %c0_i32_0 = arith.constant 0 : i32
    %c0_i32_1 = arith.constant 0 : i32
    return %arg0, %c0_i32, %c0_i32_0 : i32, i32, i32
  }
}

module attributes {stable_mosaic.version = 11 : i64} {
  func.func @_conv1d_bias_kernel(%arg0: i32, %arg1: memref<1x16x11xf32, #tpu.memory_space<vmem>>, %arg2: memref<4x8x16xf32, #tpu.memory_space<vmem>>, %arg3: memref<8x1xf32, #tpu.memory_space<vmem>>, %arg4: memref<1x8x8xf32, #tpu.memory_space<vmem>>) attributes {dimension_semantics = [#tpu.dimension_semantics<parallel>], iteration_bounds = array<i64: 2>, scalar_prefetch = 0 : i64, scratch_operands = 0 : i64, tpu.core_type = #tpu.core_type<tc>, window_params = [{transform_indices = @transform_0, window_bounds = array<i64: 1, 16, 11>}, {pipeline_mode = #tpu.pipeline_mode<synchronous>, transform_indices = @transform_1, window_bounds = array<i64: 4, 8, 16>}, {pipeline_mode = #tpu.pipeline_mode<synchronous>, transform_indices = @transform_2, window_bounds = array<i64: 8, 1>}, {transform_indices = @transform_3, window_bounds = array<i64: 1, 8, 8>}]} {
    %c0 = arith.constant 0 : index
    %c0_0 = arith.constant 0 : index
    %c0_1 = arith.constant 0 : index
    %0 = vector.load %arg1[%c0, %c0_0, %c0_1] : memref<1x16x11xf32, #tpu.memory_space<vmem>>, vector<1x16x11xf32>
    %1 = vector.shape_cast %0 : vector<1x16x11xf32> to vector<16x11xf32>
    %cst = arith.constant 0.000000e+00 : f32
    %2 = vector.broadcast %cst : f32 to vector<16x11xf32>
    %3 = arith.cmpf oge, %1, %2 : vector<16x11xf32>
    %cst_2 = arith.constant 1.000000e-01 : f32
    %4 = vector.broadcast %cst_2 : f32 to vector<16x11xf32>
    %5 = arith.mulf %1, %4 : vector<16x11xf32>
    %6 = arith.select %3, %1, %5 : vector<16x11xi1>, vector<16x11xf32>
    %7 = arith.truncf %6 : vector<16x11xf32> to vector<16x11xbf16>
    %c0_3 = arith.constant 0 : index
    %c0_4 = arith.constant 0 : index
    %8 = vector.load %arg3[%c0_3, %c0_4] : memref<8x1xf32, #tpu.memory_space<vmem>>, vector<8x1xf32>
    %9 = vector.shape_cast %8 : vector<8x1xf32> to vector<8x1xf32>
    %10 = vector.broadcast %9 : vector<8x1xf32> to vector<8x8xf32>
    %c0_5 = arith.constant 0 : index
    %c0_6 = arith.constant 0 : index
    %c0_7 = arith.constant 0 : index
    %11 = vector.load %arg2[%c0_5, %c0_6, %c0_7] : memref<4x8x16xf32, #tpu.memory_space<vmem>>, vector<1x8x16xf32>
    %12 = vector.shape_cast %11 : vector<1x8x16xf32> to vector<8x16xf32>
    %13 = arith.truncf %12 : vector<8x16xf32> to vector<8x16xbf16>
    %14 = vector.extract_strided_slice %7 {offsets = [0, 0], sizes = [16, 8], strides = [1, 1]} : vector<16x11xbf16> to vector<16x8xbf16>
    %cst_8 = arith.constant dense<0.000000e+00> : vector<8x8xf32>
    %15 = tpu.matmul %13, %14, %cst_8 {dimension_numbers = #tpu.dot_dimension_numbers<[1], [0], [0], [1], [0, 0, 1, 1], [], []>} : vector<8x16xbf16>, vector<16x8xbf16>, vector<8x8xf32> -> vector<8x8xf32>
    %16 = arith.addf %10, %15 : vector<8x8xf32>
    %c1 = arith.constant 1 : index
    %c0_9 = arith.constant 0 : index
    %c0_10 = arith.constant 0 : index
    %17 = vector.load %arg2[%c1, %c0_9, %c0_10] : memref<4x8x16xf32, #tpu.memory_space<vmem>>, vector<1x8x16xf32>
    %18 = vector.shape_cast %17 : vector<1x8x16xf32> to vector<8x16xf32>
    %19 = arith.truncf %18 : vector<8x16xf32> to vector<8x16xbf16>
    %20 = vector.extract_strided_slice %7 {offsets = [0, 1], sizes = [16, 8], strides = [1, 1]} : vector<16x11xbf16> to vector<16x8xbf16>
    %cst_11 = arith.constant dense<0.000000e+00> : vector<8x8xf32>
    %21 = tpu.matmul %19, %20, %cst_11 {dimension_numbers = #tpu.dot_dimension_numbers<[1], [0], [0], [1], [0, 0, 1, 1], [], []>} : vector<8x16xbf16>, vector<16x8xbf16>, vector<8x8xf32> -> vector<8x8xf32>
    %22 = arith.addf %16, %21 : vector<8x8xf32>
    %c2 = arith.constant 2 : index
    %c0_12 = arith.constant 0 : index
    %c0_13 = arith.constant 0 : index
    %23 = vector.load %arg2[%c2, %c0_12, %c0_13] : memref<4x8x16xf32, #tpu.memory_space<vmem>>, vector<1x8x16xf32>
    %24 = vector.shape_cast %23 : vector<1x8x16xf32> to vector<8x16xf32>
    %25 = arith.truncf %24 : vector<8x16xf32> to vector<8x16xbf16>
    %26 = vector.extract_strided_slice %7 {offsets = [0, 2], sizes = [16, 8], strides = [1, 1]} : vector<16x11xbf16> to vector<16x8xbf16>
    %cst_14 = arith.constant dense<0.000000e+00> : vector<8x8xf32>
    %27 = tpu.matmul %25, %26, %cst_14 {dimension_numbers = #tpu.dot_dimension_numbers<[1], [0], [0], [1], [0, 0, 1, 1], [], []>} : vector<8x16xbf16>, vector<16x8xbf16>, vector<8x8xf32> -> vector<8x8xf32>
    %28 = arith.addf %22, %27 : vector<8x8xf32>
    %c3 = arith.constant 3 : index
    %c0_15 = arith.constant 0 : index
    %c0_16 = arith.constant 0 : index
    %29 = vector.load %arg2[%c3, %c0_15, %c0_16] : memref<4x8x16xf32, #tpu.memory_space<vmem>>, vector<1x8x16xf32>
    %30 = vector.shape_cast %29 : vector<1x8x16xf32> to vector<8x16xf32>
    %31 = arith.truncf %30 : vector<8x16xf32> to vector<8x16xbf16>
    %32 = vector.extract_strided_slice %7 {offsets = [0, 3], sizes = [16, 8], strides = [1, 1]} : vector<16x11xbf16> to vector<16x8xbf16>
    %cst_17 = arith.constant dense<0.000000e+00> : vector<8x8xf32>
    %33 = tpu.matmul %31, %32, %cst_17 {dimension_numbers = #tpu.dot_dimension_numbers<[1], [0], [0], [1], [0, 0, 1, 1], [], []>} : vector<8x16xbf16>, vector<16x8xbf16>, vector<8x8xf32> -> vector<8x8xf32>
    %34 = arith.addf %28, %33 : vector<8x8xf32>
    %c0_18 = arith.constant 0 : index
    %c0_19 = arith.constant 0 : index
    %c0_20 = arith.constant 0 : index
    %35 = vector.load %arg4[%c0_18, %c0_19, %c0_20] : memref<1x8x8xf32, #tpu.memory_space<vmem>>, vector<1x8x8xf32>
    %36 = vector.shape_cast %35 : vector<1x8x8xf32> to vector<8x8xf32>
    %37 = vector.shape_cast %34 : vector<8x8xf32> to vector<1x8x8xf32>
    tpu.vector_store %arg4[%c0_18, %c0_19, %c0_20], %37 {strides = array<i32>} : memref<1x8x8xf32, #tpu.memory_space<vmem>>, vector<1x8x8xf32>,
    return
  }
  func.func @transform_0(%arg0: i32) -> (i32, i32, i32) {
    %c0_i32 = arith.constant 0 : i32
    %c0_i32_0 = arith.constant 0 : i32
    %c0_i32_1 = arith.constant 0 : i32
    return %arg0, %c0_i32, %c0_i32_0 : i32, i32, i32
  }
  func.func @transform_1(%arg0: i32) -> (i32, i32, i32) {
    %c0_i32 = arith.constant 0 : i32
    %c0_i32_0 = arith.constant 0 : i32
    %c0_i32_1 = arith.constant 0 : i32
    %c0_i32_2 = arith.constant 0 : i32
    return %c0_i32, %c0_i32_0, %c0_i32_1 : i32, i32, i32
  }
  func.func @transform_2(%arg0: i32) -> (i32, i32) {
    %c0_i32 = arith.constant 0 : i32
    %c0_i32_0 = arith.constant 0 : i32
    %c0_i32_1 = arith.constant 0 : i32
    return %c0_i32, %c0_i32_0 : i32, i32
  }
  func.func @transform_3(%arg0: i32) -> (i32, i32, i32) {
    %c0_i32 = arith.constant 0 : i32
    %c0_i32_0 = arith.constant 0 : i32
    %c0_i32_1 = arith.constant 0 : i32
    return %arg0, %c0_i32, %c0_i32_0 : i32, i32, i32
  }
}

module attributes {stable_mosaic.version = 11 : i64} {
  func.func @_conv1d_bias_kernel(%arg0: i32, %arg1: memref<1x4x8xf32, #tpu.memory_space<vmem>>, %arg2: memref<1x8x4xf32, #tpu.memory_space<vmem>>, %arg3: memref<8x1xf32, #tpu.memory_space<vmem>>, %arg4: memref<1x8x8xf32, #tpu.memory_space<vmem>>) attributes {dimension_semantics = [#tpu.dimension_semantics<parallel>], iteration_bounds = array<i64: 2>, scalar_prefetch = 0 : i64, scratch_operands = 0 : i64, tpu.core_type = #tpu.core_type<tc>, window_params = [{transform_indices = @transform_0, window_bounds = array<i64: 1, 4, 8>}, {pipeline_mode = #tpu.pipeline_mode<synchronous>, transform_indices = @transform_1, window_bounds = array<i64: 1, 8, 4>}, {pipeline_mode = #tpu.pipeline_mode<synchronous>, transform_indices = @transform_2, window_bounds = array<i64: 8, 1>}, {transform_indices = @transform_3, window_bounds = array<i64: 1, 8, 8>}]} {
    %c0 = arith.constant 0 : index
    %c0_0 = arith.constant 0 : index
    %c0_1 = arith.constant 0 : index
    %0 = vector.load %arg1[%c0, %c0_0, %c0_1] : memref<1x4x8xf32, #tpu.memory_space<vmem>>, vector<1x4x8xf32>
    %1 = vector.shape_cast %0 : vector<1x4x8xf32> to vector<4x8xf32>
    %2 = arith.truncf %1 : vector<4x8xf32> to vector<4x8xbf16>
    %c0_2 = arith.constant 0 : index
    %c0_3 = arith.constant 0 : index
    %3 = vector.load %arg3[%c0_2, %c0_3] : memref<8x1xf32, #tpu.memory_space<vmem>>, vector<8x1xf32>
    %4 = vector.shape_cast %3 : vector<8x1xf32> to vector<8x1xf32>
    %5 = vector.broadcast %4 : vector<8x1xf32> to vector<8x8xf32>
    %c0_4 = arith.constant 0 : index
    %c0_5 = arith.constant 0 : index
    %c0_6 = arith.constant 0 : index
    %6 = vector.load %arg2[%c0_4, %c0_5, %c0_6] : memref<1x8x4xf32, #tpu.memory_space<vmem>>, vector<1x8x4xf32>
    %7 = vector.shape_cast %6 : vector<1x8x4xf32> to vector<8x4xf32>
    %8 = arith.truncf %7 : vector<8x4xf32> to vector<8x4xbf16>
    %cst = arith.constant dense<0.000000e+00> : vector<8x8xf32>
    %9 = tpu.matmul %8, %2, %cst {dimension_numbers = #tpu.dot_dimension_numbers<[1], [0], [0], [1], [0, 0, 1, 1], [], []>} : vector<8x4xbf16>, vector<4x8xbf16>, vector<8x8xf32> -> vector<8x8xf32>
    %10 = arith.addf %5, %9 : vector<8x8xf32>
    %c0_7 = arith.constant 0 : index
    %c0_8 = arith.constant 0 : index
    %c0_9 = arith.constant 0 : index
    %11 = vector.load %arg4[%c0_7, %c0_8, %c0_9] : memref<1x8x8xf32, #tpu.memory_space<vmem>>, vector<1x8x8xf32>
    %12 = vector.shape_cast %11 : vector<1x8x8xf32> to vector<8x8xf32>
    %13 = vector.shape_cast %10 : vector<8x8xf32> to vector<1x8x8xf32>
    tpu.vector_store %arg4[%c0_7, %c0_8, %c0_9], %13 {strides = array<i32>} : memref<1x8x8xf32, #tpu.memory_space<vmem>>, vector<1x8x8xf32>,
    return
  }
  func.func @transform_0(%arg0: i32) -> (i32, i32, i32) {
    %c0_i32 = arith.constant 0 : i32
    %c0_i32_0 = arith.constant 0 : i32
    %c0_i32_1 = arith.constant 0 : i32
    return %arg0, %c0_i32, %c0_i32_0 : i32, i32, i32
  }
  func.func @transform_1(%arg0: i32) -> (i32, i32, i32) {
    %c0_i32 = arith.constant 0 : i32
    %c0_i32_0 = arith.constant 0 : i32
    %c0_i32_1 = arith.constant 0 : i32
    %c0_i32_2 = arith.constant 0 : i32
    return %c0_i32, %c0_i32_0, %c0_i32_1 : i32, i32, i32
  }
  func.func @transform_2(%arg0: i32) -> (i32, i32) {
    %c0_i32 = arith.constant 0 : i32
    %c0_i32_0 = arith.constant 0 : i32
    %c0_i32_1 = arith.constant 0 : i32
    return %c0_i32, %c0_i32_0 : i32, i32
  }
  func.func @transform_3(%arg0: i32) -> (i32, i32, i32) {
    %c0_i32 = arith.constant 0 : i32
    %c0_i32_0 = arith.constant 0 : i32
    %c0_i32_1 = arith.constant 0 : i32
    return %arg0, %c0_i32, %c0_i32_0 : i32, i32, i32
  }
}

module attributes {stable_mosaic.version = 11 : i64} {
  func.func @_conv1d_bias_kernel(%arg0: i32, %arg1: memref<1x8x10xf32, #tpu.memory_space<vmem>>, %arg2: memref<3x8x8xf32, #tpu.memory_space<vmem>>, %arg3: memref<8x1xf32, #tpu.memory_space<vmem>>, %arg4: memref<1x8x8xf32, #tpu.memory_space<vmem>>) attributes {dimension_semantics = [#tpu.dimension_semantics<parallel>], iteration_bounds = array<i64: 2>, scalar_prefetch = 0 : i64, scratch_operands = 0 : i64, tpu.core_type = #tpu.core_type<tc>, window_params = [{transform_indices = @transform_0, window_bounds = array<i64: 1, 8, 10>}, {pipeline_mode = #tpu.pipeline_mode<synchronous>, transform_indices = @transform_1, window_bounds = array<i64: 3, 8, 8>}, {pipeline_mode = #tpu.pipeline_mode<synchronous>, transform_indices = @transform_2, window_bounds = array<i64: 8, 1>}, {transform_indices = @transform_3, window_bounds = array<i64: 1, 8, 8>}]} {
    %c0 = arith.constant 0 : index
    %c0_0 = arith.constant 0 : index
    %c0_1 = arith.constant 0 : index
    %0 = vector.load %arg1[%c0, %c0_0, %c0_1] : memref<1x8x10xf32, #tpu.memory_space<vmem>>, vector<1x8x10xf32>
    %1 = vector.shape_cast %0 : vector<1x8x10xf32> to vector<8x10xf32>
    %cst = arith.constant 0.000000e+00 : f32
    %2 = vector.broadcast %cst : f32 to vector<8x10xf32>
    %3 = arith.cmpf oge, %1, %2 : vector<8x10xf32>
    %cst_2 = arith.constant 1.000000e-01 : f32
    %4 = vector.broadcast %cst_2 : f32 to vector<8x10xf32>
    %5 = arith.mulf %1, %4 : vector<8x10xf32>
    %6 = arith.select %3, %1, %5 : vector<8x10xi1>, vector<8x10xf32>
    %7 = arith.truncf %6 : vector<8x10xf32> to vector<8x10xbf16>
    %c0_3 = arith.constant 0 : index
    %c0_4 = arith.constant 0 : index
    %8 = vector.load %arg3[%c0_3, %c0_4] : memref<8x1xf32, #tpu.memory_space<vmem>>, vector<8x1xf32>
    %9 = vector.shape_cast %8 : vector<8x1xf32> to vector<8x1xf32>
    %10 = vector.broadcast %9 : vector<8x1xf32> to vector<8x8xf32>
    %c0_5 = arith.constant 0 : index
    %c0_6 = arith.constant 0 : index
    %c0_7 = arith.constant 0 : index
    %11 = vector.load %arg2[%c0_5, %c0_6, %c0_7] : memref<3x8x8xf32, #tpu.memory_space<vmem>>, vector<1x8x8xf32>
    %12 = vector.shape_cast %11 : vector<1x8x8xf32> to vector<8x8xf32>
    %13 = arith.truncf %12 : vector<8x8xf32> to vector<8x8xbf16>
    %14 = vector.extract_strided_slice %7 {offsets = [0, 0], sizes = [8, 8], strides = [1, 1]} : vector<8x10xbf16> to vector<8x8xbf16>
    %cst_8 = arith.constant dense<0.000000e+00> : vector<8x8xf32>
    %15 = tpu.matmul %13, %14, %cst_8 {dimension_numbers = #tpu.dot_dimension_numbers<[1], [0], [0], [1], [0, 0, 1, 1], [], []>} : vector<8x8xbf16>, vector<8x8xbf16>, vector<8x8xf32> -> vector<8x8xf32>
    %16 = arith.addf %10, %15 : vector<8x8xf32>
    %c1 = arith.constant 1 : index
    %c0_9 = arith.constant 0 : index
    %c0_10 = arith.constant 0 : index
    %17 = vector.load %arg2[%c1, %c0_9, %c0_10] : memref<3x8x8xf32, #tpu.memory_space<vmem>>, vector<1x8x8xf32>
    %18 = vector.shape_cast %17 : vector<1x8x8xf32> to vector<8x8xf32>
    %19 = arith.truncf %18 : vector<8x8xf32> to vector<8x8xbf16>
    %20 = vector.extract_strided_slice %7 {offsets = [0, 1], sizes = [8, 8], strides = [1, 1]} : vector<8x10xbf16> to vector<8x8xbf16>
    %cst_11 = arith.constant dense<0.000000e+00> : vector<8x8xf32>
    %21 = tpu.matmul %19, %20, %cst_11 {dimension_numbers = #tpu.dot_dimension_numbers<[1], [0], [0], [1], [0, 0, 1, 1], [], []>} : vector<8x8xbf16>, vector<8x8xbf16>, vector<8x8xf32> -> vector<8x8xf32>
    %22 = arith.addf %16, %21 : vector<8x8xf32>
    %c2 = arith.constant 2 : index
    %c0_12 = arith.constant 0 : index
    %c0_13 = arith.constant 0 : index
    %23 = vector.load %arg2[%c2, %c0_12, %c0_13] : memref<3x8x8xf32, #tpu.memory_space<vmem>>, vector<1x8x8xf32>
    %24 = vector.shape_cast %23 : vector<1x8x8xf32> to vector<8x8xf32>
    %25 = arith.truncf %24 : vector<8x8xf32> to vector<8x8xbf16>
    %26 = vector.extract_strided_slice %7 {offsets = [0, 2], sizes = [8, 8], strides = [1, 1]} : vector<8x10xbf16> to vector<8x8xbf16>
    %cst_14 = arith.constant dense<0.000000e+00> : vector<8x8xf32>
    %27 = tpu.matmul %25, %26, %cst_14 {dimension_numbers = #tpu.dot_dimension_numbers<[1], [0], [0], [1], [0, 0, 1, 1], [], []>} : vector<8x8xbf16>, vector<8x8xbf16>, vector<8x8xf32> -> vector<8x8xf32>
    %28 = arith.addf %22, %27 : vector<8x8xf32>
    %c0_15 = arith.constant 0 : index
    %c0_16 = arith.constant 0 : index
    %c0_17 = arith.constant 0 : index
    %29 = vector.load %arg4[%c0_15, %c0_16, %c0_17] : memref<1x8x8xf32, #tpu.memory_space<vmem>>, vector<1x8x8xf32>
    %30 = vector.shape_cast %29 : vector<1x8x8xf32> to vector<8x8xf32>
    %31 = vector.shape_cast %28 : vector<8x8xf32> to vector<1x8x8xf32>
    tpu.vector_store %arg4[%c0_15, %c0_16, %c0_17], %31 {strides = array<i32>} : memref<1x8x8xf32, #tpu.memory_space<vmem>>, vector<1x8x8xf32>,
    return
  }
  func.func @transform_0(%arg0: i32) -> (i32, i32, i32) {
    %c0_i32 = arith.constant 0 : i32
    %c0_i32_0 = arith.constant 0 : i32
    %c0_i32_1 = arith.constant 0 : i32
    return %arg0, %c0_i32, %c0_i32_0 : i32, i32, i32
  }
  func.func @transform_1(%arg0: i32) -> (i32, i32, i32) {
    %c0_i32 = arith.constant 0 : i32
    %c0_i32_0 = arith.constant 0 : i32
    %c0_i32_1 = arith.constant 0 : i32
    %c0_i32_2 = arith.constant 0 : i32
    return %c0_i32, %c0_i32_0, %c0_i32_1 : i32, i32, i32
  }
  func.func @transform_2(%arg0: i32) -> (i32, i32) {
    %c0_i32 = arith.constant 0 : i32
    %c0_i32_0 = arith.constant 0 : i32
    %c0_i32_1 = arith.constant 0 : i32
    return %c0_i32, %c0_i32_0 : i32, i32
  }
  func.func @transform_3(%arg0: i32) -> (i32, i32, i32) {
    %c0_i32 = arith.constant 0 : i32
    %c0_i32_0 = arith.constant 0 : i32
    %c0_i32_1 = arith.constant 0 : i32
    return %arg0, %c0_i32, %c0_i32_0 : i32, i32, i32
  }
}

module attributes {stable_mosaic.version = 11 : i64} {
  func.func @_conv1d_bias_kernel(%arg0: i32, %arg1: memref<1x8x12xf32, #tpu.memory_space<vmem>>, %arg2: memref<5x8x8xf32, #tpu.memory_space<vmem>>, %arg3: memref<8x1xf32, #tpu.memory_space<vmem>>, %arg4: memref<1x8x8xf32, #tpu.memory_space<vmem>>) attributes {dimension_semantics = [#tpu.dimension_semantics<parallel>], iteration_bounds = array<i64: 2>, scalar_prefetch = 0 : i64, scratch_operands = 0 : i64, tpu.core_type = #tpu.core_type<tc>, window_params = [{transform_indices = @transform_0, window_bounds = array<i64: 1, 8, 12>}, {pipeline_mode = #tpu.pipeline_mode<synchronous>, transform_indices = @transform_1, window_bounds = array<i64: 5, 8, 8>}, {pipeline_mode = #tpu.pipeline_mode<synchronous>, transform_indices = @transform_2, window_bounds = array<i64: 8, 1>}, {transform_indices = @transform_3, window_bounds = array<i64: 1, 8, 8>}]} {
    %c0 = arith.constant 0 : index
    %c0_0 = arith.constant 0 : index
    %c0_1 = arith.constant 0 : index
    %0 = vector.load %arg1[%c0, %c0_0, %c0_1] : memref<1x8x12xf32, #tpu.memory_space<vmem>>, vector<1x8x12xf32>
    %1 = vector.shape_cast %0 : vector<1x8x12xf32> to vector<8x12xf32>
    %cst = arith.constant 0.000000e+00 : f32
    %2 = vector.broadcast %cst : f32 to vector<8x12xf32>
    %3 = arith.cmpf oge, %1, %2 : vector<8x12xf32>
    %cst_2 = arith.constant 1.000000e-01 : f32
    %4 = vector.broadcast %cst_2 : f32 to vector<8x12xf32>
    %5 = arith.mulf %1, %4 : vector<8x12xf32>
    %6 = arith.select %3, %1, %5 : vector<8x12xi1>, vector<8x12xf32>
    %7 = arith.truncf %6 : vector<8x12xf32> to vector<8x12xbf16>
    %c0_3 = arith.constant 0 : index
    %c0_4 = arith.constant 0 : index
    %8 = vector.load %arg3[%c0_3, %c0_4] : memref<8x1xf32, #tpu.memory_space<vmem>>, vector<8x1xf32>
    %9 = vector.shape_cast %8 : vector<8x1xf32> to vector<8x1xf32>
    %10 = vector.broadcast %9 : vector<8x1xf32> to vector<8x8xf32>
    %c0_5 = arith.constant 0 : index
    %c0_6 = arith.constant 0 : index
    %c0_7 = arith.constant 0 : index
    %11 = vector.load %arg2[%c0_5, %c0_6, %c0_7] : memref<5x8x8xf32, #tpu.memory_space<vmem>>, vector<1x8x8xf32>
    %12 = vector.shape_cast %11 : vector<1x8x8xf32> to vector<8x8xf32>
    %13 = arith.truncf %12 : vector<8x8xf32> to vector<8x8xbf16>
    %14 = vector.extract_strided_slice %7 {offsets = [0, 0], sizes = [8, 8], strides = [1, 1]} : vector<8x12xbf16> to vector<8x8xbf16>
    %cst_8 = arith.constant dense<0.000000e+00> : vector<8x8xf32>
    %15 = tpu.matmul %13, %14, %cst_8 {dimension_numbers = #tpu.dot_dimension_numbers<[1], [0], [0], [1], [0, 0, 1, 1], [], []>} : vector<8x8xbf16>, vector<8x8xbf16>, vector<8x8xf32> -> vector<8x8xf32>
    %16 = arith.addf %10, %15 : vector<8x8xf32>
    %c1 = arith.constant 1 : index
    %c0_9 = arith.constant 0 : index
    %c0_10 = arith.constant 0 : index
    %17 = vector.load %arg2[%c1, %c0_9, %c0_10] : memref<5x8x8xf32, #tpu.memory_space<vmem>>, vector<1x8x8xf32>
    %18 = vector.shape_cast %17 : vector<1x8x8xf32> to vector<8x8xf32>
    %19 = arith.truncf %18 : vector<8x8xf32> to vector<8x8xbf16>
    %20 = vector.extract_strided_slice %7 {offsets = [0, 1], sizes = [8, 8], strides = [1, 1]} : vector<8x12xbf16> to vector<8x8xbf16>
    %cst_11 = arith.constant dense<0.000000e+00> : vector<8x8xf32>
    %21 = tpu.matmul %19, %20, %cst_11 {dimension_numbers = #tpu.dot_dimension_numbers<[1], [0], [0], [1], [0, 0, 1, 1], [], []>} : vector<8x8xbf16>, vector<8x8xbf16>, vector<8x8xf32> -> vector<8x8xf32>
    %22 = arith.addf %16, %21 : vector<8x8xf32>
    %c2 = arith.constant 2 : index
    %c0_12 = arith.constant 0 : index
    %c0_13 = arith.constant 0 : index
    %23 = vector.load %arg2[%c2, %c0_12, %c0_13] : memref<5x8x8xf32, #tpu.memory_space<vmem>>, vector<1x8x8xf32>
    %24 = vector.shape_cast %23 : vector<1x8x8xf32> to vector<8x8xf32>
    %25 = arith.truncf %24 : vector<8x8xf32> to vector<8x8xbf16>
    %26 = vector.extract_strided_slice %7 {offsets = [0, 2], sizes = [8, 8], strides = [1, 1]} : vector<8x12xbf16> to vector<8x8xbf16>
    %cst_14 = arith.constant dense<0.000000e+00> : vector<8x8xf32>
    %27 = tpu.matmul %25, %26, %cst_14 {dimension_numbers = #tpu.dot_dimension_numbers<[1], [0], [0], [1], [0, 0, 1, 1], [], []>} : vector<8x8xbf16>, vector<8x8xbf16>, vector<8x8xf32> -> vector<8x8xf32>
    %28 = arith.addf %22, %27 : vector<8x8xf32>
    %c3 = arith.constant 3 : index
    %c0_15 = arith.constant 0 : index
    %c0_16 = arith.constant 0 : index
    %29 = vector.load %arg2[%c3, %c0_15, %c0_16] : memref<5x8x8xf32, #tpu.memory_space<vmem>>, vector<1x8x8xf32>
    %30 = vector.shape_cast %29 : vector<1x8x8xf32> to vector<8x8xf32>
    %31 = arith.truncf %30 : vector<8x8xf32> to vector<8x8xbf16>
    %32 = vector.extract_strided_slice %7 {offsets = [0, 3], sizes = [8, 8], strides = [1, 1]} : vector<8x12xbf16> to vector<8x8xbf16>
    %cst_17 = arith.constant dense<0.000000e+00> : vector<8x8xf32>
    %33 = tpu.matmul %31, %32, %cst_17 {dimension_numbers = #tpu.dot_dimension_numbers<[1], [0], [0], [1], [0, 0, 1, 1], [], []>} : vector<8x8xbf16>, vector<8x8xbf16>, vector<8x8xf32> -> vector<8x8xf32>
    %34 = arith.addf %28, %33 : vector<8x8xf32>
    %c4 = arith.constant 4 : index
    %c0_18 = arith.constant 0 : index
    %c0_19 = arith.constant 0 : index
    %35 = vector.load %arg2[%c4, %c0_18, %c0_19] : memref<5x8x8xf32, #tpu.memory_space<vmem>>, vector<1x8x8xf32>
    %36 = vector.shape_cast %35 : vector<1x8x8xf32> to vector<8x8xf32>
    %37 = arith.truncf %36 : vector<8x8xf32> to vector<8x8xbf16>
    %38 = vector.extract_strided_slice %7 {offsets = [0, 4], sizes = [8, 8], strides = [1, 1]} : vector<8x12xbf16> to vector<8x8xbf16>
    %cst_20 = arith.constant dense<0.000000e+00> : vector<8x8xf32>
    %39 = tpu.matmul %37, %38, %cst_20 {dimension_numbers = #tpu.dot_dimension_numbers<[1], [0], [0], [1], [0, 0, 1, 1], [], []>} : vector<8x8xbf16>, vector<8x8xbf16>, vector<8x8xf32> -> vector<8x8xf32>
    %40 = arith.addf %34, %39 : vector<8x8xf32>
    %c0_21 = arith.constant 0 : index
    %c0_22 = arith.constant 0 : index
    %c0_23 = arith.constant 0 : index
    %41 = vector.load %arg4[%c0_21, %c0_22, %c0_23] : memref<1x8x8xf32, #tpu.memory_space<vmem>>, vector<1x8x8xf32>
    %42 = vector.shape_cast %41 : vector<1x8x8xf32> to vector<8x8xf32>
    %43 = vector.shape_cast %40 : vector<8x8xf32> to vector<1x8x8xf32>
    tpu.vector_store %arg4[%c0_21, %c0_22, %c0_23], %43 {strides = array<i32>} : memref<1x8x8xf32, #tpu.memory_space<vmem>>, vector<1x8x8xf32>,
    return
  }
  func.func @transform_0(%arg0: i32) -> (i32, i32, i32) {
    %c0_i32 = arith.constant 0 : i32
    %c0_i32_0 = arith.constant 0 : i32
    %c0_i32_1 = arith.constant 0 : i32
    return %arg0, %c0_i32, %c0_i32_0 : i32, i32, i32
  }
  func.func @transform_1(%arg0: i32) -> (i32, i32, i32) {
    %c0_i32 = arith.constant 0 : i32
    %c0_i32_0 = arith.constant 0 : i32
    %c0_i32_1 = arith.constant 0 : i32
    %c0_i32_2 = arith.constant 0 : i32
    return %c0_i32, %c0_i32_0, %c0_i32_1 : i32, i32, i32
  }
  func.func @transform_2(%arg0: i32) -> (i32, i32) {
    %c0_i32 = arith.constant 0 : i32
    %c0_i32_0 = arith.constant 0 : i32
    %c0_i32_1 = arith.constant 0 : i32
    return %c0_i32, %c0_i32_0 : i32, i32
  }
  func.func @transform_3(%arg0: i32) -> (i32, i32, i32) {
    %c0_i32 = arith.constant 0 : i32
    %c0_i32_0 = arith.constant 0 : i32
    %c0_i32_1 = arith.constant 0 : i32
    return %arg0, %c0_i32, %c0_i32_0 : i32, i32, i32
  }
}

module attributes {stable_mosaic.version = 11 : i64} {
  func.func @_conv1d_bias_kernel(%arg0: i32, %arg1: memref<1x8x14xf32, #tpu.memory_space<vmem>>, %arg2: memref<3x8x8xf32, #tpu.memory_space<vmem>>, %arg3: memref<8x1xf32, #tpu.memory_space<vmem>>, %arg4: memref<1x8x8xf32, #tpu.memory_space<vmem>>) attributes {dimension_semantics = [#tpu.dimension_semantics<parallel>], iteration_bounds = array<i64: 2>, scalar_prefetch = 0 : i64, scratch_operands = 0 : i64, tpu.core_type = #tpu.core_type<tc>, window_params = [{transform_indices = @transform_0, window_bounds = array<i64: 1, 8, 14>}, {pipeline_mode = #tpu.pipeline_mode<synchronous>, transform_indices = @transform_1, window_bounds = array<i64: 3, 8, 8>}, {pipeline_mode = #tpu.pipeline_mode<synchronous>, transform_indices = @transform_2, window_bounds = array<i64: 8, 1>}, {transform_indices = @transform_3, window_bounds = array<i64: 1, 8, 8>}]} {
    %c0 = arith.constant 0 : index
    %c0_0 = arith.constant 0 : index
    %c0_1 = arith.constant 0 : index
    %0 = vector.load %arg1[%c0, %c0_0, %c0_1] : memref<1x8x14xf32, #tpu.memory_space<vmem>>, vector<1x8x14xf32>
    %1 = vector.shape_cast %0 : vector<1x8x14xf32> to vector<8x14xf32>
    %cst = arith.constant 0.000000e+00 : f32
    %2 = vector.broadcast %cst : f32 to vector<8x14xf32>
    %3 = arith.cmpf oge, %1, %2 : vector<8x14xf32>
    %cst_2 = arith.constant 1.000000e-01 : f32
    %4 = vector.broadcast %cst_2 : f32 to vector<8x14xf32>
    %5 = arith.mulf %1, %4 : vector<8x14xf32>
    %6 = arith.select %3, %1, %5 : vector<8x14xi1>, vector<8x14xf32>
    %7 = arith.truncf %6 : vector<8x14xf32> to vector<8x14xbf16>
    %c0_3 = arith.constant 0 : index
    %c0_4 = arith.constant 0 : index
    %8 = vector.load %arg3[%c0_3, %c0_4] : memref<8x1xf32, #tpu.memory_space<vmem>>, vector<8x1xf32>
    %9 = vector.shape_cast %8 : vector<8x1xf32> to vector<8x1xf32>
    %10 = vector.broadcast %9 : vector<8x1xf32> to vector<8x8xf32>
    %c0_5 = arith.constant 0 : index
    %c0_6 = arith.constant 0 : index
    %c0_7 = arith.constant 0 : index
    %11 = vector.load %arg2[%c0_5, %c0_6, %c0_7] : memref<3x8x8xf32, #tpu.memory_space<vmem>>, vector<1x8x8xf32>
    %12 = vector.shape_cast %11 : vector<1x8x8xf32> to vector<8x8xf32>
    %13 = arith.truncf %12 : vector<8x8xf32> to vector<8x8xbf16>
    %14 = vector.extract_strided_slice %7 {offsets = [0, 0], sizes = [8, 8], strides = [1, 1]} : vector<8x14xbf16> to vector<8x8xbf16>
    %cst_8 = arith.constant dense<0.000000e+00> : vector<8x8xf32>
    %15 = tpu.matmul %13, %14, %cst_8 {dimension_numbers = #tpu.dot_dimension_numbers<[1], [0], [0], [1], [0, 0, 1, 1], [], []>} : vector<8x8xbf16>, vector<8x8xbf16>, vector<8x8xf32> -> vector<8x8xf32>
    %16 = arith.addf %10, %15 : vector<8x8xf32>
    %c1 = arith.constant 1 : index
    %c0_9 = arith.constant 0 : index
    %c0_10 = arith.constant 0 : index
    %17 = vector.load %arg2[%c1, %c0_9, %c0_10] : memref<3x8x8xf32, #tpu.memory_space<vmem>>, vector<1x8x8xf32>
    %18 = vector.shape_cast %17 : vector<1x8x8xf32> to vector<8x8xf32>
    %19 = arith.truncf %18 : vector<8x8xf32> to vector<8x8xbf16>
    %20 = vector.extract_strided_slice %7 {offsets = [0, 3], sizes = [8, 8], strides = [1, 1]} : vector<8x14xbf16> to vector<8x8xbf16>
    %cst_11 = arith.constant dense<0.000000e+00> : vector<8x8xf32>
    %21 = tpu.matmul %19, %20, %cst_11 {dimension_numbers = #tpu.dot_dimension_numbers<[1], [0], [0], [1], [0, 0, 1, 1], [], []>} : vector<8x8xbf16>, vector<8x8xbf16>, vector<8x8xf32> -> vector<8x8xf32>
    %22 = arith.addf %16, %21 : vector<8x8xf32>
    %c2 = arith.constant 2 : index
    %c0_12 = arith.constant 0 : index
    %c0_13 = arith.constant 0 : index
    %23 = vector.load %arg2[%c2, %c0_12, %c0_13] : memref<3x8x8xf32, #tpu.memory_space<vmem>>, vector<1x8x8xf32>
    %24 = vector.shape_cast %23 : vector<1x8x8xf32> to vector<8x8xf32>
    %25 = arith.truncf %24 : vector<8x8xf32> to vector<8x8xbf16>
    %26 = vector.extract_strided_slice %7 {offsets = [0, 6], sizes = [8, 8], strides = [1, 1]} : vector<8x14xbf16> to vector<8x8xbf16>
    %cst_14 = arith.constant dense<0.000000e+00> : vector<8x8xf32>
    %27 = tpu.matmul %25, %26, %cst_14 {dimension_numbers = #tpu.dot_dimension_numbers<[1], [0], [0], [1], [0, 0, 1, 1], [], []>} : vector<8x8xbf16>, vector<8x8xbf16>, vector<8x8xf32> -> vector<8x8xf32>
    %28 = arith.addf %22, %27 : vector<8x8xf32>
    %c0_15 = arith.constant 0 : index
    %c0_16 = arith.constant 0 : index
    %c0_17 = arith.constant 0 : index
    %29 = vector.load %arg4[%c0_15, %c0_16, %c0_17] : memref<1x8x8xf32, #tpu.memory_space<vmem>>, vector<1x8x8xf32>
    %30 = vector.shape_cast %29 : vector<1x8x8xf32> to vector<8x8xf32>
    %31 = vector.shape_cast %28 : vector<8x8xf32> to vector<1x8x8xf32>
    tpu.vector_store %arg4[%c0_15, %c0_16, %c0_17], %31 {strides = array<i32>} : memref<1x8x8xf32, #tpu.memory_space<vmem>>, vector<1x8x8xf32>,
    return
  }
  func.func @transform_0(%arg0: i32) -> (i32, i32, i32) {
    %c0_i32 = arith.constant 0 : i32
    %c0_i32_0 = arith.constant 0 : i32
    %c0_i32_1 = arith.constant 0 : i32
    return %arg0, %c0_i32, %c0_i32_0 : i32, i32, i32
  }
  func.func @transform_1(%arg0: i32) -> (i32, i32, i32) {
    %c0_i32 = arith.constant 0 : i32
    %c0_i32_0 = arith.constant 0 : i32
    %c0_i32_1 = arith.constant 0 : i32
    %c0_i32_2 = arith.constant 0 : i32
    return %c0_i32, %c0_i32_0, %c0_i32_1 : i32, i32, i32
  }
  func.func @transform_2(%arg0: i32) -> (i32, i32) {
    %c0_i32 = arith.constant 0 : i32
    %c0_i32_0 = arith.constant 0 : i32
    %c0_i32_1 = arith.constant 0 : i32
    return %c0_i32, %c0_i32_0 : i32, i32
  }
  func.func @transform_3(%arg0: i32) -> (i32, i32, i32) {
    %c0_i32 = arith.constant 0 : i32
    %c0_i32_0 = arith.constant 0 : i32
    %c0_i32_1 = arith.constant 0 : i32
    return %arg0, %c0_i32, %c0_i32_0 : i32, i32, i32
  }
}

module attributes {stable_mosaic.version = 11 : i64} {
  func.func @_conv1d_bias_kernel(%arg0: i32, %arg1: memref<1x8x18xf32, #tpu.memory_space<vmem>>, %arg2: memref<3x8x8xf32, #tpu.memory_space<vmem>>, %arg3: memref<8x1xf32, #tpu.memory_space<vmem>>, %arg4: memref<1x8x8xf32, #tpu.memory_space<vmem>>) attributes {dimension_semantics = [#tpu.dimension_semantics<parallel>], iteration_bounds = array<i64: 2>, scalar_prefetch = 0 : i64, scratch_operands = 0 : i64, tpu.core_type = #tpu.core_type<tc>, window_params = [{transform_indices = @transform_0, window_bounds = array<i64: 1, 8, 18>}, {pipeline_mode = #tpu.pipeline_mode<synchronous>, transform_indices = @transform_1, window_bounds = array<i64: 3, 8, 8>}, {pipeline_mode = #tpu.pipeline_mode<synchronous>, transform_indices = @transform_2, window_bounds = array<i64: 8, 1>}, {transform_indices = @transform_3, window_bounds = array<i64: 1, 8, 8>}]} {
    %c0 = arith.constant 0 : index
    %c0_0 = arith.constant 0 : index
    %c0_1 = arith.constant 0 : index
    %0 = vector.load %arg1[%c0, %c0_0, %c0_1] : memref<1x8x18xf32, #tpu.memory_space<vmem>>, vector<1x8x18xf32>
    %1 = vector.shape_cast %0 : vector<1x8x18xf32> to vector<8x18xf32>
    %cst = arith.constant 0.000000e+00 : f32
    %2 = vector.broadcast %cst : f32 to vector<8x18xf32>
    %3 = arith.cmpf oge, %1, %2 : vector<8x18xf32>
    %cst_2 = arith.constant 1.000000e-01 : f32
    %4 = vector.broadcast %cst_2 : f32 to vector<8x18xf32>
    %5 = arith.mulf %1, %4 : vector<8x18xf32>
    %6 = arith.select %3, %1, %5 : vector<8x18xi1>, vector<8x18xf32>
    %7 = arith.truncf %6 : vector<8x18xf32> to vector<8x18xbf16>
    %c0_3 = arith.constant 0 : index
    %c0_4 = arith.constant 0 : index
    %8 = vector.load %arg3[%c0_3, %c0_4] : memref<8x1xf32, #tpu.memory_space<vmem>>, vector<8x1xf32>
    %9 = vector.shape_cast %8 : vector<8x1xf32> to vector<8x1xf32>
    %10 = vector.broadcast %9 : vector<8x1xf32> to vector<8x8xf32>
    %c0_5 = arith.constant 0 : index
    %c0_6 = arith.constant 0 : index
    %c0_7 = arith.constant 0 : index
    %11 = vector.load %arg2[%c0_5, %c0_6, %c0_7] : memref<3x8x8xf32, #tpu.memory_space<vmem>>, vector<1x8x8xf32>
    %12 = vector.shape_cast %11 : vector<1x8x8xf32> to vector<8x8xf32>
    %13 = arith.truncf %12 : vector<8x8xf32> to vector<8x8xbf16>
    %14 = vector.extract_strided_slice %7 {offsets = [0, 0], sizes = [8, 8], strides = [1, 1]} : vector<8x18xbf16> to vector<8x8xbf16>
    %cst_8 = arith.constant dense<0.000000e+00> : vector<8x8xf32>
    %15 = tpu.matmul %13, %14, %cst_8 {dimension_numbers = #tpu.dot_dimension_numbers<[1], [0], [0], [1], [0, 0, 1, 1], [], []>} : vector<8x8xbf16>, vector<8x8xbf16>, vector<8x8xf32> -> vector<8x8xf32>
    %16 = arith.addf %10, %15 : vector<8x8xf32>
    %c1 = arith.constant 1 : index
    %c0_9 = arith.constant 0 : index
    %c0_10 = arith.constant 0 : index
    %17 = vector.load %arg2[%c1, %c0_9, %c0_10] : memref<3x8x8xf32, #tpu.memory_space<vmem>>, vector<1x8x8xf32>
    %18 = vector.shape_cast %17 : vector<1x8x8xf32> to vector<8x8xf32>
    %19 = arith.truncf %18 : vector<8x8xf32> to vector<8x8xbf16>
    %20 = vector.extract_strided_slice %7 {offsets = [0, 5], sizes = [8, 8], strides = [1, 1]} : vector<8x18xbf16> to vector<8x8xbf16>
    %cst_11 = arith.constant dense<0.000000e+00> : vector<8x8xf32>
    %21 = tpu.matmul %19, %20, %cst_11 {dimension_numbers = #tpu.dot_dimension_numbers<[1], [0], [0], [1], [0, 0, 1, 1], [], []>} : vector<8x8xbf16>, vector<8x8xbf16>, vector<8x8xf32> -> vector<8x8xf32>
    %22 = arith.addf %16, %21 : vector<8x8xf32>
    %c2 = arith.constant 2 : index
    %c0_12 = arith.constant 0 : index
    %c0_13 = arith.constant 0 : index
    %23 = vector.load %arg2[%c2, %c0_12, %c0_13] : memref<3x8x8xf32, #tpu.memory_space<vmem>>, vector<1x8x8xf32>
    %24 = vector.shape_cast %23 : vector<1x8x8xf32> to vector<8x8xf32>
    %25 = arith.truncf %24 : vector<8x8xf32> to vector<8x8xbf16>
    %26 = vector.extract_strided_slice %7 {offsets = [0, 10], sizes = [8, 8], strides = [1, 1]} : vector<8x18xbf16> to vector<8x8xbf16>
    %cst_14 = arith.constant dense<0.000000e+00> : vector<8x8xf32>
    %27 = tpu.matmul %25, %26, %cst_14 {dimension_numbers = #tpu.dot_dimension_numbers<[1], [0], [0], [1], [0, 0, 1, 1], [], []>} : vector<8x8xbf16>, vector<8x8xbf16>, vector<8x8xf32> -> vector<8x8xf32>
    %28 = arith.addf %22, %27 : vector<8x8xf32>
    %c0_15 = arith.constant 0 : index
    %c0_16 = arith.constant 0 : index
    %c0_17 = arith.constant 0 : index
    %29 = vector.load %arg4[%c0_15, %c0_16, %c0_17] : memref<1x8x8xf32, #tpu.memory_space<vmem>>, vector<1x8x8xf32>
    %30 = vector.shape_cast %29 : vector<1x8x8xf32> to vector<8x8xf32>
    %31 = vector.shape_cast %28 : vector<8x8xf32> to vector<1x8x8xf32>
    tpu.vector_store %arg4[%c0_15, %c0_16, %c0_17], %31 {strides = array<i32>} : memref<1x8x8xf32, #tpu.memory_space<vmem>>, vector<1x8x8xf32>,
    return
  }
  func.func @transform_0(%arg0: i32) -> (i32, i32, i32) {
    %c0_i32 = arith.constant 0 : i32
    %c0_i32_0 = arith.constant 0 : i32
    %c0_i32_1 = arith.constant 0 : i32
    return %arg0, %c0_i32, %c0_i32_0 : i32, i32, i32
  }
  func.func @transform_1(%arg0: i32) -> (i32, i32, i32) {
    %c0_i32 = arith.constant 0 : i32
    %c0_i32_0 = arith.constant 0 : i32
    %c0_i32_1 = arith.constant 0 : i32
    %c0_i32_2 = arith.constant 0 : i32
    return %c0_i32, %c0_i32_0, %c0_i32_1 : i32, i32, i32
  }
  func.func @transform_2(%arg0: i32) -> (i32, i32) {
    %c0_i32 = arith.constant 0 : i32
    %c0_i32_0 = arith.constant 0 : i32
    %c0_i32_1 = arith.constant 0 : i32
    return %c0_i32, %c0_i32_0 : i32, i32
  }
  func.func @transform_3(%arg0: i32) -> (i32, i32, i32) {
    %c0_i32 = arith.constant 0 : i32
    %c0_i32_0 = arith.constant 0 : i32
    %c0_i32_1 = arith.constant 0 : i32
    return %arg0, %c0_i32, %c0_i32_0 : i32, i32, i32
  }
}

module attributes {stable_mosaic.version = 11 : i64} {
  func.func @_conv1d_bias_kernel(%arg0: i32, %arg1: memref<1x8x20xf32, #tpu.memory_space<vmem>>, %arg2: memref<5x8x8xf32, #tpu.memory_space<vmem>>, %arg3: memref<8x1xf32, #tpu.memory_space<vmem>>, %arg4: memref<1x8x8xf32, #tpu.memory_space<vmem>>) attributes {dimension_semantics = [#tpu.dimension_semantics<parallel>], iteration_bounds = array<i64: 2>, scalar_prefetch = 0 : i64, scratch_operands = 0 : i64, tpu.core_type = #tpu.core_type<tc>, window_params = [{transform_indices = @transform_0, window_bounds = array<i64: 1, 8, 20>}, {pipeline_mode = #tpu.pipeline_mode<synchronous>, transform_indices = @transform_1, window_bounds = array<i64: 5, 8, 8>}, {pipeline_mode = #tpu.pipeline_mode<synchronous>, transform_indices = @transform_2, window_bounds = array<i64: 8, 1>}, {transform_indices = @transform_3, window_bounds = array<i64: 1, 8, 8>}]} {
    %c0 = arith.constant 0 : index
    %c0_0 = arith.constant 0 : index
    %c0_1 = arith.constant 0 : index
    %0 = vector.load %arg1[%c0, %c0_0, %c0_1] : memref<1x8x20xf32, #tpu.memory_space<vmem>>, vector<1x8x20xf32>
    %1 = vector.shape_cast %0 : vector<1x8x20xf32> to vector<8x20xf32>
    %cst = arith.constant 0.000000e+00 : f32
    %2 = vector.broadcast %cst : f32 to vector<8x20xf32>
    %3 = arith.cmpf oge, %1, %2 : vector<8x20xf32>
    %cst_2 = arith.constant 1.000000e-01 : f32
    %4 = vector.broadcast %cst_2 : f32 to vector<8x20xf32>
    %5 = arith.mulf %1, %4 : vector<8x20xf32>
    %6 = arith.select %3, %1, %5 : vector<8x20xi1>, vector<8x20xf32>
    %7 = arith.truncf %6 : vector<8x20xf32> to vector<8x20xbf16>
    %c0_3 = arith.constant 0 : index
    %c0_4 = arith.constant 0 : index
    %8 = vector.load %arg3[%c0_3, %c0_4] : memref<8x1xf32, #tpu.memory_space<vmem>>, vector<8x1xf32>
    %9 = vector.shape_cast %8 : vector<8x1xf32> to vector<8x1xf32>
    %10 = vector.broadcast %9 : vector<8x1xf32> to vector<8x8xf32>
    %c0_5 = arith.constant 0 : index
    %c0_6 = arith.constant 0 : index
    %c0_7 = arith.constant 0 : index
    %11 = vector.load %arg2[%c0_5, %c0_6, %c0_7] : memref<5x8x8xf32, #tpu.memory_space<vmem>>, vector<1x8x8xf32>
    %12 = vector.shape_cast %11 : vector<1x8x8xf32> to vector<8x8xf32>
    %13 = arith.truncf %12 : vector<8x8xf32> to vector<8x8xbf16>
    %14 = vector.extract_strided_slice %7 {offsets = [0, 0], sizes = [8, 8], strides = [1, 1]} : vector<8x20xbf16> to vector<8x8xbf16>
    %cst_8 = arith.constant dense<0.000000e+00> : vector<8x8xf32>
    %15 = tpu.matmul %13, %14, %cst_8 {dimension_numbers = #tpu.dot_dimension_numbers<[1], [0], [0], [1], [0, 0, 1, 1], [], []>} : vector<8x8xbf16>, vector<8x8xbf16>, vector<8x8xf32> -> vector<8x8xf32>
    %16 = arith.addf %10, %15 : vector<8x8xf32>
    %c1 = arith.constant 1 : index
    %c0_9 = arith.constant 0 : index
    %c0_10 = arith.constant 0 : index
    %17 = vector.load %arg2[%c1, %c0_9, %c0_10] : memref<5x8x8xf32, #tpu.memory_space<vmem>>, vector<1x8x8xf32>
    %18 = vector.shape_cast %17 : vector<1x8x8xf32> to vector<8x8xf32>
    %19 = arith.truncf %18 : vector<8x8xf32> to vector<8x8xbf16>
    %20 = vector.extract_strided_slice %7 {offsets = [0, 3], sizes = [8, 8], strides = [1, 1]} : vector<8x20xbf16> to vector<8x8xbf16>
    %cst_11 = arith.constant dense<0.000000e+00> : vector<8x8xf32>
    %21 = tpu.matmul %19, %20, %cst_11 {dimension_numbers = #tpu.dot_dimension_numbers<[1], [0], [0], [1], [0, 0, 1, 1], [], []>} : vector<8x8xbf16>, vector<8x8xbf16>, vector<8x8xf32> -> vector<8x8xf32>
    %22 = arith.addf %16, %21 : vector<8x8xf32>
    %c2 = arith.constant 2 : index
    %c0_12 = arith.constant 0 : index
    %c0_13 = arith.constant 0 : index
    %23 = vector.load %arg2[%c2, %c0_12, %c0_13] : memref<5x8x8xf32, #tpu.memory_space<vmem>>, vector<1x8x8xf32>
    %24 = vector.shape_cast %23 : vector<1x8x8xf32> to vector<8x8xf32>
    %25 = arith.truncf %24 : vector<8x8xf32> to vector<8x8xbf16>
    %26 = vector.extract_strided_slice %7 {offsets = [0, 6], sizes = [8, 8], strides = [1, 1]} : vector<8x20xbf16> to vector<8x8xbf16>
    %cst_14 = arith.constant dense<0.000000e+00> : vector<8x8xf32>
    %27 = tpu.matmul %25, %26, %cst_14 {dimension_numbers = #tpu.dot_dimension_numbers<[1], [0], [0], [1], [0, 0, 1, 1], [], []>} : vector<8x8xbf16>, vector<8x8xbf16>, vector<8x8xf32> -> vector<8x8xf32>
    %28 = arith.addf %22, %27 : vector<8x8xf32>
    %c3 = arith.constant 3 : index
    %c0_15 = arith.constant 0 : index
    %c0_16 = arith.constant 0 : index
    %29 = vector.load %arg2[%c3, %c0_15, %c0_16] : memref<5x8x8xf32, #tpu.memory_space<vmem>>, vector<1x8x8xf32>
    %30 = vector.shape_cast %29 : vector<1x8x8xf32> to vector<8x8xf32>
    %31 = arith.truncf %30 : vector<8x8xf32> to vector<8x8xbf16>
    %32 = vector.extract_strided_slice %7 {offsets = [0, 9], sizes = [8, 8], strides = [1, 1]} : vector<8x20xbf16> to vector<8x8xbf16>
    %cst_17 = arith.constant dense<0.000000e+00> : vector<8x8xf32>
    %33 = tpu.matmul %31, %32, %cst_17 {dimension_numbers = #tpu.dot_dimension_numbers<[1], [0], [0], [1], [0, 0, 1, 1], [], []>} : vector<8x8xbf16>, vector<8x8xbf16>, vector<8x8xf32> -> vector<8x8xf32>
    %34 = arith.addf %28, %33 : vector<8x8xf32>
    %c4 = arith.constant 4 : index
    %c0_18 = arith.constant 0 : index
    %c0_19 = arith.constant 0 : index
    %35 = vector.load %arg2[%c4, %c0_18, %c0_19] : memref<5x8x8xf32, #tpu.memory_space<vmem>>, vector<1x8x8xf32>
    %36 = vector.shape_cast %35 : vector<1x8x8xf32> to vector<8x8xf32>
    %37 = arith.truncf %36 : vector<8x8xf32> to vector<8x8xbf16>
    %38 = vector.extract_strided_slice %7 {offsets = [0, 12], sizes = [8, 8], strides = [1, 1]} : vector<8x20xbf16> to vector<8x8xbf16>
    %cst_20 = arith.constant dense<0.000000e+00> : vector<8x8xf32>
    %39 = tpu.matmul %37, %38, %cst_20 {dimension_numbers = #tpu.dot_dimension_numbers<[1], [0], [0], [1], [0, 0, 1, 1], [], []>} : vector<8x8xbf16>, vector<8x8xbf16>, vector<8x8xf32> -> vector<8x8xf32>
    %40 = arith.addf %34, %39 : vector<8x8xf32>
    %c0_21 = arith.constant 0 : index
    %c0_22 = arith.constant 0 : index
    %c0_23 = arith.constant 0 : index
    %41 = vector.load %arg4[%c0_21, %c0_22, %c0_23] : memref<1x8x8xf32, #tpu.memory_space<vmem>>, vector<1x8x8xf32>
    %42 = vector.shape_cast %41 : vector<1x8x8xf32> to vector<8x8xf32>
    %43 = vector.shape_cast %40 : vector<8x8xf32> to vector<1x8x8xf32>
    tpu.vector_store %arg4[%c0_21, %c0_22, %c0_23], %43 {strides = array<i32>} : memref<1x8x8xf32, #tpu.memory_space<vmem>>, vector<1x8x8xf32>,
    return
  }
  func.func @transform_0(%arg0: i32) -> (i32, i32, i32) {
    %c0_i32 = arith.constant 0 : i32
    %c0_i32_0 = arith.constant 0 : i32
    %c0_i32_1 = arith.constant 0 : i32
    return %arg0, %c0_i32, %c0_i32_0 : i32, i32, i32
  }
  func.func @transform_1(%arg0: i32) -> (i32, i32, i32) {
    %c0_i32 = arith.constant 0 : i32
    %c0_i32_0 = arith.constant 0 : i32
    %c0_i32_1 = arith.constant 0 : i32
    %c0_i32_2 = arith.constant 0 : i32
    return %c0_i32, %c0_i32_0, %c0_i32_1 : i32, i32, i32
  }
  func.func @transform_2(%arg0: i32) -> (i32, i32) {
    %c0_i32 = arith.constant 0 : i32
    %c0_i32_0 = arith.constant 0 : i32
    %c0_i32_1 = arith.constant 0 : i32
    return %c0_i32, %c0_i32_0 : i32, i32
  }
  func.func @transform_3(%arg0: i32) -> (i32, i32, i32) {
    %c0_i32 = arith.constant 0 : i32
    %c0_i32_0 = arith.constant 0 : i32
    %c0_i32_1 = arith.constant 0 : i32
    return %arg0, %c0_i32, %c0_i32_0 : i32, i32, i32
  }
}

module attributes {stable_mosaic.version = 11 : i64} {
  func.func @_conv1d_bias_kernel(%arg0: i32, %arg1: memref<1x8x28xf32, #tpu.memory_space<vmem>>, %arg2: memref<5x8x8xf32, #tpu.memory_space<vmem>>, %arg3: memref<8x1xf32, #tpu.memory_space<vmem>>, %arg4: memref<1x8x8xf32, #tpu.memory_space<vmem>>) attributes {dimension_semantics = [#tpu.dimension_semantics<parallel>], iteration_bounds = array<i64: 2>, scalar_prefetch = 0 : i64, scratch_operands = 0 : i64, tpu.core_type = #tpu.core_type<tc>, window_params = [{transform_indices = @transform_0, window_bounds = array<i64: 1, 8, 28>}, {pipeline_mode = #tpu.pipeline_mode<synchronous>, transform_indices = @transform_1, window_bounds = array<i64: 5, 8, 8>}, {pipeline_mode = #tpu.pipeline_mode<synchronous>, transform_indices = @transform_2, window_bounds = array<i64: 8, 1>}, {transform_indices = @transform_3, window_bounds = array<i64: 1, 8, 8>}]} {
    %c0 = arith.constant 0 : index
    %c0_0 = arith.constant 0 : index
    %c0_1 = arith.constant 0 : index
    %0 = vector.load %arg1[%c0, %c0_0, %c0_1] : memref<1x8x28xf32, #tpu.memory_space<vmem>>, vector<1x8x28xf32>
    %1 = vector.shape_cast %0 : vector<1x8x28xf32> to vector<8x28xf32>
    %cst = arith.constant 0.000000e+00 : f32
    %2 = vector.broadcast %cst : f32 to vector<8x28xf32>
    %3 = arith.cmpf oge, %1, %2 : vector<8x28xf32>
    %cst_2 = arith.constant 1.000000e-01 : f32
    %4 = vector.broadcast %cst_2 : f32 to vector<8x28xf32>
    %5 = arith.mulf %1, %4 : vector<8x28xf32>
    %6 = arith.select %3, %1, %5 : vector<8x28xi1>, vector<8x28xf32>
    %7 = arith.truncf %6 : vector<8x28xf32> to vector<8x28xbf16>
    %c0_3 = arith.constant 0 : index
    %c0_4 = arith.constant 0 : index
    %8 = vector.load %arg3[%c0_3, %c0_4] : memref<8x1xf32, #tpu.memory_space<vmem>>, vector<8x1xf32>
    %9 = vector.shape_cast %8 : vector<8x1xf32> to vector<8x1xf32>
    %10 = vector.broadcast %9 : vector<8x1xf32> to vector<8x8xf32>
    %c0_5 = arith.constant 0 : index
    %c0_6 = arith.constant 0 : index
    %c0_7 = arith.constant 0 : index
    %11 = vector.load %arg2[%c0_5, %c0_6, %c0_7] : memref<5x8x8xf32, #tpu.memory_space<vmem>>, vector<1x8x8xf32>
    %12 = vector.shape_cast %11 : vector<1x8x8xf32> to vector<8x8xf32>
    %13 = arith.truncf %12 : vector<8x8xf32> to vector<8x8xbf16>
    %14 = vector.extract_strided_slice %7 {offsets = [0, 0], sizes = [8, 8], strides = [1, 1]} : vector<8x28xbf16> to vector<8x8xbf16>
    %cst_8 = arith.constant dense<0.000000e+00> : vector<8x8xf32>
    %15 = tpu.matmul %13, %14, %cst_8 {dimension_numbers = #tpu.dot_dimension_numbers<[1], [0], [0], [1], [0, 0, 1, 1], [], []>} : vector<8x8xbf16>, vector<8x8xbf16>, vector<8x8xf32> -> vector<8x8xf32>
    %16 = arith.addf %10, %15 : vector<8x8xf32>
    %c1 = arith.constant 1 : index
    %c0_9 = arith.constant 0 : index
    %c0_10 = arith.constant 0 : index
    %17 = vector.load %arg2[%c1, %c0_9, %c0_10] : memref<5x8x8xf32, #tpu.memory_space<vmem>>, vector<1x8x8xf32>
    %18 = vector.shape_cast %17 : vector<1x8x8xf32> to vector<8x8xf32>
    %19 = arith.truncf %18 : vector<8x8xf32> to vector<8x8xbf16>
    %20 = vector.extract_strided_slice %7 {offsets = [0, 5], sizes = [8, 8], strides = [1, 1]} : vector<8x28xbf16> to vector<8x8xbf16>
    %cst_11 = arith.constant dense<0.000000e+00> : vector<8x8xf32>
    %21 = tpu.matmul %19, %20, %cst_11 {dimension_numbers = #tpu.dot_dimension_numbers<[1], [0], [0], [1], [0, 0, 1, 1], [], []>} : vector<8x8xbf16>, vector<8x8xbf16>, vector<8x8xf32> -> vector<8x8xf32>
    %22 = arith.addf %16, %21 : vector<8x8xf32>
    %c2 = arith.constant 2 : index
    %c0_12 = arith.constant 0 : index
    %c0_13 = arith.constant 0 : index
    %23 = vector.load %arg2[%c2, %c0_12, %c0_13] : memref<5x8x8xf32, #tpu.memory_space<vmem>>, vector<1x8x8xf32>
    %24 = vector.shape_cast %23 : vector<1x8x8xf32> to vector<8x8xf32>
    %25 = arith.truncf %24 : vector<8x8xf32> to vector<8x8xbf16>
    %26 = vector.extract_strided_slice %7 {offsets = [0, 10], sizes = [8, 8], strides = [1, 1]} : vector<8x28xbf16> to vector<8x8xbf16>
    %cst_14 = arith.constant dense<0.000000e+00> : vector<8x8xf32>
    %27 = tpu.matmul %25, %26, %cst_14 {dimension_numbers = #tpu.dot_dimension_numbers<[1], [0], [0], [1], [0, 0, 1, 1], [], []>} : vector<8x8xbf16>, vector<8x8xbf16>, vector<8x8xf32> -> vector<8x8xf32>
    %28 = arith.addf %22, %27 : vector<8x8xf32>
    %c3 = arith.constant 3 : index
    %c0_15 = arith.constant 0 : index
    %c0_16 = arith.constant 0 : index
    %29 = vector.load %arg2[%c3, %c0_15, %c0_16] : memref<5x8x8xf32, #tpu.memory_space<vmem>>, vector<1x8x8xf32>
    %30 = vector.shape_cast %29 : vector<1x8x8xf32> to vector<8x8xf32>
    %31 = arith.truncf %30 : vector<8x8xf32> to vector<8x8xbf16>
    %32 = vector.extract_strided_slice %7 {offsets = [0, 15], sizes = [8, 8], strides = [1, 1]} : vector<8x28xbf16> to vector<8x8xbf16>
    %cst_17 = arith.constant dense<0.000000e+00> : vector<8x8xf32>
    %33 = tpu.matmul %31, %32, %cst_17 {dimension_numbers = #tpu.dot_dimension_numbers<[1], [0], [0], [1], [0, 0, 1, 1], [], []>} : vector<8x8xbf16>, vector<8x8xbf16>, vector<8x8xf32> -> vector<8x8xf32>
    %34 = arith.addf %28, %33 : vector<8x8xf32>
    %c4 = arith.constant 4 : index
    %c0_18 = arith.constant 0 : index
    %c0_19 = arith.constant 0 : index
    %35 = vector.load %arg2[%c4, %c0_18, %c0_19] : memref<5x8x8xf32, #tpu.memory_space<vmem>>, vector<1x8x8xf32>
    %36 = vector.shape_cast %35 : vector<1x8x8xf32> to vector<8x8xf32>
    %37 = arith.truncf %36 : vector<8x8xf32> to vector<8x8xbf16>
    %38 = vector.extract_strided_slice %7 {offsets = [0, 20], sizes = [8, 8], strides = [1, 1]} : vector<8x28xbf16> to vector<8x8xbf16>
    %cst_20 = arith.constant dense<0.000000e+00> : vector<8x8xf32>
    %39 = tpu.matmul %37, %38, %cst_20 {dimension_numbers = #tpu.dot_dimension_numbers<[1], [0], [0], [1], [0, 0, 1, 1], [], []>} : vector<8x8xbf16>, vector<8x8xbf16>, vector<8x8xf32> -> vector<8x8xf32>
    %40 = arith.addf %34, %39 : vector<8x8xf32>
    %c0_21 = arith.constant 0 : index
    %c0_22 = arith.constant 0 : index
    %c0_23 = arith.constant 0 : index
    %41 = vector.load %arg4[%c0_21, %c0_22, %c0_23] : memref<1x8x8xf32, #tpu.memory_space<vmem>>, vector<1x8x8xf32>
    %42 = vector.shape_cast %41 : vector<1x8x8xf32> to vector<8x8xf32>
    %43 = vector.shape_cast %40 : vector<8x8xf32> to vector<1x8x8xf32>
    tpu.vector_store %arg4[%c0_21, %c0_22, %c0_23], %43 {strides = array<i32>} : memref<1x8x8xf32, #tpu.memory_space<vmem>>, vector<1x8x8xf32>,
    return
  }
  func.func @transform_0(%arg0: i32) -> (i32, i32, i32) {
    %c0_i32 = arith.constant 0 : i32
    %c0_i32_0 = arith.constant 0 : i32
    %c0_i32_1 = arith.constant 0 : i32
    return %arg0, %c0_i32, %c0_i32_0 : i32, i32, i32
  }
  func.func @transform_1(%arg0: i32) -> (i32, i32, i32) {
    %c0_i32 = arith.constant 0 : i32
    %c0_i32_0 = arith.constant 0 : i32
    %c0_i32_1 = arith.constant 0 : i32
    %c0_i32_2 = arith.constant 0 : i32
    return %c0_i32, %c0_i32_0, %c0_i32_1 : i32, i32, i32
  }
  func.func @transform_2(%arg0: i32) -> (i32, i32) {
    %c0_i32 = arith.constant 0 : i32
    %c0_i32_0 = arith.constant 0 : i32
    %c0_i32_1 = arith.constant 0 : i32
    return %c0_i32, %c0_i32_0 : i32, i32
  }
  func.func @transform_3(%arg0: i32) -> (i32, i32, i32) {
    %c0_i32 = arith.constant 0 : i32
    %c0_i32_0 = arith.constant 0 : i32
    %c0_i32_1 = arith.constant 0 : i32
    return %arg0, %c0_i32, %c0_i32_0 : i32, i32, i32
  }
}

module attributes {stable_mosaic.version = 11 : i64} {
  func.func @_conv1d_bias_kernel(%arg0: i32, %arg1: memref<1x8x19xf32, #tpu.memory_space<vmem>>, %arg2: memref<4x4x8xf32, #tpu.memory_space<vmem>>, %arg3: memref<4x1xf32, #tpu.memory_space<vmem>>, %arg4: memref<1x4x16xf32, #tpu.memory_space<vmem>>) attributes {dimension_semantics = [#tpu.dimension_semantics<parallel>], iteration_bounds = array<i64: 2>, scalar_prefetch = 0 : i64, scratch_operands = 0 : i64, tpu.core_type = #tpu.core_type<tc>, window_params = [{transform_indices = @transform_0, window_bounds = array<i64: 1, 8, 19>}, {pipeline_mode = #tpu.pipeline_mode<synchronous>, transform_indices = @transform_1, window_bounds = array<i64: 4, 4, 8>}, {pipeline_mode = #tpu.pipeline_mode<synchronous>, transform_indices = @transform_2, window_bounds = array<i64: 4, 1>}, {transform_indices = @transform_3, window_bounds = array<i64: 1, 4, 16>}]} {
    %c0 = arith.constant 0 : index
    %c0_0 = arith.constant 0 : index
    %c0_1 = arith.constant 0 : index
    %0 = vector.load %arg1[%c0, %c0_0, %c0_1] : memref<1x8x19xf32, #tpu.memory_space<vmem>>, vector<1x8x19xf32>
    %1 = vector.shape_cast %0 : vector<1x8x19xf32> to vector<8x19xf32>
    %cst = arith.constant 0.000000e+00 : f32
    %2 = vector.broadcast %cst : f32 to vector<8x19xf32>
    %3 = arith.cmpf oge, %1, %2 : vector<8x19xf32>
    %cst_2 = arith.constant 1.000000e-01 : f32
    %4 = vector.broadcast %cst_2 : f32 to vector<8x19xf32>
    %5 = arith.mulf %1, %4 : vector<8x19xf32>
    %6 = arith.select %3, %1, %5 : vector<8x19xi1>, vector<8x19xf32>
    %7 = arith.truncf %6 : vector<8x19xf32> to vector<8x19xbf16>
    %c0_3 = arith.constant 0 : index
    %c0_4 = arith.constant 0 : index
    %8 = vector.load %arg3[%c0_3, %c0_4] : memref<4x1xf32, #tpu.memory_space<vmem>>, vector<4x1xf32>
    %9 = vector.shape_cast %8 : vector<4x1xf32> to vector<4x1xf32>
    %10 = vector.broadcast %9 : vector<4x1xf32> to vector<4x16xf32>
    %c0_5 = arith.constant 0 : index
    %c0_6 = arith.constant 0 : index
    %c0_7 = arith.constant 0 : index
    %11 = vector.load %arg2[%c0_5, %c0_6, %c0_7] : memref<4x4x8xf32, #tpu.memory_space<vmem>>, vector<1x4x8xf32>
    %12 = vector.shape_cast %11 : vector<1x4x8xf32> to vector<4x8xf32>
    %13 = arith.truncf %12 : vector<4x8xf32> to vector<4x8xbf16>
    %14 = vector.extract_strided_slice %7 {offsets = [0, 0], sizes = [8, 16], strides = [1, 1]} : vector<8x19xbf16> to vector<8x16xbf16>
    %cst_8 = arith.constant dense<0.000000e+00> : vector<4x16xf32>
    %15 = tpu.matmul %13, %14, %cst_8 {dimension_numbers = #tpu.dot_dimension_numbers<[1], [0], [0], [1], [0, 0, 1, 1], [], []>} : vector<4x8xbf16>, vector<8x16xbf16>, vector<4x16xf32> -> vector<4x16xf32>
    %16 = arith.addf %10, %15 : vector<4x16xf32>
    %c1 = arith.constant 1 : index
    %c0_9 = arith.constant 0 : index
    %c0_10 = arith.constant 0 : index
    %17 = vector.load %arg2[%c1, %c0_9, %c0_10] : memref<4x4x8xf32, #tpu.memory_space<vmem>>, vector<1x4x8xf32>
    %18 = vector.shape_cast %17 : vector<1x4x8xf32> to vector<4x8xf32>
    %19 = arith.truncf %18 : vector<4x8xf32> to vector<4x8xbf16>
    %20 = vector.extract_strided_slice %7 {offsets = [0, 1], sizes = [8, 16], strides = [1, 1]} : vector<8x19xbf16> to vector<8x16xbf16>
    %cst_11 = arith.constant dense<0.000000e+00> : vector<4x16xf32>
    %21 = tpu.matmul %19, %20, %cst_11 {dimension_numbers = #tpu.dot_dimension_numbers<[1], [0], [0], [1], [0, 0, 1, 1], [], []>} : vector<4x8xbf16>, vector<8x16xbf16>, vector<4x16xf32> -> vector<4x16xf32>
    %22 = arith.addf %16, %21 : vector<4x16xf32>
    %c2 = arith.constant 2 : index
    %c0_12 = arith.constant 0 : index
    %c0_13 = arith.constant 0 : index
    %23 = vector.load %arg2[%c2, %c0_12, %c0_13] : memref<4x4x8xf32, #tpu.memory_space<vmem>>, vector<1x4x8xf32>
    %24 = vector.shape_cast %23 : vector<1x4x8xf32> to vector<4x8xf32>
    %25 = arith.truncf %24 : vector<4x8xf32> to vector<4x8xbf16>
    %26 = vector.extract_strided_slice %7 {offsets = [0, 2], sizes = [8, 16], strides = [1, 1]} : vector<8x19xbf16> to vector<8x16xbf16>
    %cst_14 = arith.constant dense<0.000000e+00> : vector<4x16xf32>
    %27 = tpu.matmul %25, %26, %cst_14 {dimension_numbers = #tpu.dot_dimension_numbers<[1], [0], [0], [1], [0, 0, 1, 1], [], []>} : vector<4x8xbf16>, vector<8x16xbf16>, vector<4x16xf32> -> vector<4x16xf32>
    %28 = arith.addf %22, %27 : vector<4x16xf32>
    %c3 = arith.constant 3 : index
    %c0_15 = arith.constant 0 : index
    %c0_16 = arith.constant 0 : index
    %29 = vector.load %arg2[%c3, %c0_15, %c0_16] : memref<4x4x8xf32, #tpu.memory_space<vmem>>, vector<1x4x8xf32>
    %30 = vector.shape_cast %29 : vector<1x4x8xf32> to vector<4x8xf32>
    %31 = arith.truncf %30 : vector<4x8xf32> to vector<4x8xbf16>
    %32 = vector.extract_strided_slice %7 {offsets = [0, 3], sizes = [8, 16], strides = [1, 1]} : vector<8x19xbf16> to vector<8x16xbf16>
    %cst_17 = arith.constant dense<0.000000e+00> : vector<4x16xf32>
    %33 = tpu.matmul %31, %32, %cst_17 {dimension_numbers = #tpu.dot_dimension_numbers<[1], [0], [0], [1], [0, 0, 1, 1], [], []>} : vector<4x8xbf16>, vector<8x16xbf16>, vector<4x16xf32> -> vector<4x16xf32>
    %34 = arith.addf %28, %33 : vector<4x16xf32>
    %c0_18 = arith.constant 0 : index
    %c0_19 = arith.constant 0 : index
    %c0_20 = arith.constant 0 : index
    %35 = vector.load %arg4[%c0_18, %c0_19, %c0_20] : memref<1x4x16xf32, #tpu.memory_space<vmem>>, vector<1x4x16xf32>
    %36 = vector.shape_cast %35 : vector<1x4x16xf32> to vector<4x16xf32>
    %37 = vector.shape_cast %34 : vector<4x16xf32> to vector<1x4x16xf32>
    tpu.vector_store %arg4[%c0_18, %c0_19, %c0_20], %37 {strides = array<i32>} : memref<1x4x16xf32, #tpu.memory_space<vmem>>, vector<1x4x16xf32>,
    return
  }
  func.func @transform_0(%arg0: i32) -> (i32, i32, i32) {
    %c0_i32 = arith.constant 0 : i32
    %c0_i32_0 = arith.constant 0 : i32
    %c0_i32_1 = arith.constant 0 : i32
    return %arg0, %c0_i32, %c0_i32_0 : i32, i32, i32
  }
  func.func @transform_1(%arg0: i32) -> (i32, i32, i32) {
    %c0_i32 = arith.constant 0 : i32
    %c0_i32_0 = arith.constant 0 : i32
    %c0_i32_1 = arith.constant 0 : i32
    %c0_i32_2 = arith.constant 0 : i32
    return %c0_i32, %c0_i32_0, %c0_i32_1 : i32, i32, i32
  }
  func.func @transform_2(%arg0: i32) -> (i32, i32) {
    %c0_i32 = arith.constant 0 : i32
    %c0_i32_0 = arith.constant 0 : i32
    %c0_i32_1 = arith.constant 0 : i32
    return %c0_i32, %c0_i32_0 : i32, i32
  }
  func.func @transform_3(%arg0: i32) -> (i32, i32, i32) {
    %c0_i32 = arith.constant 0 : i32
    %c0_i32_0 = arith.constant 0 : i32
    %c0_i32_1 = arith.constant 0 : i32
    return %arg0, %c0_i32, %c0_i32_0 : i32, i32, i32
  }
}

module attributes {stable_mosaic.version = 11 : i64} {
  func.func @_conv1d_bias_kernel(%arg0: i32, %arg1: memref<1x1x16xf32, #tpu.memory_space<vmem>>, %arg2: memref<1x4x1xf32, #tpu.memory_space<vmem>>, %arg3: memref<4x1xf32, #tpu.memory_space<vmem>>, %arg4: memref<1x4x16xf32, #tpu.memory_space<vmem>>) attributes {dimension_semantics = [#tpu.dimension_semantics<parallel>], iteration_bounds = array<i64: 2>, scalar_prefetch = 0 : i64, scratch_operands = 0 : i64, tpu.core_type = #tpu.core_type<tc>, window_params = [{transform_indices = @transform_0, window_bounds = array<i64: 1, 1, 16>}, {pipeline_mode = #tpu.pipeline_mode<synchronous>, transform_indices = @transform_1, window_bounds = array<i64: 1, 4, 1>}, {pipeline_mode = #tpu.pipeline_mode<synchronous>, transform_indices = @transform_2, window_bounds = array<i64: 4, 1>}, {transform_indices = @transform_3, window_bounds = array<i64: 1, 4, 16>}]} {
    %c0 = arith.constant 0 : index
    %c0_0 = arith.constant 0 : index
    %c0_1 = arith.constant 0 : index
    %0 = vector.load %arg1[%c0, %c0_0, %c0_1] : memref<1x1x16xf32, #tpu.memory_space<vmem>>, vector<1x1x16xf32>
    %1 = vector.shape_cast %0 : vector<1x1x16xf32> to vector<1x16xf32>
    %2 = arith.truncf %1 : vector<1x16xf32> to vector<1x16xbf16>
    %c0_2 = arith.constant 0 : index
    %c0_3 = arith.constant 0 : index
    %3 = vector.load %arg3[%c0_2, %c0_3] : memref<4x1xf32, #tpu.memory_space<vmem>>, vector<4x1xf32>
    %4 = vector.shape_cast %3 : vector<4x1xf32> to vector<4x1xf32>
    %5 = vector.broadcast %4 : vector<4x1xf32> to vector<4x16xf32>
    %c0_4 = arith.constant 0 : index
    %c0_5 = arith.constant 0 : index
    %c0_6 = arith.constant 0 : index
    %6 = vector.load %arg2[%c0_4, %c0_5, %c0_6] : memref<1x4x1xf32, #tpu.memory_space<vmem>>, vector<1x4x1xf32>
    %7 = vector.shape_cast %6 : vector<1x4x1xf32> to vector<4x1xf32>
    %8 = arith.truncf %7 : vector<4x1xf32> to vector<4x1xbf16>
    %cst = arith.constant dense<0.000000e+00> : vector<4x16xf32>
    %9 = tpu.matmul %8, %2, %cst {dimension_numbers = #tpu.dot_dimension_numbers<[1], [0], [0], [1], [0, 0, 1, 1], [], []>} : vector<4x1xbf16>, vector<1x16xbf16>, vector<4x16xf32> -> vector<4x16xf32>
    %10 = arith.addf %5, %9 : vector<4x16xf32>
    %c0_7 = arith.constant 0 : index
    %c0_8 = arith.constant 0 : index
    %c0_9 = arith.constant 0 : index
    %11 = vector.load %arg4[%c0_7, %c0_8, %c0_9] : memref<1x4x16xf32, #tpu.memory_space<vmem>>, vector<1x4x16xf32>
    %12 = vector.shape_cast %11 : vector<1x4x16xf32> to vector<4x16xf32>
    %13 = vector.shape_cast %10 : vector<4x16xf32> to vector<1x4x16xf32>
    tpu.vector_store %arg4[%c0_7, %c0_8, %c0_9], %13 {strides = array<i32>} : memref<1x4x16xf32, #tpu.memory_space<vmem>>, vector<1x4x16xf32>,
    return
  }
  func.func @transform_0(%arg0: i32) -> (i32, i32, i32) {
    %c0_i32 = arith.constant 0 : i32
    %c0_i32_0 = arith.constant 0 : i32
    %c0_i32_1 = arith.constant 0 : i32
    return %arg0, %c0_i32, %c0_i32_0 : i32, i32, i32
  }
  func.func @transform_1(%arg0: i32) -> (i32, i32, i32) {
    %c0_i32 = arith.constant 0 : i32
    %c0_i32_0 = arith.constant 0 : i32
    %c0_i32_1 = arith.constant 0 : i32
    %c0_i32_2 = arith.constant 0 : i32
    return %c0_i32, %c0_i32_0, %c0_i32_1 : i32, i32, i32
  }
  func.func @transform_2(%arg0: i32) -> (i32, i32) {
    %c0_i32 = arith.constant 0 : i32
    %c0_i32_0 = arith.constant 0 : i32
    %c0_i32_1 = arith.constant 0 : i32
    return %c0_i32, %c0_i32_0 : i32, i32
  }
  func.func @transform_3(%arg0: i32) -> (i32, i32, i32) {
    %c0_i32 = arith.constant 0 : i32
    %c0_i32_0 = arith.constant 0 : i32
    %c0_i32_1 = arith.constant 0 : i32
    return %arg0, %c0_i32, %c0_i32_0 : i32, i32, i32
  }
}

module attributes {stable_mosaic.version = 11 : i64} {
  func.func @_conv1d_bias_kernel(%arg0: i32, %arg1: memref<1x4x20xf32, #tpu.memory_space<vmem>>, %arg2: memref<5x4x4xf32, #tpu.memory_space<vmem>>, %arg3: memref<4x1xf32, #tpu.memory_space<vmem>>, %arg4: memref<1x4x16xf32, #tpu.memory_space<vmem>>) attributes {dimension_semantics = [#tpu.dimension_semantics<parallel>], iteration_bounds = array<i64: 2>, scalar_prefetch = 0 : i64, scratch_operands = 0 : i64, tpu.core_type = #tpu.core_type<tc>, window_params = [{transform_indices = @transform_0, window_bounds = array<i64: 1, 4, 20>}, {pipeline_mode = #tpu.pipeline_mode<synchronous>, transform_indices = @transform_1, window_bounds = array<i64: 5, 4, 4>}, {pipeline_mode = #tpu.pipeline_mode<synchronous>, transform_indices = @transform_2, window_bounds = array<i64: 4, 1>}, {transform_indices = @transform_3, window_bounds = array<i64: 1, 4, 16>}]} {
    %c0 = arith.constant 0 : index
    %c0_0 = arith.constant 0 : index
    %c0_1 = arith.constant 0 : index
    %0 = vector.load %arg1[%c0, %c0_0, %c0_1] : memref<1x4x20xf32, #tpu.memory_space<vmem>>, vector<1x4x20xf32>
    %1 = vector.shape_cast %0 : vector<1x4x20xf32> to vector<4x20xf32>
    %cst = arith.constant 0.000000e+00 : f32
    %2 = vector.broadcast %cst : f32 to vector<4x20xf32>
    %3 = arith.cmpf oge, %1, %2 : vector<4x20xf32>
    %cst_2 = arith.constant 1.000000e-01 : f32
    %4 = vector.broadcast %cst_2 : f32 to vector<4x20xf32>
    %5 = arith.mulf %1, %4 : vector<4x20xf32>
    %6 = arith.select %3, %1, %5 : vector<4x20xi1>, vector<4x20xf32>
    %7 = arith.truncf %6 : vector<4x20xf32> to vector<4x20xbf16>
    %c0_3 = arith.constant 0 : index
    %c0_4 = arith.constant 0 : index
    %8 = vector.load %arg3[%c0_3, %c0_4] : memref<4x1xf32, #tpu.memory_space<vmem>>, vector<4x1xf32>
    %9 = vector.shape_cast %8 : vector<4x1xf32> to vector<4x1xf32>
    %10 = vector.broadcast %9 : vector<4x1xf32> to vector<4x16xf32>
    %c0_5 = arith.constant 0 : index
    %c0_6 = arith.constant 0 : index
    %c0_7 = arith.constant 0 : index
    %11 = vector.load %arg2[%c0_5, %c0_6, %c0_7] : memref<5x4x4xf32, #tpu.memory_space<vmem>>, vector<1x4x4xf32>
    %12 = vector.shape_cast %11 : vector<1x4x4xf32> to vector<4x4xf32>
    %13 = arith.truncf %12 : vector<4x4xf32> to vector<4x4xbf16>
    %14 = vector.extract_strided_slice %7 {offsets = [0, 0], sizes = [4, 16], strides = [1, 1]} : vector<4x20xbf16> to vector<4x16xbf16>
    %cst_8 = arith.constant dense<0.000000e+00> : vector<4x16xf32>
    %15 = tpu.matmul %13, %14, %cst_8 {dimension_numbers = #tpu.dot_dimension_numbers<[1], [0], [0], [1], [0, 0, 1, 1], [], []>} : vector<4x4xbf16>, vector<4x16xbf16>, vector<4x16xf32> -> vector<4x16xf32>
    %16 = arith.addf %10, %15 : vector<4x16xf32>
    %c1 = arith.constant 1 : index
    %c0_9 = arith.constant 0 : index
    %c0_10 = arith.constant 0 : index
    %17 = vector.load %arg2[%c1, %c0_9, %c0_10] : memref<5x4x4xf32, #tpu.memory_space<vmem>>, vector<1x4x4xf32>
    %18 = vector.shape_cast %17 : vector<1x4x4xf32> to vector<4x4xf32>
    %19 = arith.truncf %18 : vector<4x4xf32> to vector<4x4xbf16>
    %20 = vector.extract_strided_slice %7 {offsets = [0, 1], sizes = [4, 16], strides = [1, 1]} : vector<4x20xbf16> to vector<4x16xbf16>
    %cst_11 = arith.constant dense<0.000000e+00> : vector<4x16xf32>
    %21 = tpu.matmul %19, %20, %cst_11 {dimension_numbers = #tpu.dot_dimension_numbers<[1], [0], [0], [1], [0, 0, 1, 1], [], []>} : vector<4x4xbf16>, vector<4x16xbf16>, vector<4x16xf32> -> vector<4x16xf32>
    %22 = arith.addf %16, %21 : vector<4x16xf32>
    %c2 = arith.constant 2 : index
    %c0_12 = arith.constant 0 : index
    %c0_13 = arith.constant 0 : index
    %23 = vector.load %arg2[%c2, %c0_12, %c0_13] : memref<5x4x4xf32, #tpu.memory_space<vmem>>, vector<1x4x4xf32>
    %24 = vector.shape_cast %23 : vector<1x4x4xf32> to vector<4x4xf32>
    %25 = arith.truncf %24 : vector<4x4xf32> to vector<4x4xbf16>
    %26 = vector.extract_strided_slice %7 {offsets = [0, 2], sizes = [4, 16], strides = [1, 1]} : vector<4x20xbf16> to vector<4x16xbf16>
    %cst_14 = arith.constant dense<0.000000e+00> : vector<4x16xf32>
    %27 = tpu.matmul %25, %26, %cst_14 {dimension_numbers = #tpu.dot_dimension_numbers<[1], [0], [0], [1], [0, 0, 1, 1], [], []>} : vector<4x4xbf16>, vector<4x16xbf16>, vector<4x16xf32> -> vector<4x16xf32>
    %28 = arith.addf %22, %27 : vector<4x16xf32>
    %c3 = arith.constant 3 : index
    %c0_15 = arith.constant 0 : index
    %c0_16 = arith.constant 0 : index
    %29 = vector.load %arg2[%c3, %c0_15, %c0_16] : memref<5x4x4xf32, #tpu.memory_space<vmem>>, vector<1x4x4xf32>
    %30 = vector.shape_cast %29 : vector<1x4x4xf32> to vector<4x4xf32>
    %31 = arith.truncf %30 : vector<4x4xf32> to vector<4x4xbf16>
    %32 = vector.extract_strided_slice %7 {offsets = [0, 3], sizes = [4, 16], strides = [1, 1]} : vector<4x20xbf16> to vector<4x16xbf16>
    %cst_17 = arith.constant dense<0.000000e+00> : vector<4x16xf32>
    %33 = tpu.matmul %31, %32, %cst_17 {dimension_numbers = #tpu.dot_dimension_numbers<[1], [0], [0], [1], [0, 0, 1, 1], [], []>} : vector<4x4xbf16>, vector<4x16xbf16>, vector<4x16xf32> -> vector<4x16xf32>
    %34 = arith.addf %28, %33 : vector<4x16xf32>
    %c4 = arith.constant 4 : index
    %c0_18 = arith.constant 0 : index
    %c0_19 = arith.constant 0 : index
    %35 = vector.load %arg2[%c4, %c0_18, %c0_19] : memref<5x4x4xf32, #tpu.memory_space<vmem>>, vector<1x4x4xf32>
    %36 = vector.shape_cast %35 : vector<1x4x4xf32> to vector<4x4xf32>
    %37 = arith.truncf %36 : vector<4x4xf32> to vector<4x4xbf16>
    %38 = vector.extract_strided_slice %7 {offsets = [0, 4], sizes = [4, 16], strides = [1, 1]} : vector<4x20xbf16> to vector<4x16xbf16>
    %cst_20 = arith.constant dense<0.000000e+00> : vector<4x16xf32>
    %39 = tpu.matmul %37, %38, %cst_20 {dimension_numbers = #tpu.dot_dimension_numbers<[1], [0], [0], [1], [0, 0, 1, 1], [], []>} : vector<4x4xbf16>, vector<4x16xbf16>, vector<4x16xf32> -> vector<4x16xf32>
    %40 = arith.addf %34, %39 : vector<4x16xf32>
    %c0_21 = arith.constant 0 : index
    %c0_22 = arith.constant 0 : index
    %c0_23 = arith.constant 0 : index
    %41 = vector.load %arg4[%c0_21, %c0_22, %c0_23] : memref<1x4x16xf32, #tpu.memory_space<vmem>>, vector<1x4x16xf32>
    %42 = vector.shape_cast %41 : vector<1x4x16xf32> to vector<4x16xf32>
    %43 = vector.shape_cast %40 : vector<4x16xf32> to vector<1x4x16xf32>
    tpu.vector_store %arg4[%c0_21, %c0_22, %c0_23], %43 {strides = array<i32>} : memref<1x4x16xf32, #tpu.memory_space<vmem>>, vector<1x4x16xf32>,
    return
  }
  func.func @transform_0(%arg0: i32) -> (i32, i32, i32) {
    %c0_i32 = arith.constant 0 : i32
    %c0_i32_0 = arith.constant 0 : i32
    %c0_i32_1 = arith.constant 0 : i32
    return %arg0, %c0_i32, %c0_i32_0 : i32, i32, i32
  }
  func.func @transform_1(%arg0: i32) -> (i32, i32, i32) {
    %c0_i32 = arith.constant 0 : i32
    %c0_i32_0 = arith.constant 0 : i32
    %c0_i32_1 = arith.constant 0 : i32
    %c0_i32_2 = arith.constant 0 : i32
    return %c0_i32, %c0_i32_0, %c0_i32_1 : i32, i32, i32
  }
  func.func @transform_2(%arg0: i32) -> (i32, i32) {
    %c0_i32 = arith.constant 0 : i32
    %c0_i32_0 = arith.constant 0 : i32
    %c0_i32_1 = arith.constant 0 : i32
    return %c0_i32, %c0_i32_0 : i32, i32
  }
  func.func @transform_3(%arg0: i32) -> (i32, i32, i32) {
    %c0_i32 = arith.constant 0 : i32
    %c0_i32_0 = arith.constant 0 : i32
    %c0_i32_1 = arith.constant 0 : i32
    return %arg0, %c0_i32, %c0_i32_0 : i32, i32, i32
  }
}

module attributes {stable_mosaic.version = 11 : i64} {
  func.func @_conv1d_bias_kernel(%arg0: i32, %arg1: memref<1x4x18xf32, #tpu.memory_space<vmem>>, %arg2: memref<3x4x4xf32, #tpu.memory_space<vmem>>, %arg3: memref<4x1xf32, #tpu.memory_space<vmem>>, %arg4: memref<1x4x16xf32, #tpu.memory_space<vmem>>) attributes {dimension_semantics = [#tpu.dimension_semantics<parallel>], iteration_bounds = array<i64: 2>, scalar_prefetch = 0 : i64, scratch_operands = 0 : i64, tpu.core_type = #tpu.core_type<tc>, window_params = [{transform_indices = @transform_0, window_bounds = array<i64: 1, 4, 18>}, {pipeline_mode = #tpu.pipeline_mode<synchronous>, transform_indices = @transform_1, window_bounds = array<i64: 3, 4, 4>}, {pipeline_mode = #tpu.pipeline_mode<synchronous>, transform_indices = @transform_2, window_bounds = array<i64: 4, 1>}, {transform_indices = @transform_3, window_bounds = array<i64: 1, 4, 16>}]} {
    %c0 = arith.constant 0 : index
    %c0_0 = arith.constant 0 : index
    %c0_1 = arith.constant 0 : index
    %0 = vector.load %arg1[%c0, %c0_0, %c0_1] : memref<1x4x18xf32, #tpu.memory_space<vmem>>, vector<1x4x18xf32>
    %1 = vector.shape_cast %0 : vector<1x4x18xf32> to vector<4x18xf32>
    %cst = arith.constant 0.000000e+00 : f32
    %2 = vector.broadcast %cst : f32 to vector<4x18xf32>
    %3 = arith.cmpf oge, %1, %2 : vector<4x18xf32>
    %cst_2 = arith.constant 1.000000e-01 : f32
    %4 = vector.broadcast %cst_2 : f32 to vector<4x18xf32>
    %5 = arith.mulf %1, %4 : vector<4x18xf32>
    %6 = arith.select %3, %1, %5 : vector<4x18xi1>, vector<4x18xf32>
    %7 = arith.truncf %6 : vector<4x18xf32> to vector<4x18xbf16>
    %c0_3 = arith.constant 0 : index
    %c0_4 = arith.constant 0 : index
    %8 = vector.load %arg3[%c0_3, %c0_4] : memref<4x1xf32, #tpu.memory_space<vmem>>, vector<4x1xf32>
    %9 = vector.shape_cast %8 : vector<4x1xf32> to vector<4x1xf32>
    %10 = vector.broadcast %9 : vector<4x1xf32> to vector<4x16xf32>
    %c0_5 = arith.constant 0 : index
    %c0_6 = arith.constant 0 : index
    %c0_7 = arith.constant 0 : index
    %11 = vector.load %arg2[%c0_5, %c0_6, %c0_7] : memref<3x4x4xf32, #tpu.memory_space<vmem>>, vector<1x4x4xf32>
    %12 = vector.shape_cast %11 : vector<1x4x4xf32> to vector<4x4xf32>
    %13 = arith.truncf %12 : vector<4x4xf32> to vector<4x4xbf16>
    %14 = vector.extract_strided_slice %7 {offsets = [0, 0], sizes = [4, 16], strides = [1, 1]} : vector<4x18xbf16> to vector<4x16xbf16>
    %cst_8 = arith.constant dense<0.000000e+00> : vector<4x16xf32>
    %15 = tpu.matmul %13, %14, %cst_8 {dimension_numbers = #tpu.dot_dimension_numbers<[1], [0], [0], [1], [0, 0, 1, 1], [], []>} : vector<4x4xbf16>, vector<4x16xbf16>, vector<4x16xf32> -> vector<4x16xf32>
    %16 = arith.addf %10, %15 : vector<4x16xf32>
    %c1 = arith.constant 1 : index
    %c0_9 = arith.constant 0 : index
    %c0_10 = arith.constant 0 : index
    %17 = vector.load %arg2[%c1, %c0_9, %c0_10] : memref<3x4x4xf32, #tpu.memory_space<vmem>>, vector<1x4x4xf32>
    %18 = vector.shape_cast %17 : vector<1x4x4xf32> to vector<4x4xf32>
    %19 = arith.truncf %18 : vector<4x4xf32> to vector<4x4xbf16>
    %20 = vector.extract_strided_slice %7 {offsets = [0, 1], sizes = [4, 16], strides = [1, 1]} : vector<4x18xbf16> to vector<4x16xbf16>
    %cst_11 = arith.constant dense<0.000000e+00> : vector<4x16xf32>
    %21 = tpu.matmul %19, %20, %cst_11 {dimension_numbers = #tpu.dot_dimension_numbers<[1], [0], [0], [1], [0, 0, 1, 1], [], []>} : vector<4x4xbf16>, vector<4x16xbf16>, vector<4x16xf32> -> vector<4x16xf32>
    %22 = arith.addf %16, %21 : vector<4x16xf32>
    %c2 = arith.constant 2 : index
    %c0_12 = arith.constant 0 : index
    %c0_13 = arith.constant 0 : index
    %23 = vector.load %arg2[%c2, %c0_12, %c0_13] : memref<3x4x4xf32, #tpu.memory_space<vmem>>, vector<1x4x4xf32>
    %24 = vector.shape_cast %23 : vector<1x4x4xf32> to vector<4x4xf32>
    %25 = arith.truncf %24 : vector<4x4xf32> to vector<4x4xbf16>
    %26 = vector.extract_strided_slice %7 {offsets = [0, 2], sizes = [4, 16], strides = [1, 1]} : vector<4x18xbf16> to vector<4x16xbf16>
    %cst_14 = arith.constant dense<0.000000e+00> : vector<4x16xf32>
    %27 = tpu.matmul %25, %26, %cst_14 {dimension_numbers = #tpu.dot_dimension_numbers<[1], [0], [0], [1], [0, 0, 1, 1], [], []>} : vector<4x4xbf16>, vector<4x16xbf16>, vector<4x16xf32> -> vector<4x16xf32>
    %28 = arith.addf %22, %27 : vector<4x16xf32>
    %c0_15 = arith.constant 0 : index
    %c0_16 = arith.constant 0 : index
    %c0_17 = arith.constant 0 : index
    %29 = vector.load %arg4[%c0_15, %c0_16, %c0_17] : memref<1x4x16xf32, #tpu.memory_space<vmem>>, vector<1x4x16xf32>
    %30 = vector.shape_cast %29 : vector<1x4x16xf32> to vector<4x16xf32>
    %31 = vector.shape_cast %28 : vector<4x16xf32> to vector<1x4x16xf32>
    tpu.vector_store %arg4[%c0_15, %c0_16, %c0_17], %31 {strides = array<i32>} : memref<1x4x16xf32, #tpu.memory_space<vmem>>, vector<1x4x16xf32>,
    return
  }
  func.func @transform_0(%arg0: i32) -> (i32, i32, i32) {
    %c0_i32 = arith.constant 0 : i32
    %c0_i32_0 = arith.constant 0 : i32
    %c0_i32_1 = arith.constant 0 : i32
    return %arg0, %c0_i32, %c0_i32_0 : i32, i32, i32
  }
  func.func @transform_1(%arg0: i32) -> (i32, i32, i32) {
    %c0_i32 = arith.constant 0 : i32
    %c0_i32_0 = arith.constant 0 : i32
    %c0_i32_1 = arith.constant 0 : i32
    %c0_i32_2 = arith.constant 0 : i32
    return %c0_i32, %c0_i32_0, %c0_i32_1 : i32, i32, i32
  }
  func.func @transform_2(%arg0: i32) -> (i32, i32) {
    %c0_i32 = arith.constant 0 : i32
    %c0_i32_0 = arith.constant 0 : i32
    %c0_i32_1 = arith.constant 0 : i32
    return %c0_i32, %c0_i32_0 : i32, i32
  }
  func.func @transform_3(%arg0: i32) -> (i32, i32, i32) {
    %c0_i32 = arith.constant 0 : i32
    %c0_i32_0 = arith.constant 0 : i32
    %c0_i32_1 = arith.constant 0 : i32
    return %arg0, %c0_i32, %c0_i32_0 : i32, i32, i32
  }
}

module attributes {stable_mosaic.version = 11 : i64} {
  func.func @_conv1d_bias_kernel(%arg0: i32, %arg1: memref<1x4x22xf32, #tpu.memory_space<vmem>>, %arg2: memref<3x4x4xf32, #tpu.memory_space<vmem>>, %arg3: memref<4x1xf32, #tpu.memory_space<vmem>>, %arg4: memref<1x4x16xf32, #tpu.memory_space<vmem>>) attributes {dimension_semantics = [#tpu.dimension_semantics<parallel>], iteration_bounds = array<i64: 2>, scalar_prefetch = 0 : i64, scratch_operands = 0 : i64, tpu.core_type = #tpu.core_type<tc>, window_params = [{transform_indices = @transform_0, window_bounds = array<i64: 1, 4, 22>}, {pipeline_mode = #tpu.pipeline_mode<synchronous>, transform_indices = @transform_1, window_bounds = array<i64: 3, 4, 4>}, {pipeline_mode = #tpu.pipeline_mode<synchronous>, transform_indices = @transform_2, window_bounds = array<i64: 4, 1>}, {transform_indices = @transform_3, window_bounds = array<i64: 1, 4, 16>}]} {
    %c0 = arith.constant 0 : index
    %c0_0 = arith.constant 0 : index
    %c0_1 = arith.constant 0 : index
    %0 = vector.load %arg1[%c0, %c0_0, %c0_1] : memref<1x4x22xf32, #tpu.memory_space<vmem>>, vector<1x4x22xf32>
    %1 = vector.shape_cast %0 : vector<1x4x22xf32> to vector<4x22xf32>
    %cst = arith.constant 0.000000e+00 : f32
    %2 = vector.broadcast %cst : f32 to vector<4x22xf32>
    %3 = arith.cmpf oge, %1, %2 : vector<4x22xf32>
    %cst_2 = arith.constant 1.000000e-01 : f32
    %4 = vector.broadcast %cst_2 : f32 to vector<4x22xf32>
    %5 = arith.mulf %1, %4 : vector<4x22xf32>
    %6 = arith.select %3, %1, %5 : vector<4x22xi1>, vector<4x22xf32>
    %7 = arith.truncf %6 : vector<4x22xf32> to vector<4x22xbf16>
    %c0_3 = arith.constant 0 : index
    %c0_4 = arith.constant 0 : index
    %8 = vector.load %arg3[%c0_3, %c0_4] : memref<4x1xf32, #tpu.memory_space<vmem>>, vector<4x1xf32>
    %9 = vector.shape_cast %8 : vector<4x1xf32> to vector<4x1xf32>
    %10 = vector.broadcast %9 : vector<4x1xf32> to vector<4x16xf32>
    %c0_5 = arith.constant 0 : index
    %c0_6 = arith.constant 0 : index
    %c0_7 = arith.constant 0 : index
    %11 = vector.load %arg2[%c0_5, %c0_6, %c0_7] : memref<3x4x4xf32, #tpu.memory_space<vmem>>, vector<1x4x4xf32>
    %12 = vector.shape_cast %11 : vector<1x4x4xf32> to vector<4x4xf32>
    %13 = arith.truncf %12 : vector<4x4xf32> to vector<4x4xbf16>
    %14 = vector.extract_strided_slice %7 {offsets = [0, 0], sizes = [4, 16], strides = [1, 1]} : vector<4x22xbf16> to vector<4x16xbf16>
    %cst_8 = arith.constant dense<0.000000e+00> : vector<4x16xf32>
    %15 = tpu.matmul %13, %14, %cst_8 {dimension_numbers = #tpu.dot_dimension_numbers<[1], [0], [0], [1], [0, 0, 1, 1], [], []>} : vector<4x4xbf16>, vector<4x16xbf16>, vector<4x16xf32> -> vector<4x16xf32>
    %16 = arith.addf %10, %15 : vector<4x16xf32>
    %c1 = arith.constant 1 : index
    %c0_9 = arith.constant 0 : index
    %c0_10 = arith.constant 0 : index
    %17 = vector.load %arg2[%c1, %c0_9, %c0_10] : memref<3x4x4xf32, #tpu.memory_space<vmem>>, vector<1x4x4xf32>
    %18 = vector.shape_cast %17 : vector<1x4x4xf32> to vector<4x4xf32>
    %19 = arith.truncf %18 : vector<4x4xf32> to vector<4x4xbf16>
    %20 = vector.extract_strided_slice %7 {offsets = [0, 3], sizes = [4, 16], strides = [1, 1]} : vector<4x22xbf16> to vector<4x16xbf16>
    %cst_11 = arith.constant dense<0.000000e+00> : vector<4x16xf32>
    %21 = tpu.matmul %19, %20, %cst_11 {dimension_numbers = #tpu.dot_dimension_numbers<[1], [0], [0], [1], [0, 0, 1, 1], [], []>} : vector<4x4xbf16>, vector<4x16xbf16>, vector<4x16xf32> -> vector<4x16xf32>
    %22 = arith.addf %16, %21 : vector<4x16xf32>
    %c2 = arith.constant 2 : index
    %c0_12 = arith.constant 0 : index
    %c0_13 = arith.constant 0 : index
    %23 = vector.load %arg2[%c2, %c0_12, %c0_13] : memref<3x4x4xf32, #tpu.memory_space<vmem>>, vector<1x4x4xf32>
    %24 = vector.shape_cast %23 : vector<1x4x4xf32> to vector<4x4xf32>
    %25 = arith.truncf %24 : vector<4x4xf32> to vector<4x4xbf16>
    %26 = vector.extract_strided_slice %7 {offsets = [0, 6], sizes = [4, 16], strides = [1, 1]} : vector<4x22xbf16> to vector<4x16xbf16>
    %cst_14 = arith.constant dense<0.000000e+00> : vector<4x16xf32>
    %27 = tpu.matmul %25, %26, %cst_14 {dimension_numbers = #tpu.dot_dimension_numbers<[1], [0], [0], [1], [0, 0, 1, 1], [], []>} : vector<4x4xbf16>, vector<4x16xbf16>, vector<4x16xf32> -> vector<4x16xf32>
    %28 = arith.addf %22, %27 : vector<4x16xf32>
    %c0_15 = arith.constant 0 : index
    %c0_16 = arith.constant 0 : index
    %c0_17 = arith.constant 0 : index
    %29 = vector.load %arg4[%c0_15, %c0_16, %c0_17] : memref<1x4x16xf32, #tpu.memory_space<vmem>>, vector<1x4x16xf32>
    %30 = vector.shape_cast %29 : vector<1x4x16xf32> to vector<4x16xf32>
    %31 = vector.shape_cast %28 : vector<4x16xf32> to vector<1x4x16xf32>
    tpu.vector_store %arg4[%c0_15, %c0_16, %c0_17], %31 {strides = array<i32>} : memref<1x4x16xf32, #tpu.memory_space<vmem>>, vector<1x4x16xf32>,
    return
  }
  func.func @transform_0(%arg0: i32) -> (i32, i32, i32) {
    %c0_i32 = arith.constant 0 : i32
    %c0_i32_0 = arith.constant 0 : i32
    %c0_i32_1 = arith.constant 0 : i32
    return %arg0, %c0_i32, %c0_i32_0 : i32, i32, i32
  }
  func.func @transform_1(%arg0: i32) -> (i32, i32, i32) {
    %c0_i32 = arith.constant 0 : i32
    %c0_i32_0 = arith.constant 0 : i32
    %c0_i32_1 = arith.constant 0 : i32
    %c0_i32_2 = arith.constant 0 : i32
    return %c0_i32, %c0_i32_0, %c0_i32_1 : i32, i32, i32
  }
  func.func @transform_2(%arg0: i32) -> (i32, i32) {
    %c0_i32 = arith.constant 0 : i32
    %c0_i32_0 = arith.constant 0 : i32
    %c0_i32_1 = arith.constant 0 : i32
    return %c0_i32, %c0_i32_0 : i32, i32
  }
  func.func @transform_3(%arg0: i32) -> (i32, i32, i32) {
    %c0_i32 = arith.constant 0 : i32
    %c0_i32_0 = arith.constant 0 : i32
    %c0_i32_1 = arith.constant 0 : i32
    return %arg0, %c0_i32, %c0_i32_0 : i32, i32, i32
  }
}

module attributes {stable_mosaic.version = 11 : i64} {
  func.func @_conv1d_bias_kernel(%arg0: i32, %arg1: memref<1x4x28xf32, #tpu.memory_space<vmem>>, %arg2: memref<5x4x4xf32, #tpu.memory_space<vmem>>, %arg3: memref<4x1xf32, #tpu.memory_space<vmem>>, %arg4: memref<1x4x16xf32, #tpu.memory_space<vmem>>) attributes {dimension_semantics = [#tpu.dimension_semantics<parallel>], iteration_bounds = array<i64: 2>, scalar_prefetch = 0 : i64, scratch_operands = 0 : i64, tpu.core_type = #tpu.core_type<tc>, window_params = [{transform_indices = @transform_0, window_bounds = array<i64: 1, 4, 28>}, {pipeline_mode = #tpu.pipeline_mode<synchronous>, transform_indices = @transform_1, window_bounds = array<i64: 5, 4, 4>}, {pipeline_mode = #tpu.pipeline_mode<synchronous>, transform_indices = @transform_2, window_bounds = array<i64: 4, 1>}, {transform_indices = @transform_3, window_bounds = array<i64: 1, 4, 16>}]} {
    %c0 = arith.constant 0 : index
    %c0_0 = arith.constant 0 : index
    %c0_1 = arith.constant 0 : index
    %0 = vector.load %arg1[%c0, %c0_0, %c0_1] : memref<1x4x28xf32, #tpu.memory_space<vmem>>, vector<1x4x28xf32>
    %1 = vector.shape_cast %0 : vector<1x4x28xf32> to vector<4x28xf32>
    %cst = arith.constant 0.000000e+00 : f32
    %2 = vector.broadcast %cst : f32 to vector<4x28xf32>
    %3 = arith.cmpf oge, %1, %2 : vector<4x28xf32>
    %cst_2 = arith.constant 1.000000e-01 : f32
    %4 = vector.broadcast %cst_2 : f32 to vector<4x28xf32>
    %5 = arith.mulf %1, %4 : vector<4x28xf32>
    %6 = arith.select %3, %1, %5 : vector<4x28xi1>, vector<4x28xf32>
    %7 = arith.truncf %6 : vector<4x28xf32> to vector<4x28xbf16>
    %c0_3 = arith.constant 0 : index
    %c0_4 = arith.constant 0 : index
    %8 = vector.load %arg3[%c0_3, %c0_4] : memref<4x1xf32, #tpu.memory_space<vmem>>, vector<4x1xf32>
    %9 = vector.shape_cast %8 : vector<4x1xf32> to vector<4x1xf32>
    %10 = vector.broadcast %9 : vector<4x1xf32> to vector<4x16xf32>
    %c0_5 = arith.constant 0 : index
    %c0_6 = arith.constant 0 : index
    %c0_7 = arith.constant 0 : index
    %11 = vector.load %arg2[%c0_5, %c0_6, %c0_7] : memref<5x4x4xf32, #tpu.memory_space<vmem>>, vector<1x4x4xf32>
    %12 = vector.shape_cast %11 : vector<1x4x4xf32> to vector<4x4xf32>
    %13 = arith.truncf %12 : vector<4x4xf32> to vector<4x4xbf16>
    %14 = vector.extract_strided_slice %7 {offsets = [0, 0], sizes = [4, 16], strides = [1, 1]} : vector<4x28xbf16> to vector<4x16xbf16>
    %cst_8 = arith.constant dense<0.000000e+00> : vector<4x16xf32>
    %15 = tpu.matmul %13, %14, %cst_8 {dimension_numbers = #tpu.dot_dimension_numbers<[1], [0], [0], [1], [0, 0, 1, 1], [], []>} : vector<4x4xbf16>, vector<4x16xbf16>, vector<4x16xf32> -> vector<4x16xf32>
    %16 = arith.addf %10, %15 : vector<4x16xf32>
    %c1 = arith.constant 1 : index
    %c0_9 = arith.constant 0 : index
    %c0_10 = arith.constant 0 : index
    %17 = vector.load %arg2[%c1, %c0_9, %c0_10] : memref<5x4x4xf32, #tpu.memory_space<vmem>>, vector<1x4x4xf32>
    %18 = vector.shape_cast %17 : vector<1x4x4xf32> to vector<4x4xf32>
    %19 = arith.truncf %18 : vector<4x4xf32> to vector<4x4xbf16>
    %20 = vector.extract_strided_slice %7 {offsets = [0, 3], sizes = [4, 16], strides = [1, 1]} : vector<4x28xbf16> to vector<4x16xbf16>
    %cst_11 = arith.constant dense<0.000000e+00> : vector<4x16xf32>
    %21 = tpu.matmul %19, %20, %cst_11 {dimension_numbers = #tpu.dot_dimension_numbers<[1], [0], [0], [1], [0, 0, 1, 1], [], []>} : vector<4x4xbf16>, vector<4x16xbf16>, vector<4x16xf32> -> vector<4x16xf32>
    %22 = arith.addf %16, %21 : vector<4x16xf32>
    %c2 = arith.constant 2 : index
    %c0_12 = arith.constant 0 : index
    %c0_13 = arith.constant 0 : index
    %23 = vector.load %arg2[%c2, %c0_12, %c0_13] : memref<5x4x4xf32, #tpu.memory_space<vmem>>, vector<1x4x4xf32>
    %24 = vector.shape_cast %23 : vector<1x4x4xf32> to vector<4x4xf32>
    %25 = arith.truncf %24 : vector<4x4xf32> to vector<4x4xbf16>
    %26 = vector.extract_strided_slice %7 {offsets = [0, 6], sizes = [4, 16], strides = [1, 1]} : vector<4x28xbf16> to vector<4x16xbf16>
    %cst_14 = arith.constant dense<0.000000e+00> : vector<4x16xf32>
    %27 = tpu.matmul %25, %26, %cst_14 {dimension_numbers = #tpu.dot_dimension_numbers<[1], [0], [0], [1], [0, 0, 1, 1], [], []>} : vector<4x4xbf16>, vector<4x16xbf16>, vector<4x16xf32> -> vector<4x16xf32>
    %28 = arith.addf %22, %27 : vector<4x16xf32>
    %c3 = arith.constant 3 : index
    %c0_15 = arith.constant 0 : index
    %c0_16 = arith.constant 0 : index
    %29 = vector.load %arg2[%c3, %c0_15, %c0_16] : memref<5x4x4xf32, #tpu.memory_space<vmem>>, vector<1x4x4xf32>
    %30 = vector.shape_cast %29 : vector<1x4x4xf32> to vector<4x4xf32>
    %31 = arith.truncf %30 : vector<4x4xf32> to vector<4x4xbf16>
    %32 = vector.extract_strided_slice %7 {offsets = [0, 9], sizes = [4, 16], strides = [1, 1]} : vector<4x28xbf16> to vector<4x16xbf16>
    %cst_17 = arith.constant dense<0.000000e+00> : vector<4x16xf32>
    %33 = tpu.matmul %31, %32, %cst_17 {dimension_numbers = #tpu.dot_dimension_numbers<[1], [0], [0], [1], [0, 0, 1, 1], [], []>} : vector<4x4xbf16>, vector<4x16xbf16>, vector<4x16xf32> -> vector<4x16xf32>
    %34 = arith.addf %28, %33 : vector<4x16xf32>
    %c4 = arith.constant 4 : index
    %c0_18 = arith.constant 0 : index
    %c0_19 = arith.constant 0 : index
    %35 = vector.load %arg2[%c4, %c0_18, %c0_19] : memref<5x4x4xf32, #tpu.memory_space<vmem>>, vector<1x4x4xf32>
    %36 = vector.shape_cast %35 : vector<1x4x4xf32> to vector<4x4xf32>
    %37 = arith.truncf %36 : vector<4x4xf32> to vector<4x4xbf16>
    %38 = vector.extract_strided_slice %7 {offsets = [0, 12], sizes = [4, 16], strides = [1, 1]} : vector<4x28xbf16> to vector<4x16xbf16>
    %cst_20 = arith.constant dense<0.000000e+00> : vector<4x16xf32>
    %39 = tpu.matmul %37, %38, %cst_20 {dimension_numbers = #tpu.dot_dimension_numbers<[1], [0], [0], [1], [0, 0, 1, 1], [], []>} : vector<4x4xbf16>, vector<4x16xbf16>, vector<4x16xf32> -> vector<4x16xf32>
    %40 = arith.addf %34, %39 : vector<4x16xf32>
    %c0_21 = arith.constant 0 : index
    %c0_22 = arith.constant 0 : index
    %c0_23 = arith.constant 0 : index
    %41 = vector.load %arg4[%c0_21, %c0_22, %c0_23] : memref<1x4x16xf32, #tpu.memory_space<vmem>>, vector<1x4x16xf32>
    %42 = vector.shape_cast %41 : vector<1x4x16xf32> to vector<4x16xf32>
    %43 = vector.shape_cast %40 : vector<4x16xf32> to vector<1x4x16xf32>
    tpu.vector_store %arg4[%c0_21, %c0_22, %c0_23], %43 {strides = array<i32>} : memref<1x4x16xf32, #tpu.memory_space<vmem>>, vector<1x4x16xf32>,
    return
  }
  func.func @transform_0(%arg0: i32) -> (i32, i32, i32) {
    %c0_i32 = arith.constant 0 : i32
    %c0_i32_0 = arith.constant 0 : i32
    %c0_i32_1 = arith.constant 0 : i32
    return %arg0, %c0_i32, %c0_i32_0 : i32, i32, i32
  }
  func.func @transform_1(%arg0: i32) -> (i32, i32, i32) {
    %c0_i32 = arith.constant 0 : i32
    %c0_i32_0 = arith.constant 0 : i32
    %c0_i32_1 = arith.constant 0 : i32
    %c0_i32_2 = arith.constant 0 : i32
    return %c0_i32, %c0_i32_0, %c0_i32_1 : i32, i32, i32
  }
  func.func @transform_2(%arg0: i32) -> (i32, i32) {
    %c0_i32 = arith.constant 0 : i32
    %c0_i32_0 = arith.constant 0 : i32
    %c0_i32_1 = arith.constant 0 : i32
    return %c0_i32, %c0_i32_0 : i32, i32
  }
  func.func @transform_3(%arg0: i32) -> (i32, i32, i32) {
    %c0_i32 = arith.constant 0 : i32
    %c0_i32_0 = arith.constant 0 : i32
    %c0_i32_1 = arith.constant 0 : i32
    return %arg0, %c0_i32, %c0_i32_0 : i32, i32, i32
  }
}

module attributes {stable_mosaic.version = 11 : i64} {
  func.func @_conv1d_bias_kernel(%arg0: i32, %arg1: memref<1x4x26xf32, #tpu.memory_space<vmem>>, %arg2: memref<3x4x4xf32, #tpu.memory_space<vmem>>, %arg3: memref<4x1xf32, #tpu.memory_space<vmem>>, %arg4: memref<1x4x16xf32, #tpu.memory_space<vmem>>) attributes {dimension_semantics = [#tpu.dimension_semantics<parallel>], iteration_bounds = array<i64: 2>, scalar_prefetch = 0 : i64, scratch_operands = 0 : i64, tpu.core_type = #tpu.core_type<tc>, window_params = [{transform_indices = @transform_0, window_bounds = array<i64: 1, 4, 26>}, {pipeline_mode = #tpu.pipeline_mode<synchronous>, transform_indices = @transform_1, window_bounds = array<i64: 3, 4, 4>}, {pipeline_mode = #tpu.pipeline_mode<synchronous>, transform_indices = @transform_2, window_bounds = array<i64: 4, 1>}, {transform_indices = @transform_3, window_bounds = array<i64: 1, 4, 16>}]} {
    %c0 = arith.constant 0 : index
    %c0_0 = arith.constant 0 : index
    %c0_1 = arith.constant 0 : index
    %0 = vector.load %arg1[%c0, %c0_0, %c0_1] : memref<1x4x26xf32, #tpu.memory_space<vmem>>, vector<1x4x26xf32>
    %1 = vector.shape_cast %0 : vector<1x4x26xf32> to vector<4x26xf32>
    %cst = arith.constant 0.000000e+00 : f32
    %2 = vector.broadcast %cst : f32 to vector<4x26xf32>
    %3 = arith.cmpf oge, %1, %2 : vector<4x26xf32>
    %cst_2 = arith.constant 1.000000e-01 : f32
    %4 = vector.broadcast %cst_2 : f32 to vector<4x26xf32>
    %5 = arith.mulf %1, %4 : vector<4x26xf32>
    %6 = arith.select %3, %1, %5 : vector<4x26xi1>, vector<4x26xf32>
    %7 = arith.truncf %6 : vector<4x26xf32> to vector<4x26xbf16>
    %c0_3 = arith.constant 0 : index
    %c0_4 = arith.constant 0 : index
    %8 = vector.load %arg3[%c0_3, %c0_4] : memref<4x1xf32, #tpu.memory_space<vmem>>, vector<4x1xf32>
    %9 = vector.shape_cast %8 : vector<4x1xf32> to vector<4x1xf32>
    %10 = vector.broadcast %9 : vector<4x1xf32> to vector<4x16xf32>
    %c0_5 = arith.constant 0 : index
    %c0_6 = arith.constant 0 : index
    %c0_7 = arith.constant 0 : index
    %11 = vector.load %arg2[%c0_5, %c0_6, %c0_7] : memref<3x4x4xf32, #tpu.memory_space<vmem>>, vector<1x4x4xf32>
    %12 = vector.shape_cast %11 : vector<1x4x4xf32> to vector<4x4xf32>
    %13 = arith.truncf %12 : vector<4x4xf32> to vector<4x4xbf16>
    %14 = vector.extract_strided_slice %7 {offsets = [0, 0], sizes = [4, 16], strides = [1, 1]} : vector<4x26xbf16> to vector<4x16xbf16>
    %cst_8 = arith.constant dense<0.000000e+00> : vector<4x16xf32>
    %15 = tpu.matmul %13, %14, %cst_8 {dimension_numbers = #tpu.dot_dimension_numbers<[1], [0], [0], [1], [0, 0, 1, 1], [], []>} : vector<4x4xbf16>, vector<4x16xbf16>, vector<4x16xf32> -> vector<4x16xf32>
    %16 = arith.addf %10, %15 : vector<4x16xf32>
    %c1 = arith.constant 1 : index
    %c0_9 = arith.constant 0 : index
    %c0_10 = arith.constant 0 : index
    %17 = vector.load %arg2[%c1, %c0_9, %c0_10] : memref<3x4x4xf32, #tpu.memory_space<vmem>>, vector<1x4x4xf32>
    %18 = vector.shape_cast %17 : vector<1x4x4xf32> to vector<4x4xf32>
    %19 = arith.truncf %18 : vector<4x4xf32> to vector<4x4xbf16>
    %20 = vector.extract_strided_slice %7 {offsets = [0, 5], sizes = [4, 16], strides = [1, 1]} : vector<4x26xbf16> to vector<4x16xbf16>
    %cst_11 = arith.constant dense<0.000000e+00> : vector<4x16xf32>
    %21 = tpu.matmul %19, %20, %cst_11 {dimension_numbers = #tpu.dot_dimension_numbers<[1], [0], [0], [1], [0, 0, 1, 1], [], []>} : vector<4x4xbf16>, vector<4x16xbf16>, vector<4x16xf32> -> vector<4x16xf32>
    %22 = arith.addf %16, %21 : vector<4x16xf32>
    %c2 = arith.constant 2 : index
    %c0_12 = arith.constant 0 : index
    %c0_13 = arith.constant 0 : index
    %23 = vector.load %arg2[%c2, %c0_12, %c0_13] : memref<3x4x4xf32, #tpu.memory_space<vmem>>, vector<1x4x4xf32>
    %24 = vector.shape_cast %23 : vector<1x4x4xf32> to vector<4x4xf32>
    %25 = arith.truncf %24 : vector<4x4xf32> to vector<4x4xbf16>
    %26 = vector.extract_strided_slice %7 {offsets = [0, 10], sizes = [4, 16], strides = [1, 1]} : vector<4x26xbf16> to vector<4x16xbf16>
    %cst_14 = arith.constant dense<0.000000e+00> : vector<4x16xf32>
    %27 = tpu.matmul %25, %26, %cst_14 {dimension_numbers = #tpu.dot_dimension_numbers<[1], [0], [0], [1], [0, 0, 1, 1], [], []>} : vector<4x4xbf16>, vector<4x16xbf16>, vector<4x16xf32> -> vector<4x16xf32>
    %28 = arith.addf %22, %27 : vector<4x16xf32>
    %c0_15 = arith.constant 0 : index
    %c0_16 = arith.constant 0 : index
    %c0_17 = arith.constant 0 : index
    %29 = vector.load %arg4[%c0_15, %c0_16, %c0_17] : memref<1x4x16xf32, #tpu.memory_space<vmem>>, vector<1x4x16xf32>
    %30 = vector.shape_cast %29 : vector<1x4x16xf32> to vector<4x16xf32>
    %31 = vector.shape_cast %28 : vector<4x16xf32> to vector<1x4x16xf32>
    tpu.vector_store %arg4[%c0_15, %c0_16, %c0_17], %31 {strides = array<i32>} : memref<1x4x16xf32, #tpu.memory_space<vmem>>, vector<1x4x16xf32>,
    return
  }
  func.func @transform_0(%arg0: i32) -> (i32, i32, i32) {
    %c0_i32 = arith.constant 0 : i32
    %c0_i32_0 = arith.constant 0 : i32
    %c0_i32_1 = arith.constant 0 : i32
    return %arg0, %c0_i32, %c0_i32_0 : i32, i32, i32
  }
  func.func @transform_1(%arg0: i32) -> (i32, i32, i32) {
    %c0_i32 = arith.constant 0 : i32
    %c0_i32_0 = arith.constant 0 : i32
    %c0_i32_1 = arith.constant 0 : i32
    %c0_i32_2 = arith.constant 0 : i32
    return %c0_i32, %c0_i32_0, %c0_i32_1 : i32, i32, i32
  }
  func.func @transform_2(%arg0: i32) -> (i32, i32) {
    %c0_i32 = arith.constant 0 : i32
    %c0_i32_0 = arith.constant 0 : i32
    %c0_i32_1 = arith.constant 0 : i32
    return %c0_i32, %c0_i32_0 : i32, i32
  }
  func.func @transform_3(%arg0: i32) -> (i32, i32, i32) {
    %c0_i32 = arith.constant 0 : i32
    %c0_i32_0 = arith.constant 0 : i32
    %c0_i32_1 = arith.constant 0 : i32
    return %arg0, %c0_i32, %c0_i32_0 : i32, i32, i32
  }
}

module attributes {stable_mosaic.version = 11 : i64} {
  func.func @_conv1d_bias_kernel(%arg0: i32, %arg1: memref<1x4x36xf32, #tpu.memory_space<vmem>>, %arg2: memref<5x4x4xf32, #tpu.memory_space<vmem>>, %arg3: memref<4x1xf32, #tpu.memory_space<vmem>>, %arg4: memref<1x4x16xf32, #tpu.memory_space<vmem>>) attributes {dimension_semantics = [#tpu.dimension_semantics<parallel>], iteration_bounds = array<i64: 2>, scalar_prefetch = 0 : i64, scratch_operands = 0 : i64, tpu.core_type = #tpu.core_type<tc>, window_params = [{transform_indices = @transform_0, window_bounds = array<i64: 1, 4, 36>}, {pipeline_mode = #tpu.pipeline_mode<synchronous>, transform_indices = @transform_1, window_bounds = array<i64: 5, 4, 4>}, {pipeline_mode = #tpu.pipeline_mode<synchronous>, transform_indices = @transform_2, window_bounds = array<i64: 4, 1>}, {transform_indices = @transform_3, window_bounds = array<i64: 1, 4, 16>}]} {
    %c0 = arith.constant 0 : index
    %c0_0 = arith.constant 0 : index
    %c0_1 = arith.constant 0 : index
    %0 = vector.load %arg1[%c0, %c0_0, %c0_1] : memref<1x4x36xf32, #tpu.memory_space<vmem>>, vector<1x4x36xf32>
    %1 = vector.shape_cast %0 : vector<1x4x36xf32> to vector<4x36xf32>
    %cst = arith.constant 0.000000e+00 : f32
    %2 = vector.broadcast %cst : f32 to vector<4x36xf32>
    %3 = arith.cmpf oge, %1, %2 : vector<4x36xf32>
    %cst_2 = arith.constant 1.000000e-01 : f32
    %4 = vector.broadcast %cst_2 : f32 to vector<4x36xf32>
    %5 = arith.mulf %1, %4 : vector<4x36xf32>
    %6 = arith.select %3, %1, %5 : vector<4x36xi1>, vector<4x36xf32>
    %7 = arith.truncf %6 : vector<4x36xf32> to vector<4x36xbf16>
    %c0_3 = arith.constant 0 : index
    %c0_4 = arith.constant 0 : index
    %8 = vector.load %arg3[%c0_3, %c0_4] : memref<4x1xf32, #tpu.memory_space<vmem>>, vector<4x1xf32>
    %9 = vector.shape_cast %8 : vector<4x1xf32> to vector<4x1xf32>
    %10 = vector.broadcast %9 : vector<4x1xf32> to vector<4x16xf32>
    %c0_5 = arith.constant 0 : index
    %c0_6 = arith.constant 0 : index
    %c0_7 = arith.constant 0 : index
    %11 = vector.load %arg2[%c0_5, %c0_6, %c0_7] : memref<5x4x4xf32, #tpu.memory_space<vmem>>, vector<1x4x4xf32>
    %12 = vector.shape_cast %11 : vector<1x4x4xf32> to vector<4x4xf32>
    %13 = arith.truncf %12 : vector<4x4xf32> to vector<4x4xbf16>
    %14 = vector.extract_strided_slice %7 {offsets = [0, 0], sizes = [4, 16], strides = [1, 1]} : vector<4x36xbf16> to vector<4x16xbf16>
    %cst_8 = arith.constant dense<0.000000e+00> : vector<4x16xf32>
    %15 = tpu.matmul %13, %14, %cst_8 {dimension_numbers = #tpu.dot_dimension_numbers<[1], [0], [0], [1], [0, 0, 1, 1], [], []>} : vector<4x4xbf16>, vector<4x16xbf16>, vector<4x16xf32> -> vector<4x16xf32>
    %16 = arith.addf %10, %15 : vector<4x16xf32>
    %c1 = arith.constant 1 : index
    %c0_9 = arith.constant 0 : index
    %c0_10 = arith.constant 0 : index
    %17 = vector.load %arg2[%c1, %c0_9, %c0_10] : memref<5x4x4xf32, #tpu.memory_space<vmem>>, vector<1x4x4xf32>
    %18 = vector.shape_cast %17 : vector<1x4x4xf32> to vector<4x4xf32>
    %19 = arith.truncf %18 : vector<4x4xf32> to vector<4x4xbf16>
    %20 = vector.extract_strided_slice %7 {offsets = [0, 5], sizes = [4, 16], strides = [1, 1]} : vector<4x36xbf16> to vector<4x16xbf16>
    %cst_11 = arith.constant dense<0.000000e+00> : vector<4x16xf32>
    %21 = tpu.matmul %19, %20, %cst_11 {dimension_numbers = #tpu.dot_dimension_numbers<[1], [0], [0], [1], [0, 0, 1, 1], [], []>} : vector<4x4xbf16>, vector<4x16xbf16>, vector<4x16xf32> -> vector<4x16xf32>
    %22 = arith.addf %16, %21 : vector<4x16xf32>
    %c2 = arith.constant 2 : index
    %c0_12 = arith.constant 0 : index
    %c0_13 = arith.constant 0 : index
    %23 = vector.load %arg2[%c2, %c0_12, %c0_13] : memref<5x4x4xf32, #tpu.memory_space<vmem>>, vector<1x4x4xf32>
    %24 = vector.shape_cast %23 : vector<1x4x4xf32> to vector<4x4xf32>
    %25 = arith.truncf %24 : vector<4x4xf32> to vector<4x4xbf16>
    %26 = vector.extract_strided_slice %7 {offsets = [0, 10], sizes = [4, 16], strides = [1, 1]} : vector<4x36xbf16> to vector<4x16xbf16>
    %cst_14 = arith.constant dense<0.000000e+00> : vector<4x16xf32>
    %27 = tpu.matmul %25, %26, %cst_14 {dimension_numbers = #tpu.dot_dimension_numbers<[1], [0], [0], [1], [0, 0, 1, 1], [], []>} : vector<4x4xbf16>, vector<4x16xbf16>, vector<4x16xf32> -> vector<4x16xf32>
    %28 = arith.addf %22, %27 : vector<4x16xf32>
    %c3 = arith.constant 3 : index
    %c0_15 = arith.constant 0 : index
    %c0_16 = arith.constant 0 : index
    %29 = vector.load %arg2[%c3, %c0_15, %c0_16] : memref<5x4x4xf32, #tpu.memory_space<vmem>>, vector<1x4x4xf32>
    %30 = vector.shape_cast %29 : vector<1x4x4xf32> to vector<4x4xf32>
    %31 = arith.truncf %30 : vector<4x4xf32> to vector<4x4xbf16>
    %32 = vector.extract_strided_slice %7 {offsets = [0, 15], sizes = [4, 16], strides = [1, 1]} : vector<4x36xbf16> to vector<4x16xbf16>
    %cst_17 = arith.constant dense<0.000000e+00> : vector<4x16xf32>
    %33 = tpu.matmul %31, %32, %cst_17 {dimension_numbers = #tpu.dot_dimension_numbers<[1], [0], [0], [1], [0, 0, 1, 1], [], []>} : vector<4x4xbf16>, vector<4x16xbf16>, vector<4x16xf32> -> vector<4x16xf32>
    %34 = arith.addf %28, %33 : vector<4x16xf32>
    %c4 = arith.constant 4 : index
    %c0_18 = arith.constant 0 : index
    %c0_19 = arith.constant 0 : index
    %35 = vector.load %arg2[%c4, %c0_18, %c0_19] : memref<5x4x4xf32, #tpu.memory_space<vmem>>, vector<1x4x4xf32>
    %36 = vector.shape_cast %35 : vector<1x4x4xf32> to vector<4x4xf32>
    %37 = arith.truncf %36 : vector<4x4xf32> to vector<4x4xbf16>
    %38 = vector.extract_strided_slice %7 {offsets = [0, 20], sizes = [4, 16], strides = [1, 1]} : vector<4x36xbf16> to vector<4x16xbf16>
    %cst_20 = arith.constant dense<0.000000e+00> : vector<4x16xf32>
    %39 = tpu.matmul %37, %38, %cst_20 {dimension_numbers = #tpu.dot_dimension_numbers<[1], [0], [0], [1], [0, 0, 1, 1], [], []>} : vector<4x4xbf16>, vector<4x16xbf16>, vector<4x16xf32> -> vector<4x16xf32>
    %40 = arith.addf %34, %39 : vector<4x16xf32>
    %c0_21 = arith.constant 0 : index
    %c0_22 = arith.constant 0 : index
    %c0_23 = arith.constant 0 : index
    %41 = vector.load %arg4[%c0_21, %c0_22, %c0_23] : memref<1x4x16xf32, #tpu.memory_space<vmem>>, vector<1x4x16xf32>
    %42 = vector.shape_cast %41 : vector<1x4x16xf32> to vector<4x16xf32>
    %43 = vector.shape_cast %40 : vector<4x16xf32> to vector<1x4x16xf32>
    tpu.vector_store %arg4[%c0_21, %c0_22, %c0_23], %43 {strides = array<i32>} : memref<1x4x16xf32, #tpu.memory_space<vmem>>, vector<1x4x16xf32>,
    return
  }
  func.func @transform_0(%arg0: i32) -> (i32, i32, i32) {
    %c0_i32 = arith.constant 0 : i32
    %c0_i32_0 = arith.constant 0 : i32
    %c0_i32_1 = arith.constant 0 : i32
    return %arg0, %c0_i32, %c0_i32_0 : i32, i32, i32
  }
  func.func @transform_1(%arg0: i32) -> (i32, i32, i32) {
    %c0_i32 = arith.constant 0 : i32
    %c0_i32_0 = arith.constant 0 : i32
    %c0_i32_1 = arith.constant 0 : i32
    %c0_i32_2 = arith.constant 0 : i32
    return %c0_i32, %c0_i32_0, %c0_i32_1 : i32, i32, i32
  }
  func.func @transform_2(%arg0: i32) -> (i32, i32) {
    %c0_i32 = arith.constant 0 : i32
    %c0_i32_0 = arith.constant 0 : i32
    %c0_i32_1 = arith.constant 0 : i32
    return %c0_i32, %c0_i32_0 : i32, i32
  }
  func.func @transform_3(%arg0: i32) -> (i32, i32, i32) {
    %c0_i32 = arith.constant 0 : i32
    %c0_i32_0 = arith.constant 0 : i32
    %c0_i32_1 = arith.constant 0 : i32
    return %arg0, %c0_i32, %c0_i32_0 : i32, i32, i32
  }
}

module attributes {stable_mosaic.version = 11 : i64} {
  func.func @_conv1d_nobias_kernel(%arg0: i32, %arg1: memref<1x4x22xf32, #tpu.memory_space<vmem>>, %arg2: memref<7x1x4xf32, #tpu.memory_space<vmem>>, %arg3: memref<1x1x16xf32, #tpu.memory_space<vmem>>) attributes {dimension_semantics = [#tpu.dimension_semantics<parallel>], iteration_bounds = array<i64: 2>, scalar_prefetch = 0 : i64, scratch_operands = 0 : i64, tpu.core_type = #tpu.core_type<tc>, window_params = [{transform_indices = @transform_0, window_bounds = array<i64: 1, 4, 22>}, {pipeline_mode = #tpu.pipeline_mode<synchronous>, transform_indices = @transform_1, window_bounds = array<i64: 7, 1, 4>}, {transform_indices = @transform_2, window_bounds = array<i64: 1, 1, 16>}]} {
    %c0 = arith.constant 0 : index
    %c0_0 = arith.constant 0 : index
    %c0_1 = arith.constant 0 : index
    %0 = vector.load %arg1[%c0, %c0_0, %c0_1] : memref<1x4x22xf32, #tpu.memory_space<vmem>>, vector<1x4x22xf32>
    %1 = vector.shape_cast %0 : vector<1x4x22xf32> to vector<4x22xf32>
    %cst = arith.constant 0.000000e+00 : f32
    %2 = vector.broadcast %cst : f32 to vector<4x22xf32>
    %3 = arith.cmpf oge, %1, %2 : vector<4x22xf32>
    %cst_2 = arith.constant 1.000000e-01 : f32
    %4 = vector.broadcast %cst_2 : f32 to vector<4x22xf32>
    %5 = arith.mulf %1, %4 : vector<4x22xf32>
    %6 = arith.select %3, %1, %5 : vector<4x22xi1>, vector<4x22xf32>
    %7 = arith.truncf %6 : vector<4x22xf32> to vector<4x22xbf16>
    %cst_3 = arith.constant 0.000000e+00 : f32
    %8 = vector.broadcast %cst_3 : f32 to vector<1x16xf32>
    %c0_4 = arith.constant 0 : index
    %c0_5 = arith.constant 0 : index
    %c0_6 = arith.constant 0 : index
    %9 = vector.load %arg2[%c0_4, %c0_5, %c0_6] : memref<7x1x4xf32, #tpu.memory_space<vmem>>, vector<1x1x4xf32>
    %10 = vector.shape_cast %9 : vector<1x1x4xf32> to vector<1x4xf32>
    %11 = arith.truncf %10 : vector<1x4xf32> to vector<1x4xbf16>
    %12 = vector.extract_strided_slice %7 {offsets = [0, 0], sizes = [4, 16], strides = [1, 1]} : vector<4x22xbf16> to vector<4x16xbf16>
    %cst_7 = arith.constant dense<0.000000e+00> : vector<1x16xf32>
    %13 = tpu.matmul %11, %12, %cst_7 {dimension_numbers = #tpu.dot_dimension_numbers<[1], [0], [0], [1], [0, 0, 1, 1], [], []>} : vector<1x4xbf16>, vector<4x16xbf16>, vector<1x16xf32> -> vector<1x16xf32>
    %14 = arith.addf %8, %13 : vector<1x16xf32>
    %c1 = arith.constant 1 : index
    %c0_8 = arith.constant 0 : index
    %c0_9 = arith.constant 0 : index
    %15 = vector.load %arg2[%c1, %c0_8, %c0_9] : memref<7x1x4xf32, #tpu.memory_space<vmem>>, vector<1x1x4xf32>
    %16 = vector.shape_cast %15 : vector<1x1x4xf32> to vector<1x4xf32>
    %17 = arith.truncf %16 : vector<1x4xf32> to vector<1x4xbf16>
    %18 = vector.extract_strided_slice %7 {offsets = [0, 1], sizes = [4, 16], strides = [1, 1]} : vector<4x22xbf16> to vector<4x16xbf16>
    %cst_10 = arith.constant dense<0.000000e+00> : vector<1x16xf32>
    %19 = tpu.matmul %17, %18, %cst_10 {dimension_numbers = #tpu.dot_dimension_numbers<[1], [0], [0], [1], [0, 0, 1, 1], [], []>} : vector<1x4xbf16>, vector<4x16xbf16>, vector<1x16xf32> -> vector<1x16xf32>
    %20 = arith.addf %14, %19 : vector<1x16xf32>
    %c2 = arith.constant 2 : index
    %c0_11 = arith.constant 0 : index
    %c0_12 = arith.constant 0 : index
    %21 = vector.load %arg2[%c2, %c0_11, %c0_12] : memref<7x1x4xf32, #tpu.memory_space<vmem>>, vector<1x1x4xf32>
    %22 = vector.shape_cast %21 : vector<1x1x4xf32> to vector<1x4xf32>
    %23 = arith.truncf %22 : vector<1x4xf32> to vector<1x4xbf16>
    %24 = vector.extract_strided_slice %7 {offsets = [0, 2], sizes = [4, 16], strides = [1, 1]} : vector<4x22xbf16> to vector<4x16xbf16>
    %cst_13 = arith.constant dense<0.000000e+00> : vector<1x16xf32>
    %25 = tpu.matmul %23, %24, %cst_13 {dimension_numbers = #tpu.dot_dimension_numbers<[1], [0], [0], [1], [0, 0, 1, 1], [], []>} : vector<1x4xbf16>, vector<4x16xbf16>, vector<1x16xf32> -> vector<1x16xf32>
    %26 = arith.addf %20, %25 : vector<1x16xf32>
    %c3 = arith.constant 3 : index
    %c0_14 = arith.constant 0 : index
    %c0_15 = arith.constant 0 : index
    %27 = vector.load %arg2[%c3, %c0_14, %c0_15] : memref<7x1x4xf32, #tpu.memory_space<vmem>>, vector<1x1x4xf32>
    %28 = vector.shape_cast %27 : vector<1x1x4xf32> to vector<1x4xf32>
    %29 = arith.truncf %28 : vector<1x4xf32> to vector<1x4xbf16>
    %30 = vector.extract_strided_slice %7 {offsets = [0, 3], sizes = [4, 16], strides = [1, 1]} : vector<4x22xbf16> to vector<4x16xbf16>
    %cst_16 = arith.constant dense<0.000000e+00> : vector<1x16xf32>
    %31 = tpu.matmul %29, %30, %cst_16 {dimension_numbers = #tpu.dot_dimension_numbers<[1], [0], [0], [1], [0, 0, 1, 1], [], []>} : vector<1x4xbf16>, vector<4x16xbf16>, vector<1x16xf32> -> vector<1x16xf32>
    %32 = arith.addf %26, %31 : vector<1x16xf32>
    %c4 = arith.constant 4 : index
    %c0_17 = arith.constant 0 : index
    %c0_18 = arith.constant 0 : index
    %33 = vector.load %arg2[%c4, %c0_17, %c0_18] : memref<7x1x4xf32, #tpu.memory_space<vmem>>, vector<1x1x4xf32>
    %34 = vector.shape_cast %33 : vector<1x1x4xf32> to vector<1x4xf32>
    %35 = arith.truncf %34 : vector<1x4xf32> to vector<1x4xbf16>
    %36 = vector.extract_strided_slice %7 {offsets = [0, 4], sizes = [4, 16], strides = [1, 1]} : vector<4x22xbf16> to vector<4x16xbf16>
    %cst_19 = arith.constant dense<0.000000e+00> : vector<1x16xf32>
    %37 = tpu.matmul %35, %36, %cst_19 {dimension_numbers = #tpu.dot_dimension_numbers<[1], [0], [0], [1], [0, 0, 1, 1], [], []>} : vector<1x4xbf16>, vector<4x16xbf16>, vector<1x16xf32> -> vector<1x16xf32>
    %38 = arith.addf %32, %37 : vector<1x16xf32>
    %c5 = arith.constant 5 : index
    %c0_20 = arith.constant 0 : index
    %c0_21 = arith.constant 0 : index
    %39 = vector.load %arg2[%c5, %c0_20, %c0_21] : memref<7x1x4xf32, #tpu.memory_space<vmem>>, vector<1x1x4xf32>
    %40 = vector.shape_cast %39 : vector<1x1x4xf32> to vector<1x4xf32>
    %41 = arith.truncf %40 : vector<1x4xf32> to vector<1x4xbf16>
    %42 = vector.extract_strided_slice %7 {offsets = [0, 5], sizes = [4, 16], strides = [1, 1]} : vector<4x22xbf16> to vector<4x16xbf16>
    %cst_22 = arith.constant dense<0.000000e+00> : vector<1x16xf32>
    %43 = tpu.matmul %41, %42, %cst_22 {dimension_numbers = #tpu.dot_dimension_numbers<[1], [0], [0], [1], [0, 0, 1, 1], [], []>} : vector<1x4xbf16>, vector<4x16xbf16>, vector<1x16xf32> -> vector<1x16xf32>
    %44 = arith.addf %38, %43 : vector<1x16xf32>
    %c6 = arith.constant 6 : index
    %c0_23 = arith.constant 0 : index
    %c0_24 = arith.constant 0 : index
    %45 = vector.load %arg2[%c6, %c0_23, %c0_24] : memref<7x1x4xf32, #tpu.memory_space<vmem>>, vector<1x1x4xf32>
    %46 = vector.shape_cast %45 : vector<1x1x4xf32> to vector<1x4xf32>
    %47 = arith.truncf %46 : vector<1x4xf32> to vector<1x4xbf16>
    %48 = vector.extract_strided_slice %7 {offsets = [0, 6], sizes = [4, 16], strides = [1, 1]} : vector<4x22xbf16> to vector<4x16xbf16>
    %cst_25 = arith.constant dense<0.000000e+00> : vector<1x16xf32>
    %49 = tpu.matmul %47, %48, %cst_25 {dimension_numbers = #tpu.dot_dimension_numbers<[1], [0], [0], [1], [0, 0, 1, 1], [], []>} : vector<1x4xbf16>, vector<4x16xbf16>, vector<1x16xf32> -> vector<1x16xf32>
    %50 = arith.addf %44, %49 : vector<1x16xf32>
    %c0_26 = arith.constant 0 : index
    %c0_27 = arith.constant 0 : index
    %c0_28 = arith.constant 0 : index
    %51 = vector.load %arg3[%c0_26, %c0_27, %c0_28] : memref<1x1x16xf32, #tpu.memory_space<vmem>>, vector<1x1x16xf32>
    %52 = vector.shape_cast %51 : vector<1x1x16xf32> to vector<1x16xf32>
    %53 = vector.shape_cast %50 : vector<1x16xf32> to vector<1x1x16xf32>
    tpu.vector_store %arg3[%c0_26, %c0_27, %c0_28], %53 {strides = array<i32>} : memref<1x1x16xf32, #tpu.memory_space<vmem>>, vector<1x1x16xf32>,
    return
  }
  func.func @transform_0(%arg0: i32) -> (i32, i32, i32) {
    %c0_i32 = arith.constant 0 : i32
    %c0_i32_0 = arith.constant 0 : i32
    %c0_i32_1 = arith.constant 0 : i32
    return %arg0, %c0_i32, %c0_i32_0 : i32, i32, i32
  }
  func.func @transform_1(%arg0: i32) -> (i32, i32, i32) {
    %c0_i32 = arith.constant 0 : i32
    %c0_i32_0 = arith.constant 0 : i32
    %c0_i32_1 = arith.constant 0 : i32
    %c0_i32_2 = arith.constant 0 : i32
    return %c0_i32, %c0_i32_0, %c0_i32_1 : i32, i32, i32
  }
  func.func @transform_2(%arg0: i32) -> (i32, i32, i32) {
    %c0_i32 = arith.constant 0 : i32
    %c0_i32_0 = arith.constant 0 : i32
    %c0_i32_1 = arith.constant 0 : i32
    return %arg0, %c0_i32, %c0_i32_0 : i32, i32, i32
  }
}

module attributes {stable_mosaic.version = 11 : i64} {
  func.func @_linear_ncw_kernel(%arg0: i32, %arg1: memref<1x8x768xf32, #tpu.memory_space<vmem>>, %arg2: memref<16x768xf32, #tpu.memory_space<vmem>>, %arg3: memref<16x1xf32, #tpu.memory_space<vmem>>, %arg4: memref<1x16x8xf32, #tpu.memory_space<vmem>>) attributes {dimension_semantics = [#tpu.dimension_semantics<parallel>], iteration_bounds = array<i64: 2>, scalar_prefetch = 0 : i64, scratch_operands = 0 : i64, tpu.core_type = #tpu.core_type<tc>, window_params = [{transform_indices = @transform_0, window_bounds = array<i64: 1, 8, 768>}, {pipeline_mode = #tpu.pipeline_mode<synchronous>, transform_indices = @transform_1, window_bounds = array<i64: 16, 768>}, {pipeline_mode = #tpu.pipeline_mode<synchronous>, transform_indices = @transform_2, window_bounds = array<i64: 16, 1>}, {transform_indices = @transform_3, window_bounds = array<i64: 1, 16, 8>}]} {
    %c0 = arith.constant 0 : index
    %c0_0 = arith.constant 0 : index
    %c0_1 = arith.constant 0 : index
    %0 = vector.load %arg1[%c0, %c0_0, %c0_1] : memref<1x8x768xf32, #tpu.memory_space<vmem>>, vector<1x8x768xf32>
    %1 = vector.shape_cast %0 : vector<1x8x768xf32> to vector<8x768xf32>
    %c0_2 = arith.constant 0 : index
    %c0_3 = arith.constant 0 : index
    %2 = vector.load %arg2[%c0_2, %c0_3] : memref<16x768xf32, #tpu.memory_space<vmem>>, vector<16x768xf32>
    %3 = arith.truncf %2 : vector<16x768xf32> to vector<16x768xbf16>
    %4 = arith.truncf %1 : vector<8x768xf32> to vector<8x768xbf16>
    %cst = arith.constant dense<0.000000e+00> : vector<16x8xf32>
    %5 = tpu.matmul %3, %4, %cst {dimension_numbers = #tpu.dot_dimension_numbers<[1], [1], [0], [0], [0, 0, 1, 0], [], []>} : vector<16x768xbf16>, vector<8x768xbf16>, vector<16x8xf32> -> vector<16x8xf32>
    %c0_4 = arith.constant 0 : index
    %c0_5 = arith.constant 0 : index
    %6 = vector.load %arg3[%c0_4, %c0_5] : memref<16x1xf32, #tpu.memory_space<vmem>>, vector<16x1xf32>
    %7 = vector.broadcast %6 : vector<16x1xf32> to vector<16x8xf32>
    %8 = arith.addf %5, %7 : vector<16x8xf32>
    %c0_6 = arith.constant 0 : index
    %c0_7 = arith.constant 0 : index
    %c0_8 = arith.constant 0 : index
    %9 = vector.load %arg4[%c0_6, %c0_7, %c0_8] : memref<1x16x8xf32, #tpu.memory_space<vmem>>, vector<1x16x8xf32>
    %10 = vector.shape_cast %9 : vector<1x16x8xf32> to vector<16x8xf32>
    %11 = vector.shape_cast %8 : vector<16x8xf32> to vector<1x16x8xf32>
    tpu.vector_store %arg4[%c0_6, %c0_7, %c0_8], %11 {strides = array<i32>} : memref<1x16x8xf32, #tpu.memory_space<vmem>>, vector<1x16x8xf32>,
    return
  }
  func.func @transform_0(%arg0: i32) -> (i32, i32, i32) {
    %c0_i32 = arith.constant 0 : i32
    %c0_i32_0 = arith.constant 0 : i32
    %c0_i32_1 = arith.constant 0 : i32
    return %arg0, %c0_i32, %c0_i32_0 : i32, i32, i32
  }
  func.func @transform_1(%arg0: i32) -> (i32, i32) {
    %c0_i32 = arith.constant 0 : i32
    %c0_i32_0 = arith.constant 0 : i32
    %c0_i32_1 = arith.constant 0 : i32
    return %c0_i32, %c0_i32_0 : i32, i32
  }
  func.func @transform_2(%arg0: i32) -> (i32, i32) {
    %c0_i32 = arith.constant 0 : i32
    %c0_i32_0 = arith.constant 0 : i32
    %c0_i32_1 = arith.constant 0 : i32
    return %c0_i32, %c0_i32_0 : i32, i32
  }
  func.func @transform_3(%arg0: i32) -> (i32, i32, i32) {
    %c0_i32 = arith.constant 0 : i32
    %c0_i32_0 = arith.constant 0 : i32
    %c0_i32_1 = arith.constant 0 : i32
    return %arg0, %c0_i32, %c0_i32_0 : i32, i32, i32
  }
}

module attributes {stable_mosaic.version = 11 : i64} {
  func.func @_conv1d_bias_kernel(%arg0: i32, %arg1: memref<1x16x8xf32, #tpu.memory_space<vmem>>, %arg2: memref<1x48x16xf32, #tpu.memory_space<vmem>>, %arg3: memref<48x1xf32, #tpu.memory_space<vmem>>, %arg4: memref<1x48x8xf32, #tpu.memory_space<vmem>>) attributes {dimension_semantics = [#tpu.dimension_semantics<parallel>], iteration_bounds = array<i64: 2>, scalar_prefetch = 0 : i64, scratch_operands = 0 : i64, tpu.core_type = #tpu.core_type<tc>, window_params = [{transform_indices = @transform_0, window_bounds = array<i64: 1, 16, 8>}, {pipeline_mode = #tpu.pipeline_mode<synchronous>, transform_indices = @transform_1, window_bounds = array<i64: 1, 48, 16>}, {pipeline_mode = #tpu.pipeline_mode<synchronous>, transform_indices = @transform_2, window_bounds = array<i64: 48, 1>}, {transform_indices = @transform_3, window_bounds = array<i64: 1, 48, 8>}]} {
    %c0 = arith.constant 0 : index
    %c0_0 = arith.constant 0 : index
    %c0_1 = arith.constant 0 : index
    %0 = vector.load %arg1[%c0, %c0_0, %c0_1] : memref<1x16x8xf32, #tpu.memory_space<vmem>>, vector<1x16x8xf32>
    %1 = vector.shape_cast %0 : vector<1x16x8xf32> to vector<16x8xf32>
    %2 = arith.truncf %1 : vector<16x8xf32> to vector<16x8xbf16>
    %c0_2 = arith.constant 0 : index
    %c0_3 = arith.constant 0 : index
    %3 = vector.load %arg3[%c0_2, %c0_3] : memref<48x1xf32, #tpu.memory_space<vmem>>, vector<48x1xf32>
    %4 = vector.shape_cast %3 : vector<48x1xf32> to vector<48x1xf32>
    %5 = vector.broadcast %4 : vector<48x1xf32> to vector<48x8xf32>
    %c0_4 = arith.constant 0 : index
    %c0_5 = arith.constant 0 : index
    %c0_6 = arith.constant 0 : index
    %6 = vector.load %arg2[%c0_4, %c0_5, %c0_6] : memref<1x48x16xf32, #tpu.memory_space<vmem>>, vector<1x48x16xf32>
    %7 = vector.shape_cast %6 : vector<1x48x16xf32> to vector<48x16xf32>
    %8 = arith.truncf %7 : vector<48x16xf32> to vector<48x16xbf16>
    %cst = arith.constant dense<0.000000e+00> : vector<48x8xf32>
    %9 = tpu.matmul %8, %2, %cst {dimension_numbers = #tpu.dot_dimension_numbers<[1], [0], [0], [1], [0, 0, 1, 1], [], []>} : vector<48x16xbf16>, vector<16x8xbf16>, vector<48x8xf32> -> vector<48x8xf32>
    %10 = arith.addf %5, %9 : vector<48x8xf32>
    %c0_7 = arith.constant 0 : index
    %c0_8 = arith.constant 0 : index
    %c0_9 = arith.constant 0 : index
    %11 = vector.load %arg4[%c0_7, %c0_8, %c0_9] : memref<1x48x8xf32, #tpu.memory_space<vmem>>, vector<1x48x8xf32>
    %12 = vector.shape_cast %11 : vector<1x48x8xf32> to vector<48x8xf32>
    %13 = vector.shape_cast %10 : vector<48x8xf32> to vector<1x48x8xf32>
    tpu.vector_store %arg4[%c0_7, %c0_8, %c0_9], %13 {strides = array<i32>} : memref<1x48x8xf32, #tpu.memory_space<vmem>>, vector<1x48x8xf32>,
    return
  }
  func.func @transform_0(%arg0: i32) -> (i32, i32, i32) {
    %c0_i32 = arith.constant 0 : i32
    %c0_i32_0 = arith.constant 0 : i32
    %c0_i32_1 = arith.constant 0 : i32
    return %arg0, %c0_i32, %c0_i32_0 : i32, i32, i32
  }
  func.func @transform_1(%arg0: i32) -> (i32, i32, i32) {
    %c0_i32 = arith.constant 0 : i32
    %c0_i32_0 = arith.constant 0 : i32
    %c0_i32_1 = arith.constant 0 : i32
    %c0_i32_2 = arith.constant 0 : i32
    return %c0_i32, %c0_i32_0, %c0_i32_1 : i32, i32, i32
  }
  func.func @transform_2(%arg0: i32) -> (i32, i32) {
    %c0_i32 = arith.constant 0 : i32
    %c0_i32_0 = arith.constant 0 : i32
    %c0_i32_1 = arith.constant 0 : i32
    return %c0_i32, %c0_i32_0 : i32, i32
  }
  func.func @transform_3(%arg0: i32) -> (i32, i32, i32) {
    %c0_i32 = arith.constant 0 : i32
    %c0_i32_0 = arith.constant 0 : i32
    %c0_i32_1 = arith.constant 0 : i32
    return %arg0, %c0_i32, %c0_i32_0 : i32, i32, i32
  }
}

module attributes {stable_mosaic.version = 11 : i64} {
  func.func @_attn_kernel(%arg0: i32, %arg1: i32, %arg2: memref<2xi32, #tpu.memory_space<smem>>, %arg3: memref<1x8x8xf32, #tpu.memory_space<vmem>>, %arg4: memref<1x8x8xf32, #tpu.memory_space<vmem>>, %arg5: memref<1x8x8xf32, #tpu.memory_space<vmem>>, %arg6: memref<1x8x8xf32, #tpu.memory_space<vmem>>) attributes {dimension_semantics = [#tpu.dimension_semantics<parallel>, #tpu.dimension_semantics<parallel>], iteration_bounds = array<i64: 2, 2>, scalar_prefetch = 1 : i64, scratch_operands = 0 : i64, tpu.core_type = #tpu.core_type<tc>, window_params = [{transform_indices = @transform_0, window_bounds = array<i64: 1, 8, 8>}, {transform_indices = @transform_1, window_bounds = array<i64: 1, 8, 8>}, {transform_indices = @transform_2, window_bounds = array<i64: 1, 8, 8>}, {transform_indices = @transform_3, window_bounds = array<i64: 1, 8, 8>}]} {
    %0 = arith.index_cast %arg0 : i32 to index
    %1 = memref.load %arg2[%0] : memref<2xi32, #tpu.memory_space<smem>>
    %c0 = arith.constant 0 : index
    %c0_0 = arith.constant 0 : index
    %c0_1 = arith.constant 0 : index
    %2 = vector.load %arg3[%c0, %c0_0, %c0_1] : memref<1x8x8xf32, #tpu.memory_space<vmem>>, vector<1x8x8xf32>
    %3 = vector.shape_cast %2 : vector<1x8x8xf32> to vector<8x8xf32>
    %c0_2 = arith.constant 0 : index
    %c0_3 = arith.constant 0 : index
    %c0_4 = arith.constant 0 : index
    %4 = vector.load %arg4[%c0_2, %c0_3, %c0_4] : memref<1x8x8xf32, #tpu.memory_space<vmem>>, vector<1x8x8xf32>
    %5 = vector.shape_cast %4 : vector<1x8x8xf32> to vector<8x8xf32>
    %c0_5 = arith.constant 0 : index
    %c0_6 = arith.constant 0 : index
    %c0_7 = arith.constant 0 : index
    %6 = vector.load %arg5[%c0_5, %c0_6, %c0_7] : memref<1x8x8xf32, #tpu.memory_space<vmem>>, vector<1x8x8xf32>
    %7 = vector.shape_cast %6 : vector<1x8x8xf32> to vector<8x8xf32>
    %cst = arith.constant 0.353553385 : f32
    %8 = vector.broadcast %cst : f32 to vector<8x8xf32>
    %9 = arith.mulf %3, %8 : vector<8x8xf32>
    %10 = arith.truncf %9 : vector<8x8xf32> to vector<8x8xbf16>
    %11 = arith.truncf %5 : vector<8x8xf32> to vector<8x8xbf16>
    %cst_8 = arith.constant dense<0.000000e+00> : vector<8x8xf32>
    %12 = tpu.matmul %10, %11, %cst_8 {dimension_numbers = #tpu.dot_dimension_numbers<[0], [0], [1], [1], [0, 1, 1, 1], [], []>} : vector<8x8xbf16>, vector<8x8xbf16>, vector<8x8xf32> -> vector<8x8xf32>
    %13 = tpu.iota {dimensions = array<i32: 0>} : vector<8x8xi32>
    %14 = tpu.iota {dimensions = array<i32: 1>} : vector<8x8xi32>
    %15 = vector.broadcast %1 : i32 to vector<8x8xi32>
    %16 = arith.cmpi slt, %13, %15 : vector<8x8xi32>
    %17 = vector.broadcast %1 : i32 to vector<8x8xi32>
    %18 = arith.cmpi slt, %14, %17 : vector<8x8xi32>
    %19 = arith.andi %16, %18 : vector<8x8xi1>
    %cst_9 = arith.constant -1.000000e+04 : f32
    %20 = vector.broadcast %cst_9 : f32 to vector<8x8xf32>
    %21 = arith.select %19, %12, %20 : vector<8x8xi1>, vector<8x8xf32>
    %cst_10 = arith.constant dense<0xFF800000> : vector<8xf32>
    %22 = vector.multi_reduction <maximumf>, %21, %cst_10 [1] : vector<8x8xf32> to vector<8xf32>
    %23 = vector.shape_cast %22 : vector<8xf32> to vector<8x1xf32>
    %24 = vector.broadcast %23 : vector<8x1xf32> to vector<8x8xf32>
    %25 = arith.subf %21, %24 : vector<8x8xf32>
    %26 = math.exp %25 : vector<8x8xf32>
    %cst_11 = arith.constant dense<0.000000e+00> : vector<8xf32>
    %27 = vector.multi_reduction <add>, %26, %cst_11 [1] : vector<8x8xf32> to vector<8xf32>
    %28 = vector.shape_cast %27 : vector<8xf32> to vector<8x1xf32>
    %29 = tpu.reciprocal %28 {approx = true} : vector<8x1xf32> -> vector<8x1xf32>
    %30 = vector.broadcast %29 : vector<8x1xf32> to vector<8x8xf32>
    %31 = arith.mulf %26, %30 : vector<8x8xf32>
    %32 = arith.truncf %7 : vector<8x8xf32> to vector<8x8xbf16>
    %33 = arith.truncf %31 : vector<8x8xf32> to vector<8x8xbf16>
    %cst_12 = arith.constant dense<0.000000e+00> : vector<8x8xf32>
    %34 = tpu.matmul %32, %33, %cst_12 {dimension_numbers = #tpu.dot_dimension_numbers<[1], [1], [0], [0], [0, 0, 1, 0], [], []>} : vector<8x8xbf16>, vector<8x8xbf16>, vector<8x8xf32> -> vector<8x8xf32>
    %c0_13 = arith.constant 0 : index
    %c0_14 = arith.constant 0 : index
    %c0_15 = arith.constant 0 : index
    %35 = vector.load %arg6[%c0_13, %c0_14, %c0_15] : memref<1x8x8xf32, #tpu.memory_space<vmem>>, vector<1x8x8xf32>
    %36 = vector.shape_cast %35 : vector<1x8x8xf32> to vector<8x8xf32>
    %37 = vector.shape_cast %34 : vector<8x8xf32> to vector<1x8x8xf32>
    tpu.vector_store %arg6[%c0_13, %c0_14, %c0_15], %37 {strides = array<i32>} : memref<1x8x8xf32, #tpu.memory_space<vmem>>, vector<1x8x8xf32>,
    return
  }
  func.func @transform_0(%arg0: i32, %arg1: i32, %arg2: memref<2xi32, #tpu.memory_space<smem>>) -> (i32, i32, i32) {
    %c0_i32 = arith.constant 0 : i32
    %c0_i32_0 = arith.constant 0 : i32
    return %arg0, %arg1, %c0_i32 : i32, i32, i32
  }
  func.func @transform_1(%arg0: i32, %arg1: i32, %arg2: memref<2xi32, #tpu.memory_space<smem>>) -> (i32, i32, i32) {
    %c2_i32 = arith.constant 2 : i32
    %0 = arith.addi %c2_i32, %arg1 : i32
    %c0_i32 = arith.constant 0 : i32
    %c0_i32_0 = arith.constant 0 : i32
    return %arg0, %0, %c0_i32 : i32, i32, i32
  }
  func.func @transform_2(%arg0: i32, %arg1: i32, %arg2: memref<2xi32, #tpu.memory_space<smem>>) -> (i32, i32, i32) {
    %c4_i32 = arith.constant 4 : i32
    %0 = arith.addi %c4_i32, %arg1 : i32
    %c0_i32 = arith.constant 0 : i32
    %c0_i32_0 = arith.constant 0 : i32
    return %arg0, %0, %c0_i32 : i32, i32, i32
  }
  func.func @transform_3(%arg0: i32, %arg1: i32, %arg2: memref<2xi32, #tpu.memory_space<smem>>) -> (i32, i32, i32) {
    %c0_i32 = arith.constant 0 : i32
    %c0_i32_0 = arith.constant 0 : i32
    return %arg0, %arg1, %c0_i32 : i32, i32, i32
  }
}

module attributes {stable_mosaic.version = 11 : i64} {
  func.func @_add_ln_kernel(%arg0: i32, %arg1: memref<1x16x8xf32, #tpu.memory_space<vmem>>, %arg2: memref<1x16x8xf32, #tpu.memory_space<vmem>>, %arg3: memref<16x1xf32, #tpu.memory_space<vmem>>, %arg4: memref<16x1xf32, #tpu.memory_space<vmem>>, %arg5: memref<1x16x8xf32, #tpu.memory_space<vmem>>) attributes {dimension_semantics = [#tpu.dimension_semantics<parallel>], iteration_bounds = array<i64: 2>, scalar_prefetch = 0 : i64, scratch_operands = 0 : i64, tpu.core_type = #tpu.core_type<tc>, window_params = [{transform_indices = @transform_0, window_bounds = array<i64: 1, 16, 8>}, {transform_indices = @transform_1, window_bounds = array<i64: 1, 16, 8>}, {pipeline_mode = #tpu.pipeline_mode<synchronous>, transform_indices = @transform_2, window_bounds = array<i64: 16, 1>}, {pipeline_mode = #tpu.pipeline_mode<synchronous>, transform_indices = @transform_3, window_bounds = array<i64: 16, 1>}, {transform_indices = @transform_4, window_bounds = array<i64: 1, 16, 8>}]} {
    %c0 = arith.constant 0 : index
    %c0_0 = arith.constant 0 : index
    %c0_1 = arith.constant 0 : index
    %0 = vector.load %arg1[%c0, %c0_0, %c0_1] : memref<1x16x8xf32, #tpu.memory_space<vmem>>, vector<1x16x8xf32>
    %1 = vector.shape_cast %0 : vector<1x16x8xf32> to vector<16x8xf32>
    %c0_2 = arith.constant 0 : index
    %c0_3 = arith.constant 0 : index
    %c0_4 = arith.constant 0 : index
    %2 = vector.load %arg2[%c0_2, %c0_3, %c0_4] : memref<1x16x8xf32, #tpu.memory_space<vmem>>, vector<1x16x8xf32>
    %3 = vector.shape_cast %2 : vector<1x16x8xf32> to vector<16x8xf32>
    %4 = arith.addf %1, %3 : vector<16x8xf32>
    %cst = arith.constant dense<0.000000e+00> : vector<8xf32>
    %5 = vector.multi_reduction <add>, %4, %cst [0] : vector<16x8xf32> to vector<8xf32>
    %6 = vector.shape_cast %5 : vector<8xf32> to vector<1x8xf32>
    %cst_5 = arith.constant 1.600000e+01 : f32
    %7 = vector.broadcast %cst_5 : f32 to vector<1x8xf32>
    %8 = arith.divf %6, %7 : vector<1x8xf32>
    %9 = vector.broadcast %8 : vector<1x8xf32> to vector<16x8xf32>
    %10 = arith.subf %4, %9 : vector<16x8xf32>
    %11 = arith.mulf %10, %10 : vector<16x8xf32>
    %cst_6 = arith.constant dense<0.000000e+00> : vector<8xf32>
    %12 = vector.multi_reduction <add>, %11, %cst_6 [0] : vector<16x8xf32> to vector<8xf32>
    %13 = vector.shape_cast %12 : vector<8xf32> to vector<1x8xf32>
    %cst_7 = arith.constant 1.600000e+01 : f32
    %14 = vector.broadcast %cst_7 : f32 to vector<1x8xf32>
    %15 = arith.divf %13, %14 : vector<1x8xf32>
    %cst_8 = arith.constant 9.99999974E-6 : f32
    %16 = vector.broadcast %cst_8 : f32 to vector<1x8xf32>
    %17 = arith.addf %15, %16 : vector<1x8xf32>
    %18 = math.rsqrt %17 : vector<1x8xf32>
    %19 = vector.broadcast %18 : vector<1x8xf32> to vector<16x8xf32>
    %20 = arith.mulf %10, %19 : vector<16x8xf32>
    %c0_9 = arith.constant 0 : index
    %c0_10 = arith.constant 0 : index
    %21 = vector.load %arg3[%c0_9, %c0_10] : memref<16x1xf32, #tpu.memory_space<vmem>>, vector<16x1xf32>
    %22 = vector.broadcast %21 : vector<16x1xf32> to vector<16x8xf32>
    %23 = arith.mulf %20, %22 : vector<16x8xf32>
    %c0_11 = arith.constant 0 : index
    %c0_12 = arith.constant 0 : index
    %24 = vector.load %arg4[%c0_11, %c0_12] : memref<16x1xf32, #tpu.memory_space<vmem>>, vector<16x1xf32>
    %25 = vector.broadcast %24 : vector<16x1xf32> to vector<16x8xf32>
    %26 = arith.addf %23, %25 : vector<16x8xf32>
    %c0_13 = arith.constant 0 : index
    %c0_14 = arith.constant 0 : index
    %c0_15 = arith.constant 0 : index
    %27 = vector.load %arg5[%c0_13, %c0_14, %c0_15] : memref<1x16x8xf32, #tpu.memory_space<vmem>>, vector<1x16x8xf32>
    %28 = vector.shape_cast %27 : vector<1x16x8xf32> to vector<16x8xf32>
    %29 = vector.shape_cast %26 : vector<16x8xf32> to vector<1x16x8xf32>
    tpu.vector_store %arg5[%c0_13, %c0_14, %c0_15], %29 {strides = array<i32>} : memref<1x16x8xf32, #tpu.memory_space<vmem>>, vector<1x16x8xf32>,
    return
  }
  func.func @transform_0(%arg0: i32) -> (i32, i32, i32) {
    %c0_i32 = arith.constant 0 : i32
    %c0_i32_0 = arith.constant 0 : i32
    %c0_i32_1 = arith.constant 0 : i32
    return %arg0, %c0_i32, %c0_i32_0 : i32, i32, i32
  }
  func.func @transform_1(%arg0: i32) -> (i32, i32, i32) {
    %c0_i32 = arith.constant 0 : i32
    %c0_i32_0 = arith.constant 0 : i32
    %c0_i32_1 = arith.constant 0 : i32
    return %arg0, %c0_i32, %c0_i32_0 : i32, i32, i32
  }
  func.func @transform_2(%arg0: i32) -> (i32, i32) {
    %c0_i32 = arith.constant 0 : i32
    %c0_i32_0 = arith.constant 0 : i32
    %c0_i32_1 = arith.constant 0 : i32
    return %c0_i32, %c0_i32_0 : i32, i32
  }
  func.func @transform_3(%arg0: i32) -> (i32, i32) {
    %c0_i32 = arith.constant 0 : i32
    %c0_i32_0 = arith.constant 0 : i32
    %c0_i32_1 = arith.constant 0 : i32
    return %c0_i32, %c0_i32_0 : i32, i32
  }
  func.func @transform_4(%arg0: i32) -> (i32, i32, i32) {
    %c0_i32 = arith.constant 0 : i32
    %c0_i32_0 = arith.constant 0 : i32
    %c0_i32_1 = arith.constant 0 : i32
    return %arg0, %c0_i32, %c0_i32_0 : i32, i32, i32
  }
}

module attributes {stable_mosaic.version = 11 : i64} {
  func.func @_conv1d_bias_kernel(%arg0: i32, %arg1: memref<1x16x10xf32, #tpu.memory_space<vmem>>, %arg2: memref<3x32x16xf32, #tpu.memory_space<vmem>>, %arg3: memref<32x1xf32, #tpu.memory_space<vmem>>, %arg4: memref<1x32x8xf32, #tpu.memory_space<vmem>>) attributes {dimension_semantics = [#tpu.dimension_semantics<parallel>], iteration_bounds = array<i64: 2>, scalar_prefetch = 0 : i64, scratch_operands = 0 : i64, tpu.core_type = #tpu.core_type<tc>, window_params = [{transform_indices = @transform_0, window_bounds = array<i64: 1, 16, 10>}, {pipeline_mode = #tpu.pipeline_mode<synchronous>, transform_indices = @transform_1, window_bounds = array<i64: 3, 32, 16>}, {pipeline_mode = #tpu.pipeline_mode<synchronous>, transform_indices = @transform_2, window_bounds = array<i64: 32, 1>}, {transform_indices = @transform_3, window_bounds = array<i64: 1, 32, 8>}]} {
    %c0 = arith.constant 0 : index
    %c0_0 = arith.constant 0 : index
    %c0_1 = arith.constant 0 : index
    %0 = vector.load %arg1[%c0, %c0_0, %c0_1] : memref<1x16x10xf32, #tpu.memory_space<vmem>>, vector<1x16x10xf32>
    %1 = vector.shape_cast %0 : vector<1x16x10xf32> to vector<16x10xf32>
    %2 = arith.truncf %1 : vector<16x10xf32> to vector<16x10xbf16>
    %c0_2 = arith.constant 0 : index
    %c0_3 = arith.constant 0 : index
    %3 = vector.load %arg3[%c0_2, %c0_3] : memref<32x1xf32, #tpu.memory_space<vmem>>, vector<32x1xf32>
    %4 = vector.shape_cast %3 : vector<32x1xf32> to vector<32x1xf32>
    %5 = vector.broadcast %4 : vector<32x1xf32> to vector<32x8xf32>
    %c0_4 = arith.constant 0 : index
    %c0_5 = arith.constant 0 : index
    %c0_6 = arith.constant 0 : index
    %6 = vector.load %arg2[%c0_4, %c0_5, %c0_6] : memref<3x32x16xf32, #tpu.memory_space<vmem>>, vector<1x32x16xf32>
    %7 = vector.shape_cast %6 : vector<1x32x16xf32> to vector<32x16xf32>
    %8 = arith.truncf %7 : vector<32x16xf32> to vector<32x16xbf16>
    %9 = vector.extract_strided_slice %2 {offsets = [0, 0], sizes = [16, 8], strides = [1, 1]} : vector<16x10xbf16> to vector<16x8xbf16>
    %cst = arith.constant dense<0.000000e+00> : vector<32x8xf32>
    %10 = tpu.matmul %8, %9, %cst {dimension_numbers = #tpu.dot_dimension_numbers<[1], [0], [0], [1], [0, 0, 1, 1], [], []>} : vector<32x16xbf16>, vector<16x8xbf16>, vector<32x8xf32> -> vector<32x8xf32>
    %11 = arith.addf %5, %10 : vector<32x8xf32>
    %c1 = arith.constant 1 : index
    %c0_7 = arith.constant 0 : index
    %c0_8 = arith.constant 0 : index
    %12 = vector.load %arg2[%c1, %c0_7, %c0_8] : memref<3x32x16xf32, #tpu.memory_space<vmem>>, vector<1x32x16xf32>
    %13 = vector.shape_cast %12 : vector<1x32x16xf32> to vector<32x16xf32>
    %14 = arith.truncf %13 : vector<32x16xf32> to vector<32x16xbf16>
    %15 = vector.extract_strided_slice %2 {offsets = [0, 1], sizes = [16, 8], strides = [1, 1]} : vector<16x10xbf16> to vector<16x8xbf16>
    %cst_9 = arith.constant dense<0.000000e+00> : vector<32x8xf32>
    %16 = tpu.matmul %14, %15, %cst_9 {dimension_numbers = #tpu.dot_dimension_numbers<[1], [0], [0], [1], [0, 0, 1, 1], [], []>} : vector<32x16xbf16>, vector<16x8xbf16>, vector<32x8xf32> -> vector<32x8xf32>
    %17 = arith.addf %11, %16 : vector<32x8xf32>
    %c2 = arith.constant 2 : index
    %c0_10 = arith.constant 0 : index
    %c0_11 = arith.constant 0 : index
    %18 = vector.load %arg2[%c2, %c0_10, %c0_11] : memref<3x32x16xf32, #tpu.memory_space<vmem>>, vector<1x32x16xf32>
    %19 = vector.shape_cast %18 : vector<1x32x16xf32> to vector<32x16xf32>
    %20 = arith.truncf %19 : vector<32x16xf32> to vector<32x16xbf16>
    %21 = vector.extract_strided_slice %2 {offsets = [0, 2], sizes = [16, 8], strides = [1, 1]} : vector<16x10xbf16> to vector<16x8xbf16>
    %cst_12 = arith.constant dense<0.000000e+00> : vector<32x8xf32>
    %22 = tpu.matmul %20, %21, %cst_12 {dimension_numbers = #tpu.dot_dimension_numbers<[1], [0], [0], [1], [0, 0, 1, 1], [], []>} : vector<32x16xbf16>, vector<16x8xbf16>, vector<32x8xf32> -> vector<32x8xf32>
    %23 = arith.addf %17, %22 : vector<32x8xf32>
    %c0_13 = arith.constant 0 : index
    %c0_14 = arith.constant 0 : index
    %c0_15 = arith.constant 0 : index
    %24 = vector.load %arg4[%c0_13, %c0_14, %c0_15] : memref<1x32x8xf32, #tpu.memory_space<vmem>>, vector<1x32x8xf32>
    %25 = vector.shape_cast %24 : vector<1x32x8xf32> to vector<32x8xf32>
    %26 = vector.shape_cast %23 : vector<32x8xf32> to vector<1x32x8xf32>
    tpu.vector_store %arg4[%c0_13, %c0_14, %c0_15], %26 {strides = array<i32>} : memref<1x32x8xf32, #tpu.memory_space<vmem>>, vector<1x32x8xf32>,
    return
  }
  func.func @transform_0(%arg0: i32) -> (i32, i32, i32) {
    %c0_i32 = arith.constant 0 : i32
    %c0_i32_0 = arith.constant 0 : i32
    %c0_i32_1 = arith.constant 0 : i32
    return %arg0, %c0_i32, %c0_i32_0 : i32, i32, i32
  }
  func.func @transform_1(%arg0: i32) -> (i32, i32, i32) {
    %c0_i32 = arith.constant 0 : i32
    %c0_i32_0 = arith.constant 0 : i32
    %c0_i32_1 = arith.constant 0 : i32
    %c0_i32_2 = arith.constant 0 : i32
    return %c0_i32, %c0_i32_0, %c0_i32_1 : i32, i32, i32
  }
  func.func @transform_2(%arg0: i32) -> (i32, i32) {
    %c0_i32 = arith.constant 0 : i32
    %c0_i32_0 = arith.constant 0 : i32
    %c0_i32_1 = arith.constant 0 : i32
    return %c0_i32, %c0_i32_0 : i32, i32
  }
  func.func @transform_3(%arg0: i32) -> (i32, i32, i32) {
    %c0_i32 = arith.constant 0 : i32
    %c0_i32_0 = arith.constant 0 : i32
    %c0_i32_1 = arith.constant 0 : i32
    return %arg0, %c0_i32, %c0_i32_0 : i32, i32, i32
  }
}

module attributes {stable_mosaic.version = 11 : i64} {
  func.func @_conv1d_bias_kernel(%arg0: i32, %arg1: memref<1x32x10xf32, #tpu.memory_space<vmem>>, %arg2: memref<3x16x32xf32, #tpu.memory_space<vmem>>, %arg3: memref<16x1xf32, #tpu.memory_space<vmem>>, %arg4: memref<1x16x8xf32, #tpu.memory_space<vmem>>) attributes {dimension_semantics = [#tpu.dimension_semantics<parallel>], iteration_bounds = array<i64: 2>, scalar_prefetch = 0 : i64, scratch_operands = 0 : i64, tpu.core_type = #tpu.core_type<tc>, window_params = [{transform_indices = @transform_0, window_bounds = array<i64: 1, 32, 10>}, {pipeline_mode = #tpu.pipeline_mode<synchronous>, transform_indices = @transform_1, window_bounds = array<i64: 3, 16, 32>}, {pipeline_mode = #tpu.pipeline_mode<synchronous>, transform_indices = @transform_2, window_bounds = array<i64: 16, 1>}, {transform_indices = @transform_3, window_bounds = array<i64: 1, 16, 8>}]} {
    %c0 = arith.constant 0 : index
    %c0_0 = arith.constant 0 : index
    %c0_1 = arith.constant 0 : index
    %0 = vector.load %arg1[%c0, %c0_0, %c0_1] : memref<1x32x10xf32, #tpu.memory_space<vmem>>, vector<1x32x10xf32>
    %1 = vector.shape_cast %0 : vector<1x32x10xf32> to vector<32x10xf32>
    %2 = arith.truncf %1 : vector<32x10xf32> to vector<32x10xbf16>
    %c0_2 = arith.constant 0 : index
    %c0_3 = arith.constant 0 : index
    %3 = vector.load %arg3[%c0_2, %c0_3] : memref<16x1xf32, #tpu.memory_space<vmem>>, vector<16x1xf32>
    %4 = vector.shape_cast %3 : vector<16x1xf32> to vector<16x1xf32>
    %5 = vector.broadcast %4 : vector<16x1xf32> to vector<16x8xf32>
    %c0_4 = arith.constant 0 : index
    %c0_5 = arith.constant 0 : index
    %c0_6 = arith.constant 0 : index
    %6 = vector.load %arg2[%c0_4, %c0_5, %c0_6] : memref<3x16x32xf32, #tpu.memory_space<vmem>>, vector<1x16x32xf32>
    %7 = vector.shape_cast %6 : vector<1x16x32xf32> to vector<16x32xf32>
    %8 = arith.truncf %7 : vector<16x32xf32> to vector<16x32xbf16>
    %9 = vector.extract_strided_slice %2 {offsets = [0, 0], sizes = [32, 8], strides = [1, 1]} : vector<32x10xbf16> to vector<32x8xbf16>
    %cst = arith.constant dense<0.000000e+00> : vector<16x8xf32>
    %10 = tpu.matmul %8, %9, %cst {dimension_numbers = #tpu.dot_dimension_numbers<[1], [0], [0], [1], [0, 0, 1, 1], [], []>} : vector<16x32xbf16>, vector<32x8xbf16>, vector<16x8xf32> -> vector<16x8xf32>
    %11 = arith.addf %5, %10 : vector<16x8xf32>
    %c1 = arith.constant 1 : index
    %c0_7 = arith.constant 0 : index
    %c0_8 = arith.constant 0 : index
    %12 = vector.load %arg2[%c1, %c0_7, %c0_8] : memref<3x16x32xf32, #tpu.memory_space<vmem>>, vector<1x16x32xf32>
    %13 = vector.shape_cast %12 : vector<1x16x32xf32> to vector<16x32xf32>
    %14 = arith.truncf %13 : vector<16x32xf32> to vector<16x32xbf16>
    %15 = vector.extract_strided_slice %2 {offsets = [0, 1], sizes = [32, 8], strides = [1, 1]} : vector<32x10xbf16> to vector<32x8xbf16>
    %cst_9 = arith.constant dense<0.000000e+00> : vector<16x8xf32>
    %16 = tpu.matmul %14, %15, %cst_9 {dimension_numbers = #tpu.dot_dimension_numbers<[1], [0], [0], [1], [0, 0, 1, 1], [], []>} : vector<16x32xbf16>, vector<32x8xbf16>, vector<16x8xf32> -> vector<16x8xf32>
    %17 = arith.addf %11, %16 : vector<16x8xf32>
    %c2 = arith.constant 2 : index
    %c0_10 = arith.constant 0 : index
    %c0_11 = arith.constant 0 : index
    %18 = vector.load %arg2[%c2, %c0_10, %c0_11] : memref<3x16x32xf32, #tpu.memory_space<vmem>>, vector<1x16x32xf32>
    %19 = vector.shape_cast %18 : vector<1x16x32xf32> to vector<16x32xf32>
    %20 = arith.truncf %19 : vector<16x32xf32> to vector<16x32xbf16>
    %21 = vector.extract_strided_slice %2 {offsets = [0, 2], sizes = [32, 8], strides = [1, 1]} : vector<32x10xbf16> to vector<32x8xbf16>
    %cst_12 = arith.constant dense<0.000000e+00> : vector<16x8xf32>
    %22 = tpu.matmul %20, %21, %cst_12 {dimension_numbers = #tpu.dot_dimension_numbers<[1], [0], [0], [1], [0, 0, 1, 1], [], []>} : vector<16x32xbf16>, vector<32x8xbf16>, vector<16x8xf32> -> vector<16x8xf32>
    %23 = arith.addf %17, %22 : vector<16x8xf32>
    %c0_13 = arith.constant 0 : index
    %c0_14 = arith.constant 0 : index
    %c0_15 = arith.constant 0 : index
    %24 = vector.load %arg4[%c0_13, %c0_14, %c0_15] : memref<1x16x8xf32, #tpu.memory_space<vmem>>, vector<1x16x8xf32>
    %25 = vector.shape_cast %24 : vector<1x16x8xf32> to vector<16x8xf32>
    %26 = vector.shape_cast %23 : vector<16x8xf32> to vector<1x16x8xf32>
    tpu.vector_store %arg4[%c0_13, %c0_14, %c0_15], %26 {strides = array<i32>} : memref<1x16x8xf32, #tpu.memory_space<vmem>>, vector<1x16x8xf32>,
    return
  }
  func.func @transform_0(%arg0: i32) -> (i32, i32, i32) {
    %c0_i32 = arith.constant 0 : i32
    %c0_i32_0 = arith.constant 0 : i32
    %c0_i32_1 = arith.constant 0 : i32
    return %arg0, %c0_i32, %c0_i32_0 : i32, i32, i32
  }
  func.func @transform_1(%arg0: i32) -> (i32, i32, i32) {
    %c0_i32 = arith.constant 0 : i32
    %c0_i32_0 = arith.constant 0 : i32
    %c0_i32_1 = arith.constant 0 : i32
    %c0_i32_2 = arith.constant 0 : i32
    return %c0_i32, %c0_i32_0, %c0_i32_1 : i32, i32, i32
  }
  func.func @transform_2(%arg0: i32) -> (i32, i32) {
    %c0_i32 = arith.constant 0 : i32
    %c0_i32_0 = arith.constant 0 : i32
    %c0_i32_1 = arith.constant 0 : i32
    return %c0_i32, %c0_i32_0 : i32, i32
  }
  func.func @transform_3(%arg0: i32) -> (i32, i32, i32) {
    %c0_i32 = arith.constant 0 : i32
    %c0_i32_0 = arith.constant 0 : i32
    %c0_i32_1 = arith.constant 0 : i32
    return %arg0, %c0_i32, %c0_i32_0 : i32, i32, i32
  }
}

</mosaic_0001>

<bundles_post_ra>
// kernel: fwd.84
= control target key start
LH: loop header
LB: loop body
LE: loop exit
PB: predicated region body
PF: predicated region fallthrough
CT: control target
= control target key end

     0   :  { %s378_s12 = smov 0   ;;  %s411_s0 = inlined_call_operand.vmem [shape: f32[2,64,8], index: 0, kind: input, shape index: {}]   ;;  %s412_s1 = inlined_call_operand.vmem [shape: f32[1,16,64], index: 1, kind: input, shape index: {}]   ;;  %s413_s2 = inlined_call_operand.vmem [shape: f32[16,1], index: 2, kind: input, shape index: {}]   ;;  %s414_s3 = inlined_call_operand.vmem [shape: f32[2,16,8], index: 3, kind: output, shape index: {}]  }
   0x1 LB: > { %s304_s13 = sadd.s32 4294967295, %s353_s12   ;;  %p308_p0 = scmp.ge.s32.totalorder %s353_s12, 1  ;;  %s353_s12 = sphi %s378_s12, %s13_s12  }
   0x2   : > { %p137_p1 = scmp.lt.s32.totalorder %s353_s12, 3 }
   0x4   : > { %p138_p2 = pnand %p308_p0, %p137_p1 }
   0x5   : > { %p161_p3 = scmp.lt.s32.totalorder (!%p138_p2), %s304_s13, 1  ;;  %v355_v0 = vmov (!%p138_p2), 0.0   ;;  %vm356_vm0 = vmmov (!%p138_p2), 0   ;;  %v184_v1 = vld [vmem:[%s413_s2] sm:$0xff] (!%p138_p2)  ;;  %v357_v2 = vmov (!%p138_p2), 0   ;;  %v185_v3 = vld [vmem:[%s413_s2 + $0x8] sm:$0xff] (!%p138_p2) }
   0x6   : > { %141 = sbr.rel (%p138_p2) target bundleno = 251 (0xfb), region = 32  ;;  %323 = vmatprep.subr.bf16.mxu0 (!%p138_p2), %v355_v0  ;;  %331 = vmatprep.mubr.msk.bf16.mxu0 (!%p138_p2), %vm356_vm0, %v355_v0  ;;  %v196_v16 = vld [vmem:[%s412_s1] sm:$0xff] (!%p138_p2)  ;;  %v197_v17 = vld [vmem:[%s412_s1 + $0x8] sm:$0xff] (!%p138_p2)  ;;  %vm199_vm1 = vcmask (!%p138_p2), 523264   ;;  %vm246_vm2 = vcmask (!%p138_p2), 64512  }
   0x7   : > { %346 = vset.pattern.permute.xlu0 (!%p138_p2), %v357_v2  ;;  %v198_v18 = vpack.c.bf16 (!%p138_p2), %v197_v17, %v196_v16 }
   0x8   : > { %188 = vperm.xlu0 (!%p138_p2), %346, %v184_v1  }
   0xc   : > { %193 = vperm.xlu0 (!%p138_p2), %346, %v185_v3  }
   0xd   : > { %s416_s13 = smov (!%p161_p3, %s304_s13), 1 }
   0xe   : > { %s316_s16 = sshll.u32 %s416_s13, 6  ;;  %s317_s26 = sshll.u32 %s416_s13, 4 }
   0xf   : > { %s165_s21 = scalar_lea.vmem %s411_s0, %s316_s16  ;;  %s170_s29 = scalar_lea.vmem %s414_s3, %s317_s26 }
  0x10   : > { %v172_v4 = vld [vmem:[%s165_s21] sm:$0xff]  ;;  %v173_v5 = vld [vmem:[%s165_s21 + $0x8] sm:$0xff]  ;;  %v174_v6 = vld [vmem:[%s165_s21 + $0x10] sm:$0xff] }
  0x11   : > { %v180_v7 = vpack.c.bf16 %v173_v5, %v172_v4  ;;  %v175_v8 = vld [vmem:[%s165_s21 + $0x18] sm:$0xff]  ;;  %v176_v10 = vld [vmem:[%s165_s21 + $0x20] sm:$0xff]  ;;  %v177_v11 = vld [vmem:[%s165_s21 + $0x28] sm:$0xff] }
  0x12   : > { %v181_v9 = vpack.c.bf16 %v175_v8, %v174_v6  ;;  %v182_v12 = vpack.c.bf16 %v177_v11, %v176_v10  ;;  %v178_v13 = vld [vmem:[%s165_s21 + $0x30] sm:$0xff]  ;;  %v179_v14 = vld [vmem:[%s165_s21 + $0x38] sm:$0xff] }
  0x13   : > { %324 = vmatpush3.bf16.msra.mxu0 %v180_v7  ;;  %v183_v15 = vpack.c.bf16 %v179_v14, %v178_v13 }
  0x14   : > { %325 = vmatprep.subr.bf16.mxu0 %v355_v0 }
  0x17   : > { %326 = vmatpush3.bf16.msra.mxu0 %v181_v9 }
  0x18   : > { %327 = vmatprep.subr.bf16.mxu0 %v355_v0 }
  0x1b   : > { %328 = vmatpush3.bf16.msra.mxu0 %v182_v12 }
  0x1c   : > { %329 = vmatprep.subr.bf16.mxu0 %v355_v0 }
  0x1f   : > { %330 = vmatpush3.bf16.msra.mxu0 %v183_v15 }
  0x22   : > { %332 = vmatmul.mubr.msk.bf16.vlgmr.msra.gmra.mrb[0].mxu0 %vm199_vm1, %v198_v18 }
  0x87   : > { %v189_v19 = vpop.permute.xlu0 %188 }
  0x8b   : > { %v194_v23 = vpop.permute.xlu0 %193 }
  0xf5   : > { %v237_v20 = vpop.f32.mrb[0].mxu0 }
  0xf6   : > { %v244_v21 = vadd.f32 %v237_v20, %v189_v19  ;;  %v333_v22 = vpop.f32.mrb[1].mxu0 }
  0xf7   : > { %v240_v24 = vpop.f32.mrb[2].mxu0 }
  0xf8   : > { %247 = vst.msk [vmem:[%s170_s29] sm:$0xff] %vm246_vm2, %v244_v21  ;;  %v245_v25 = vadd.f32 %v240_v24, %v194_v23  ;;  %v334_v26 = vpop.f32.mrb[3].mxu0 }
  0xfa   : > { %248 = vst.msk [vmem:[%s170_s29 + $0x8] sm:$0xff] %vm246_vm2, %v245_v25 }
  0xfb PF: > { %s13_s12 = sadd.s32 1, %s353_s12  }
  0xfc   : > { %p10_p4 = scmp.ge.s32.totalorder %s13_s12, 4  }
  0xfe   :  { %12 = sbr.rel (!%p10_p4) target bundleno = 1 (0x1), region = 62 }

// kernel: fwd.101
= control target key start
LH: loop header
LB: loop body
LE: loop exit
PB: predicated region body
PF: predicated region fallthrough
CT: control target
= control target key end

     0   :  { %s360_s12 = smov 0   ;;  %s389_s0 = inlined_call_operand.vmem [shape: f32[2,16,8], index: 0, kind: input, shape index: {}]   ;;  %s390_s1 = inlined_call_operand.vmem [shape: f32[1,16,16], index: 1, kind: input, shape index: {}]   ;;  %s391_s2 = inlined_call_operand.vmem [shape: f32[16,1], index: 2, kind: input, shape index: {}]   ;;  %s392_s3 = inlined_call_operand.vmem [shape: f32[2,16,8], index: 3, kind: output, shape index: {}]  }
   0x1 LB: > { %s295_s13 = sadd.s32 4294967295, %s335_s12   ;;  %p299_p0 = scmp.ge.s32.totalorder %s335_s12, 1  ;;  %s335_s12 = sphi %s360_s12, %s13_s12  }
   0x2   : > { %p137_p1 = scmp.lt.s32.totalorder %s335_s12, 3 }
   0x4   : > { %p138_p2 = pnand %p299_p0, %p137_p1 }
   0x5   : > { %p161_p3 = scmp.lt.s32.totalorder (!%p138_p2), %s295_s13, 1  ;;  %v337_v0 = vmov (!%p138_p2), 0.0   ;;  %vm338_vm0 = vmmov (!%p138_p2), 0   ;;  %v175_v1 = vld [vmem:[%s391_s2] sm:$0xff] (!%p138_p2)  ;;  %v339_v2 = vmov (!%p138_p2), 0   ;;  %v176_v3 = vld [vmem:[%s391_s2 + $0x8] sm:$0xff] (!%p138_p2) }
   0x6   : > { %141 = sbr.rel (%p138_p2) target bundleno = 239 (0xef), region = 32  ;;  %311 = vmatprep.subr.bf16.mxu0 (!%p138_p2), %v337_v0  ;;  %313 = vmatprep.mubr.msk.bf16.mxu0 (!%p138_p2), %vm338_vm0, %v337_v0  ;;  %v187_v4 = vld [vmem:[%s390_s1] sm:$0xff] (!%p138_p2)  ;;  %v188_v5 = vld [vmem:[%s390_s1 + $0x8] sm:$0xff] (!%p138_p2)  ;;  %vm190_vm1 = vcmask (!%p138_p2), 130048   ;;  %vm237_vm2 = vcmask (!%p138_p2), 64512  }
   0x7   : > { %328 = vset.pattern.permute.xlu0 (!%p138_p2), %v339_v2  ;;  %v189_v9 = vpack.c.bf16 (!%p138_p2), %v188_v5, %v187_v4 }
   0x8   : > { %179 = vperm.xlu0 (!%p138_p2), %328, %v175_v1  }
   0xc   : > { %184 = vperm.xlu0 (!%p138_p2), %328, %v176_v3  }
   0xd   : > { %s394_s13 = smov (!%p161_p3, %s295_s13), 1 }
   0xe   : > { %s307_s16 = sshll.u32 %s394_s13, 4 }
   0xf   : > { %s165_s21 = scalar_lea.vmem %s389_s0, %s307_s16  ;;  %s170_s28 = scalar_lea.vmem %s392_s3, %s307_s16 }
  0x10   : > { %v172_v6 = vld [vmem:[%s165_s21] sm:$0xff]  ;;  %v173_v7 = vld [vmem:[%s165_s21 + $0x8] sm:$0xff] }
  0x11   : > { %v174_v8 = vpack.c.bf16 %v173_v7, %v172_v6 }
  0x13   : > { %312 = vmatpush3.bf16.msra.mxu0 %v174_v8 }
  0x16   : > { %314 = vmatmul.mubr.msk.bf16.vlgmr.msra.gmra.mrb[0].mxu0 %vm190_vm1, %v189_v9 }
  0x87   : > { %v180_v10 = vpop.permute.xlu0 %179 }
  0x8b   : > { %v185_v14 = vpop.permute.xlu0 %184 }
  0xe9   : > { %v228_v11 = vpop.f32.mrb[0].mxu0 }
  0xea   : > { %v235_v12 = vadd.f32 %v228_v11, %v180_v10  ;;  %v315_v13 = vpop.f32.mrb[1].mxu0 }
  0xeb   : > { %v231_v15 = vpop.f32.mrb[2].mxu0 }
  0xec   : > { %238 = vst.msk [vmem:[%s170_s28] sm:$0xff] %vm237_vm2, %v235_v12  ;;  %v236_v16 = vadd.f32 %v231_v15, %v185_v14  ;;  %v316_v17 = vpop.f32.mrb[3].mxu0 }
  0xee   : > { %239 = vst.msk [vmem:[%s170_s28 + $0x8] sm:$0xff] %vm237_vm2, %v236_v16 }
  0xef PF: > { %s13_s12 = sadd.s32 1, %s335_s12  }
  0xf0   : > { %p10_p4 = scmp.ge.s32.totalorder %s13_s12, 4  }
  0xf2   :  { %12 = sbr.rel (!%p10_p4) target bundleno = 1 (0x1), region = 62 }

// kernel: fwd.85
= control target key start
LH: loop header
LB: loop body
LE: loop exit
PB: predicated region body
PF: predicated region fallthrough
CT: control target
= control target key end

     0   :  { %s1259_s30 = smov 0   ;;  %s1418_s0 = inlined_call_operand.vmem [shape: f32[2,16,12], index: 0, kind: input, shape index: {}]   ;;  %s1419_s1 = inlined_call_operand.vmem [shape: f32[2,16,8], index: 1, kind: input, shape index: {}]   ;;  %s1420_s2 = inlined_call_operand.vmem [shape: f32[2,32,1], index: 2, kind: input, shape index: {}]   ;;  %s1421_s3 = inlined_call_operand.vmem [shape: f32[2,1,8], index: 3, kind: input, shape index: {}]   ;;  %s1422_s4 = inlined_call_operand.vmem [shape: f32[5,32,16], index: 4, kind: input, shape index: {}]   ;;  %s1423_s5 = inlined_call_operand.vmem [shape: f32[32,1], index: 5, kind: input, shape index: {}]   ;;  %s1424_s6 = inlined_call_operand.vmem [shape: f32[32,16], index: 6, kind: input, shape index: {}]   ;;  %s1425_s7 = inlined_call_operand.vmem [shape: f32[32,1], index: 7, kind: input, shape index: {}]   ;;  %s1426_s8 = inlined_call_operand.vmem [shape: f32[2,16,8], index: 8, kind: output, shape index: {0}]   ;;  %s1427_s9 = inlined_call_operand.vmem [shape: f32[2,16,8], index: 9, kind: output, shape index: {1}]  }
   0x1 LB: > { %s1040_s10 = sadd.s32 4294967295, %s1201_s30   ;;  %p1044_p0 = scmp.ge.s32.totalorder %s1201_s30, 1  ;;  %s1201_s30 = sphi %s1259_s30, %s20_s30  }
   0x2   : > { %p318_p1 = scmp.lt.s32.totalorder %s1201_s30, 3 }
   0x4   : > { %p319_p2 = pnand %p1044_p0, %p318_p1 }
   0x5   : > { %p372_p3 = scmp.lt.s32.totalorder (!%p319_p2), %s1040_s10, 1  ;;  %v436_v0 = vld [vmem:[%s1422_s4] sm:$0xff] (!%p319_p2)  ;;  %v437_v1 = vld [vmem:[%s1422_s4 + $0x8] sm:$0xff] (!%p319_p2)  ;;  %vm442_vm0 = vcmask (!%p319_p2), 130048   ;;  %v438_v9 = vld [vmem:[%s1422_s4 + $0x10] sm:$0xff] (!%p319_p2)  ;;  %s1203_s12 = smov (!%p319_p2), 126  }
   0x6   : > { %322 = sbr.rel (%p319_p2) target bundleno = 864 (0x360), region = 52  ;;  %v440_v2 = vpack.c.bf16 (!%p319_p2), %v437_v1, %v436_v0  ;;  %v1063_v3 = vld [vmem:[%s1422_s4 + $0x40] sm:$0xff] (!%p319_p2)  ;;  %v1064_v4 = vld [vmem:[%s1422_s4 + $0x48] sm:$0xff] (!%p319_p2)  ;;  %v439_v10 = vld [vmem:[%s1422_s4 + $0x18] sm:$0xff] (!%p319_p2)  ;;  %s1204_s13 = smov (!%p319_p2), 127   ;;  %v1207_v17 = vmov (!%p319_p2), 0  }
   0x7   : > { %v577_v5 = vpack.c.bf16 (!%p319_p2), %v1064_v4, %v1063_v3  ;;  %v1057_v11 = vld [vmem:[%s1422_s4 + $0x20] sm:$0xff] (!%p319_p2)  ;;  %v1058_v12 = vld [vmem:[%s1422_s4 + $0x28] sm:$0xff] (!%p319_p2)  ;;  %v441_v13 = vpack.c.bf16 (!%p319_p2), %v439_v10, %v438_v9  ;;  %s1205_s14 = smov (!%p319_p2), 125   ;;  %s1206_s15 = smov (!%p319_p2), 124   ;;  %v406_v15 = vld [vmem:[%s1423_s5 + $0x18] sm:$0xff] (!%p319_p2)  ;;  %1182 = vset.pattern.permute.xlu1 (!%p319_p2), %v1207_v17  ;;  %1181 = vset.pattern.permute.xlu0 (!%p319_p2), %v1207_v17  ;;  %vm910_vm1 = vcmask (!%p319_p2), 64512  }
   0x8   : > { %1113 = vmatprep.mubr.msk.bf16.mxu1 (!%p319_p2), %vm442_vm0, %v440_v2  ;;  %v507_v14 = vpack.c.bf16 (!%p319_p2), %v1058_v12, %v1057_v11  ;;  %v405_v16 = vld [vmem:[%s1423_s5 + $0x10] sm:$0xff] (!%p319_p2)  ;;  %v403_v18 = vld [vmem:[%s1423_s5] sm:$0xff] (!%p319_p2)  ;;  %v404_v19 = vld [vmem:[%s1423_s5 + $0x8] sm:$0xff] (!%p319_p2) }
   0x9   : > { %1125 = vmatprep.mubr.msk.bf16.mxu0 (!%p319_p2), %vm442_vm0, %v577_v5  ;;  %v802_v28 = vld [vmem:[%s1425_s7] sm:$0xff] (!%p319_p2)  ;;  %v803_v29 = vld [vmem:[%s1425_s7 + $0x8] sm:$0xff] (!%p319_p2)  ;;  %v1065_v30 = vld [vmem:[%s1422_s4 + $0x50] sm:$0xff] (!%p319_p2) }
   0xa   : > { %v1066_v31 = vld [vmem:[%s1422_s4 + $0x58] sm:$0xff] (!%p319_p2)  ;;  %v1059_v32 = vld [vmem:[%s1422_s4 + $0x30] sm:$0xff] (!%p319_p2)  ;;  %v1069_v36 = vld [vmem:[%s1422_s4 + $0x60] sm:$0xff] (!%p319_p2) }
   0xb   : > { %v1060_v33 = vld [vmem:[%s1422_s4 + $0x38] sm:$0xff] (!%p319_p2)  ;;  %v1070_v37 = vld [vmem:[%s1422_s4 + $0x68] sm:$0xff] (!%p319_p2)  ;;  %v578_v38 = vpack.c.bf16 (!%p319_p2), %v1066_v31, %v1065_v30  ;;  %v1071_v43 = vld [vmem:[%s1422_s4 + $0x70] sm:$0xff] (!%p319_p2) }
   0xc   : > { %v508_v39 = vpack.c.bf16 (!%p319_p2), %v1060_v33, %v1059_v32  ;;  %v646_v40 = vpack.c.bf16 (!%p319_p2), %v1070_v37, %v1069_v36  ;;  %v1072_v44 = vld [vmem:[%s1422_s4 + $0x78] sm:$0xff] (!%p319_p2)  ;;  %v1075_v45 = vld [vmem:[%s1422_s4 + $0x80] sm:$0xff] (!%p319_p2)  ;;  %v1076_v46 = vld [vmem:[%s1422_s4 + $0x88] sm:$0xff] (!%p319_p2) }
   0xd   : > { %s1429_s10 = smov (!%p372_p3, %s1040_s10), 1  ;;  %v647_v47 = vpack.c.bf16 %v1072_v44, %v1071_v43  ;;  %v715_v48 = vpack.c.bf16 %v1076_v46, %v1075_v45  ;;  %v1077_v49 = vld [vmem:[%s1422_s4 + $0x90] sm:$0xff]  ;;  %v1078_v50 = vld [vmem:[%s1422_s4 + $0x98] sm:$0xff]  ;;  %v795_v52 = vld [vmem:[%s1424_s6] sm:$0xff] }
   0xe   : > { %s1283_s19 = sshll.u32 %s1429_s10, 4  ;;  %s1090_s16 = sshll.u32 %s1429_s10, 5  ;;  %v716_v51 = vpack.c.bf16 %v1078_v50, %v1077_v49  ;;  %v796_v53 = vld [vmem:[%s1424_s6 + $0x8] sm:$0xff] }
   0xf   : > { %s376_s22 = scalar_lea.vmem %s1418_s0, %s1283_s19  ;;  %s386_s24 = scalar_lea.vmem %s1420_s2, %s1090_s16  ;;  %v799_v54 = vpack.c.bf16 %v796_v53, %v795_v52 }
  0x10   : > { %v1290_v6 = vld [vmem:[%s376_s22] sm:$0xff]  ;;  %v1292_v7 = vld [vmem:[%s376_s22 + $0x8] sm:$0xff]  ;;  %v410_v20 = vld [vmem:[%s386_s24 + $0x18] sm:$0xff]  ;;  %s1208_s16 = smov 2   ;;  %s381_s23 = scalar_lea.vmem %s1419_s1, %s1283_s19 }
  0x11   : > { %v435_v8 = vpack.c.bf16 %v1292_v7, %v1290_v6  ;;  %v409_v21 = vld [vmem:[%s386_s24 + $0x10] sm:$0xff]  ;;  %v407_v22 = vld [vmem:[%s386_s24] sm:$0xff]  ;;  %v414_v23 = vadd.f32 %v410_v20, %v406_v15  ;;  %v408_v25 = vld [vmem:[%s386_s24 + $0x8] sm:$0xff]  ;;  %s399_s26 = scalar_lea.vmem %s1427_s9, %s1283_s19  ;;  %s394_s28 = scalar_lea.vmem %s1426_s8, %s1283_s19 }
  0x12   : > { %v413_v24 = vadd.f32 %v409_v21, %v405_v16  ;;  %v411_v26 = vadd.f32 %v407_v22, %v403_v18  ;;  %v412_v27 = vadd.f32 %v408_v25, %v404_v19  ;;  %v797_v25 = vld [vmem:[%s1424_s6 + $0x10] sm:$0xff]  ;;  %v914_v50 = vld [vmem:[%s381_s23 + $0x8] sm:$0xff] }
  0x13   : > { %579 = vrot.lane.b32.xlu0 %v435_v8, %s1203_s12  ;;  %510 = vrot.lane.b32.xlu1 %v435_v8, %s1204_s13 }
  0x14   : > { %1111 = vmatprep.subr.bf16.mxu1 %v435_v8 }
  0x15   : > { %1112 = vmatpush3.bf16.msra.mxu1 %v435_v8 }
  0x17   : > { %648 = vrot.lane.b32.xlu0 %v435_v8, %s1205_s14  ;;  %717 = vrot.lane.b32.xlu1 %v435_v8, %s1206_s15  ;;  %s389_s15 = scalar_lea.vmem %s1421_s3, %s1429_s10 }
  0x18   : > { %1114 = vmatmul.mubr.msk.bf16.vlgmr.msra.gmra.mrb[0].mxu1 %vm442_vm0, %v441_v13  ;;  %v1085_v37 = vld [vmem:[%s389_s15] ss:$0 sm:$0xff] }
  0x19   : > { %1119 = vmatprep.mubr.msk.bf16.mxu1 %vm442_vm0, %v507_v14 }
  0x1b   : > { %432 = vperm.xlu1 %1182, %v414_v23   ;;  %427 = vperm.xlu0 %1181, %v413_v24  }
  0x1f   : > { %417 = vperm.xlu1 %1182, %v411_v26   ;;  %422 = vperm.xlu0 %1181, %v412_v27   ;;  %v798_v26 = vld [vmem:[%s1424_s6 + $0x18] sm:$0xff] }
  0x23   : > { %808 = vperm.xlu1 %1182, %v802_v28   ;;  %813 = vperm.xlu0 %1181, %v803_v29   ;;  %v800_v28 = vpack.c.bf16 %v798_v26, %v797_v25 }
  0x85   : > { %v580_v34 = vpop.permute.xlu0 %579  ;;  %v511_v35 = vpop.permute.xlu1 %510 }
  0x86   : > { %1123 = vmatprep.subr.bf16.mxu0 %v580_v34  ;;  %1117 = vmatprep.subr.bf16.mxu1 %v511_v35 }
  0x87   : > { %1124 = vmatpush3.bf16.msra.mxu0 %v580_v34  ;;  %1118 = vmatpush3.bf16.msra.mxu1 %v511_v35 }
  0x89   : > { %v649_v41 = vpop.permute.xlu0 %648  ;;  %v718_v42 = vpop.permute.xlu1 %717 }
  0x8a   : > { %1126 = vmatmul.mubr.msk.bf16.vlgmr.msra.gmra.mrb[0].mxu0 %vm442_vm0, %v578_v38  ;;  %1129 = vmatprep.subr.bf16.mxu0 %v649_v41  ;;  %v804_v38 = vld [vmem:[%s1425_s7 + $0x10] sm:$0xff] }
  0x8b   : > { %1130 = vmatpush3.bf16.msra.mxu0 %v649_v41  ;;  %1120 = vmatmul.mubr.msk.bf16.vlgmr.msra.gmra.mrb[0].mxu1 %vm442_vm0, %v508_v39  ;;  %v805_v39 = vld [vmem:[%s1425_s7 + $0x18] sm:$0xff] }
  0x8c   : > { %1131 = vmatprep.mubr.msk.bf16.mxu0 %vm442_vm0, %v646_v40  ;;  %1135 = vmatprep.subr.bf16.mxu0 %v718_v42 }
  0x8d   : > { %1143 = vmatprep.mubr.msk.bf16.mxu1 %vm442_vm0, %v799_v54 }
  0x96   : > { %1132 = vmatmul.mubr.msk.bf16.vlgmr.msra.gmra.mrb[0].mxu0 %vm442_vm0, %v647_v47  ;;  %v913_v47 = vld [vmem:[%s381_s23] sm:$0xff] }
  0x97   : > { %1136 = vmatpush3.bf16.msra.mxu0 %v718_v42  ;;  %1137 = vmatprep.mubr.msk.bf16.mxu0 %vm442_vm0, %v715_v48 }
  0x9a   : > { %v433_v59 = vpop.permute.xlu1 %432  ;;  %v428_v60 = vpop.permute.xlu0 %427 }
  0x9e   : > { %v418_v61 = vpop.permute.xlu1 %417  ;;  %v423_v63 = vpop.permute.xlu0 %422 }
  0xa2   : > { %1138 = vmatmul.mubr.msk.bf16.vlgmr.msra.gmra.mrb[0].mxu0 %vm442_vm0, %v716_v51  ;;  %v809_v30 = vpop.permute.xlu1 %808  ;;  %v814_v34 = vpop.permute.xlu0 %813 }
 0x15e   : > { %v1121_v55 = vpop.f32.mrb[0].mxu1 }
 0x15f   : > { %v553_v56 = vpop.f32.mrb[1].mxu1  ;;  %v1147_v62 = vadd.f32 %v1121_v55, %v428_v60 }
 0x160   : > { %v1122_v57 = vpop.f32.mrb[2].mxu1  ;;  %v1149_v0 = vadd.f32 %v553_v56, %v418_v61 }
 0x161   : > { %v556_v58 = vpop.f32.mrb[3].mxu1  ;;  %v1151_v2 = vadd.f32 %v1122_v57, %v433_v59 }
 0x162   : > { %v1153_v5 = vadd.f32 %v556_v58, %v423_v63 }
 0x175   : > { %v1139_v1 = vpop.f32.mrb[0].mxu0 }
 0x176   : > { %v1148_v3 = vadd.f32 %v1147_v62, %v1139_v1  ;;  %v760_v4 = vpop.f32.mrb[1].mxu0 }
 0x177   : > { %v1150_v8 = vadd.f32 %v1149_v0, %v760_v4  ;;  %v1140_v9 = vpop.f32.mrb[2].mxu0 }
 0x178   : > { %v1081_v10 = vmul.f32 -1.442695, %v1148_v3  ;;  %v1152_v11 = vadd.f32 %v1151_v2, %v1140_v9  ;;  %v763_v12 = vpop.f32.mrb[3].mxu0 }
 0x179   : > { %v1154_v13 = vadd.f32 %v1153_v5, %v763_v12 }
 0x17a   : > { %1183 = vpow2.f32 %v1081_v10  ;;  %v1082_v14 = vmul.f32 -1.442695, %v1152_v11 }
 0x17c   : > { %1185 = vpow2.f32 %v1082_v14 }
 0x17d   : > { %1187 = vtanh.f32 %v1150_v8 }
 0x184   : > { %v1184_v15 = vpop.eup %1183 }
 0x185   : > { %v787_v16 = vadd.f32 1.0, %v1184_v15 }
 0x186   : > { %v1186_v17 = vpop.eup %1185 }
 0x187   : > { %1189 = vrcp.f32 %v787_v16  ;;  %v788_v18 = vadd.f32 1.0, %v1186_v17  ;;  %v1188_v19 = vpop.eup %1187 }
 0x188   : > { %1191 = vtanh.f32 %v1154_v13 }
 0x189   : > { %1193 = vrcp.f32 %v788_v18 }
 0x191   : > { %v1190_v20 = vpop.eup %1189 }
 0x192   : > { %v1192_v21 = vpop.eup %1191  ;;  %v793_v22 = vmul.f32 %v1190_v20, %v1188_v19 }
 0x193   : > { %v1194_v23 = vpop.eup %1193 }
 0x194   : > { %v794_v24 = vmul.f32 %v1194_v23, %v1192_v21 }
 0x196   : > { %v801_v27 = vpack.c.bf16 %v794_v24, %v793_v22 }
 0x198   : > { %1141 = vmatprep.subr.bf16.mxu1 %v801_v27 }
 0x199   : > { %1142 = vmatpush3.bf16.msra.mxu1 %v801_v27 }
 0x19c   : > { %1144 = vmatmul.mubr.msk.bf16.vlgmr.msra.gmra.mrb[4].mxu1 %vm442_vm0, %v800_v28 }
 0x26f   : > { %v1145_v29 = vpop.f32.mrb[4].mxu1 }
 0x270   : > { %v866_v31 = vpop.f32.mrb[5].mxu1 }
 0x271   : > { %v867_v32 = vadd.f32 %v866_v31, %v809_v30  ;;  %v1146_v33 = vpop.f32.mrb[6].mxu1 }
 0x272   : > { %v869_v35 = vpop.f32.mrb[7].mxu1 }
 0x273   : > { %v870_v36 = vadd.f32 %v869_v35, %v814_v34  ;;  %884 = vrot.lane.b32.xlu1 %v867_v32, %s1208_s16 }
 0x275   : > { %886 = vrot.lane.b32.xlu0 %v870_v36, %s1208_s16 }
 0x277   : > { %897 = vrot.lane.b32.xlu1 %v1085_v37, %s1208_s16 }
 0x279   : > { %818 = vperm.xlu0 %1181, %v804_v38  }
 0x27b   : > { %823 = vperm.xlu1 %1182, %v805_v39  }
 0x2e5   : > { %v885_v40 = vpop.permute.xlu1 %884 }
 0x2e6   : > { %v890_v42 = vadd.f32 %v885_v40, %v1290_v6 }
 0x2e7   : > { %v887_v41 = vpop.permute.xlu0 %886 }
 0x2e8   : > { %v891_v43 = vadd.f32 %v887_v41, %v1292_v7 }
 0x2e9   : > { %v898_v44 = vpop.permute.xlu1 %897 }
 0x2ea   : > { %v900_v45 = vmul.f32 %v898_v44, %v890_v42  ;;  %v901_v46 = vmul.f32 %v898_v44, %v891_v43 }
 0x2ec   : > { %906 = vrot.lane.b32.xlu1 %v901_v46, %s1203_s12  ;;  %904 = vrot.lane.b32.xlu0 %v900_v45, %s1203_s12 }
 0x2f8   : > { %v819_v48 = vpop.permute.xlu0 %818 }
 0x2f9   : > { %v875_v49 = vadd.f32 %v1145_v29, %v819_v48 }
 0x2fa   : > { %v824_v51 = vpop.permute.xlu1 %823 }
 0x2fb   : > { %v915_v6 = vadd.f32 %v913_v47, %v875_v49  ;;  %v878_v7 = vadd.f32 %v1146_v33, %v824_v51 }
 0x2fd   : > { %v916_v52 = vadd.f32 %v914_v50, %v878_v7  ;;  %917 = vst.msk [vmem:[%s399_s26] sm:$0xff] %vm910_vm1, %v915_v6 }
 0x2ff   : > { %918 = vst.msk [vmem:[%s399_s26 + $0x8] sm:$0xff] %vm910_vm1, %v916_v52 }
 0x35e   : > { %v905_v53 = vpop.permute.xlu0 %904  ;;  %v907_v54 = vpop.permute.xlu1 %906 }
 0x35f   : > { %911 = vst.msk [vmem:[%s394_s28] sm:$0xff] %vm910_vm1, %v905_v53  ;;  %912 = vst.msk [vmem:[%s394_s28 + $0x8] sm:$0xff] %vm910_vm1, %v907_v54 }
 0x360 PF: > { %s20_s30 = sadd.s32 1, %s1201_s30  }
 0x361   : > { %p17_p4 = scmp.ge.s32.totalorder %s20_s30, 4  }
 0x363   :  { %19 = sbr.rel (!%p17_p4) target bundleno = 1 (0x1), region = 107 }

// kernel: fwd.100
= control target key start
LH: loop header
LB: loop body
LE: loop exit
PB: predicated region body
PF: predicated region fallthrough
CT: control target
= control target key end

     0   :  { %s1560_s0 = inlined_call_operand.vmem [shape: f32[2,16,12], index: 0, kind: input, shape index: {}]   ;;  %s1561_s1 = inlined_call_operand.vmem [shape: f32[2,16,8], index: 1, kind: input, shape index: {}]   ;;  %s1562_s2 = inlined_call_operand.vmem [shape: f32[2,32,1], index: 2, kind: input, shape index: {}]   ;;  %s1563_s3 = inlined_call_operand.vmem [shape: f32[2,1,8], index: 3, kind: input, shape index: {}]   ;;  %s1564_s4 = inlined_call_operand.vmem [shape: f32[5,32,16], index: 4, kind: input, shape index: {}]   ;;  %s1565_s5 = inlined_call_operand.vmem [shape: f32[32,1], index: 5, kind: input, shape index: {}]   ;;  %s1566_s6 = inlined_call_operand.vmem [shape: f32[16,16], index: 6, kind: input, shape index: {}]   ;;  %s1567_s7 = inlined_call_operand.vmem [shape: f32[16,1], index: 7, kind: input, shape index: {}]   ;;  %s1568_s8 = inlined_call_operand.hbm [shape: f32[2,16,8], index: 8, kind: output, shape index: {0}]   ;;  %s1569_s9 = inlined_call_operand.vmem [shape: f32[2,16,8], index: 9, kind: output, shape index: {1}]  }
   0x1   :  { %1572 = sst [smem:[#allocation6_spill]] %s1560_s0 }
   0x2   :  { %15 = vsyncpa [#allocation3], 0 }
   0x3   :  { %17 = vsyncpa [#allocation3 + $0x1], 0  ;;  %s1333_s30 = smov 0   ;;  %s1335_s10 = smov 0  }
   0x4   :  { %s1337_s11 = smov 0   ;;  %s1339_s12 = smov 0  }
   0x5 LB: > { %s1354_s13 = sadd.s32 4294967295, %s1271_s12   ;;  %s1021_s14 = sadd.s32 4294967294, %s1271_s12   ;;  %s1271_s12 = sphi %s1339_s12, %s1582_s12   ;;  %s1267_s11 = sphi %s1337_s11, %s1581_s11   ;;  %s1263_s10 = sphi %s1335_s10, %s1580_s10   ;;  %s1259_s30 = sphi %s1333_s30, %s1579_s30  }
   0x6   : > { %s1358_s15 = sadd.s32 1, %s1271_s12   ;;  %s218_s16 = sadd.s32 1, %s1267_s11 }
   0x7   : > { %s215_s17 = ssub.s32 %s1271_s12, %s1358_s15  ;;  %p228_p0 = scmp.ne.s32.totalorder %s1267_s11, %s1263_s10 }
   0x8   : > { %p216_p1 = scmp.eq.s32.totalorder %s215_s17, 0  ;;  %p229_p2 = scmp.eq.s32.totalorder %s1354_s13, 1 }
   0x9   : > { %p234_p3 = scmp.ne.s32.totalorder %s1263_s10, %s1259_s30  ;;  %p235_p4 = scmp.eq.s32.totalorder %s1021_s14, 1 }
   0xa   : > { %s1369_s18 = scalar_select %p216_p1, %s1267_s11, %s218_s16  }
   0xb   : > { %p1371_p5 = por %p229_p2, %p228_p0  ;;  %p1375_p6 = por %p235_p4, %p234_p3 }
   0xc   : > { %1573 = sst [smem:[#allocation5_spill]] %s1369_s18  ;;  %p1024_p7 = scmp.ge.s32.totalorder %s1271_s12, 1 }
   0xd   : > { %p321_p8 = scmp.lt.s32.totalorder %s1271_s12, 3 }
   0xf   : > { %p322_p9 = pnand %p1024_p7, %p321_p8 }
  0x10   : > { %p375_p10 = scmp.lt.s32.totalorder (!%p322_p9), %s1354_s13, 1  ;;  %v434_v0 = vld [vmem:[%s1564_s4] sm:$0xff] (!%p322_p9)  ;;  %v435_v1 = vld [vmem:[%s1564_s4 + $0x8] sm:$0xff] (!%p322_p9)  ;;  %vm440_vm0 = vcmask (!%p322_p9), 130048   ;;  %s1576_s0 = sld [smem:[#allocation6_spill]] (!%p322_p9)  ;;  %v436_v9 = vld [vmem:[%s1564_s4 + $0x10] sm:$0xff] (!%p322_p9) }
  0x11   : > { %325 = sbr.rel (%p322_p9) target bundleno = 644 (0x284), region = 52  ;;  %v438_v2 = vpack.c.bf16 (!%p322_p9), %v435_v1, %v434_v0  ;;  %v1042_v3 = vld [vmem:[%s1564_s4 + $0x40] sm:$0xff] (!%p322_p9)  ;;  %v1043_v4 = vld [vmem:[%s1564_s4 + $0x48] sm:$0xff] (!%p322_p9)  ;;  %v437_v10 = vld [vmem:[%s1564_s4 + $0x18] sm:$0xff] (!%p322_p9)  ;;  %s1570_s16 = smov (!%p322_p9), 126   ;;  %v1277_v17 = vmov (!%p322_p9), 0  }
  0x12   : > { %v575_v5 = vpack.c.bf16 (!%p322_p9), %v1043_v4, %v1042_v3  ;;  %v1036_v11 = vld [vmem:[%s1564_s4 + $0x20] sm:$0xff] (!%p322_p9)  ;;  %v1037_v12 = vld [vmem:[%s1564_s4 + $0x28] sm:$0xff] (!%p322_p9)  ;;  %s1274_s17 = smov (!%p322_p9), 127   ;;  %v439_v13 = vpack.c.bf16 (!%p322_p9), %v437_v10, %v436_v9  ;;  %s1276_s22 = smov (!%p322_p9), 124   ;;  %v404_v15 = vld [vmem:[%s1565_s5 + $0x18] sm:$0xff] (!%p322_p9)  ;;  %1196 = vset.pattern.permute.xlu1 (!%p322_p9), %v1277_v17  ;;  %1195 = vset.pattern.permute.xlu0 (!%p322_p9), %v1277_v17  ;;  %v1278_v52 = vmov (!%p322_p9), 0.0  }
  0x13   : > { %1093 = vmatprep.mubr.msk.bf16.mxu1 (!%p322_p9), %vm440_vm0, %v438_v2  ;;  %v505_v14 = vpack.c.bf16 (!%p322_p9), %v1037_v12, %v1036_v11  ;;  %v403_v16 = vld [vmem:[%s1565_s5 + $0x10] sm:$0xff] (!%p322_p9)  ;;  %v401_v18 = vld [vmem:[%s1565_s5] sm:$0xff] (!%p322_p9)  ;;  %v402_v19 = vld [vmem:[%s1565_s5 + $0x8] sm:$0xff] (!%p322_p9)  ;;  %vm1279_vm1 = vmmov (!%p322_p9), 0   ;;  %vm862_vm2 = vcmask (!%p322_p9), 64512   ;;  %s1073_s23 = sshll.u32 (!%p322_p9), %s1354_s13, 8 }
  0x14   : > { %1105 = vmatprep.mubr.msk.bf16.mxu0 (!%p322_p9), %vm440_vm0, %v575_v5  ;;  %v797_v28 = vld [vmem:[%s1567_s7] sm:$0xff] (!%p322_p9)  ;;  %v798_v29 = vld [vmem:[%s1567_s7 + $0x8] sm:$0xff] (!%p322_p9)  ;;  %v1044_v30 = vld [vmem:[%s1564_s4 + $0x50] sm:$0xff] (!%p322_p9) }
  0x15   : > { %v1045_v31 = vld [vmem:[%s1564_s4 + $0x58] sm:$0xff] (!%p322_p9)  ;;  %v1038_v32 = vld [vmem:[%s1564_s4 + $0x30] sm:$0xff] (!%p322_p9)  ;;  %v1048_v36 = vld [vmem:[%s1564_s4 + $0x60] sm:$0xff] (!%p322_p9) }
  0x16   : > { %v1039_v33 = vld [vmem:[%s1564_s4 + $0x38] sm:$0xff] (!%p322_p9)  ;;  %v1049_v37 = vld [vmem:[%s1564_s4 + $0x68] sm:$0xff] (!%p322_p9)  ;;  %v576_v38 = vpack.c.bf16 (!%p322_p9), %v1045_v31, %v1044_v30  ;;  %v1050_v43 = vld [vmem:[%s1564_s4 + $0x70] sm:$0xff] (!%p322_p9) }
  0x17   : > { %v506_v39 = vpack.c.bf16 (!%p322_p9), %v1039_v33, %v1038_v32  ;;  %v644_v40 = vpack.c.bf16 (!%p322_p9), %v1049_v37, %v1048_v36  ;;  %v1051_v44 = vld [vmem:[%s1564_s4 + $0x78] sm:$0xff] (!%p322_p9)  ;;  %v1054_v45 = vld [vmem:[%s1564_s4 + $0x80] sm:$0xff] (!%p322_p9)  ;;  %v1055_v46 = vld [vmem:[%s1564_s4 + $0x88] sm:$0xff] (!%p322_p9) }
  0x18   : > { %s1395_s29 = scalar_select %p375_p10, %s1354_s13, 1  ;;  %v645_v47 = vpack.c.bf16 %v1051_v44, %v1050_v43  ;;  %v713_v48 = vpack.c.bf16 %v1055_v46, %v1054_v45  ;;  %v1056_v49 = vld [vmem:[%s1564_s4 + $0x90] sm:$0xff]  ;;  %v1057_v50 = vld [vmem:[%s1564_s4 + $0x98] sm:$0xff] }
  0x19   : > { %v714_v51 = vpack.c.bf16 %v1057_v50, %v1056_v49  ;;  %s1280_s13 = smov [#allocation2]  }
  0x1a   : > { %s1399_s14 = sshll.u32 %s1395_s29, 4  ;;  %s1071_s18 = sshll.u32 %s1395_s29, 5 }
  0x1b   : > { %s379_s21 = scalar_lea.vmem %s1576_s0, %s1399_s14  ;;  %s1577_s0 = smov 126  }
  0x1c   : > { %v399_v6 = vld [vmem:[%s379_s21] sm:$0xff]  ;;  %v400_v7 = vld [vmem:[%s379_s21 + $0x8] sm:$0xff]  ;;  %s1275_s21 = smov 125   ;;  %s1213_s27 = sshll.u32 %s1280_s13, 4  ;;  %s1214_s27 = int_to_ptr.vmem [resolvable:$false] %s1213_s27 }
  0x1d   : > { %v433_v8 = vpack.c.bf16 %v400_v7, %v399_v6  ;;  %s1215_s28 = scalar_lea.vmem %s1214_s27, 512 }
  0x1f   : > { %577 = vrot.lane.b32.xlu0 %v433_v8, %s1570_s16  ;;  %508 = vrot.lane.b32.xlu1 %v433_v8, %s1274_s17  ;;  %s389_s17 = scalar_lea.vmem %s1562_s2, %s1071_s18 }
  0x20   : > { %1091 = vmatprep.subr.bf16.mxu1 %v433_v8  ;;  %v408_v20 = vld [vmem:[%s389_s17 + $0x18] sm:$0xff]  ;;  %v407_v21 = vld [vmem:[%s389_s17 + $0x10] sm:$0xff]  ;;  %v405_v22 = vld [vmem:[%s389_s17] sm:$0xff] }
  0x21   : > { %1092 = vmatpush3.bf16.msra.mxu1 %v433_v8  ;;  %v412_v23 = vadd.f32 %v408_v20, %v404_v15  ;;  %v411_v24 = vadd.f32 %v407_v21, %v403_v16  ;;  %v406_v25 = vld [vmem:[%s389_s17 + $0x8] sm:$0xff]  ;;  %v409_v26 = vadd.f32 %v405_v22, %v401_v18  ;;  %v793_v21 = vld [vmem:[%s1566_s6] sm:$0xff]  ;;  %s365_s17 = sand.u32 1, %s1263_s10  }
  0x22   : > { %v410_v27 = vadd.f32 %v406_v25, %v402_v19  ;;  %v794_v22 = vld [vmem:[%s1566_s6 + $0x8] sm:$0xff]  ;;  %s1505_s16 = scalar_lea.sflag [#allocation3], %s365_s17 }
  0x23   : > { %646 = vrot.lane.b32.xlu0 %v433_v8, %s1275_s21  ;;  %715 = vrot.lane.b32.xlu1 %v433_v8, %s1276_s22  ;;  %s1025_s21 = sshll.u32 %s365_s17, 4 }
  0x24   : > { %1094 = vmatmul.mubr.msk.bf16.vlgmr.msra.gmra.mrb[0].mxu1 %vm440_vm0, %v439_v13  ;;  %s367_s22 = scalar_lea.vmem [#allocation2], %s1025_s21 }
  0x25   : > { %1099 = vmatprep.mubr.msk.bf16.mxu1 %vm440_vm0, %v505_v14  ;;  %s898_s18 = sshll.u32 %s367_s22, 4  ;;  %s1497_s18 = int_to_ptr.vmem [resolvable:$true] %s898_s18 }
  0x26   : > { %s1209_s26 = scalar_lea.vmem %s1497_s18, 256  ;;  %p1216_p0 = scmp.lt.s32.totalorder %s1497_s18, %s1214_s27 }
  0x27   : > { %430 = vperm.xlu1 %1196, %v412_v23   ;;  %425 = vperm.xlu0 %1195, %v411_v24   ;;  %v795_v24 = vpack.c.bf16 %v794_v22, %v793_v21  ;;  %p1210_p11 = scmp.ne.s32.totalorder %s1497_s18, %s1209_s26  ;;  %p1217_p1 = scmp.lt.s32.totalorder %s1215_s28, %s1209_s26 }
  0x29   : > { %p1211_p12 = pnand %p1210_p11, %p1371_p5  ;;  %p1218_p2 = por %p1217_p1, %p1216_p0 }
  0x2b   : > { %415 = vperm.xlu1 %1196, %v409_v26   ;;  %420 = vperm.xlu0 %1195, %v410_v27   ;;  %p1212_p13 = pneg %p1211_p12 }
  0x2d   : > { %p1219_p3 = pnand %p1218_p2, %p1212_p13 }
  0x2f   : > { %801 = vperm.xlu1 %1196, %v797_v28   ;;  %806 = vperm.xlu0 %1195, %v798_v29  }
  0x33   : > { %856 = vrot.lane.b32.xlu1 %v399_v6, %s1577_s0  ;;  %858 = vrot.lane.b32.xlu0 %v400_v7, %s1577_s0  ;;  %s1503_s0 = scalar_lea.hbm %s1568_s8, %s1073_s23 }
  0x91   : > { %v578_v34 = vpop.permute.xlu0 %577  ;;  %v509_v35 = vpop.permute.xlu1 %508 }
  0x92   : > { %1103 = vmatprep.subr.bf16.mxu0 %v578_v34  ;;  %1097 = vmatprep.subr.bf16.mxu1 %v509_v35 }
  0x93   : > { %1104 = vmatpush3.bf16.msra.mxu0 %v578_v34  ;;  %1098 = vmatpush3.bf16.msra.mxu1 %v509_v35 }
  0x94   : > { %1121 = vmatprep.subr.bf16.mxu1 %v1278_v52 }
  0x95   : > { %v647_v41 = vpop.permute.xlu0 %646  ;;  %v716_v42 = vpop.permute.xlu1 %715 }
  0x96   : > { %1106 = vmatmul.mubr.msk.bf16.vlgmr.msra.gmra.mrb[0].mxu0 %vm440_vm0, %v576_v38  ;;  %1109 = vmatprep.subr.bf16.mxu0 %v647_v41 }
  0x97   : > { %1110 = vmatpush3.bf16.msra.mxu0 %v647_v41  ;;  %1100 = vmatmul.mubr.msk.bf16.vlgmr.msra.gmra.mrb[0].mxu1 %vm440_vm0, %v506_v39 }
  0x98   : > { %1111 = vmatprep.mubr.msk.bf16.mxu0 %vm440_vm0, %v644_v40  ;;  %1115 = vmatprep.subr.bf16.mxu0 %v716_v42 }
  0x99   : > { %1123 = vmatprep.mubr.msk.bf16.mxu1 %vm1279_vm1, %v1278_v52 }
  0xa2   : > { %1112 = vmatmul.mubr.msk.bf16.vlgmr.msra.gmra.mrb[0].mxu0 %vm440_vm0, %v645_v47 }
  0xa3   : > { %1116 = vmatpush3.bf16.msra.mxu0 %v716_v42  ;;  %1117 = vmatprep.mubr.msk.bf16.mxu0 %vm440_vm0, %v713_v48 }
  0xa6   : > { %v431_v57 = vpop.permute.xlu1 %430  ;;  %v426_v58 = vpop.permute.xlu0 %425 }
  0xaa   : > { %v416_v59 = vpop.permute.xlu1 %415  ;;  %v421_v61 = vpop.permute.xlu0 %420 }
  0xae   : > { %1118 = vmatmul.mubr.msk.bf16.vlgmr.msra.gmra.mrb[0].mxu0 %vm440_vm0, %v714_v51  ;;  %v802_v25 = vpop.permute.xlu1 %801  ;;  %v807_v26 = vpop.permute.xlu0 %806 }
  0xb2   : > { %v857_v27 = vpop.permute.xlu1 %856  ;;  %v859_v28 = vpop.permute.xlu0 %858 }
  0xb3   : > { %863 = vst.msk [vmem:[%s367_s22] sm:$0xff] %vm862_vm2, %v857_v27  ;;  %864 = vst.msk [vmem:[%s367_s22 + $0x8] sm:$0xff] %vm862_vm2, %v859_v28 }
 0x16a   : > { %v1101_v53 = vpop.f32.mrb[0].mxu1 }
 0x16b   : > { %v551_v54 = vpop.f32.mrb[1].mxu1  ;;  %v1127_v60 = vadd.f32 %v1101_v53, %v426_v58 }
 0x16c   : > { %v1102_v55 = vpop.f32.mrb[2].mxu1  ;;  %v1129_v62 = vadd.f32 %v551_v54, %v416_v59 }
 0x16d   : > { %v554_v56 = vpop.f32.mrb[3].mxu1  ;;  %v1131_v0 = vadd.f32 %v1102_v55, %v431_v57 }
 0x16e   : > { %v1133_v3 = vadd.f32 %v554_v56, %v421_v61 }
 0x181   : > { %v1119_v63 = vpop.f32.mrb[0].mxu0 }
 0x182   : > { %v1128_v1 = vadd.f32 %v1127_v60, %v1119_v63  ;;  %v758_v2 = vpop.f32.mrb[1].mxu0 }
 0x183   : > { %v1130_v4 = vadd.f32 %v1129_v62, %v758_v2  ;;  %v1120_v5 = vpop.f32.mrb[2].mxu0 }
 0x184   : > { %v1060_v6 = vmul.f32 -1.442695, %v1128_v1  ;;  %v1132_v7 = vadd.f32 %v1131_v0, %v1120_v5  ;;  %v761_v8 = vpop.f32.mrb[3].mxu0 }
 0x185   : > { %v1134_v9 = vadd.f32 %v1133_v3, %v761_v8 }
 0x186   : > { %1197 = vpow2.f32 %v1060_v6  ;;  %v1061_v10 = vmul.f32 -1.442695, %v1132_v7 }
 0x188   : > { %1199 = vpow2.f32 %v1061_v10 }
 0x189   : > { %1201 = vtanh.f32 %v1130_v4 }
 0x190   : > { %v1198_v11 = vpop.eup %1197 }
 0x191   : > { %v785_v12 = vadd.f32 1.0, %v1198_v11 }
 0x192   : > { %v1200_v13 = vpop.eup %1199 }
 0x193   : > { %1203 = vrcp.f32 %v785_v12  ;;  %v786_v14 = vadd.f32 1.0, %v1200_v13  ;;  %v1202_v15 = vpop.eup %1201 }
 0x194   : > { %1205 = vtanh.f32 %v1134_v9 }
 0x195   : > { %1207 = vrcp.f32 %v786_v14 }
 0x19d   : > { %v1204_v16 = vpop.eup %1203 }
 0x19e   : > { %v1206_v17 = vpop.eup %1205  ;;  %v791_v18 = vmul.f32 %v1204_v16, %v1202_v15 }
 0x19f   : > { %v1208_v19 = vpop.eup %1207 }
 0x1a0   : > { %v792_v20 = vmul.f32 %v1208_v19, %v1206_v17 }
 0x1a2   : > { %v796_v23 = vpack.c.bf16 %v792_v20, %v791_v18 }
 0x1a4   : > { %1122 = vmatpush3.bf16.msra.mxu1 %v796_v23 }
 0x1a7   : > { %1124 = vmatmul.mubr.msk.bf16.vlgmr.msra.gmra.mrb[4].mxu1 %vm440_vm0, %v795_v24 }
 0x1a8   : > { %1222 = shalt.err (!%p1219_p3)
}
 0x1a9   : > { %s1223_s17 = scalar_lea.hbm %s1503_s0, 256  ;;  %s1227_s23 = scalar_lea.hbm %s1568_s8, 512 }
 0x1aa   : > { %p1224_p4 = scmp.ne.s32.totalorder %s1503_s0, %s1223_s17  ;;  %p1228_p9 = scmp.lt.u32.totalorder %s1503_s0, %s1568_s8 }
 0x1ab   : > { %p1229_p10 = scmp.lt.u32.totalorder %s1227_s23, %s1223_s17  ;;  %p1231_p12 = scmp.lt.u32.totalorder %s1223_s17, %s1503_s0 }
 0x1ac   : > { %p1225_p7 = pnand %p1224_p4, %p1371_p5 }
 0x1ad   : > { %p1230_p11 = por %p1229_p10, %p1228_p9 }
 0x1ae   : > { %p1226_p8 = pneg %p1225_p7 }
 0x1af   : > { %p1232_p13 = por %p1231_p12, %p1230_p11 }
 0x1b1   : > { %p1233_p0 = pnand %p1232_p13, %p1226_p8 }
 0x1b3   : > { %1236 = shalt.err (!%p1233_p0)
}
 0x1b4   : > { %s1281_s26 = smov 128   ;;  %s1282_s13 = smov 8  }
 0x1b5   : > { %1147 = dma.vmem_to_hbm [thread:$0]  (%p1371_p5), %s1497_s18, 256, %s1503_s0, %s1505_s16, %s1281_s26, %s1281_s26, %s1282_s13  }
 0x1b6   : > { %s384_s21 = scalar_lea.vmem %s1561_s1, %s1399_s14  ;;  %s392_s23 = scalar_lea.vmem %s1563_s3, %s1395_s29 }
 0x1b7   : > { %v865_v30 = vld [vmem:[%s384_s21] sm:$0xff]  ;;  %v866_v35 = vld [vmem:[%s384_s21 + $0x8] sm:$0xff]  ;;  %s397_s0 = scalar_lea.vmem %s1569_s9, %s1399_s14 }
 0x1b8   : > { %v1063_v33 = vld [vmem:[%s392_s23] ss:$0 sm:$0xff] }
 0x27a   : > { %v846_v29 = vpop.f32.mrb[4].mxu1 }
 0x27b   : > { %v847_v31 = vadd.f32 %v846_v29, %v802_v25  ;;  %v1125_v32 = vpop.f32.mrb[5].mxu1 }
 0x27c   : > { %v849_v34 = vpop.f32.mrb[6].mxu1 }
 0x27d   : > { %v867_v36 = vadd.f32 %v865_v30, %v847_v31  ;;  %v850_v37 = vadd.f32 %v849_v34, %v807_v26  ;;  %v1126_v38 = vpop.f32.mrb[7].mxu1 }
 0x27f   : > { %v875_v39 = vmul.f32 %v1063_v33, %v867_v36  ;;  %v868_v40 = vadd.f32 %v866_v35, %v850_v37 }
 0x281   : > { %v876_v41 = vmul.f32 %v1063_v33, %v868_v40  ;;  %877 = vst.msk [vmem:[%s397_s0] sm:$0xff] %vm862_vm2, %v875_v39 }
 0x283   : > { %878 = vst.msk [vmem:[%s397_s0 + $0x8] sm:$0xff] %vm862_vm2, %v876_v41 }
 0x284 PF: > { %p1153_p5 = scmp.ge.s32.totalorder %s1271_s12, 2  ;;  %s916_s29 = sand.u32 1, %s1259_s30  }
 0x285   : > { %s917_s16 = scalar_lea.sflag [#allocation3], %s916_s29 }
 0x286   : > { %p1150_p1 = pnand %p1153_p5, %p1375_p6 }
 0x288   : > { %1254 = dma.done.wait (!%p1150_p1), %s917_s16, 256  }
 0x289   : > { %1256 = vsyncadd (!%p1150_p1), %s917_s16, 4294967040  ;;  %s1578_s14 = sld [smem:[#allocation5_spill]]  ;;  %p20_p2 = scmp.ge.s32.totalorder %s1358_s15, 4  }
 0x28a   : > { %s1579_s30 = smov %s1263_s10  ;;  %s1580_s10 = smov %s1267_s11 }
 0x28b   : > { %s1582_s12 = smov %s1358_s15  ;;  %22 = sbr.rel (!%p20_p2) target bundleno = 5 (0x5), region = 112 }
 0x28f   : > { %s1581_s11 = smov %s1578_s14 }
 0x292   :  { %930 = vsyncpa [#allocation3], 1 }
 0x293   :  { %932 = vsyncpa [#allocation3 + $0x1], 1 }

// kernel: reverse
= control target key start
LH: loop header
LB: loop body
LE: loop exit
PB: predicated region body
PF: predicated region fallthrough
CT: control target
= control target key end

     0   :  { %v55_v2 = vld [vmem:[#allocation1 + $0x8] sm:$0xf]  ;;  %v62_v3 = vld [vmem:[#allocation1] sm:$0xf]  ;;  %v72_v6 = vlaneseq  ;;  %s177_s0 = inlined_call_operand.vmem [shape: f32[2,4,8], index: 0, kind: input, shape index: {}]   ;;  %s178_s1 = inlined_call_operand.vmem [shape: f32[2,4,8], index: 1, kind: output, shape index: {}]  }
   0x1   :  { %v18_v0 = vld [vmem:[%s177_s0] sm:$0xf]  ;;  %v20_v1 = vld [vmem:[%s177_s0 + $0x4] sm:$0xf]  ;;  %57 = vst [vmem:[#allocation0 + $0x10] sm:$0xf] %v55_v2 }
   0x2   :  { %19 = vst [vmem:[#allocation1 + $0x4] sm:$0xf] %v18_v0  ;;  %21 = vst [vmem:[#allocation1 + $0xc] sm:$0xf] %v20_v1  ;;  %v73_v11 = vshrl.u32 %v72_v6, 7 }
   0x3   :  { %63 = vst [vmem:[#allocation0] sm:$0xf] %v62_v3 }
   0x4   :  { %vm74_vm0 = vcmp.lt.s32.totalorder %v73_v11, 4 }
   0x8   :  { %v79_v7 = vld [vmem:[#allocation0 + $0x17] ss:$-1 sm:$0xff] }
   0x9   :  { %v50_v4 = vld [vmem:[#allocation1 + $0xc] sm:$0xf]  ;;  %v59_v5 = vld [vmem:[#allocation1 + $0x4] sm:$0xf]  ;;  %v80_v9 = vrot.slane %v79_v7, 4 }
   0xa   :  { %52 = vst [vmem:[#allocation0 + $0x18] sm:$0xf] %v50_v4  ;;  %61 = vst [vmem:[#allocation0 + $0x8] sm:$0xf] %v59_v5  ;;  %v65_v8 = vld [vmem:[#allocation0 + $0x7] ss:$-1 sm:$0xff] }
   0xb   :  { %v66_v10 = vrot.slane %v65_v8, 4  ;;  %81 = vst [vmem:[#allocation2 + $0x8] sm:$0xff] %v80_v9 }
   0xd   :  { %67 = vst [vmem:[#allocation2] sm:$0xff] %v66_v10 }
  0x11   :  { %v70_v12 = vld [vmem:[#allocation0 + $0xf] ss:$-1 sm:$0xff]  ;;  %v84_v13 = vld [vmem:[#allocation0 + $0x1f] ss:$-1 sm:$0xff] }
  0x12   :  { %v71_v14 = vrot.slane %v70_v12, 4  ;;  %v85_v15 = vrot.slane %v84_v13, 4 }
  0x14   :  { %75 = vst.msk [vmem:[#allocation2] sm:$0xff] %vm74_vm0, %v71_v14  ;;  %89 = vst.msk [vmem:[#allocation2 + $0x8] sm:$0xff] %vm74_vm0, %v85_v15 }
  0x1b   :  { %v93_v16 = vld [vmem:[#allocation2] sm:$0xf]  ;;  %v97_v17 = vld [vmem:[#allocation2 + $0x8] sm:$0xf] }
  0x1c   :  { %95 = vst [vmem:[#allocation3] sm:$0xf] %v93_v16  ;;  %100 = vst [vmem:[#allocation3 + $0x4] sm:$0xf] %v97_v17 }
  0x23   :  { %v116_v18 = vld [vmem:[#allocation3] sm:$0xff]  }
  0x24   :  { %117 = vst [vmem:[%s178_s1] sm:$0xff] %v116_v18  }

// kernel: fwd.132
= control target key start
LH: loop header
LB: loop body
LE: loop exit
PB: predicated region body
PF: predicated region fallthrough
CT: control target
= control target key end

     0   :  { %s358_s12 = smov 0   ;;  %s387_s0 = inlined_call_operand.vmem [shape: f32[2,4,8], index: 0, kind: input, shape index: {}]   ;;  %s388_s1 = inlined_call_operand.vmem [shape: f32[1,16,4], index: 1, kind: input, shape index: {}]   ;;  %s389_s2 = inlined_call_operand.vmem [shape: f32[16,1], index: 2, kind: input, shape index: {}]   ;;  %s390_s3 = inlined_call_operand.vmem [shape: f32[2,16,8], index: 3, kind: output, shape index: {}]  }
   0x1 LB: > { %s295_s13 = sadd.s32 4294967295, %s333_s12   ;;  %p299_p0 = scmp.ge.s32.totalorder %s333_s12, 1  ;;  %s333_s12 = sphi %s358_s12, %s13_s12  }
   0x2   : > { %p136_p1 = scmp.lt.s32.totalorder %s333_s12, 3 }
   0x4   : > { %p137_p2 = pnand %p299_p0, %p136_p1 }
   0x5   : > { %p159_p3 = scmp.lt.s32.totalorder (!%p137_p2), %s295_s13, 1  ;;  %v335_v0 = vmov (!%p137_p2), 0.0   ;;  %vm336_vm0 = vmmov (!%p137_p2), 0   ;;  %v171_v1 = vld [vmem:[%s389_s2] sm:$0xff] (!%p137_p2)  ;;  %v337_v2 = vmov (!%p137_p2), 0   ;;  %v172_v3 = vld [vmem:[%s389_s2 + $0x8] sm:$0xff] (!%p137_p2) }
   0x6   : > { %140 = sbr.rel (%p137_p2) target bundleno = 240 (0xf0), region = 32  ;;  %309 = vmatprep.subr.bf16.mxu0 (!%p137_p2), %v335_v0  ;;  %311 = vmatprep.mubr.msk.bf16.mxu0 (!%p137_p2), %vm336_vm0, %v335_v0  ;;  %vm190_vm1 = vcmask (!%p137_p2), 1041408   ;;  %v183_v5 = vld [vmem:[%s388_s1] sm:$0xff] (!%p137_p2)  ;;  %v184_v6 = vld [vmem:[%s388_s1 + $0x8] sm:$0xff] (!%p137_p2)  ;;  %vm186_vm2 = vcmask (!%p137_p2), 31744   ;;  %vm237_vm3 = vcmask (!%p137_p2), 64512  }
   0x7   : > { %326 = vset.pattern.permute.xlu0 (!%p137_p2), %v337_v2  ;;  %v185_v9 = vpack.c.bf16 (!%p137_p2), %v184_v6, %v183_v5 }
   0x8   : > { %175 = vperm.xlu0 (!%p137_p2), %326, %v171_v1  }
   0xc   : > { %180 = vperm.xlu0 (!%p137_p2), %326, %v172_v3  }
   0xd   : > { %s392_s13 = smov (!%p159_p3, %s295_s13), 1 }
   0xe   : > { %s300_s16 = sshll.u32 %s392_s13, 2  ;;  %s306_s26 = sshll.u32 %s392_s13, 4 }
   0xf   : > { %s162_s21 = scalar_lea.vmem %s387_s0, %s300_s16  ;;  %s167_s29 = scalar_lea.vmem %s390_s3, %s306_s26 }
  0x10   : > { %v169_v4 = vld [vmem:[%s162_s21] sm:$0xf] }
  0x11   : > { %v170_v7 = vpack.c.bf16 %v169_v4, %v169_v4 }
  0x13   : > { %v192_v8 = vsel %vm190_vm1, %v170_v7, 0 }
  0x14   : > { %310 = vmatpush3.bf16.msra.mxu0 %v192_v8 }
  0x17   : > { %312 = vmatmul.mubr.msk.bf16.vlgmr.msra.gmra.mrb[0].mxu0 %vm186_vm2, %v185_v9 }
  0x87   : > { %v176_v10 = vpop.permute.xlu0 %175 }
  0x8b   : > { %v181_v14 = vpop.permute.xlu0 %180 }
  0xea   : > { %v228_v11 = vpop.f32.mrb[0].mxu0 }
  0xeb   : > { %v235_v12 = vadd.f32 %v228_v11, %v176_v10  ;;  %v313_v13 = vpop.f32.mrb[1].mxu0 }
  0xec   : > { %v231_v15 = vpop.f32.mrb[2].mxu0 }
  0xed   : > { %238 = vst.msk [vmem:[%s167_s29] sm:$0xff] %vm237_vm3, %v235_v12  ;;  %v236_v16 = vadd.f32 %v231_v15, %v181_v14  ;;  %v314_v17 = vpop.f32.mrb[3].mxu0 }
  0xef   : > { %239 = vst.msk [vmem:[%s167_s29 + $0x8] sm:$0xff] %vm237_vm3, %v236_v16 }
  0xf0 PF: > { %s13_s12 = sadd.s32 1, %s333_s12  }
  0xf1   : > { %p10_p4 = scmp.ge.s32.totalorder %s13_s12, 4  }
  0xf3   :  { %12 = sbr.rel (!%p10_p4) target bundleno = 1 (0x1), region = 62 }

// kernel: fwd.136
= control target key start
LH: loop header
LB: loop body
LE: loop exit
PB: predicated region body
PF: predicated region fallthrough
CT: control target
= control target key end

     0   :  { %s344_s12 = smov 0   ;;  %s367_s0 = inlined_call_operand.vmem [shape: f32[2,16,8], index: 0, kind: input, shape index: {}]   ;;  %s368_s1 = inlined_call_operand.vmem [shape: f32[1,4,16], index: 1, kind: input, shape index: {}]   ;;  %s369_s2 = inlined_call_operand.vmem [shape: f32[4,1], index: 2, kind: input, shape index: {}]   ;;  %s370_s3 = inlined_call_operand.vmem [shape: f32[2,4,8], index: 3, kind: output, shape index: {}]  }
   0x1 LB: > { %s281_s13 = sadd.s32 4294967295, %s319_s12   ;;  %p285_p0 = scmp.ge.s32.totalorder %s319_s12, 1  ;;  %s319_s12 = sphi %s344_s12, %s13_s12  }
   0x2   : > { %p137_p1 = scmp.lt.s32.totalorder %s319_s12, 3 }
   0x4   : > { %p138_p2 = pnand %p285_p0, %p137_p1 }
   0x5   : > { %p160_p3 = scmp.lt.s32.totalorder (!%p138_p2), %s281_s13, 1  ;;  %v321_v0 = vmov (!%p138_p2), 0.0   ;;  %vm322_vm0 = vmmov (!%p138_p2), 0   ;;  %v173_v1 = vld [vmem:[%s369_s2] sm:$0xf] (!%p138_p2)  ;;  %v323_v2 = vmov (!%p138_p2), 0  }
   0x6   : > { %141 = sbr.rel (%p138_p2) target bundleno = 237 (0xed), region = 32  ;;  %295 = vmatprep.subr.bf16.mxu0 (!%p138_p2), %v321_v0  ;;  %297 = vmatprep.mubr.msk.bf16.mxu0 (!%p138_p2), %vm322_vm0, %v321_v0  ;;  %v179_v3 = vld [vmem:[%s368_s1] sm:$0xf] (!%p138_p2)  ;;  %vm181_vm1 = vcmask (!%p138_p2), 130048   ;;  %vm226_vm2 = vcmask (!%p138_p2), 60416  }
   0x7   : > { %312 = vset.pattern.permute.xlu0 (!%p138_p2), %v323_v2  ;;  %v180_v7 = vpack.c.bf16 (!%p138_p2), %v179_v3, %v179_v3 }
   0x8   : > { %176 = vperm.xlu0 (!%p138_p2), %312, %v173_v1  }
   0xd   : > { %s372_s13 = smov (!%p160_p3, %s281_s13), 1 }
   0xe   : > { %s292_s16 = sshll.u32 %s372_s13, 4  ;;  %s288_s22 = sshll.u32 %s372_s13, 2 }
   0xf   : > { %s164_s19 = scalar_lea.vmem %s367_s0, %s292_s16  ;;  %s168_s25 = scalar_lea.vmem %s370_s3, %s288_s22 }
  0x10   : > { %v170_v4 = vld [vmem:[%s164_s19] sm:$0xff]  ;;  %v171_v5 = vld [vmem:[%s164_s19 + $0x8] sm:$0xff] }
  0x11   : > { %v172_v6 = vpack.c.bf16 %v171_v5, %v170_v4 }
  0x13   : > { %296 = vmatpush3.bf16.msra.mxu0 %v172_v6 }
  0x16   : > { %298 = vmatmul.mubr.msk.bf16.vlgmr.msra.gmra.mrb[0].mxu0 %vm181_vm1, %v180_v7 }
  0x87   : > { %v177_v8 = vpop.permute.xlu0 %176 }
  0xe9   : > { %v219_v9 = vpop.f32.mrb[0].mxu0 }
  0xea   : > { %v225_v10 = vadd.f32 %v219_v9, %v177_v8  ;;  %v299_v11 = vpop.f32.mrb[1].mxu0 }
  0xeb   : > { %v222_v12 = vpop.f32.mrb[2].mxu0 }
  0xec   : > { %227 = vst.msk [vmem:[%s168_s25] sm:$0xf] %vm226_vm2, %v225_v10  ;;  %v300_v13 = vpop.f32.mrb[3].mxu0 }
  0xed PF: > { %s13_s12 = sadd.s32 1, %s319_s12  }
  0xee   : > { %p10_p4 = scmp.ge.s32.totalorder %s13_s12, 4  }
  0xf0   :  { %12 = sbr.rel (!%p10_p4) target bundleno = 1 (0x1), region = 62 }

// kernel: fwd.102
= control target key start
LH: loop header
LB: loop body
LE: loop exit
PB: predicated region body
PF: predicated region fallthrough
CT: control target
= control target key end

     0   :  { %s792_s12 = smov 0   ;;  %s896_s0 = inlined_call_operand.vmem [shape: f32[2,8,10], index: 0, kind: input, shape index: {}]   ;;  %s897_s1 = inlined_call_operand.vmem [shape: f32[7,16,8], index: 1, kind: input, shape index: {}]   ;;  %s898_s2 = inlined_call_operand.vmem [shape: f32[16,1], index: 2, kind: input, shape index: {}]   ;;  %s899_s3 = inlined_call_operand.vmem [shape: f32[2,16,4], index: 3, kind: output, shape index: {}]  }
   0x1 LB: > { %s626_s13 = sadd.s32 4294967295, %s761_s12   ;;  %p630_p0 = scmp.ge.s32.totalorder %s761_s12, 1  ;;  %s761_s12 = sphi %s792_s12, %s13_s12  }
   0x2   : > { %p136_p1 = scmp.lt.s32.totalorder %s761_s12, 3 }
   0x4   : > { %p137_p2 = pnand %p630_p0, %p136_p1 }
   0x5   : > { %p159_p3 = scmp.lt.s32.totalorder (!%p137_p2), %s626_s13, 1  ;;  %v763_v0 = vmov (!%p137_p2), 0.0   ;;  %vm764_vm0 = vmmov (!%p137_p2), 0   ;;  %vm190_vm1 = vcmask (!%p137_p2), 1043456   ;;  %v183_v3 = vld [vmem:[%s897_s1] sm:$0xff] (!%p137_p2)  ;;  %v184_v4 = vld [vmem:[%s897_s1 + $0x8] sm:$0xff] (!%p137_p2) }
   0x6   : > { %140 = sbr.rel (%p137_p2) target bundleno = 391 (0x187), region = 32  ;;  %670 = vmatprep.subr.bf16.mxu1 (!%p137_p2), %v763_v0  ;;  %672 = vmatprep.mubr.msk.bf16.mxu1 (!%p137_p2), %vm764_vm0, %v763_v0  ;;  %s765_s22 = smov (!%p137_p2), 127   ;;  %v185_v6 = vpack.c.bf16 (!%p137_p2), %v184_v4, %v183_v3  ;;  %vm186_vm2 = vcmask (!%p137_p2), 64512   ;;  %v171_v7 = vld [vmem:[%s898_s2] sm:$0xff] (!%p137_p2)  ;;  %v172_v8 = vld [vmem:[%s898_s2 + $0x8] sm:$0xff] (!%p137_p2)  ;;  %v771_v9 = vmov (!%p137_p2), 0  }
   0x7   : > { %688 = vmatprep.subr.bf16.mxu0 (!%p137_p2), %v763_v0  ;;  %690 = vmatprep.mubr.msk.bf16.mxu0 (!%p137_p2), %vm764_vm0, %v763_v0  ;;  %s766_s23 = smov (!%p137_p2), 125   ;;  %s767_s24 = smov (!%p137_p2), 124   ;;  %v635_v10 = vld [vmem:[%s897_s1 + $0x10] sm:$0xff] (!%p137_p2)  ;;  %v636_v11 = vld [vmem:[%s897_s1 + $0x18] sm:$0xff] (!%p137_p2)  ;;  %v638_v24 = vld [vmem:[%s897_s1 + $0x20] sm:$0xff] (!%p137_p2)  ;;  %vm568_vm3 = vcmask (!%p137_p2), 31744  }
   0x8   : > { %s768_s25 = smov (!%p137_p2), 123   ;;  %s769_s26 = smov (!%p137_p2), 126   ;;  %753 = vset.pattern.permute.xlu0 (!%p137_p2), %v771_v9  ;;  %754 = vset.pattern.permute.xlu1 (!%p137_p2), %v771_v9  ;;  %v641_v12 = vld [vmem:[%s897_s1 + $0x30] sm:$0xff] (!%p137_p2)  ;;  %v642_v13 = vld [vmem:[%s897_s1 + $0x38] sm:$0xff] (!%p137_p2)  ;;  %v240_v18 = vpack.c.bf16 (!%p137_p2), %v636_v11, %v635_v10  ;;  %v639_v25 = vld [vmem:[%s897_s1 + $0x28] sm:$0xff] (!%p137_p2) }
   0x9   : > { %s770_s27 = smov (!%p137_p2), 122   ;;  %v351_v19 = vpack.c.bf16 (!%p137_p2), %v642_v13, %v641_v12  ;;  %v644_v26 = vld [vmem:[%s897_s1 + $0x40] sm:$0xff] (!%p137_p2)  ;;  %v645_v27 = vld [vmem:[%s897_s1 + $0x48] sm:$0xff] (!%p137_p2)  ;;  %v296_v29 = vpack.c.bf16 (!%p137_p2), %v639_v25, %v638_v24  ;;  %v647_v32 = vld [vmem:[%s897_s1 + $0x50] sm:$0xff] (!%p137_p2) }
   0xa   : > { %v406_v30 = vpack.c.bf16 (!%p137_p2), %v645_v27, %v644_v26  ;;  %v648_v33 = vld [vmem:[%s897_s1 + $0x58] sm:$0xff] (!%p137_p2)  ;;  %v650_v37 = vld [vmem:[%s897_s1 + $0x60] sm:$0xff] (!%p137_p2)  ;;  %v651_v38 = vld [vmem:[%s897_s1 + $0x68] sm:$0xff] (!%p137_p2) }
   0xb   : > { %v461_v35 = vpack.c.bf16 (!%p137_p2), %v648_v33, %v647_v32  ;;  %v516_v39 = vpack.c.bf16 (!%p137_p2), %v651_v38, %v650_v37 }
   0xd   : > { %s901_s13 = smov (!%p159_p3, %s626_s13), 1 }
   0xe   : > { %s631_s14 = sshll.u32 %s901_s13, 3  ;;  %s655_s4 = sshll.u32 %s901_s13, 4 }
   0xf   : > { %s162_s17 = scalar_lea.vmem %s896_s0, %s631_s14  ;;  %s167_s7 = scalar_lea.vmem %s899_s3, %s655_s4 }
  0x10   : > { %v169_v1 = vld [vmem:[%s162_s17] sm:$0xff] }
  0x11   : > { %v170_v2 = vpack.c.bf16 %v169_v1, %v169_v1 }
  0x13   : > { %242 = vrot.lane.b32.xlu1 %v170_v2, %s765_s22  ;;  %352 = vrot.lane.b32.xlu0 %v170_v2, %s766_s23  ;;  %v192_v5 = vsel %vm190_vm1, %v170_v2, 0 }
  0x14   : > { %671 = vmatpush3.bf16.msra.mxu1 %v192_v5 }
  0x15   : > { %676 = vmatprep.subr.bf16.mxu1 %v763_v0 }
  0x17   : > { %407 = vrot.lane.b32.xlu0 %v170_v2, %s767_s24  ;;  %462 = vrot.lane.b32.xlu1 %v170_v2, %s768_s25 }
  0x18   : > { %673 = vmatmul.mubr.msk.bf16.vlgmr.msra.gmra.mrb[0].mxu1 %vm186_vm2, %v185_v6 }
  0x19   : > { %678 = vmatprep.mubr.msk.bf16.mxu1 %vm764_vm0, %v763_v0 }
  0x1b   : > { %297 = vrot.lane.b32.xlu0 %v170_v2, %s769_s26  ;;  %517 = vrot.lane.b32.xlu1 %v170_v2, %s770_s27 }
  0x1f   : > { %175 = vperm.xlu0 %753, %v171_v7   ;;  %180 = vperm.xlu1 %754, %v172_v8  }
  0x85   : > { %v243_v14 = vpop.permute.xlu1 %242  ;;  %v353_v15 = vpop.permute.xlu0 %352 }
  0x86   : > { %v248_v16 = vsel %vm190_vm1, %v243_v14, 0  ;;  %v358_v17 = vsel %vm190_vm1, %v353_v15, 0 }
  0x87   : > { %677 = vmatpush3.bf16.msra.mxu1 %v248_v16  ;;  %689 = vmatpush3.bf16.msra.mxu0 %v358_v17 }
  0x88   : > { %694 = vmatprep.subr.bf16.mxu0 %v763_v0  ;;  %682 = vmatprep.subr.bf16.mxu1 %v763_v0 }
  0x89   : > { %v408_v20 = vpop.permute.xlu0 %407  ;;  %v463_v28 = vpop.permute.xlu1 %462 }
  0x8a   : > { %v413_v21 = vsel %vm190_vm1, %v408_v20, 0  ;;  %679 = vmatmul.mubr.msk.bf16.vlgmr.msra.gmra.mrb[0].mxu1 %vm186_vm2, %v240_v18  ;;  %691 = vmatmul.mubr.msk.bf16.vlgmr.msra.gmra.mrb[0].mxu0 %vm186_vm2, %v351_v19  ;;  %v468_v31 = vsel %vm190_vm1, %v463_v28, 0 }
  0x8b   : > { %695 = vmatpush3.bf16.msra.mxu0 %v413_v21  ;;  %684 = vmatprep.mubr.msk.bf16.mxu1 %vm764_vm0, %v763_v0 }
  0x8c   : > { %696 = vmatprep.mubr.msk.bf16.mxu0 %vm764_vm0, %v763_v0  ;;  %700 = vmatprep.subr.bf16.mxu0 %v763_v0 }
  0x8d   : > { %v298_v22 = vpop.permute.xlu0 %297  ;;  %v518_v34 = vpop.permute.xlu1 %517 }
  0x8e   : > { %v303_v23 = vsel %vm190_vm1, %v298_v22, 0  ;;  %v523_v36 = vsel %vm190_vm1, %v518_v34, 0 }
  0x8f   : > { %683 = vmatpush3.bf16.msra.mxu1 %v303_v23 }
  0x96   : > { %685 = vmatmul.mubr.msk.bf16.vlgmr.msra.gmra.mrb[0].mxu1 %vm186_vm2, %v296_v29  ;;  %697 = vmatmul.mubr.msk.bf16.vlgmr.msra.gmra.mrb[0].mxu0 %vm186_vm2, %v406_v30 }
  0x97   : > { %701 = vmatpush3.bf16.msra.mxu0 %v468_v31  ;;  %702 = vmatprep.mubr.msk.bf16.mxu0 %vm764_vm0, %v763_v0 }
  0x98   : > { %706 = vmatprep.subr.bf16.mxu0 %v763_v0 }
  0x9e   : > { %v176_v44 = vpop.permute.xlu0 %175  ;;  %v181_v45 = vpop.permute.xlu1 %180 }
  0xa2   : > { %703 = vmatmul.mubr.msk.bf16.vlgmr.msra.gmra.mrb[0].mxu0 %vm186_vm2, %v461_v35 }
  0xa3   : > { %707 = vmatpush3.bf16.msra.mxu0 %v523_v36  ;;  %708 = vmatprep.mubr.msk.bf16.mxu0 %vm764_vm0, %v763_v0 }
  0xae   : > { %709 = vmatmul.mubr.msk.bf16.vlgmr.msra.gmra.mrb[0].mxu0 %vm186_vm2, %v516_v39 }
 0x169   : > { %v339_v40 = vpop.f32.mrb[0].mxu1 }
 0x16a   : > { %v686_v41 = vpop.f32.mrb[1].mxu1  ;;  %v712_v46 = vadd.f32 %v339_v40, %v176_v44 }
 0x16b   : > { %v342_v42 = vpop.f32.mrb[2].mxu1 }
 0x16c   : > { %v687_v43 = vpop.f32.mrb[3].mxu1  ;;  %v714_v48 = vadd.f32 %v342_v42, %v181_v45 }
 0x181   : > { %v559_v47 = vpop.f32.mrb[0].mxu0 }
 0x182   : > { %v713_v49 = vadd.f32 %v712_v46, %v559_v47  ;;  %v710_v50 = vpop.f32.mrb[1].mxu0 }
 0x183   : > { %v562_v51 = vpop.f32.mrb[2].mxu0 }
 0x184   : > { %569 = vst.msk [vmem:[%s167_s7] sm:$0xff] %vm568_vm3, %v713_v49  ;;  %v715_v52 = vadd.f32 %v714_v48, %v562_v51  ;;  %v711_v53 = vpop.f32.mrb[3].mxu0 }
 0x186   : > { %570 = vst.msk [vmem:[%s167_s7 + $0x8] sm:$0xff] %vm568_vm3, %v715_v52 }
 0x187 PF: > { %s13_s12 = sadd.s32 1, %s761_s12  }
 0x188   : > { %p10_p4 = scmp.ge.s32.totalorder %s13_s12, 4  }
 0x18a   :  { %12 = sbr.rel (!%p10_p4) target bundleno = 1 (0x1), region = 68 }

// kernel: fwd.103
= control target key start
LH: loop header
LB: loop body
LE: loop exit
PB: predicated region body
PF: predicated region fallthrough
CT: control target
= control target key end

     0   :  { %s548_s12 = smov 0   ;;  %s592_s0 = inlined_call_operand.vmem [shape: f32[2,16,11], index: 0, kind: input, shape index: {}]   ;;  %s593_s1 = inlined_call_operand.vmem [shape: f32[4,8,16], index: 1, kind: input, shape index: {}]   ;;  %s594_s2 = inlined_call_operand.vmem [shape: f32[8,1], index: 2, kind: input, shape index: {}]   ;;  %s595_s3 = inlined_call_operand.vmem [shape: f32[2,8,8], index: 3, kind: output, shape index: {}]  }
   0x1 LB: > { %s438_s13 = sadd.s32 4294967295, %s520_s12   ;;  %p442_p0 = scmp.ge.s32.totalorder %s520_s12, 1  ;;  %s520_s12 = sphi %s548_s12, %s13_s12  }
   0x2   : > { %p137_p1 = scmp.lt.s32.totalorder %s520_s12, 3 }
   0x4   : > { %p138_p2 = pnand %p442_p0, %p137_p1 }
   0x5   : > { %p160_p3 = scmp.lt.s32.totalorder (!%p138_p2), %s438_s13, 1  ;;  %v522_v0 = vmov (!%p138_p2), 0.0   ;;  %vm523_vm0 = vmmov (!%p138_p2), 0   ;;  %v185_v7 = vld [vmem:[%s593_s1] sm:$0xff] (!%p138_p2)  ;;  %s524_s20 = smov (!%p138_p2), 126   ;;  %vm187_vm3 = vcmask (!%p138_p2), 130048  }
   0x6   : > { %141 = sbr.rel (%p138_p2) target bundleno = 367 (0x16f), region = 32  ;;  %464 = vmatprep.subr.bf16.mxu1 (!%p138_p2), %v522_v0  ;;  %466 = vmatprep.mubr.msk.bf16.mxu1 (!%p138_p2), %vm523_vm0, %v522_v0  ;;  %s525_s21 = smov (!%p138_p2), 125   ;;  %v186_v9 = vpack.c.bf16 (!%p138_p2), %v185_v7, %v185_v7  ;;  %v179_v10 = vld [vmem:[%s594_s2] sm:$0xff] (!%p138_p2)  ;;  %v526_v11 = vmov (!%p138_p2), 0   ;;  %v449_v12 = vld [vmem:[%s593_s1 + $0x10] sm:$0xff] (!%p138_p2)  ;;  %v447_v15 = vld [vmem:[%s593_s1 + $0x8] sm:$0xff] (!%p138_p2) }
   0x7   : > { %476 = vmatprep.subr.bf16.mxu0 (!%p138_p2), %v522_v0  ;;  %478 = vmatprep.mubr.msk.bf16.mxu0 (!%p138_p2), %vm523_vm0, %v522_v0  ;;  %s527_s24 = smov (!%p138_p2), 127   ;;  %v285_v14 = vpack.c.bf16 (!%p138_p2), %v449_v12, %v449_v12  ;;  %v234_v18 = vpack.c.bf16 (!%p138_p2), %v447_v15, %v447_v15  ;;  %v451_v19 = vld [vmem:[%s593_s1 + $0x18] sm:$0xff] (!%p138_p2)  ;;  %vm383_vm4 = vcmask (!%p138_p2), 64512  }
   0x8   : > { %512 = vset.pattern.permute.xlu1 (!%p138_p2), %v526_v11  ;;  %513 = vset.pattern.permute.xlu0 (!%p138_p2), %v526_v11  ;;  %v335_v20 = vpack.c.bf16 (!%p138_p2), %v451_v19, %v451_v19 }
   0xd   : > { %s597_s13 = smov (!%p160_p3, %s438_s13), 1 }
   0xe   : > { %s455_s14 = sshll.u32 %s597_s13, 4  ;;  %s445_s4 = sshll.u32 %s597_s13, 3 }
   0xf   : > { %s164_s17 = scalar_lea.vmem %s592_s0, %s455_s14  ;;  %s168_s7 = scalar_lea.vmem %s595_s3, %s445_s4 }
  0x10   : > { %v170_v1 = vld [vmem:[%s164_s17] sm:$0xff]  ;;  %v171_v2 = vld [vmem:[%s164_s17 + $0x8] sm:$0xff] }
  0x11   : > { %vm172_vm1 = vcmp.ge.f32.partialorder %v170_v1, 0.0  ;;  %vm173_vm2 = vcmp.ge.f32.partialorder %v171_v2, 0.0  ;;  %v174_v3 = vmul.f32 0.1, %v170_v1  ;;  %v175_v4 = vmul.f32 0.1, %v171_v2 }
  0x13   : > { %v176_v5 = vsel %vm172_vm1, %v170_v1, %v174_v3  ;;  %v177_v6 = vsel %vm173_vm2, %v171_v2, %v175_v4 }
  0x14   : > { %v178_v8 = vpack.c.bf16 %v177_v6, %v176_v5 }
  0x16   : > { %286 = vrot.lane.b32.xlu0 %v178_v8, %s524_s20  ;;  %336 = vrot.lane.b32.xlu1 %v178_v8, %s525_s21 }
  0x17   : > { %465 = vmatpush3.bf16.msra.mxu1 %v178_v8 }
  0x18   : > { %470 = vmatprep.subr.bf16.mxu1 %v522_v0 }
  0x1a   : > { %236 = vrot.lane.b32.xlu0 %v178_v8, %s527_s24  ;;  %467 = vmatmul.mubr.msk.bf16.vlgmr.msra.gmra.mrb[0].mxu1 %vm187_vm3, %v186_v9 }
  0x1b   : > { %472 = vmatprep.mubr.msk.bf16.mxu1 %vm523_vm0, %v522_v0  ;;  %182 = vperm.xlu1 %512, %v179_v10  }
  0x88   : > { %v287_v13 = vpop.permute.xlu0 %286  ;;  %v337_v16 = vpop.permute.xlu1 %336 }
  0x89   : > { %477 = vmatpush3.bf16.msra.mxu0 %v287_v13 }
  0x8a   : > { %482 = vmatprep.subr.bf16.mxu0 %v522_v0 }
  0x8c   : > { %479 = vmatmul.mubr.msk.bf16.vlgmr.msra.gmra.mrb[0].mxu0 %vm187_vm3, %v285_v14  ;;  %v237_v17 = vpop.permute.xlu0 %236 }
  0x8d   : > { %471 = vmatpush3.bf16.msra.mxu1 %v237_v17  ;;  %483 = vmatpush3.bf16.msra.mxu0 %v337_v16 }
  0x8e   : > { %484 = vmatprep.mubr.msk.bf16.mxu0 %vm523_vm0, %v522_v0 }
  0x90   : > { %473 = vmatmul.mubr.msk.bf16.vlgmr.msra.gmra.mrb[0].mxu1 %vm187_vm3, %v234_v18 }
  0x98   : > { %485 = vmatmul.mubr.msk.bf16.vlgmr.msra.gmra.mrb[0].mxu0 %vm187_vm3, %v335_v20 }
  0x9a   : > { %v183_v25 = vpop.permute.xlu1 %182 }
 0x163   : > { %v276_v21 = vpop.f32.mrb[0].mxu1 }
 0x164   : > { %v474_v22 = vpop.f32.mrb[1].mxu1  ;;  %v488_v26 = vadd.f32 %v276_v21, %v183_v25 }
 0x165   : > { %v279_v23 = vpop.f32.mrb[2].mxu1 }
 0x166   : > { %v475_v24 = vpop.f32.mrb[3].mxu1 }
 0x16b   : > { %v376_v27 = vpop.f32.mrb[0].mxu0 }
 0x16c   : > { %v489_v28 = vadd.f32 %v488_v26, %v376_v27  ;;  %v486_v29 = vpop.f32.mrb[1].mxu0 }
 0x16d   : > { %v379_v30 = vpop.f32.mrb[2].mxu0 }
 0x16e   : > { %384 = vst.msk [vmem:[%s168_s7] sm:$0xff] %vm383_vm4, %v489_v28  ;;  %v487_v31 = vpop.f32.mrb[3].mxu0 }
 0x16f PF: > { %s13_s12 = sadd.s32 1, %s520_s12  }
 0x170   : > { %p10_p4 = scmp.ge.s32.totalorder %s13_s12, 4  }
 0x172   :  { %12 = sbr.rel (!%p10_p4) target bundleno = 1 (0x1), region = 65 }

// kernel: fwd.104
= control target key start
LH: loop header
LB: loop body
LE: loop exit
PB: predicated region body
PF: predicated region fallthrough
CT: control target
= control target key end

     0   :  { %s342_s12 = smov 0   ;;  %s365_s0 = inlined_call_operand.vmem [shape: f32[2,4,8], index: 0, kind: input, shape index: {}]   ;;  %s366_s1 = inlined_call_operand.vmem [shape: f32[1,8,4], index: 1, kind: input, shape index: {}]   ;;  %s367_s2 = inlined_call_operand.vmem [shape: f32[8,1], index: 2, kind: input, shape index: {}]   ;;  %s368_s3 = inlined_call_operand.vmem [shape: f32[2,8,8], index: 3, kind: output, shape index: {}]  }
   0x1 LB: > { %s281_s13 = sadd.s32 4294967295, %s317_s12   ;;  %p285_p0 = scmp.ge.s32.totalorder %s317_s12, 1  ;;  %s317_s12 = sphi %s342_s12, %s13_s12  }
   0x2   : > { %p136_p1 = scmp.lt.s32.totalorder %s317_s12, 3 }
   0x4   : > { %p137_p2 = pnand %p285_p0, %p136_p1 }
   0x5   : > { %p158_p3 = scmp.lt.s32.totalorder (!%p137_p2), %s281_s13, 1  ;;  %v319_v0 = vmov (!%p137_p2), 0.0   ;;  %vm320_vm0 = vmmov (!%p137_p2), 0   ;;  %v169_v1 = vld [vmem:[%s367_s2] sm:$0xff] (!%p137_p2)  ;;  %v321_v2 = vmov (!%p137_p2), 0   ;;  %vm181_vm1 = vcmask (!%p137_p2), 1041408  }
   0x6   : > { %140 = sbr.rel (%p137_p2) target bundleno = 238 (0xee), region = 32  ;;  %293 = vmatprep.subr.bf16.mxu0 (!%p137_p2), %v319_v0  ;;  %295 = vmatprep.mubr.msk.bf16.mxu0 (!%p137_p2), %vm320_vm0, %v319_v0  ;;  %v175_v4 = vld [vmem:[%s366_s1] sm:$0xff] (!%p137_p2)  ;;  %vm177_vm2 = vcmask (!%p137_p2), 31744   ;;  %vm226_vm3 = vcmask (!%p137_p2), 64512  }
   0x7   : > { %310 = vset.pattern.permute.xlu0 (!%p137_p2), %v321_v2  ;;  %v176_v7 = vpack.c.bf16 (!%p137_p2), %v175_v4, %v175_v4 }
   0x8   : > { %172 = vperm.xlu0 (!%p137_p2), %310, %v169_v1  }
   0xd   : > { %s370_s13 = smov (!%p158_p3, %s281_s13), 1 }
   0xe   : > { %s286_s16 = sshll.u32 %s370_s13, 2  ;;  %s287_s22 = sshll.u32 %s370_s13, 3 }
   0xf   : > { %s161_s19 = scalar_lea.vmem %s365_s0, %s286_s16  ;;  %s165_s25 = scalar_lea.vmem %s368_s3, %s287_s22 }
  0x10   : > { %v167_v3 = vld [vmem:[%s161_s19] sm:$0xf] }
  0x11   : > { %v168_v5 = vpack.c.bf16 %v167_v3, %v167_v3 }
  0x13   : > { %v183_v6 = vsel %vm181_vm1, %v168_v5, 0 }
  0x14   : > { %294 = vmatpush3.bf16.msra.mxu0 %v183_v6 }
  0x17   : > { %296 = vmatmul.mubr.msk.bf16.vlgmr.msra.gmra.mrb[0].mxu0 %vm177_vm2, %v176_v7 }
  0x87   : > { %v173_v8 = vpop.permute.xlu0 %172 }
  0xea   : > { %v219_v9 = vpop.f32.mrb[0].mxu0 }
  0xeb   : > { %v225_v10 = vadd.f32 %v219_v9, %v173_v8  ;;  %v297_v11 = vpop.f32.mrb[1].mxu0 }
  0xec   : > { %v222_v12 = vpop.f32.mrb[2].mxu0 }
  0xed   : > { %227 = vst.msk [vmem:[%s165_s25] sm:$0xff] %vm226_vm3, %v225_v10  ;;  %v298_v13 = vpop.f32.mrb[3].mxu0 }
  0xee PF: > { %s13_s12 = sadd.s32 1, %s317_s12  }
  0xef   : > { %p10_p4 = scmp.ge.s32.totalorder %s13_s12, 4  }
  0xf1   :  { %12 = sbr.rel (!%p10_p4) target bundleno = 1 (0x1), region = 62 }

// kernel: fwd.105
= control target key start
LH: loop header
LB: loop body
LE: loop exit
PB: predicated region body
PF: predicated region fallthrough
CT: control target
= control target key end

     0   :  { %s480_s12 = smov 0   ;;  %s526_s0 = inlined_call_operand.vmem [shape: f32[2,8,10], index: 0, kind: input, shape index: {}]   ;;  %s527_s1 = inlined_call_operand.vmem [shape: f32[3,8,8], index: 1, kind: input, shape index: {}]   ;;  %s528_s2 = inlined_call_operand.vmem [shape: f32[8,1], index: 2, kind: input, shape index: {}]   ;;  %s529_s3 = inlined_call_operand.vmem [shape: f32[2,8,8], index: 3, kind: output, shape index: {}]  }
   0x1 LB: > { %s388_s13 = sadd.s32 4294967295, %s453_s12   ;;  %p392_p0 = scmp.ge.s32.totalorder %s453_s12, 1  ;;  %s453_s12 = sphi %s480_s12, %s13_s12  }
   0x2   : > { %p136_p1 = scmp.lt.s32.totalorder %s453_s12, 3 }
   0x4   : > { %p137_p2 = pnand %p392_p0, %p136_p1 }
   0x5   : > { %p158_p3 = scmp.lt.s32.totalorder (!%p137_p2), %s388_s13, 1  ;;  %v455_v0 = vmov (!%p137_p2), 0.0   ;;  %vm456_vm0 = vmmov (!%p137_p2), 0   ;;  %v178_v4 = vld [vmem:[%s527_s1] sm:$0xff] (!%p137_p2)  ;;  %vm184_vm2 = vcmask (!%p137_p2), 1043456   ;;  %s457_s20 = smov (!%p137_p2), 127  }
   0x6   : > { %140 = sbr.rel (%p137_p2) target bundleno = 368 (0x170), region = 32  ;;  %414 = vmatprep.subr.bf16.mxu0 (!%p137_p2), %v455_v0  ;;  %416 = vmatprep.mubr.msk.bf16.mxu0 (!%p137_p2), %vm456_vm0, %v455_v0  ;;  %v179_v7 = vpack.c.bf16 (!%p137_p2), %v178_v4, %v178_v4  ;;  %vm180_vm3 = vcmask (!%p137_p2), 64512   ;;  %v172_v8 = vld [vmem:[%s528_s2] sm:$0xff] (!%p137_p2)  ;;  %s458_s23 = smov (!%p137_p2), 126   ;;  %v459_v9 = vmov (!%p137_p2), 0   ;;  %v396_v10 = vld [vmem:[%s527_s1 + $0x8] sm:$0xff] (!%p137_p2) }
   0x7   : > { %408 = vmatprep.subr.bf16.mxu1 (!%p137_p2), %v455_v0  ;;  %410 = vmatprep.mubr.msk.bf16.mxu1 (!%p137_p2), %vm456_vm0, %v455_v0  ;;  %v231_v13 = vpack.c.bf16 (!%p137_p2), %v396_v10, %v396_v10  ;;  %v398_v16 = vld [vmem:[%s527_s1 + $0x10] sm:$0xff] (!%p137_p2) }
   0x8   : > { %445 = vset.pattern.permute.xlu1 (!%p137_p2), %v459_v9  ;;  %446 = vset.pattern.permute.xlu0 (!%p137_p2), %v459_v9  ;;  %v284_v17 = vpack.c.bf16 (!%p137_p2), %v398_v16, %v398_v16 }
   0x9   : > { %175 = vperm.xlu1 (!%p137_p2), %445, %v172_v8  }
   0xd   : > { %s531_s13 = smov (!%p158_p3, %s388_s13), 1 }
   0xe   : > { %s393_s14 = sshll.u32 %s531_s13, 3 }
   0xf   : > { %s161_s17 = scalar_lea.vmem %s526_s0, %s393_s14  ;;  %s165_s30 = scalar_lea.vmem %s529_s3, %s393_s14 }
  0x10   : > { %v167_v1 = vld [vmem:[%s161_s17] sm:$0xff] }
  0x11   : > { %vm168_vm1 = vcmp.ge.f32.partialorder %v167_v1, 0.0  ;;  %v169_v2 = vmul.f32 0.1, %v167_v1 }
  0x13   : > { %v170_v3 = vsel %vm168_vm1, %v167_v1, %v169_v2 }
  0x14   : > { %v171_v5 = vpack.c.bf16 %v170_v3, %v170_v3 }
  0x16   : > { %233 = vrot.lane.b32.xlu0 %v171_v5, %s457_s20  ;;  %v186_v6 = vsel %vm184_vm2, %v171_v5, 0 }
  0x17   : > { %409 = vmatpush3.bf16.msra.mxu1 %v186_v6 }
  0x1a   : > { %285 = vrot.lane.b32.xlu0 %v171_v5, %s458_s23  ;;  %411 = vmatmul.mubr.msk.bf16.vlgmr.msra.gmra.mrb[0].mxu1 %vm180_vm3, %v179_v7 }
  0x88   : > { %v234_v11 = vpop.permute.xlu0 %233  ;;  %v176_v22 = vpop.permute.xlu1 %175 }
  0x89   : > { %v239_v12 = vsel %vm184_vm2, %v234_v11, 0 }
  0x8a   : > { %415 = vmatpush3.bf16.msra.mxu0 %v239_v12 }
  0x8b   : > { %420 = vmatprep.subr.bf16.mxu0 %v455_v0 }
  0x8c   : > { %v286_v14 = vpop.permute.xlu0 %285 }
  0x8d   : > { %v291_v15 = vsel %vm184_vm2, %v286_v14, 0  ;;  %417 = vmatmul.mubr.msk.bf16.vlgmr.msra.gmra.mrb[0].mxu0 %vm180_vm3, %v231_v13 }
  0x8e   : > { %421 = vmatpush3.bf16.msra.mxu0 %v291_v15  ;;  %422 = vmatprep.mubr.msk.bf16.mxu0 %vm456_vm0, %v455_v0 }
  0x99   : > { %423 = vmatmul.mubr.msk.bf16.vlgmr.msra.gmra.mrb[0].mxu0 %vm180_vm3, %v284_v17 }
  0xed   : > { %v222_v18 = vpop.f32.mrb[0].mxu1 }
  0xee   : > { %v412_v19 = vpop.f32.mrb[1].mxu1  ;;  %v228_v23 = vadd.f32 %v222_v18, %v176_v22 }
  0xef   : > { %v225_v20 = vpop.f32.mrb[2].mxu1 }
  0xf0   : > { %v413_v21 = vpop.f32.mrb[3].mxu1 }
 0x16c   : > { %v327_v24 = vpop.f32.mrb[0].mxu0 }
 0x16d   : > { %v427_v25 = vadd.f32 %v327_v24, %v228_v23  ;;  %v424_v26 = vpop.f32.mrb[1].mxu0 }
 0x16e   : > { %v330_v27 = vpop.f32.mrb[2].mxu0 }
 0x16f   : > { %334 = vst.msk [vmem:[%s165_s30] sm:$0xff] %vm180_vm3, %v427_v25  ;;  %v425_v28 = vpop.f32.mrb[3].mxu0 }
 0x170 PF: > { %s13_s12 = sadd.s32 1, %s453_s12  }
 0x171   : > { %p10_p4 = scmp.ge.s32.totalorder %s13_s12, 4  }
 0x173   :  { %12 = sbr.rel (!%p10_p4) target bundleno = 1 (0x1), region = 64 }

// kernel: fwd.111
= control target key start
LH: loop header
LB: loop body
LE: loop exit
PB: predicated region body
PF: predicated region fallthrough
CT: control target
= control target key end

     0   :  { %s615_s12 = smov 0   ;;  %s673_s0 = inlined_call_operand.vmem [shape: f32[2,8,12], index: 0, kind: input, shape index: {}]   ;;  %s674_s1 = inlined_call_operand.vmem [shape: f32[5,8,8], index: 1, kind: input, shape index: {}]   ;;  %s675_s2 = inlined_call_operand.vmem [shape: f32[8,1], index: 2, kind: input, shape index: {}]   ;;  %s676_s3 = inlined_call_operand.vmem [shape: f32[2,8,8], index: 3, kind: output, shape index: {}]  }
   0x1 LB: > { %s492_s13 = sadd.s32 4294967295, %s586_s12   ;;  %p496_p0 = scmp.ge.s32.totalorder %s586_s12, 1  ;;  %s586_s12 = sphi %s615_s12, %s13_s12  }
   0x2   : > { %p136_p1 = scmp.lt.s32.totalorder %s586_s12, 3 }
   0x4   : > { %p137_p2 = pnand %p496_p0, %p136_p1 }
   0x5   : > { %p158_p3 = scmp.lt.s32.totalorder (!%p137_p2), %s492_s13, 1  ;;  %v588_v0 = vmov (!%p137_p2), 0.0   ;;  %vm589_vm0 = vmmov (!%p137_p2), 0   ;;  %vm184_vm2 = vcmask (!%p137_p2), 1043456   ;;  %v178_v5 = vld [vmem:[%s674_s1] sm:$0xff] (!%p137_p2)  ;;  %s590_s20 = smov (!%p137_p2), 126  }
   0x6   : > { %140 = sbr.rel (%p137_p2) target bundleno = 380 (0x17c), region = 32  ;;  %520 = vmatprep.subr.bf16.mxu1 (!%p137_p2), %v588_v0  ;;  %522 = vmatprep.mubr.msk.bf16.mxu1 (!%p137_p2), %vm589_vm0, %v588_v0  ;;  %s591_s21 = smov (!%p137_p2), 127   ;;  %v179_v7 = vpack.c.bf16 (!%p137_p2), %v178_v5, %v178_v5  ;;  %vm180_vm3 = vcmask (!%p137_p2), 64512   ;;  %v172_v8 = vld [vmem:[%s675_s2] sm:$0xff] (!%p137_p2)  ;;  %v594_v9 = vmov (!%p137_p2), 0   ;;  %v502_v10 = vld [vmem:[%s674_s1 + $0x10] sm:$0xff] (!%p137_p2) }
   0x7   : > { %532 = vmatprep.subr.bf16.mxu0 (!%p137_p2), %v588_v0  ;;  %534 = vmatprep.mubr.msk.bf16.mxu0 (!%p137_p2), %vm589_vm0, %v588_v0  ;;  %s592_s22 = smov (!%p137_p2), 125   ;;  %s593_s23 = smov (!%p137_p2), 124   ;;  %v500_v11 = vld [vmem:[%s674_s1 + $0x8] sm:$0xff] (!%p137_p2)  ;;  %v284_v15 = vpack.c.bf16 (!%p137_p2), %v502_v10, %v502_v10  ;;  %v504_v20 = vld [vmem:[%s674_s1 + $0x18] sm:$0xff] (!%p137_p2)  ;;  %v506_v24 = vld [vmem:[%s674_s1 + $0x20] sm:$0xff] (!%p137_p2) }
   0x8   : > { %579 = vset.pattern.permute.xlu0 (!%p137_p2), %v594_v9  ;;  %v231_v17 = vpack.c.bf16 (!%p137_p2), %v500_v11, %v500_v11  ;;  %v336_v22 = vpack.c.bf16 (!%p137_p2), %v504_v20, %v504_v20  ;;  %v388_v25 = vpack.c.bf16 (!%p137_p2), %v506_v24, %v506_v24 }
   0xd   : > { %s678_s13 = smov (!%p158_p3, %s492_s13), 1 }
   0xe   : > { %s497_s14 = sshll.u32 %s678_s13, 3 }
   0xf   : > { %s161_s17 = scalar_lea.vmem %s673_s0, %s497_s14  ;;  %s165_s9 = scalar_lea.vmem %s676_s3, %s497_s14 }
  0x10   : > { %v167_v1 = vld [vmem:[%s161_s17] sm:$0xff] }
  0x11   : > { %vm168_vm1 = vcmp.ge.f32.partialorder %v167_v1, 0.0  ;;  %v169_v2 = vmul.f32 0.1, %v167_v1 }
  0x13   : > { %v170_v3 = vsel %vm168_vm1, %v167_v1, %v169_v2 }
  0x14   : > { %v171_v4 = vpack.c.bf16 %v170_v3, %v170_v3 }
  0x16   : > { %285 = vrot.lane.b32.xlu0 %v171_v4, %s590_s20  ;;  %233 = vrot.lane.b32.xlu1 %v171_v4, %s591_s21  ;;  %v186_v6 = vsel %vm184_vm2, %v171_v4, 0 }
  0x17   : > { %521 = vmatpush3.bf16.msra.mxu1 %v186_v6 }
  0x18   : > { %526 = vmatprep.subr.bf16.mxu1 %v588_v0 }
  0x1a   : > { %337 = vrot.lane.b32.xlu0 %v171_v4, %s592_s22  ;;  %389 = vrot.lane.b32.xlu1 %v171_v4, %s593_s23 }
  0x1b   : > { %523 = vmatmul.mubr.msk.bf16.vlgmr.msra.gmra.mrb[0].mxu1 %vm180_vm3, %v179_v7 }
  0x1c   : > { %528 = vmatprep.mubr.msk.bf16.mxu1 %vm589_vm0, %v588_v0 }
  0x1e   : > { %175 = vperm.xlu0 %579, %v172_v8  }
  0x88   : > { %v286_v12 = vpop.permute.xlu0 %285  ;;  %v234_v13 = vpop.permute.xlu1 %233 }
  0x89   : > { %v291_v14 = vsel %vm184_vm2, %v286_v12, 0  ;;  %v239_v16 = vsel %vm184_vm2, %v234_v13, 0 }
  0x8a   : > { %533 = vmatpush3.bf16.msra.mxu0 %v291_v14  ;;  %527 = vmatpush3.bf16.msra.mxu1 %v239_v16 }
  0x8b   : > { %538 = vmatprep.subr.bf16.mxu0 %v588_v0 }
  0x8c   : > { %v338_v18 = vpop.permute.xlu0 %337  ;;  %v390_v21 = vpop.permute.xlu1 %389 }
  0x8d   : > { %v343_v19 = vsel %vm184_vm2, %v338_v18, 0  ;;  %535 = vmatmul.mubr.msk.bf16.vlgmr.msra.gmra.mrb[0].mxu0 %vm180_vm3, %v284_v15  ;;  %529 = vmatmul.mubr.msk.bf16.vlgmr.msra.gmra.mrb[0].mxu1 %vm180_vm3, %v231_v17  ;;  %v395_v23 = vsel %vm184_vm2, %v390_v21, 0 }
  0x8e   : > { %539 = vmatpush3.bf16.msra.mxu0 %v343_v19  ;;  %540 = vmatprep.mubr.msk.bf16.mxu0 %vm589_vm0, %v588_v0 }
  0x8f   : > { %544 = vmatprep.subr.bf16.mxu0 %v588_v0 }
  0x99   : > { %541 = vmatmul.mubr.msk.bf16.vlgmr.msra.gmra.mrb[0].mxu0 %vm180_vm3, %v336_v22 }
  0x9a   : > { %545 = vmatpush3.bf16.msra.mxu0 %v395_v23  ;;  %546 = vmatprep.mubr.msk.bf16.mxu0 %vm589_vm0, %v588_v0 }
  0x9d   : > { %v176_v30 = vpop.permute.xlu0 %175 }
  0xa5   : > { %547 = vmatmul.mubr.msk.bf16.vlgmr.msra.gmra.mrb[0].mxu0 %vm180_vm3, %v388_v25 }
 0x160   : > { %v275_v26 = vpop.f32.mrb[0].mxu1 }
 0x161   : > { %v530_v27 = vpop.f32.mrb[1].mxu1  ;;  %v550_v31 = vadd.f32 %v275_v26, %v176_v30 }
 0x162   : > { %v278_v28 = vpop.f32.mrb[2].mxu1 }
 0x163   : > { %v531_v29 = vpop.f32.mrb[3].mxu1 }
 0x178   : > { %v431_v32 = vpop.f32.mrb[0].mxu0 }
 0x179   : > { %v551_v33 = vadd.f32 %v550_v31, %v431_v32  ;;  %v548_v34 = vpop.f32.mrb[1].mxu0 }
 0x17a   : > { %v434_v35 = vpop.f32.mrb[2].mxu0 }
 0x17b   : > { %438 = vst.msk [vmem:[%s165_s9] sm:$0xff] %vm180_vm3, %v551_v33  ;;  %v549_v36 = vpop.f32.mrb[3].mxu0 }
 0x17c PF: > { %s13_s12 = sadd.s32 1, %s586_s12  }
 0x17d   : > { %p10_p4 = scmp.ge.s32.totalorder %s13_s12, 4  }
 0x17f   :  { %12 = sbr.rel (!%p10_p4) target bundleno = 1 (0x1), region = 66 }

// kernel: fwd.107
= control target key start
LH: loop header
LB: loop body
LE: loop exit
PB: predicated region body
PF: predicated region fallthrough
CT: control target
= control target key end

     0   :  { %s480_s12 = smov 0   ;;  %s526_s0 = inlined_call_operand.vmem [shape: f32[2,8,14], index: 0, kind: input, shape index: {}]   ;;  %s527_s1 = inlined_call_operand.vmem [shape: f32[3,8,8], index: 1, kind: input, shape index: {}]   ;;  %s528_s2 = inlined_call_operand.vmem [shape: f32[8,1], index: 2, kind: input, shape index: {}]   ;;  %s529_s3 = inlined_call_operand.vmem [shape: f32[2,8,8], index: 3, kind: output, shape index: {}]  }
   0x1 LB: > { %s388_s13 = sadd.s32 4294967295, %s453_s12   ;;  %p392_p0 = scmp.ge.s32.totalorder %s453_s12, 1  ;;  %s453_s12 = sphi %s480_s12, %s13_s12  }
   0x2   : > { %p136_p1 = scmp.lt.s32.totalorder %s453_s12, 3 }
   0x4   : > { %p137_p2 = pnand %p392_p0, %p136_p1 }
   0x5   : > { %p158_p3 = scmp.lt.s32.totalorder (!%p137_p2), %s388_s13, 1  ;;  %v455_v0 = vmov (!%p137_p2), 0.0   ;;  %vm456_vm0 = vmmov (!%p137_p2), 0   ;;  %v178_v4 = vld [vmem:[%s527_s1] sm:$0xff] (!%p137_p2)  ;;  %vm184_vm2 = vcmask (!%p137_p2), 1043456   ;;  %s457_s20 = smov (!%p137_p2), 125  }
   0x6   : > { %140 = sbr.rel (%p137_p2) target bundleno = 368 (0x170), region = 32  ;;  %414 = vmatprep.subr.bf16.mxu0 (!%p137_p2), %v455_v0  ;;  %416 = vmatprep.mubr.msk.bf16.mxu0 (!%p137_p2), %vm456_vm0, %v455_v0  ;;  %v179_v7 = vpack.c.bf16 (!%p137_p2), %v178_v4, %v178_v4  ;;  %vm180_vm3 = vcmask (!%p137_p2), 64512   ;;  %v172_v8 = vld [vmem:[%s528_s2] sm:$0xff] (!%p137_p2)  ;;  %s458_s23 = smov (!%p137_p2), 122   ;;  %v459_v9 = vmov (!%p137_p2), 0   ;;  %v396_v10 = vld [vmem:[%s527_s1 + $0x8] sm:$0xff] (!%p137_p2) }
   0x7   : > { %408 = vmatprep.subr.bf16.mxu1 (!%p137_p2), %v455_v0  ;;  %410 = vmatprep.mubr.msk.bf16.mxu1 (!%p137_p2), %vm456_vm0, %v455_v0  ;;  %v231_v13 = vpack.c.bf16 (!%p137_p2), %v396_v10, %v396_v10  ;;  %v398_v16 = vld [vmem:[%s527_s1 + $0x10] sm:$0xff] (!%p137_p2) }
   0x8   : > { %445 = vset.pattern.permute.xlu1 (!%p137_p2), %v459_v9  ;;  %446 = vset.pattern.permute.xlu0 (!%p137_p2), %v459_v9  ;;  %v284_v17 = vpack.c.bf16 (!%p137_p2), %v398_v16, %v398_v16 }
   0x9   : > { %175 = vperm.xlu1 (!%p137_p2), %445, %v172_v8  }
   0xd   : > { %s531_s13 = smov (!%p158_p3, %s388_s13), 1 }
   0xe   : > { %s393_s14 = sshll.u32 %s531_s13, 3 }
   0xf   : > { %s161_s17 = scalar_lea.vmem %s526_s0, %s393_s14  ;;  %s165_s30 = scalar_lea.vmem %s529_s3, %s393_s14 }
  0x10   : > { %v167_v1 = vld [vmem:[%s161_s17] sm:$0xff] }
  0x11   : > { %vm168_vm1 = vcmp.ge.f32.partialorder %v167_v1, 0.0  ;;  %v169_v2 = vmul.f32 0.1, %v167_v1 }
  0x13   : > { %v170_v3 = vsel %vm168_vm1, %v167_v1, %v169_v2 }
  0x14   : > { %v171_v5 = vpack.c.bf16 %v170_v3, %v170_v3 }
  0x16   : > { %233 = vrot.lane.b32.xlu0 %v171_v5, %s457_s20  ;;  %v186_v6 = vsel %vm184_vm2, %v171_v5, 0 }
  0x17   : > { %409 = vmatpush3.bf16.msra.mxu1 %v186_v6 }
  0x1a   : > { %285 = vrot.lane.b32.xlu0 %v171_v5, %s458_s23  ;;  %411 = vmatmul.mubr.msk.bf16.vlgmr.msra.gmra.mrb[0].mxu1 %vm180_vm3, %v179_v7 }
  0x88   : > { %v234_v11 = vpop.permute.xlu0 %233  ;;  %v176_v22 = vpop.permute.xlu1 %175 }
  0x89   : > { %v239_v12 = vsel %vm184_vm2, %v234_v11, 0 }
  0x8a   : > { %415 = vmatpush3.bf16.msra.mxu0 %v239_v12 }
  0x8b   : > { %420 = vmatprep.subr.bf16.mxu0 %v455_v0 }
  0x8c   : > { %v286_v14 = vpop.permute.xlu0 %285 }
  0x8d   : > { %v291_v15 = vsel %vm184_vm2, %v286_v14, 0  ;;  %417 = vmatmul.mubr.msk.bf16.vlgmr.msra.gmra.mrb[0].mxu0 %vm180_vm3, %v231_v13 }
  0x8e   : > { %421 = vmatpush3.bf16.msra.mxu0 %v291_v15  ;;  %422 = vmatprep.mubr.msk.bf16.mxu0 %vm456_vm0, %v455_v0 }
  0x99   : > { %423 = vmatmul.mubr.msk.bf16.vlgmr.msra.gmra.mrb[0].mxu0 %vm180_vm3, %v284_v17 }
  0xed   : > { %v222_v18 = vpop.f32.mrb[0].mxu1 }
  0xee   : > { %v412_v19 = vpop.f32.mrb[1].mxu1  ;;  %v228_v23 = vadd.f32 %v222_v18, %v176_v22 }
  0xef   : > { %v225_v20 = vpop.f32.mrb[2].mxu1 }
  0xf0   : > { %v413_v21 = vpop.f32.mrb[3].mxu1 }
 0x16c   : > { %v327_v24 = vpop.f32.mrb[0].mxu0 }
 0x16d   : > { %v427_v25 = vadd.f32 %v327_v24, %v228_v23  ;;  %v424_v26 = vpop.f32.mrb[1].mxu0 }
 0x16e   : > { %v330_v27 = vpop.f32.mrb[2].mxu0 }
 0x16f   : > { %334 = vst.msk [vmem:[%s165_s30] sm:$0xff] %vm180_vm3, %v427_v25  ;;  %v425_v28 = vpop.f32.mrb[3].mxu0 }
 0x170 PF: > { %s13_s12 = sadd.s32 1, %s453_s12  }
 0x171   : > { %p10_p4 = scmp.ge.s32.totalorder %s13_s12, 4  }
 0x173   :  { %12 = sbr.rel (!%p10_p4) target bundleno = 1 (0x1), region = 64 }

// kernel: fwd.109
= control target key start
LH: loop header
LB: loop body
LE: loop exit
PB: predicated region body
PF: predicated region fallthrough
CT: control target
= control target key end

     0   :  { %s480_s12 = smov 0   ;;  %s526_s0 = inlined_call_operand.vmem [shape: f32[2,8,18], index: 0, kind: input, shape index: {}]   ;;  %s527_s1 = inlined_call_operand.vmem [shape: f32[3,8,8], index: 1, kind: input, shape index: {}]   ;;  %s528_s2 = inlined_call_operand.vmem [shape: f32[8,1], index: 2, kind: input, shape index: {}]   ;;  %s529_s3 = inlined_call_operand.vmem [shape: f32[2,8,8], index: 3, kind: output, shape index: {}]  }
   0x1 LB: > { %s388_s13 = sadd.s32 4294967295, %s453_s12   ;;  %p392_p0 = scmp.ge.s32.totalorder %s453_s12, 1  ;;  %s453_s12 = sphi %s480_s12, %s13_s12  }
   0x2   : > { %p136_p1 = scmp.lt.s32.totalorder %s453_s12, 3 }
   0x4   : > { %p137_p2 = pnand %p392_p0, %p136_p1 }
   0x5   : > { %p158_p3 = scmp.lt.s32.totalorder (!%p137_p2), %s388_s13, 1  ;;  %v455_v0 = vmov (!%p137_p2), 0.0   ;;  %vm456_vm0 = vmmov (!%p137_p2), 0   ;;  %v178_v4 = vld [vmem:[%s527_s1] sm:$0xff] (!%p137_p2)  ;;  %vm184_vm2 = vcmask (!%p137_p2), 1043456   ;;  %s457_s20 = smov (!%p137_p2), 123  }
   0x6   : > { %140 = sbr.rel (%p137_p2) target bundleno = 368 (0x170), region = 32  ;;  %414 = vmatprep.subr.bf16.mxu0 (!%p137_p2), %v455_v0  ;;  %416 = vmatprep.mubr.msk.bf16.mxu0 (!%p137_p2), %vm456_vm0, %v455_v0  ;;  %v179_v7 = vpack.c.bf16 (!%p137_p2), %v178_v4, %v178_v4  ;;  %vm180_vm3 = vcmask (!%p137_p2), 64512   ;;  %v172_v8 = vld [vmem:[%s528_s2] sm:$0xff] (!%p137_p2)  ;;  %s458_s23 = smov (!%p137_p2), 118   ;;  %v459_v9 = vmov (!%p137_p2), 0   ;;  %v396_v10 = vld [vmem:[%s527_s1 + $0x8] sm:$0xff] (!%p137_p2) }
   0x7   : > { %408 = vmatprep.subr.bf16.mxu1 (!%p137_p2), %v455_v0  ;;  %410 = vmatprep.mubr.msk.bf16.mxu1 (!%p137_p2), %vm456_vm0, %v455_v0  ;;  %v231_v13 = vpack.c.bf16 (!%p137_p2), %v396_v10, %v396_v10  ;;  %v398_v16 = vld [vmem:[%s527_s1 + $0x10] sm:$0xff] (!%p137_p2) }
   0x8   : > { %445 = vset.pattern.permute.xlu1 (!%p137_p2), %v459_v9  ;;  %446 = vset.pattern.permute.xlu0 (!%p137_p2), %v459_v9  ;;  %v284_v17 = vpack.c.bf16 (!%p137_p2), %v398_v16, %v398_v16 }
   0x9   : > { %175 = vperm.xlu1 (!%p137_p2), %445, %v172_v8  }
   0xd   : > { %s531_s13 = smov (!%p158_p3, %s388_s13), 1 }
   0xe   : > { %s393_s14 = sshll.u32 %s531_s13, 3 }
   0xf   : > { %s161_s17 = scalar_lea.vmem %s526_s0, %s393_s14  ;;  %s165_s30 = scalar_lea.vmem %s529_s3, %s393_s14 }
  0x10   : > { %v167_v1 = vld [vmem:[%s161_s17] sm:$0xff] }
  0x11   : > { %vm168_vm1 = vcmp.ge.f32.partialorder %v167_v1, 0.0  ;;  %v169_v2 = vmul.f32 0.1, %v167_v1 }
  0x13   : > { %v170_v3 = vsel %vm168_vm1, %v167_v1, %v169_v2 }
  0x14   : > { %v171_v5 = vpack.c.bf16 %v170_v3, %v170_v3 }
  0x16   : > { %233 = vrot.lane.b32.xlu0 %v171_v5, %s457_s20  ;;  %v186_v6 = vsel %vm184_vm2, %v171_v5, 0 }
  0x17   : > { %409 = vmatpush3.bf16.msra.mxu1 %v186_v6 }
  0x1a   : > { %285 = vrot.lane.b32.xlu0 %v171_v5, %s458_s23  ;;  %411 = vmatmul.mubr.msk.bf16.vlgmr.msra.gmra.mrb[0].mxu1 %vm180_vm3, %v179_v7 }
  0x88   : > { %v234_v11 = vpop.permute.xlu0 %233  ;;  %v176_v22 = vpop.permute.xlu1 %175 }
  0x89   : > { %v239_v12 = vsel %vm184_vm2, %v234_v11, 0 }
  0x8a   : > { %415 = vmatpush3.bf16.msra.mxu0 %v239_v12 }
  0x8b   : > { %420 = vmatprep.subr.bf16.mxu0 %v455_v0 }
  0x8c   : > { %v286_v14 = vpop.permute.xlu0 %285 }
  0x8d   : > { %v291_v15 = vsel %vm184_vm2, %v286_v14, 0  ;;  %417 = vmatmul.mubr.msk.bf16.vlgmr.msra.gmra.mrb[0].mxu0 %vm180_vm3, %v231_v13 }
  0x8e   : > { %421 = vmatpush3.bf16.msra.mxu0 %v291_v15  ;;  %422 = vmatprep.mubr.msk.bf16.mxu0 %vm456_vm0, %v455_v0 }
  0x99   : > { %423 = vmatmul.mubr.msk.bf16.vlgmr.msra.gmra.mrb[0].mxu0 %vm180_vm3, %v284_v17 }
  0xed   : > { %v222_v18 = vpop.f32.mrb[0].mxu1 }
  0xee   : > { %v412_v19 = vpop.f32.mrb[1].mxu1  ;;  %v228_v23 = vadd.f32 %v222_v18, %v176_v22 }
  0xef   : > { %v225_v20 = vpop.f32.mrb[2].mxu1 }
  0xf0   : > { %v413_v21 = vpop.f32.mrb[3].mxu1 }
 0x16c   : > { %v327_v24 = vpop.f32.mrb[0].mxu0 }
 0x16d   : > { %v427_v25 = vadd.f32 %v327_v24, %v228_v23  ;;  %v424_v26 = vpop.f32.mrb[1].mxu0 }
 0x16e   : > { %v330_v27 = vpop.f32.mrb[2].mxu0 }
 0x16f   : > { %334 = vst.msk [vmem:[%s165_s30] sm:$0xff] %vm180_vm3, %v427_v25  ;;  %v425_v28 = vpop.f32.mrb[3].mxu0 }
 0x170 PF: > { %s13_s12 = sadd.s32 1, %s453_s12  }
 0x171   : > { %p10_p4 = scmp.ge.s32.totalorder %s13_s12, 4  }
 0x173   :  { %12 = sbr.rel (!%p10_p4) target bundleno = 1 (0x1), region = 64 }

// kernel: fwd.113
= control target key start
LH: loop header
LB: loop body
LE: loop exit
PB: predicated region body
PF: predicated region fallthrough
CT: control target
= control target key end

     0   :  { %s615_s12 = smov 0   ;;  %s673_s0 = inlined_call_operand.vmem [shape: f32[2,8,20], index: 0, kind: input, shape index: {}]   ;;  %s674_s1 = inlined_call_operand.vmem [shape: f32[5,8,8], index: 1, kind: input, shape index: {}]   ;;  %s675_s2 = inlined_call_operand.vmem [shape: f32[8,1], index: 2, kind: input, shape index: {}]   ;;  %s676_s3 = inlined_call_operand.vmem [shape: f32[2,8,8], index: 3, kind: output, shape index: {}]  }
   0x1 LB: > { %s492_s13 = sadd.s32 4294967295, %s586_s12   ;;  %p496_p0 = scmp.ge.s32.totalorder %s586_s12, 1  ;;  %s586_s12 = sphi %s615_s12, %s13_s12  }
   0x2   : > { %p136_p1 = scmp.lt.s32.totalorder %s586_s12, 3 }
   0x4   : > { %p137_p2 = pnand %p496_p0, %p136_p1 }
   0x5   : > { %p158_p3 = scmp.lt.s32.totalorder (!%p137_p2), %s492_s13, 1  ;;  %v588_v0 = vmov (!%p137_p2), 0.0   ;;  %vm589_vm0 = vmmov (!%p137_p2), 0   ;;  %vm184_vm2 = vcmask (!%p137_p2), 1043456   ;;  %v178_v5 = vld [vmem:[%s674_s1] sm:$0xff] (!%p137_p2)  ;;  %s590_s20 = smov (!%p137_p2), 122  }
   0x6   : > { %140 = sbr.rel (%p137_p2) target bundleno = 380 (0x17c), region = 32  ;;  %520 = vmatprep.subr.bf16.mxu1 (!%p137_p2), %v588_v0  ;;  %522 = vmatprep.mubr.msk.bf16.mxu1 (!%p137_p2), %vm589_vm0, %v588_v0  ;;  %s591_s21 = smov (!%p137_p2), 125   ;;  %v179_v7 = vpack.c.bf16 (!%p137_p2), %v178_v5, %v178_v5  ;;  %vm180_vm3 = vcmask (!%p137_p2), 64512   ;;  %v172_v8 = vld [vmem:[%s675_s2] sm:$0xff] (!%p137_p2)  ;;  %v594_v9 = vmov (!%p137_p2), 0   ;;  %v502_v10 = vld [vmem:[%s674_s1 + $0x10] sm:$0xff] (!%p137_p2) }
   0x7   : > { %532 = vmatprep.subr.bf16.mxu0 (!%p137_p2), %v588_v0  ;;  %534 = vmatprep.mubr.msk.bf16.mxu0 (!%p137_p2), %vm589_vm0, %v588_v0  ;;  %s592_s22 = smov (!%p137_p2), 119   ;;  %s593_s23 = smov (!%p137_p2), 116   ;;  %v500_v11 = vld [vmem:[%s674_s1 + $0x8] sm:$0xff] (!%p137_p2)  ;;  %v284_v15 = vpack.c.bf16 (!%p137_p2), %v502_v10, %v502_v10  ;;  %v504_v20 = vld [vmem:[%s674_s1 + $0x18] sm:$0xff] (!%p137_p2)  ;;  %v506_v24 = vld [vmem:[%s674_s1 + $0x20] sm:$0xff] (!%p137_p2) }
   0x8   : > { %579 = vset.pattern.permute.xlu0 (!%p137_p2), %v594_v9  ;;  %v231_v17 = vpack.c.bf16 (!%p137_p2), %v500_v11, %v500_v11  ;;  %v336_v22 = vpack.c.bf16 (!%p137_p2), %v504_v20, %v504_v20  ;;  %v388_v25 = vpack.c.bf16 (!%p137_p2), %v506_v24, %v506_v24 }
   0xd   : > { %s678_s13 = smov (!%p158_p3, %s492_s13), 1 }
   0xe   : > { %s497_s14 = sshll.u32 %s678_s13, 3 }
   0xf   : > { %s161_s17 = scalar_lea.vmem %s673_s0, %s497_s14  ;;  %s165_s9 = scalar_lea.vmem %s676_s3, %s497_s14 }
  0x10   : > { %v167_v1 = vld [vmem:[%s161_s17] sm:$0xff] }
  0x11   : > { %vm168_vm1 = vcmp.ge.f32.partialorder %v167_v1, 0.0  ;;  %v169_v2 = vmul.f32 0.1, %v167_v1 }
  0x13   : > { %v170_v3 = vsel %vm168_vm1, %v167_v1, %v169_v2 }
  0x14   : > { %v171_v4 = vpack.c.bf16 %v170_v3, %v170_v3 }
  0x16   : > { %285 = vrot.lane.b32.xlu0 %v171_v4, %s590_s20  ;;  %233 = vrot.lane.b32.xlu1 %v171_v4, %s591_s21  ;;  %v186_v6 = vsel %vm184_vm2, %v171_v4, 0 }
  0x17   : > { %521 = vmatpush3.bf16.msra.mxu1 %v186_v6 }
  0x18   : > { %526 = vmatprep.subr.bf16.mxu1 %v588_v0 }
  0x1a   : > { %337 = vrot.lane.b32.xlu0 %v171_v4, %s592_s22  ;;  %389 = vrot.lane.b32.xlu1 %v171_v4, %s593_s23 }
  0x1b   : > { %523 = vmatmul.mubr.msk.bf16.vlgmr.msra.gmra.mrb[0].mxu1 %vm180_vm3, %v179_v7 }
  0x1c   : > { %528 = vmatprep.mubr.msk.bf16.mxu1 %vm589_vm0, %v588_v0 }
  0x1e   : > { %175 = vperm.xlu0 %579, %v172_v8  }
  0x88   : > { %v286_v12 = vpop.permute.xlu0 %285  ;;  %v234_v13 = vpop.permute.xlu1 %233 }
  0x89   : > { %v291_v14 = vsel %vm184_vm2, %v286_v12, 0  ;;  %v239_v16 = vsel %vm184_vm2, %v234_v13, 0 }
  0x8a   : > { %533 = vmatpush3.bf16.msra.mxu0 %v291_v14  ;;  %527 = vmatpush3.bf16.msra.mxu1 %v239_v16 }
  0x8b   : > { %538 = vmatprep.subr.bf16.mxu0 %v588_v0 }
  0x8c   : > { %v338_v18 = vpop.permute.xlu0 %337  ;;  %v390_v21 = vpop.permute.xlu1 %389 }
  0x8d   : > { %v343_v19 = vsel %vm184_vm2, %v338_v18, 0  ;;  %535 = vmatmul.mubr.msk.bf16.vlgmr.msra.gmra.mrb[0].mxu0 %vm180_vm3, %v284_v15  ;;  %529 = vmatmul.mubr.msk.bf16.vlgmr.msra.gmra.mrb[0].mxu1 %vm180_vm3, %v231_v17  ;;  %v395_v23 = vsel %vm184_vm2, %v390_v21, 0 }
  0x8e   : > { %539 = vmatpush3.bf16.msra.mxu0 %v343_v19  ;;  %540 = vmatprep.mubr.msk.bf16.mxu0 %vm589_vm0, %v588_v0 }
  0x8f   : > { %544 = vmatprep.subr.bf16.mxu0 %v588_v0 }
  0x99   : > { %541 = vmatmul.mubr.msk.bf16.vlgmr.msra.gmra.mrb[0].mxu0 %vm180_vm3, %v336_v22 }
  0x9a   : > { %545 = vmatpush3.bf16.msra.mxu0 %v395_v23  ;;  %546 = vmatprep.mubr.msk.bf16.mxu0 %vm589_vm0, %v588_v0 }
  0x9d   : > { %v176_v30 = vpop.permute.xlu0 %175 }
  0xa5   : > { %547 = vmatmul.mubr.msk.bf16.vlgmr.msra.gmra.mrb[0].mxu0 %vm180_vm3, %v388_v25 }
 0x160   : > { %v275_v26 = vpop.f32.mrb[0].mxu1 }
 0x161   : > { %v530_v27 = vpop.f32.mrb[1].mxu1  ;;  %v550_v31 = vadd.f32 %v275_v26, %v176_v30 }
 0x162   : > { %v278_v28 = vpop.f32.mrb[2].mxu1 }
 0x163   : > { %v531_v29 = vpop.f32.mrb[3].mxu1 }
 0x178   : > { %v431_v32 = vpop.f32.mrb[0].mxu0 }
 0x179   : > { %v551_v33 = vadd.f32 %v550_v31, %v431_v32  ;;  %v548_v34 = vpop.f32.mrb[1].mxu0 }
 0x17a   : > { %v434_v35 = vpop.f32.mrb[2].mxu0 }
 0x17b   : > { %438 = vst.msk [vmem:[%s165_s9] sm:$0xff] %vm180_vm3, %v551_v33  ;;  %v549_v36 = vpop.f32.mrb[3].mxu0 }
 0x17c PF: > { %s13_s12 = sadd.s32 1, %s586_s12  }
 0x17d   : > { %p10_p4 = scmp.ge.s32.totalorder %s13_s12, 4  }
 0x17f   :  { %12 = sbr.rel (!%p10_p4) target bundleno = 1 (0x1), region = 66 }

// kernel: fwd.115
= control target key start
LH: loop header
LB: loop body
LE: loop exit
PB: predicated region body
PF: predicated region fallthrough
CT: control target
= control target key end

     0   :  { %s615_s12 = smov 0   ;;  %s673_s0 = inlined_call_operand.vmem [shape: f32[2,8,28], index: 0, kind: input, shape index: {}]   ;;  %s674_s1 = inlined_call_operand.vmem [shape: f32[5,8,8], index: 1, kind: input, shape index: {}]   ;;  %s675_s2 = inlined_call_operand.vmem [shape: f32[8,1], index: 2, kind: input, shape index: {}]   ;;  %s676_s3 = inlined_call_operand.vmem [shape: f32[2,8,8], index: 3, kind: output, shape index: {}]  }
   0x1 LB: > { %s492_s13 = sadd.s32 4294967295, %s586_s12   ;;  %p496_p0 = scmp.ge.s32.totalorder %s586_s12, 1  ;;  %s586_s12 = sphi %s615_s12, %s13_s12  }
   0x2   : > { %p136_p1 = scmp.lt.s32.totalorder %s586_s12, 3 }
   0x4   : > { %p137_p2 = pnand %p496_p0, %p136_p1 }
   0x5   : > { %p158_p3 = scmp.lt.s32.totalorder (!%p137_p2), %s492_s13, 1  ;;  %v588_v0 = vmov (!%p137_p2), 0.0   ;;  %vm589_vm0 = vmmov (!%p137_p2), 0   ;;  %vm184_vm2 = vcmask (!%p137_p2), 1043456   ;;  %v178_v5 = vld [vmem:[%s674_s1] sm:$0xff] (!%p137_p2)  ;;  %s590_s20 = smov (!%p137_p2), 118  }
   0x6   : > { %140 = sbr.rel (%p137_p2) target bundleno = 380 (0x17c), region = 32  ;;  %520 = vmatprep.subr.bf16.mxu1 (!%p137_p2), %v588_v0  ;;  %522 = vmatprep.mubr.msk.bf16.mxu1 (!%p137_p2), %vm589_vm0, %v588_v0  ;;  %s591_s21 = smov (!%p137_p2), 123   ;;  %v179_v7 = vpack.c.bf16 (!%p137_p2), %v178_v5, %v178_v5  ;;  %vm180_vm3 = vcmask (!%p137_p2), 64512   ;;  %v172_v8 = vld [vmem:[%s675_s2] sm:$0xff] (!%p137_p2)  ;;  %v594_v9 = vmov (!%p137_p2), 0   ;;  %v502_v10 = vld [vmem:[%s674_s1 + $0x10] sm:$0xff] (!%p137_p2) }
   0x7   : > { %532 = vmatprep.subr.bf16.mxu0 (!%p137_p2), %v588_v0  ;;  %534 = vmatprep.mubr.msk.bf16.mxu0 (!%p137_p2), %vm589_vm0, %v588_v0  ;;  %s592_s22 = smov (!%p137_p2), 113   ;;  %s593_s23 = smov (!%p137_p2), 108   ;;  %v500_v11 = vld [vmem:[%s674_s1 + $0x8] sm:$0xff] (!%p137_p2)  ;;  %v284_v15 = vpack.c.bf16 (!%p137_p2), %v502_v10, %v502_v10  ;;  %v504_v20 = vld [vmem:[%s674_s1 + $0x18] sm:$0xff] (!%p137_p2)  ;;  %v506_v24 = vld [vmem:[%s674_s1 + $0x20] sm:$0xff] (!%p137_p2) }
   0x8   : > { %579 = vset.pattern.permute.xlu0 (!%p137_p2), %v594_v9  ;;  %v231_v17 = vpack.c.bf16 (!%p137_p2), %v500_v11, %v500_v11  ;;  %v336_v22 = vpack.c.bf16 (!%p137_p2), %v504_v20, %v504_v20  ;;  %v388_v25 = vpack.c.bf16 (!%p137_p2), %v506_v24, %v506_v24 }
   0xd   : > { %s678_s13 = smov (!%p158_p3, %s492_s13), 1 }
   0xe   : > { %s497_s14 = sshll.u32 %s678_s13, 3 }
   0xf   : > { %s161_s17 = scalar_lea.vmem %s673_s0, %s497_s14  ;;  %s165_s9 = scalar_lea.vmem %s676_s3, %s497_s14 }
  0x10   : > { %v167_v1 = vld [vmem:[%s161_s17] sm:$0xff] }
  0x11   : > { %vm168_vm1 = vcmp.ge.f32.partialorder %v167_v1, 0.0  ;;  %v169_v2 = vmul.f32 0.1, %v167_v1 }
  0x13   : > { %v170_v3 = vsel %vm168_vm1, %v167_v1, %v169_v2 }
  0x14   : > { %v171_v4 = vpack.c.bf16 %v170_v3, %v170_v3 }
  0x16   : > { %285 = vrot.lane.b32.xlu0 %v171_v4, %s590_s20  ;;  %233 = vrot.lane.b32.xlu1 %v171_v4, %s591_s21  ;;  %v186_v6 = vsel %vm184_vm2, %v171_v4, 0 }
  0x17   : > { %521 = vmatpush3.bf16.msra.mxu1 %v186_v6 }
  0x18   : > { %526 = vmatprep.subr.bf16.mxu1 %v588_v0 }
  0x1a   : > { %337 = vrot.lane.b32.xlu0 %v171_v4, %s592_s22  ;;  %389 = vrot.lane.b32.xlu1 %v171_v4, %s593_s23 }
  0x1b   : > { %523 = vmatmul.mubr.msk.bf16.vlgmr.msra.gmra.mrb[0].mxu1 %vm180_vm3, %v179_v7 }
  0x1c   : > { %528 = vmatprep.mubr.msk.bf16.mxu1 %vm589_vm0, %v588_v0 }
  0x1e   : > { %175 = vperm.xlu0 %579, %v172_v8  }
  0x88   : > { %v286_v12 = vpop.permute.xlu0 %285  ;;  %v234_v13 = vpop.permute.xlu1 %233 }
  0x89   : > { %v291_v14 = vsel %vm184_vm2, %v286_v12, 0  ;;  %v239_v16 = vsel %vm184_vm2, %v234_v13, 0 }
  0x8a   : > { %533 = vmatpush3.bf16.msra.mxu0 %v291_v14  ;;  %527 = vmatpush3.bf16.msra.mxu1 %v239_v16 }
  0x8b   : > { %538 = vmatprep.subr.bf16.mxu0 %v588_v0 }
  0x8c   : > { %v338_v18 = vpop.permute.xlu0 %337  ;;  %v390_v21 = vpop.permute.xlu1 %389 }
  0x8d   : > { %v343_v19 = vsel %vm184_vm2, %v338_v18, 0  ;;  %535 = vmatmul.mubr.msk.bf16.vlgmr.msra.gmra.mrb[0].mxu0 %vm180_vm3, %v284_v15  ;;  %529 = vmatmul.mubr.msk.bf16.vlgmr.msra.gmra.mrb[0].mxu1 %vm180_vm3, %v231_v17  ;;  %v395_v23 = vsel %vm184_vm2, %v390_v21, 0 }
  0x8e   : > { %539 = vmatpush3.bf16.msra.mxu0 %v343_v19  ;;  %540 = vmatprep.mubr.msk.bf16.mxu0 %vm589_vm0, %v588_v0 }
  0x8f   : > { %544 = vmatprep.subr.bf16.mxu0 %v588_v0 }
  0x99   : > { %541 = vmatmul.mubr.msk.bf16.vlgmr.msra.gmra.mrb[0].mxu0 %vm180_vm3, %v336_v22 }
  0x9a   : > { %545 = vmatpush3.bf16.msra.mxu0 %v395_v23  ;;  %546 = vmatprep.mubr.msk.bf16.mxu0 %vm589_vm0, %v588_v0 }
  0x9d   : > { %v176_v30 = vpop.permute.xlu0 %175 }
  0xa5   : > { %547 = vmatmul.mubr.msk.bf16.vlgmr.msra.gmra.mrb[0].mxu0 %vm180_vm3, %v388_v25 }
 0x160   : > { %v275_v26 = vpop.f32.mrb[0].mxu1 }
 0x161   : > { %v530_v27 = vpop.f32.mrb[1].mxu1  ;;  %v550_v31 = vadd.f32 %v275_v26, %v176_v30 }
 0x162   : > { %v278_v28 = vpop.f32.mrb[2].mxu1 }
 0x163   : > { %v531_v29 = vpop.f32.mrb[3].mxu1 }
 0x178   : > { %v431_v32 = vpop.f32.mrb[0].mxu0 }
 0x179   : > { %v551_v33 = vadd.f32 %v550_v31, %v431_v32  ;;  %v548_v34 = vpop.f32.mrb[1].mxu0 }
 0x17a   : > { %v434_v35 = vpop.f32.mrb[2].mxu0 }
 0x17b   : > { %438 = vst.msk [vmem:[%s165_s9] sm:$0xff] %vm180_vm3, %v551_v33  ;;  %v549_v36 = vpop.f32.mrb[3].mxu0 }
 0x17c PF: > { %s13_s12 = sadd.s32 1, %s586_s12  }
 0x17d   : > { %p10_p4 = scmp.ge.s32.totalorder %s13_s12, 4  }
 0x17f   :  { %12 = sbr.rel (!%p10_p4) target bundleno = 1 (0x1), region = 66 }

// kernel: fwd.117
= control target key start
LH: loop header
LB: loop body
LE: loop exit
PB: predicated region body
PF: predicated region fallthrough
CT: control target
= control target key end

     0   :  { %s549_s12 = smov 0   ;;  %s597_s0 = inlined_call_operand.vmem [shape: f32[2,8,19], index: 0, kind: input, shape index: {}]   ;;  %s598_s1 = inlined_call_operand.vmem [shape: f32[4,4,8], index: 1, kind: input, shape index: {}]   ;;  %s599_s2 = inlined_call_operand.vmem [shape: f32[4,1], index: 2, kind: input, shape index: {}]   ;;  %s600_s3 = inlined_call_operand.vmem [shape: f32[2,4,16], index: 3, kind: output, shape index: {}]  }
   0x1 LB: > { %s441_s13 = sadd.s32 4294967295, %s521_s12   ;;  %p445_p0 = scmp.ge.s32.totalorder %s521_s12, 1  ;;  %s521_s12 = sphi %s549_s12, %s13_s12  }
   0x2   : > { %p136_p1 = scmp.lt.s32.totalorder %s521_s12, 3 }
   0x4   : > { %p137_p2 = pnand %p445_p0, %p136_p1 }
   0x5   : > { %p158_p3 = scmp.lt.s32.totalorder (!%p137_p2), %s441_s13, 1  ;;  %v523_v0 = vmov (!%p137_p2), 0.0   ;;  %vm524_vm0 = vmmov (!%p137_p2), 0   ;;  %vm184_vm2 = vcmask (!%p137_p2), 1043456   ;;  %v178_v4 = vld [vmem:[%s598_s1] sm:$0xf] (!%p137_p2) }
   0x6   : > { %140 = sbr.rel (%p137_p2) target bundleno = 368 (0x170), region = 32  ;;  %465 = vmatprep.subr.bf16.mxu1 (!%p137_p2), %v523_v0  ;;  %467 = vmatprep.mubr.msk.bf16.mxu1 (!%p137_p2), %vm524_vm0, %v523_v0  ;;  %s525_s20 = smov (!%p137_p2), 126   ;;  %v179_v7 = vpack.c.bf16 (!%p137_p2), %v178_v4, %v178_v4  ;;  %vm180_vm3 = vcmask (!%p137_p2), 64512   ;;  %v172_v8 = vld [vmem:[%s599_s2] sm:$0xf] (!%p137_p2)  ;;  %v528_v9 = vmov (!%p137_p2), 0  }
   0x7   : > { %477 = vmatprep.subr.bf16.mxu0 (!%p137_p2), %v523_v0  ;;  %479 = vmatprep.mubr.msk.bf16.mxu0 (!%p137_p2), %vm524_vm0, %v523_v0  ;;  %s526_s21 = smov (!%p137_p2), 125   ;;  %s527_s24 = smov (!%p137_p2), 127   ;;  %v451_v10 = vld [vmem:[%s598_s1 + $0x8] sm:$0xf] (!%p137_p2)  ;;  %v449_v15 = vld [vmem:[%s598_s1 + $0x4] sm:$0xf] (!%p137_p2) }
   0x8   : > { %513 = vset.pattern.permute.xlu1 (!%p137_p2), %v528_v9  ;;  %514 = vset.pattern.permute.xlu0 (!%p137_p2), %v528_v9  ;;  %v284_v14 = vpack.c.bf16 (!%p137_p2), %v451_v10, %v451_v10  ;;  %v231_v19 = vpack.c.bf16 (!%p137_p2), %v449_v15, %v449_v15  ;;  %v453_v20 = vld [vmem:[%s598_s1 + $0xc] sm:$0xf] (!%p137_p2)  ;;  %vm386_vm4 = vcmask (!%p137_p2), 125952  }
   0x9   : > { %v336_v21 = vpack.c.bf16 (!%p137_p2), %v453_v20, %v453_v20 }
   0xd   : > { %s602_s13 = smov (!%p158_p3, %s441_s13), 1 }
   0xe   : > { %s446_s14 = sshll.u32 %s602_s13, 3  ;;  %s447_s4 = sshll.u32 %s602_s13, 2 }
   0xf   : > { %s161_s17 = scalar_lea.vmem %s597_s0, %s446_s14  ;;  %s165_s7 = scalar_lea.vmem %s600_s3, %s447_s4 }
  0x10   : > { %v167_v1 = vld [vmem:[%s161_s17] sm:$0xff] }
  0x11   : > { %vm168_vm1 = vcmp.ge.f32.partialorder %v167_v1, 0.0  ;;  %v169_v2 = vmul.f32 0.1, %v167_v1 }
  0x13   : > { %v170_v3 = vsel %vm168_vm1, %v167_v1, %v169_v2 }
  0x14   : > { %v171_v5 = vpack.c.bf16 %v170_v3, %v170_v3 }
  0x16   : > { %285 = vrot.lane.b32.xlu0 %v171_v5, %s525_s20  ;;  %337 = vrot.lane.b32.xlu1 %v171_v5, %s526_s21  ;;  %v186_v6 = vsel %vm184_vm2, %v171_v5, 0 }
  0x17   : > { %466 = vmatpush3.bf16.msra.mxu1 %v186_v6 }
  0x18   : > { %471 = vmatprep.subr.bf16.mxu1 %v523_v0 }
  0x1a   : > { %233 = vrot.lane.b32.xlu0 %v171_v5, %s527_s24  ;;  %468 = vmatmul.mubr.msk.bf16.vlgmr.msra.gmra.mrb[0].mxu1 %vm180_vm3, %v179_v7 }
  0x1b   : > { %473 = vmatprep.mubr.msk.bf16.mxu1 %vm524_vm0, %v523_v0  ;;  %175 = vperm.xlu1 %513, %v172_v8  }
  0x88   : > { %v286_v11 = vpop.permute.xlu0 %285  ;;  %v338_v12 = vpop.permute.xlu1 %337 }
  0x89   : > { %v291_v13 = vsel %vm184_vm2, %v286_v11, 0  ;;  %v343_v16 = vsel %vm184_vm2, %v338_v12, 0 }
  0x8a   : > { %478 = vmatpush3.bf16.msra.mxu0 %v291_v13 }
  0x8b   : > { %483 = vmatprep.subr.bf16.mxu0 %v523_v0 }
  0x8c   : > { %v234_v17 = vpop.permute.xlu0 %233 }
  0x8d   : > { %v239_v18 = vsel %vm184_vm2, %v234_v17, 0  ;;  %480 = vmatmul.mubr.msk.bf16.vlgmr.msra.gmra.mrb[0].mxu0 %vm180_vm3, %v284_v14 }
  0x8e   : > { %472 = vmatpush3.bf16.msra.mxu1 %v239_v18  ;;  %484 = vmatpush3.bf16.msra.mxu0 %v343_v16 }
  0x8f   : > { %485 = vmatprep.mubr.msk.bf16.mxu0 %vm524_vm0, %v523_v0 }
  0x91   : > { %474 = vmatmul.mubr.msk.bf16.vlgmr.msra.gmra.mrb[0].mxu1 %vm180_vm3, %v231_v19 }
  0x99   : > { %486 = vmatmul.mubr.msk.bf16.vlgmr.msra.gmra.mrb[0].mxu0 %vm180_vm3, %v336_v21 }
  0x9a   : > { %v176_v26 = vpop.permute.xlu1 %175 }
 0x164   : > { %v275_v22 = vpop.f32.mrb[0].mxu1 }
 0x165   : > { %v475_v23 = vpop.f32.mrb[1].mxu1  ;;  %v489_v27 = vadd.f32 %v275_v22, %v176_v26 }
 0x166   : > { %v278_v24 = vpop.f32.mrb[2].mxu1 }
 0x167   : > { %v476_v25 = vpop.f32.mrb[3].mxu1 }
 0x16c   : > { %v379_v28 = vpop.f32.mrb[0].mxu0 }
 0x16d   : > { %v490_v29 = vadd.f32 %v489_v27, %v379_v28  ;;  %v487_v30 = vpop.f32.mrb[1].mxu0 }
 0x16e   : > { %v382_v31 = vpop.f32.mrb[2].mxu0 }
 0x16f   : > { %387 = vst.msk [vmem:[%s165_s7] sm:$0xf] %vm386_vm4, %v490_v29  ;;  %v488_v32 = vpop.f32.mrb[3].mxu0 }
 0x170 PF: > { %s13_s12 = sadd.s32 1, %s521_s12  }
 0x171   : > { %p10_p4 = scmp.ge.s32.totalorder %s13_s12, 4  }
 0x173   :  { %12 = sbr.rel (!%p10_p4) target bundleno = 1 (0x1), region = 65 }

// kernel: fwd.118
= control target key start
LH: loop header
LB: loop body
LE: loop exit
PB: predicated region body
PF: predicated region fallthrough
CT: control target
= control target key end

     0   :  { %s337_s12 = smov 0   ;;  %s360_s0 = inlined_call_operand.vmem [shape: f32[2,1,16], index: 0, kind: input, shape index: {}]   ;;  %s361_s1 = inlined_call_operand.vmem [shape: f32[1,4,1], index: 1, kind: input, shape index: {}]   ;;  %s362_s2 = inlined_call_operand.vmem [shape: f32[4,1], index: 2, kind: input, shape index: {}]   ;;  %s363_s3 = inlined_call_operand.vmem [shape: f32[2,4,16], index: 3, kind: output, shape index: {}]  }
   0x1 LB: > { %s277_s13 = sadd.s32 4294967295, %s312_s12   ;;  %p281_p0 = scmp.ge.s32.totalorder %s312_s12, 1  ;;  %s312_s12 = sphi %s337_s12, %s13_s12  }
   0x2   : > { %p135_p1 = scmp.lt.s32.totalorder %s312_s12, 3 }
   0x4   : > { %p136_p2 = pnand %p281_p0, %p135_p1 }
   0x5   : > { %p156_p3 = scmp.lt.s32.totalorder (!%p136_p2), %s277_s13, 1  ;;  %v314_v0 = vmov (!%p136_p2), 0.0   ;;  %vm315_vm0 = vmmov (!%p136_p2), 0   ;;  %v166_v1 = vld [vmem:[%s362_s2] sm:$0xf] (!%p136_p2)  ;;  %vm178_vm1 = vcmask (!%p136_p2), 1040384  }
   0x6   : > { %139 = sbr.rel (%p136_p2) target bundleno = 238 (0xee), region = 32  ;;  %288 = vmatprep.subr.bf16.mxu0 (!%p136_p2), %v314_v0  ;;  %290 = vmatprep.mubr.msk.bf16.mxu0 (!%p136_p2), %vm315_vm0, %v314_v0  ;;  %v316_v2 = vmov (!%p136_p2), 0   ;;  %v172_v6 = vld [vmem:[%s361_s1] sm:$0xf] (!%p136_p2)  ;;  %vm174_vm2 = vcmask (!%p136_p2), 7168   ;;  %vm225_vm3 = vcmask (!%p136_p2), 125952  }
   0x7   : > { %305 = vset.pattern.permute.xlu0 (!%p136_p2), %v316_v2  ;;  %v180_v4 = vsel (!%p136_p2), %vm178_vm1, 65535, %v316_v2  ;;  %v173_v8 = vpack.c.bf16 (!%p136_p2), %v172_v6, %v172_v6 }
   0x8   : > { %169 = vperm.xlu0 (!%p136_p2), %305, %v166_v1  }
   0xd   : > { %s365_s13 = smov (!%p156_p3, %s277_s13), 1 }
   0xe   : > { %s158_s18 = scalar_lea.vmem %s360_s0, %s365_s13  ;;  %s282_s21 = sshll.u32 %s365_s13, 2 }
   0xf   : > { %v164_v3 = vld [vmem:[%s158_s18] sm:$0x1]  ;;  %s162_s24 = scalar_lea.vmem %s363_s3, %s282_s21 }
  0x10   : > { %v165_v5 = vpack.c.bf16 %v164_v3, %v164_v3 }
  0x12   : > { %v182_v7 = vand.u32 %v180_v4, %v165_v5 }
  0x14   : > { %289 = vmatpush3.bf16.msra.mxu0 %v182_v7 }
  0x17   : > { %291 = vmatmul.mubr.msk.bf16.vlgmr.msra.gmra.mrb[0].mxu0 %vm174_vm2, %v173_v8 }
  0x87   : > { %v170_v9 = vpop.permute.xlu0 %169 }
  0xea   : > { %v218_v10 = vpop.f32.mrb[0].mxu0 }
  0xeb   : > { %v224_v11 = vadd.f32 %v218_v10, %v170_v9  ;;  %v292_v12 = vpop.f32.mrb[1].mxu0 }
  0xec   : > { %v221_v13 = vpop.f32.mrb[2].mxu0 }
  0xed   : > { %226 = vst.msk [vmem:[%s162_s24] sm:$0xf] %vm225_vm3, %v224_v11  ;;  %v293_v14 = vpop.f32.mrb[3].mxu0 }
  0xee PF: > { %s13_s12 = sadd.s32 1, %s312_s12  }
  0xef   : > { %p10_p4 = scmp.ge.s32.totalorder %s13_s12, 4  }
  0xf1   :  { %12 = sbr.rel (!%p10_p4) target bundleno = 1 (0x1), region = 62 }

// kernel: fwd.125
= control target key start
LH: loop header
LB: loop body
LE: loop exit
PB: predicated region body
PF: predicated region fallthrough
CT: control target
= control target key end

     0   :  { %s616_s12 = smov 0   ;;  %s673_s0 = inlined_call_operand.vmem [shape: f32[2,4,20], index: 0, kind: input, shape index: {}]   ;;  %s674_s1 = inlined_call_operand.vmem [shape: f32[5,4,4], index: 1, kind: input, shape index: {}]   ;;  %s675_s2 = inlined_call_operand.vmem [shape: f32[4,1], index: 2, kind: input, shape index: {}]   ;;  %s676_s3 = inlined_call_operand.vmem [shape: f32[2,4,16], index: 3, kind: output, shape index: {}]  }
   0x1 LB: > { %s493_s13 = sadd.s32 4294967295, %s587_s12   ;;  %p497_p0 = scmp.ge.s32.totalorder %s587_s12, 1  ;;  %s587_s12 = sphi %s616_s12, %s13_s12  }
   0x2   : > { %p136_p1 = scmp.lt.s32.totalorder %s587_s12, 3 }
   0x4   : > { %p137_p2 = pnand %p497_p0, %p136_p1 }
   0x5   : > { %p158_p3 = scmp.lt.s32.totalorder (!%p137_p2), %s493_s13, 1  ;;  %v589_v0 = vmov (!%p137_p2), 0.0   ;;  %vm590_vm0 = vmmov (!%p137_p2), 0   ;;  %vm184_vm2 = vcmask (!%p137_p2), 1041408   ;;  %v178_v5 = vld [vmem:[%s674_s1] sm:$0xf] (!%p137_p2) }
   0x6   : > { %140 = sbr.rel (%p137_p2) target bundleno = 380 (0x17c), region = 32  ;;  %521 = vmatprep.subr.bf16.mxu1 (!%p137_p2), %v589_v0  ;;  %523 = vmatprep.mubr.msk.bf16.mxu1 (!%p137_p2), %vm590_vm0, %v589_v0  ;;  %s591_s20 = smov (!%p137_p2), 126   ;;  %v179_v7 = vpack.c.bf16 (!%p137_p2), %v178_v5, %v178_v5  ;;  %vm180_vm3 = vcmask (!%p137_p2), 31744   ;;  %v172_v8 = vld [vmem:[%s675_s2] sm:$0xf] (!%p137_p2)  ;;  %v595_v9 = vmov (!%p137_p2), 0  }
   0x7   : > { %533 = vmatprep.subr.bf16.mxu0 (!%p137_p2), %v589_v0  ;;  %535 = vmatprep.mubr.msk.bf16.mxu0 (!%p137_p2), %vm590_vm0, %v589_v0  ;;  %s592_s21 = smov (!%p137_p2), 127   ;;  %s593_s22 = smov (!%p137_p2), 125   ;;  %v503_v10 = vld [vmem:[%s674_s1 + $0x8] sm:$0xf] (!%p137_p2)  ;;  %v501_v11 = vld [vmem:[%s674_s1 + $0x4] sm:$0xf] (!%p137_p2) }
   0x8   : > { %s594_s23 = smov (!%p137_p2), 124   ;;  %580 = vset.pattern.permute.xlu0 (!%p137_p2), %v595_v9  ;;  %v284_v15 = vpack.c.bf16 (!%p137_p2), %v503_v10, %v503_v10  ;;  %v231_v17 = vpack.c.bf16 (!%p137_p2), %v501_v11, %v501_v11  ;;  %v505_v20 = vld [vmem:[%s674_s1 + $0xc] sm:$0xf] (!%p137_p2)  ;;  %v507_v24 = vld [vmem:[%s674_s1 + $0x10] sm:$0xf] (!%p137_p2)  ;;  %vm438_vm4 = vcmask (!%p137_p2), 125952  }
   0x9   : > { %v336_v22 = vpack.c.bf16 (!%p137_p2), %v505_v20, %v505_v20  ;;  %v388_v25 = vpack.c.bf16 (!%p137_p2), %v507_v24, %v507_v24 }
   0xd   : > { %s678_s13 = smov (!%p158_p3, %s493_s13), 1 }
   0xe   : > { %s498_s14 = sshll.u32 %s678_s13, 2 }
   0xf   : > { %s161_s17 = scalar_lea.vmem %s673_s0, %s498_s14  ;;  %s165_s9 = scalar_lea.vmem %s676_s3, %s498_s14 }
  0x10   : > { %v167_v1 = vld [vmem:[%s161_s17] sm:$0xf] }
  0x11   : > { %vm168_vm1 = vcmp.ge.f32.partialorder %v167_v1, 0.0  ;;  %v169_v2 = vmul.f32 0.1, %v167_v1 }
  0x13   : > { %v170_v3 = vsel %vm168_vm1, %v167_v1, %v169_v2 }
  0x14   : > { %v171_v4 = vpack.c.bf16 %v170_v3, %v170_v3 }
  0x16   : > { %285 = vrot.lane.b32.xlu0 %v171_v4, %s591_s20  ;;  %233 = vrot.lane.b32.xlu1 %v171_v4, %s592_s21  ;;  %v186_v6 = vsel %vm184_vm2, %v171_v4, 0 }
  0x17   : > { %522 = vmatpush3.bf16.msra.mxu1 %v186_v6 }
  0x18   : > { %527 = vmatprep.subr.bf16.mxu1 %v589_v0 }
  0x1a   : > { %337 = vrot.lane.b32.xlu0 %v171_v4, %s593_s22  ;;  %389 = vrot.lane.b32.xlu1 %v171_v4, %s594_s23 }
  0x1b   : > { %524 = vmatmul.mubr.msk.bf16.vlgmr.msra.gmra.mrb[0].mxu1 %vm180_vm3, %v179_v7 }
  0x1c   : > { %529 = vmatprep.mubr.msk.bf16.mxu1 %vm590_vm0, %v589_v0 }
  0x1e   : > { %175 = vperm.xlu0 %580, %v172_v8  }
  0x88   : > { %v286_v12 = vpop.permute.xlu0 %285  ;;  %v234_v13 = vpop.permute.xlu1 %233 }
  0x89   : > { %v291_v14 = vsel %vm184_vm2, %v286_v12, 0  ;;  %v239_v16 = vsel %vm184_vm2, %v234_v13, 0 }
  0x8a   : > { %534 = vmatpush3.bf16.msra.mxu0 %v291_v14  ;;  %528 = vmatpush3.bf16.msra.mxu1 %v239_v16 }
  0x8b   : > { %539 = vmatprep.subr.bf16.mxu0 %v589_v0 }
  0x8c   : > { %v338_v18 = vpop.permute.xlu0 %337  ;;  %v390_v21 = vpop.permute.xlu1 %389 }
  0x8d   : > { %v343_v19 = vsel %vm184_vm2, %v338_v18, 0  ;;  %536 = vmatmul.mubr.msk.bf16.vlgmr.msra.gmra.mrb[0].mxu0 %vm180_vm3, %v284_v15  ;;  %530 = vmatmul.mubr.msk.bf16.vlgmr.msra.gmra.mrb[0].mxu1 %vm180_vm3, %v231_v17  ;;  %v395_v23 = vsel %vm184_vm2, %v390_v21, 0 }
  0x8e   : > { %540 = vmatpush3.bf16.msra.mxu0 %v343_v19  ;;  %541 = vmatprep.mubr.msk.bf16.mxu0 %vm590_vm0, %v589_v0 }
  0x8f   : > { %545 = vmatprep.subr.bf16.mxu0 %v589_v0 }
  0x99   : > { %542 = vmatmul.mubr.msk.bf16.vlgmr.msra.gmra.mrb[0].mxu0 %vm180_vm3, %v336_v22 }
  0x9a   : > { %546 = vmatpush3.bf16.msra.mxu0 %v395_v23  ;;  %547 = vmatprep.mubr.msk.bf16.mxu0 %vm590_vm0, %v589_v0 }
  0x9d   : > { %v176_v30 = vpop.permute.xlu0 %175 }
  0xa5   : > { %548 = vmatmul.mubr.msk.bf16.vlgmr.msra.gmra.mrb[0].mxu0 %vm180_vm3, %v388_v25 }
 0x160   : > { %v275_v26 = vpop.f32.mrb[0].mxu1 }
 0x161   : > { %v531_v27 = vpop.f32.mrb[1].mxu1  ;;  %v551_v31 = vadd.f32 %v275_v26, %v176_v30 }
 0x162   : > { %v278_v28 = vpop.f32.mrb[2].mxu1 }
 0x163   : > { %v532_v29 = vpop.f32.mrb[3].mxu1 }
 0x178   : > { %v431_v32 = vpop.f32.mrb[0].mxu0 }
 0x179   : > { %v552_v33 = vadd.f32 %v551_v31, %v431_v32  ;;  %v549_v34 = vpop.f32.mrb[1].mxu0 }
 0x17a   : > { %v434_v35 = vpop.f32.mrb[2].mxu0 }
 0x17b   : > { %439 = vst.msk [vmem:[%s165_s9] sm:$0xf] %vm438_vm4, %v552_v33  ;;  %v550_v36 = vpop.f32.mrb[3].mxu0 }
 0x17c PF: > { %s13_s12 = sadd.s32 1, %s587_s12  }
 0x17d   : > { %p10_p4 = scmp.ge.s32.totalorder %s13_s12, 4  }
 0x17f   :  { %12 = sbr.rel (!%p10_p4) target bundleno = 1 (0x1), region = 66 }

// kernel: fwd.119
= control target key start
LH: loop header
LB: loop body
LE: loop exit
PB: predicated region body
PF: predicated region fallthrough
CT: control target
= control target key end

     0   :  { %s481_s12 = smov 0   ;;  %s526_s0 = inlined_call_operand.vmem [shape: f32[2,4,18], index: 0, kind: input, shape index: {}]   ;;  %s527_s1 = inlined_call_operand.vmem [shape: f32[3,4,4], index: 1, kind: input, shape index: {}]   ;;  %s528_s2 = inlined_call_operand.vmem [shape: f32[4,1], index: 2, kind: input, shape index: {}]   ;;  %s529_s3 = inlined_call_operand.vmem [shape: f32[2,4,16], index: 3, kind: output, shape index: {}]  }
   0x1 LB: > { %s389_s13 = sadd.s32 4294967295, %s454_s12   ;;  %p393_p0 = scmp.ge.s32.totalorder %s454_s12, 1  ;;  %s454_s12 = sphi %s481_s12, %s13_s12  }
   0x2   : > { %p136_p1 = scmp.lt.s32.totalorder %s454_s12, 3 }
   0x4   : > { %p137_p2 = pnand %p393_p0, %p136_p1 }
   0x5   : > { %p158_p3 = scmp.lt.s32.totalorder (!%p137_p2), %s389_s13, 1  ;;  %v456_v0 = vmov (!%p137_p2), 0.0   ;;  %vm457_vm0 = vmmov (!%p137_p2), 0   ;;  %v178_v4 = vld [vmem:[%s527_s1] sm:$0xf] (!%p137_p2)  ;;  %vm184_vm2 = vcmask (!%p137_p2), 1041408  }
   0x6   : > { %140 = sbr.rel (%p137_p2) target bundleno = 368 (0x170), region = 32  ;;  %415 = vmatprep.subr.bf16.mxu0 (!%p137_p2), %v456_v0  ;;  %417 = vmatprep.mubr.msk.bf16.mxu0 (!%p137_p2), %vm457_vm0, %v456_v0  ;;  %s458_s20 = smov (!%p137_p2), 127   ;;  %v179_v7 = vpack.c.bf16 (!%p137_p2), %v178_v4, %v178_v4  ;;  %vm180_vm3 = vcmask (!%p137_p2), 31744   ;;  %v172_v8 = vld [vmem:[%s528_s2] sm:$0xf] (!%p137_p2)  ;;  %v460_v9 = vmov (!%p137_p2), 0  }
   0x7   : > { %409 = vmatprep.subr.bf16.mxu1 (!%p137_p2), %v456_v0  ;;  %411 = vmatprep.mubr.msk.bf16.mxu1 (!%p137_p2), %vm457_vm0, %v456_v0  ;;  %s459_s23 = smov (!%p137_p2), 126   ;;  %v397_v10 = vld [vmem:[%s527_s1 + $0x4] sm:$0xf] (!%p137_p2)  ;;  %v399_v16 = vld [vmem:[%s527_s1 + $0x8] sm:$0xf] (!%p137_p2)  ;;  %vm334_vm4 = vcmask (!%p137_p2), 125952  }
   0x8   : > { %446 = vset.pattern.permute.xlu1 (!%p137_p2), %v460_v9  ;;  %447 = vset.pattern.permute.xlu0 (!%p137_p2), %v460_v9  ;;  %v231_v13 = vpack.c.bf16 (!%p137_p2), %v397_v10, %v397_v10  ;;  %v284_v17 = vpack.c.bf16 (!%p137_p2), %v399_v16, %v399_v16 }
   0x9   : > { %175 = vperm.xlu1 (!%p137_p2), %446, %v172_v8  }
   0xd   : > { %s531_s13 = smov (!%p158_p3, %s389_s13), 1 }
   0xe   : > { %s394_s14 = sshll.u32 %s531_s13, 2 }
   0xf   : > { %s161_s17 = scalar_lea.vmem %s526_s0, %s394_s14  ;;  %s165_s30 = scalar_lea.vmem %s529_s3, %s394_s14 }
  0x10   : > { %v167_v1 = vld [vmem:[%s161_s17] sm:$0xf] }
  0x11   : > { %vm168_vm1 = vcmp.ge.f32.partialorder %v167_v1, 0.0  ;;  %v169_v2 = vmul.f32 0.1, %v167_v1 }
  0x13   : > { %v170_v3 = vsel %vm168_vm1, %v167_v1, %v169_v2 }
  0x14   : > { %v171_v5 = vpack.c.bf16 %v170_v3, %v170_v3 }
  0x16   : > { %233 = vrot.lane.b32.xlu0 %v171_v5, %s458_s20  ;;  %v186_v6 = vsel %vm184_vm2, %v171_v5, 0 }
  0x17   : > { %410 = vmatpush3.bf16.msra.mxu1 %v186_v6 }
  0x1a   : > { %285 = vrot.lane.b32.xlu0 %v171_v5, %s459_s23  ;;  %412 = vmatmul.mubr.msk.bf16.vlgmr.msra.gmra.mrb[0].mxu1 %vm180_vm3, %v179_v7 }
  0x88   : > { %v234_v11 = vpop.permute.xlu0 %233  ;;  %v176_v22 = vpop.permute.xlu1 %175 }
  0x89   : > { %v239_v12 = vsel %vm184_vm2, %v234_v11, 0 }
  0x8a   : > { %416 = vmatpush3.bf16.msra.mxu0 %v239_v12 }
  0x8b   : > { %421 = vmatprep.subr.bf16.mxu0 %v456_v0 }
  0x8c   : > { %v286_v14 = vpop.permute.xlu0 %285 }
  0x8d   : > { %v291_v15 = vsel %vm184_vm2, %v286_v14, 0  ;;  %418 = vmatmul.mubr.msk.bf16.vlgmr.msra.gmra.mrb[0].mxu0 %vm180_vm3, %v231_v13 }
  0x8e   : > { %422 = vmatpush3.bf16.msra.mxu0 %v291_v15  ;;  %423 = vmatprep.mubr.msk.bf16.mxu0 %vm457_vm0, %v456_v0 }
  0x99   : > { %424 = vmatmul.mubr.msk.bf16.vlgmr.msra.gmra.mrb[0].mxu0 %vm180_vm3, %v284_v17 }
  0xed   : > { %v222_v18 = vpop.f32.mrb[0].mxu1 }
  0xee   : > { %v413_v19 = vpop.f32.mrb[1].mxu1  ;;  %v228_v23 = vadd.f32 %v222_v18, %v176_v22 }
  0xef   : > { %v225_v20 = vpop.f32.mrb[2].mxu1 }
  0xf0   : > { %v414_v21 = vpop.f32.mrb[3].mxu1 }
 0x16c   : > { %v327_v24 = vpop.f32.mrb[0].mxu0 }
 0x16d   : > { %v428_v25 = vadd.f32 %v327_v24, %v228_v23  ;;  %v425_v26 = vpop.f32.mrb[1].mxu0 }
 0x16e   : > { %v330_v27 = vpop.f32.mrb[2].mxu0 }
 0x16f   : > { %335 = vst.msk [vmem:[%s165_s30] sm:$0xf] %vm334_vm4, %v428_v25  ;;  %v426_v28 = vpop.f32.mrb[3].mxu0 }
 0x170 PF: > { %s13_s12 = sadd.s32 1, %s454_s12  }
 0x171   : > { %p10_p4 = scmp.ge.s32.totalorder %s13_s12, 4  }
 0x173   :  { %12 = sbr.rel (!%p10_p4) target bundleno = 1 (0x1), region = 64 }

// kernel: fwd.127
= control target key start
LH: loop header
LB: loop body
LE: loop exit
PB: predicated region body
PF: predicated region fallthrough
CT: control target
= control target key end

     0   :  { %s616_s12 = smov 0   ;;  %s673_s0 = inlined_call_operand.vmem [shape: f32[2,4,28], index: 0, kind: input, shape index: {}]   ;;  %s674_s1 = inlined_call_operand.vmem [shape: f32[5,4,4], index: 1, kind: input, shape index: {}]   ;;  %s675_s2 = inlined_call_operand.vmem [shape: f32[4,1], index: 2, kind: input, shape index: {}]   ;;  %s676_s3 = inlined_call_operand.vmem [shape: f32[2,4,16], index: 3, kind: output, shape index: {}]  }
   0x1 LB: > { %s493_s13 = sadd.s32 4294967295, %s587_s12   ;;  %p497_p0 = scmp.ge.s32.totalorder %s587_s12, 1  ;;  %s587_s12 = sphi %s616_s12, %s13_s12  }
   0x2   : > { %p136_p1 = scmp.lt.s32.totalorder %s587_s12, 3 }
   0x4   : > { %p137_p2 = pnand %p497_p0, %p136_p1 }
   0x5   : > { %p158_p3 = scmp.lt.s32.totalorder (!%p137_p2), %s493_s13, 1  ;;  %v589_v0 = vmov (!%p137_p2), 0.0   ;;  %vm590_vm0 = vmmov (!%p137_p2), 0   ;;  %vm184_vm2 = vcmask (!%p137_p2), 1041408   ;;  %v178_v5 = vld [vmem:[%s674_s1] sm:$0xf] (!%p137_p2) }
   0x6   : > { %140 = sbr.rel (%p137_p2) target bundleno = 380 (0x17c), region = 32  ;;  %521 = vmatprep.subr.bf16.mxu1 (!%p137_p2), %v589_v0  ;;  %523 = vmatprep.mubr.msk.bf16.mxu1 (!%p137_p2), %vm590_vm0, %v589_v0  ;;  %s591_s20 = smov (!%p137_p2), 122   ;;  %v179_v7 = vpack.c.bf16 (!%p137_p2), %v178_v5, %v178_v5  ;;  %vm180_vm3 = vcmask (!%p137_p2), 31744   ;;  %v172_v8 = vld [vmem:[%s675_s2] sm:$0xf] (!%p137_p2)  ;;  %v595_v9 = vmov (!%p137_p2), 0  }
   0x7   : > { %533 = vmatprep.subr.bf16.mxu0 (!%p137_p2), %v589_v0  ;;  %535 = vmatprep.mubr.msk.bf16.mxu0 (!%p137_p2), %vm590_vm0, %v589_v0  ;;  %s592_s21 = smov (!%p137_p2), 125   ;;  %s593_s22 = smov (!%p137_p2), 119   ;;  %v503_v10 = vld [vmem:[%s674_s1 + $0x8] sm:$0xf] (!%p137_p2)  ;;  %v501_v11 = vld [vmem:[%s674_s1 + $0x4] sm:$0xf] (!%p137_p2) }
   0x8   : > { %s594_s23 = smov (!%p137_p2), 116   ;;  %580 = vset.pattern.permute.xlu0 (!%p137_p2), %v595_v9  ;;  %v284_v15 = vpack.c.bf16 (!%p137_p2), %v503_v10, %v503_v10  ;;  %v231_v17 = vpack.c.bf16 (!%p137_p2), %v501_v11, %v501_v11  ;;  %v505_v20 = vld [vmem:[%s674_s1 + $0xc] sm:$0xf] (!%p137_p2)  ;;  %v507_v24 = vld [vmem:[%s674_s1 + $0x10] sm:$0xf] (!%p137_p2)  ;;  %vm438_vm4 = vcmask (!%p137_p2), 125952  }
   0x9   : > { %v336_v22 = vpack.c.bf16 (!%p137_p2), %v505_v20, %v505_v20  ;;  %v388_v25 = vpack.c.bf16 (!%p137_p2), %v507_v24, %v507_v24 }
   0xd   : > { %s678_s13 = smov (!%p158_p3, %s493_s13), 1 }
   0xe   : > { %s498_s14 = sshll.u32 %s678_s13, 2 }
   0xf   : > { %s161_s17 = scalar_lea.vmem %s673_s0, %s498_s14  ;;  %s165_s9 = scalar_lea.vmem %s676_s3, %s498_s14 }
  0x10   : > { %v167_v1 = vld [vmem:[%s161_s17] sm:$0xf] }
  0x11   : > { %vm168_vm1 = vcmp.ge.f32.partialorder %v167_v1, 0.0  ;;  %v169_v2 = vmul.f32 0.1, %v167_v1 }
  0x13   : > { %v170_v3 = vsel %vm168_vm1, %v167_v1, %v169_v2 }
  0x14   : > { %v171_v4 = vpack.c.bf16 %v170_v3, %v170_v3 }
  0x16   : > { %285 = vrot.lane.b32.xlu0 %v171_v4, %s591_s20  ;;  %233 = vrot.lane.b32.xlu1 %v171_v4, %s592_s21  ;;  %v186_v6 = vsel %vm184_vm2, %v171_v4, 0 }
  0x17   : > { %522 = vmatpush3.bf16.msra.mxu1 %v186_v6 }
  0x18   : > { %527 = vmatprep.subr.bf16.mxu1 %v589_v0 }
  0x1a   : > { %337 = vrot.lane.b32.xlu0 %v171_v4, %s593_s22  ;;  %389 = vrot.lane.b32.xlu1 %v171_v4, %s594_s23 }
  0x1b   : > { %524 = vmatmul.mubr.msk.bf16.vlgmr.msra.gmra.mrb[0].mxu1 %vm180_vm3, %v179_v7 }
  0x1c   : > { %529 = vmatprep.mubr.msk.bf16.mxu1 %vm590_vm0, %v589_v0 }
  0x1e   : > { %175 = vperm.xlu0 %580, %v172_v8  }
  0x88   : > { %v286_v12 = vpop.permute.xlu0 %285  ;;  %v234_v13 = vpop.permute.xlu1 %233 }
  0x89   : > { %v291_v14 = vsel %vm184_vm2, %v286_v12, 0  ;;  %v239_v16 = vsel %vm184_vm2, %v234_v13, 0 }
  0x8a   : > { %534 = vmatpush3.bf16.msra.mxu0 %v291_v14  ;;  %528 = vmatpush3.bf16.msra.mxu1 %v239_v16 }
  0x8b   : > { %539 = vmatprep.subr.bf16.mxu0 %v589_v0 }
  0x8c   : > { %v338_v18 = vpop.permute.xlu0 %337  ;;  %v390_v21 = vpop.permute.xlu1 %389 }
  0x8d   : > { %v343_v19 = vsel %vm184_vm2, %v338_v18, 0  ;;  %536 = vmatmul.mubr.msk.bf16.vlgmr.msra.gmra.mrb[0].mxu0 %vm180_vm3, %v284_v15  ;;  %530 = vmatmul.mubr.msk.bf16.vlgmr.msra.gmra.mrb[0].mxu1 %vm180_vm3, %v231_v17  ;;  %v395_v23 = vsel %vm184_vm2, %v390_v21, 0 }
  0x8e   : > { %540 = vmatpush3.bf16.msra.mxu0 %v343_v19  ;;  %541 = vmatprep.mubr.msk.bf16.mxu0 %vm590_vm0, %v589_v0 }
  0x8f   : > { %545 = vmatprep.subr.bf16.mxu0 %v589_v0 }
  0x99   : > { %542 = vmatmul.mubr.msk.bf16.vlgmr.msra.gmra.mrb[0].mxu0 %vm180_vm3, %v336_v22 }
  0x9a   : > { %546 = vmatpush3.bf16.msra.mxu0 %v395_v23  ;;  %547 = vmatprep.mubr.msk.bf16.mxu0 %vm590_vm0, %v589_v0 }
  0x9d   : > { %v176_v30 = vpop.permute.xlu0 %175 }
  0xa5   : > { %548 = vmatmul.mubr.msk.bf16.vlgmr.msra.gmra.mrb[0].mxu0 %vm180_vm3, %v388_v25 }
 0x160   : > { %v275_v26 = vpop.f32.mrb[0].mxu1 }
 0x161   : > { %v531_v27 = vpop.f32.mrb[1].mxu1  ;;  %v551_v31 = vadd.f32 %v275_v26, %v176_v30 }
 0x162   : > { %v278_v28 = vpop.f32.mrb[2].mxu1 }
 0x163   : > { %v532_v29 = vpop.f32.mrb[3].mxu1 }
 0x178   : > { %v431_v32 = vpop.f32.mrb[0].mxu0 }
 0x179   : > { %v552_v33 = vadd.f32 %v551_v31, %v431_v32  ;;  %v549_v34 = vpop.f32.mrb[1].mxu0 }
 0x17a   : > { %v434_v35 = vpop.f32.mrb[2].mxu0 }
 0x17b   : > { %439 = vst.msk [vmem:[%s165_s9] sm:$0xf] %vm438_vm4, %v552_v33  ;;  %v550_v36 = vpop.f32.mrb[3].mxu0 }
 0x17c PF: > { %s13_s12 = sadd.s32 1, %s587_s12  }
 0x17d   : > { %p10_p4 = scmp.ge.s32.totalorder %s13_s12, 4  }
 0x17f   :  { %12 = sbr.rel (!%p10_p4) target bundleno = 1 (0x1), region = 66 }

// kernel: fwd.121
= control target key start
LH: loop header
LB: loop body
LE: loop exit
PB: predicated region body
PF: predicated region fallthrough
CT: control target
= control target key end

     0   :  { %s481_s12 = smov 0   ;;  %s526_s0 = inlined_call_operand.vmem [shape: f32[2,4,22], index: 0, kind: input, shape index: {}]   ;;  %s527_s1 = inlined_call_operand.vmem [shape: f32[3,4,4], index: 1, kind: input, shape index: {}]   ;;  %s528_s2 = inlined_call_operand.vmem [shape: f32[4,1], index: 2, kind: input, shape index: {}]   ;;  %s529_s3 = inlined_call_operand.vmem [shape: f32[2,4,16], index: 3, kind: output, shape index: {}]  }
   0x1 LB: > { %s389_s13 = sadd.s32 4294967295, %s454_s12   ;;  %p393_p0 = scmp.ge.s32.totalorder %s454_s12, 1  ;;  %s454_s12 = sphi %s481_s12, %s13_s12  }
   0x2   : > { %p136_p1 = scmp.lt.s32.totalorder %s454_s12, 3 }
   0x4   : > { %p137_p2 = pnand %p393_p0, %p136_p1 }
   0x5   : > { %p158_p3 = scmp.lt.s32.totalorder (!%p137_p2), %s389_s13, 1  ;;  %v456_v0 = vmov (!%p137_p2), 0.0   ;;  %vm457_vm0 = vmmov (!%p137_p2), 0   ;;  %v178_v4 = vld [vmem:[%s527_s1] sm:$0xf] (!%p137_p2)  ;;  %vm184_vm2 = vcmask (!%p137_p2), 1041408  }
   0x6   : > { %140 = sbr.rel (%p137_p2) target bundleno = 368 (0x170), region = 32  ;;  %415 = vmatprep.subr.bf16.mxu0 (!%p137_p2), %v456_v0  ;;  %417 = vmatprep.mubr.msk.bf16.mxu0 (!%p137_p2), %vm457_vm0, %v456_v0  ;;  %s458_s20 = smov (!%p137_p2), 125   ;;  %v179_v7 = vpack.c.bf16 (!%p137_p2), %v178_v4, %v178_v4  ;;  %vm180_vm3 = vcmask (!%p137_p2), 31744   ;;  %v172_v8 = vld [vmem:[%s528_s2] sm:$0xf] (!%p137_p2)  ;;  %v460_v9 = vmov (!%p137_p2), 0  }
   0x7   : > { %409 = vmatprep.subr.bf16.mxu1 (!%p137_p2), %v456_v0  ;;  %411 = vmatprep.mubr.msk.bf16.mxu1 (!%p137_p2), %vm457_vm0, %v456_v0  ;;  %s459_s23 = smov (!%p137_p2), 122   ;;  %v397_v10 = vld [vmem:[%s527_s1 + $0x4] sm:$0xf] (!%p137_p2)  ;;  %v399_v16 = vld [vmem:[%s527_s1 + $0x8] sm:$0xf] (!%p137_p2)  ;;  %vm334_vm4 = vcmask (!%p137_p2), 125952  }
   0x8   : > { %446 = vset.pattern.permute.xlu1 (!%p137_p2), %v460_v9  ;;  %447 = vset.pattern.permute.xlu0 (!%p137_p2), %v460_v9  ;;  %v231_v13 = vpack.c.bf16 (!%p137_p2), %v397_v10, %v397_v10  ;;  %v284_v17 = vpack.c.bf16 (!%p137_p2), %v399_v16, %v399_v16 }
   0x9   : > { %175 = vperm.xlu1 (!%p137_p2), %446, %v172_v8  }
   0xd   : > { %s531_s13 = smov (!%p158_p3, %s389_s13), 1 }
   0xe   : > { %s394_s14 = sshll.u32 %s531_s13, 2 }
   0xf   : > { %s161_s17 = scalar_lea.vmem %s526_s0, %s394_s14  ;;  %s165_s30 = scalar_lea.vmem %s529_s3, %s394_s14 }
  0x10   : > { %v167_v1 = vld [vmem:[%s161_s17] sm:$0xf] }
  0x11   : > { %vm168_vm1 = vcmp.ge.f32.partialorder %v167_v1, 0.0  ;;  %v169_v2 = vmul.f32 0.1, %v167_v1 }
  0x13   : > { %v170_v3 = vsel %vm168_vm1, %v167_v1, %v169_v2 }
  0x14   : > { %v171_v5 = vpack.c.bf16 %v170_v3, %v170_v3 }
  0x16   : > { %233 = vrot.lane.b32.xlu0 %v171_v5, %s458_s20  ;;  %v186_v6 = vsel %vm184_vm2, %v171_v5, 0 }
  0x17   : > { %410 = vmatpush3.bf16.msra.mxu1 %v186_v6 }
  0x1a   : > { %285 = vrot.lane.b32.xlu0 %v171_v5, %s459_s23  ;;  %412 = vmatmul.mubr.msk.bf16.vlgmr.msra.gmra.mrb[0].mxu1 %vm180_vm3, %v179_v7 }
  0x88   : > { %v234_v11 = vpop.permute.xlu0 %233  ;;  %v176_v22 = vpop.permute.xlu1 %175 }
  0x89   : > { %v239_v12 = vsel %vm184_vm2, %v234_v11, 0 }
  0x8a   : > { %416 = vmatpush3.bf16.msra.mxu0 %v239_v12 }
  0x8b   : > { %421 = vmatprep.subr.bf16.mxu0 %v456_v0 }
  0x8c   : > { %v286_v14 = vpop.permute.xlu0 %285 }
  0x8d   : > { %v291_v15 = vsel %vm184_vm2, %v286_v14, 0  ;;  %418 = vmatmul.mubr.msk.bf16.vlgmr.msra.gmra.mrb[0].mxu0 %vm180_vm3, %v231_v13 }
  0x8e   : > { %422 = vmatpush3.bf16.msra.mxu0 %v291_v15  ;;  %423 = vmatprep.mubr.msk.bf16.mxu0 %vm457_vm0, %v456_v0 }
  0x99   : > { %424 = vmatmul.mubr.msk.bf16.vlgmr.msra.gmra.mrb[0].mxu0 %vm180_vm3, %v284_v17 }
  0xed   : > { %v222_v18 = vpop.f32.mrb[0].mxu1 }
  0xee   : > { %v413_v19 = vpop.f32.mrb[1].mxu1  ;;  %v228_v23 = vadd.f32 %v222_v18, %v176_v22 }
  0xef   : > { %v225_v20 = vpop.f32.mrb[2].mxu1 }
  0xf0   : > { %v414_v21 = vpop.f32.mrb[3].mxu1 }
 0x16c   : > { %v327_v24 = vpop.f32.mrb[0].mxu0 }
 0x16d   : > { %v428_v25 = vadd.f32 %v327_v24, %v228_v23  ;;  %v425_v26 = vpop.f32.mrb[1].mxu0 }
 0x16e   : > { %v330_v27 = vpop.f32.mrb[2].mxu0 }
 0x16f   : > { %335 = vst.msk [vmem:[%s165_s30] sm:$0xf] %vm334_vm4, %v428_v25  ;;  %v426_v28 = vpop.f32.mrb[3].mxu0 }
 0x170 PF: > { %s13_s12 = sadd.s32 1, %s454_s12  }
 0x171   : > { %p10_p4 = scmp.ge.s32.totalorder %s13_s12, 4  }
 0x173   :  { %12 = sbr.rel (!%p10_p4) target bundleno = 1 (0x1), region = 64 }

// kernel: fwd.123
= control target key start
LH: loop header
LB: loop body
LE: loop exit
PB: predicated region body
PF: predicated region fallthrough
CT: control target
= control target key end

     0   :  { %s481_s12 = smov 0   ;;  %s526_s0 = inlined_call_operand.vmem [shape: f32[2,4,26], index: 0, kind: input, shape index: {}]   ;;  %s527_s1 = inlined_call_operand.vmem [shape: f32[3,4,4], index: 1, kind: input, shape index: {}]   ;;  %s528_s2 = inlined_call_operand.vmem [shape: f32[4,1], index: 2, kind: input, shape index: {}]   ;;  %s529_s3 = inlined_call_operand.vmem [shape: f32[2,4,16], index: 3, kind: output, shape index: {}]  }
   0x1 LB: > { %s389_s13 = sadd.s32 4294967295, %s454_s12   ;;  %p393_p0 = scmp.ge.s32.totalorder %s454_s12, 1  ;;  %s454_s12 = sphi %s481_s12, %s13_s12  }
   0x2   : > { %p136_p1 = scmp.lt.s32.totalorder %s454_s12, 3 }
   0x4   : > { %p137_p2 = pnand %p393_p0, %p136_p1 }
   0x5   : > { %p158_p3 = scmp.lt.s32.totalorder (!%p137_p2), %s389_s13, 1  ;;  %v456_v0 = vmov (!%p137_p2), 0.0   ;;  %vm457_vm0 = vmmov (!%p137_p2), 0   ;;  %v178_v4 = vld [vmem:[%s527_s1] sm:$0xf] (!%p137_p2)  ;;  %vm184_vm2 = vcmask (!%p137_p2), 1041408  }
   0x6   : > { %140 = sbr.rel (%p137_p2) target bundleno = 368 (0x170), region = 32  ;;  %415 = vmatprep.subr.bf16.mxu0 (!%p137_p2), %v456_v0  ;;  %417 = vmatprep.mubr.msk.bf16.mxu0 (!%p137_p2), %vm457_vm0, %v456_v0  ;;  %s458_s20 = smov (!%p137_p2), 123   ;;  %v179_v7 = vpack.c.bf16 (!%p137_p2), %v178_v4, %v178_v4  ;;  %vm180_vm3 = vcmask (!%p137_p2), 31744   ;;  %v172_v8 = vld [vmem:[%s528_s2] sm:$0xf] (!%p137_p2)  ;;  %v460_v9 = vmov (!%p137_p2), 0  }
   0x7   : > { %409 = vmatprep.subr.bf16.mxu1 (!%p137_p2), %v456_v0  ;;  %411 = vmatprep.mubr.msk.bf16.mxu1 (!%p137_p2), %vm457_vm0, %v456_v0  ;;  %s459_s23 = smov (!%p137_p2), 118   ;;  %v397_v10 = vld [vmem:[%s527_s1 + $0x4] sm:$0xf] (!%p137_p2)  ;;  %v399_v16 = vld [vmem:[%s527_s1 + $0x8] sm:$0xf] (!%p137_p2)  ;;  %vm334_vm4 = vcmask (!%p137_p2), 125952  }
   0x8   : > { %446 = vset.pattern.permute.xlu1 (!%p137_p2), %v460_v9  ;;  %447 = vset.pattern.permute.xlu0 (!%p137_p2), %v460_v9  ;;  %v231_v13 = vpack.c.bf16 (!%p137_p2), %v397_v10, %v397_v10  ;;  %v284_v17 = vpack.c.bf16 (!%p137_p2), %v399_v16, %v399_v16 }
   0x9   : > { %175 = vperm.xlu1 (!%p137_p2), %446, %v172_v8  }
   0xd   : > { %s531_s13 = smov (!%p158_p3, %s389_s13), 1 }
   0xe   : > { %s394_s14 = sshll.u32 %s531_s13, 2 }
   0xf   : > { %s161_s17 = scalar_lea.vmem %s526_s0, %s394_s14  ;;  %s165_s30 = scalar_lea.vmem %s529_s3, %s394_s14 }
  0x10   : > { %v167_v1 = vld [vmem:[%s161_s17] sm:$0xf] }
  0x11   : > { %vm168_vm1 = vcmp.ge.f32.partialorder %v167_v1, 0.0  ;;  %v169_v2 = vmul.f32 0.1, %v167_v1 }
  0x13   : > { %v170_v3 = vsel %vm168_vm1, %v167_v1, %v169_v2 }
  0x14   : > { %v171_v5 = vpack.c.bf16 %v170_v3, %v170_v3 }
  0x16   : > { %233 = vrot.lane.b32.xlu0 %v171_v5, %s458_s20  ;;  %v186_v6 = vsel %vm184_vm2, %v171_v5, 0 }
  0x17   : > { %410 = vmatpush3.bf16.msra.mxu1 %v186_v6 }
  0x1a   : > { %285 = vrot.lane.b32.xlu0 %v171_v5, %s459_s23  ;;  %412 = vmatmul.mubr.msk.bf16.vlgmr.msra.gmra.mrb[0].mxu1 %vm180_vm3, %v179_v7 }
  0x88   : > { %v234_v11 = vpop.permute.xlu0 %233  ;;  %v176_v22 = vpop.permute.xlu1 %175 }
  0x89   : > { %v239_v12 = vsel %vm184_vm2, %v234_v11, 0 }
  0x8a   : > { %416 = vmatpush3.bf16.msra.mxu0 %v239_v12 }
  0x8b   : > { %421 = vmatprep.subr.bf16.mxu0 %v456_v0 }
  0x8c   : > { %v286_v14 = vpop.permute.xlu0 %285 }
  0x8d   : > { %v291_v15 = vsel %vm184_vm2, %v286_v14, 0  ;;  %418 = vmatmul.mubr.msk.bf16.vlgmr.msra.gmra.mrb[0].mxu0 %vm180_vm3, %v231_v13 }
  0x8e   : > { %422 = vmatpush3.bf16.msra.mxu0 %v291_v15  ;;  %423 = vmatprep.mubr.msk.bf16.mxu0 %vm457_vm0, %v456_v0 }
  0x99   : > { %424 = vmatmul.mubr.msk.bf16.vlgmr.msra.gmra.mrb[0].mxu0 %vm180_vm3, %v284_v17 }
  0xed   : > { %v222_v18 = vpop.f32.mrb[0].mxu1 }
  0xee   : > { %v413_v19 = vpop.f32.mrb[1].mxu1  ;;  %v228_v23 = vadd.f32 %v222_v18, %v176_v22 }
  0xef   : > { %v225_v20 = vpop.f32.mrb[2].mxu1 }
  0xf0   : > { %v414_v21 = vpop.f32.mrb[3].mxu1 }
 0x16c   : > { %v327_v24 = vpop.f32.mrb[0].mxu0 }
 0x16d   : > { %v428_v25 = vadd.f32 %v327_v24, %v228_v23  ;;  %v425_v26 = vpop.f32.mrb[1].mxu0 }
 0x16e   : > { %v330_v27 = vpop.f32.mrb[2].mxu0 }
 0x16f   : > { %335 = vst.msk [vmem:[%s165_s30] sm:$0xf] %vm334_vm4, %v428_v25  ;;  %v426_v28 = vpop.f32.mrb[3].mxu0 }
 0x170 PF: > { %s13_s12 = sadd.s32 1, %s454_s12  }
 0x171   : > { %p10_p4 = scmp.ge.s32.totalorder %s13_s12, 4  }
 0x173   :  { %12 = sbr.rel (!%p10_p4) target bundleno = 1 (0x1), region = 64 }

// kernel: fwd.129
= control target key start
LH: loop header
LB: loop body
LE: loop exit
PB: predicated region body
PF: predicated region fallthrough
CT: control target
= control target key end

     0   :  { %s616_s12 = smov 0   ;;  %s673_s0 = inlined_call_operand.vmem [shape: f32[2,4,36], index: 0, kind: input, shape index: {}]   ;;  %s674_s1 = inlined_call_operand.vmem [shape: f32[5,4,4], index: 1, kind: input, shape index: {}]   ;;  %s675_s2 = inlined_call_operand.vmem [shape: f32[4,1], index: 2, kind: input, shape index: {}]   ;;  %s676_s3 = inlined_call_operand.vmem [shape: f32[2,4,16], index: 3, kind: output, shape index: {}]  }
   0x1 LB: > { %s493_s13 = sadd.s32 4294967295, %s587_s12   ;;  %p497_p0 = scmp.ge.s32.totalorder %s587_s12, 1  ;;  %s587_s12 = sphi %s616_s12, %s13_s12  }
   0x2   : > { %p136_p1 = scmp.lt.s32.totalorder %s587_s12, 3 }
   0x4   : > { %p137_p2 = pnand %p497_p0, %p136_p1 }
   0x5   : > { %p158_p3 = scmp.lt.s32.totalorder (!%p137_p2), %s493_s13, 1  ;;  %v589_v0 = vmov (!%p137_p2), 0.0   ;;  %vm590_vm0 = vmmov (!%p137_p2), 0   ;;  %vm184_vm2 = vcmask (!%p137_p2), 1041408   ;;  %v178_v5 = vld [vmem:[%s674_s1] sm:$0xf] (!%p137_p2) }
   0x6   : > { %140 = sbr.rel (%p137_p2) target bundleno = 380 (0x17c), region = 32  ;;  %521 = vmatprep.subr.bf16.mxu1 (!%p137_p2), %v589_v0  ;;  %523 = vmatprep.mubr.msk.bf16.mxu1 (!%p137_p2), %vm590_vm0, %v589_v0  ;;  %s591_s20 = smov (!%p137_p2), 118   ;;  %v179_v7 = vpack.c.bf16 (!%p137_p2), %v178_v5, %v178_v5  ;;  %vm180_vm3 = vcmask (!%p137_p2), 31744   ;;  %v172_v8 = vld [vmem:[%s675_s2] sm:$0xf] (!%p137_p2)  ;;  %v595_v9 = vmov (!%p137_p2), 0  }
   0x7   : > { %533 = vmatprep.subr.bf16.mxu0 (!%p137_p2), %v589_v0  ;;  %535 = vmatprep.mubr.msk.bf16.mxu0 (!%p137_p2), %vm590_vm0, %v589_v0  ;;  %s592_s21 = smov (!%p137_p2), 123   ;;  %s593_s22 = smov (!%p137_p2), 113   ;;  %v503_v10 = vld [vmem:[%s674_s1 + $0x8] sm:$0xf] (!%p137_p2)  ;;  %v501_v11 = vld [vmem:[%s674_s1 + $0x4] sm:$0xf] (!%p137_p2) }
   0x8   : > { %s594_s23 = smov (!%p137_p2), 108   ;;  %580 = vset.pattern.permute.xlu0 (!%p137_p2), %v595_v9  ;;  %v284_v15 = vpack.c.bf16 (!%p137_p2), %v503_v10, %v503_v10  ;;  %v231_v17 = vpack.c.bf16 (!%p137_p2), %v501_v11, %v501_v11  ;;  %v505_v20 = vld [vmem:[%s674_s1 + $0xc] sm:$0xf] (!%p137_p2)  ;;  %v507_v24 = vld [vmem:[%s674_s1 + $0x10] sm:$0xf] (!%p137_p2)  ;;  %vm438_vm4 = vcmask (!%p137_p2), 125952  }
   0x9   : > { %v336_v22 = vpack.c.bf16 (!%p137_p2), %v505_v20, %v505_v20  ;;  %v388_v25 = vpack.c.bf16 (!%p137_p2), %v507_v24, %v507_v24 }
   0xd   : > { %s678_s13 = smov (!%p158_p3, %s493_s13), 1 }
   0xe   : > { %s498_s14 = sshll.u32 %s678_s13, 2 }
   0xf   : > { %s161_s17 = scalar_lea.vmem %s673_s0, %s498_s14  ;;  %s165_s9 = scalar_lea.vmem %s676_s3, %s498_s14 }
  0x10   : > { %v167_v1 = vld [vmem:[%s161_s17] sm:$0xf] }
  0x11   : > { %vm168_vm1 = vcmp.ge.f32.partialorder %v167_v1, 0.0  ;;  %v169_v2 = vmul.f32 0.1, %v167_v1 }
  0x13   : > { %v170_v3 = vsel %vm168_vm1, %v167_v1, %v169_v2 }
  0x14   : > { %v171_v4 = vpack.c.bf16 %v170_v3, %v170_v3 }
  0x16   : > { %285 = vrot.lane.b32.xlu0 %v171_v4, %s591_s20  ;;  %233 = vrot.lane.b32.xlu1 %v171_v4, %s592_s21  ;;  %v186_v6 = vsel %vm184_vm2, %v171_v4, 0 }
  0x17   : > { %522 = vmatpush3.bf16.msra.mxu1 %v186_v6 }
  0x18   : > { %527 = vmatprep.subr.bf16.mxu1 %v589_v0 }
  0x1a   : > { %337 = vrot.lane.b32.xlu0 %v171_v4, %s593_s22  ;;  %389 = vrot.lane.b32.xlu1 %v171_v4, %s594_s23 }
  0x1b   : > { %524 = vmatmul.mubr.msk.bf16.vlgmr.msra.gmra.mrb[0].mxu1 %vm180_vm3, %v179_v7 }
  0x1c   : > { %529 = vmatprep.mubr.msk.bf16.mxu1 %vm590_vm0, %v589_v0 }
  0x1e   : > { %175 = vperm.xlu0 %580, %v172_v8  }
  0x88   : > { %v286_v12 = vpop.permute.xlu0 %285  ;;  %v234_v13 = vpop.permute.xlu1 %233 }
  0x89   : > { %v291_v14 = vsel %vm184_vm2, %v286_v12, 0  ;;  %v239_v16 = vsel %vm184_vm2, %v234_v13, 0 }
  0x8a   : > { %534 = vmatpush3.bf16.msra.mxu0 %v291_v14  ;;  %528 = vmatpush3.bf16.msra.mxu1 %v239_v16 }
  0x8b   : > { %539 = vmatprep.subr.bf16.mxu0 %v589_v0 }
  0x8c   : > { %v338_v18 = vpop.permute.xlu0 %337  ;;  %v390_v21 = vpop.permute.xlu1 %389 }
  0x8d   : > { %v343_v19 = vsel %vm184_vm2, %v338_v18, 0  ;;  %536 = vmatmul.mubr.msk.bf16.vlgmr.msra.gmra.mrb[0].mxu0 %vm180_vm3, %v284_v15  ;;  %530 = vmatmul.mubr.msk.bf16.vlgmr.msra.gmra.mrb[0].mxu1 %vm180_vm3, %v231_v17  ;;  %v395_v23 = vsel %vm184_vm2, %v390_v21, 0 }
  0x8e   : > { %540 = vmatpush3.bf16.msra.mxu0 %v343_v19  ;;  %541 = vmatprep.mubr.msk.bf16.mxu0 %vm590_vm0, %v589_v0 }
  0x8f   : > { %545 = vmatprep.subr.bf16.mxu0 %v589_v0 }
  0x99   : > { %542 = vmatmul.mubr.msk.bf16.vlgmr.msra.gmra.mrb[0].mxu0 %vm180_vm3, %v336_v22 }
  0x9a   : > { %546 = vmatpush3.bf16.msra.mxu0 %v395_v23  ;;  %547 = vmatprep.mubr.msk.bf16.mxu0 %vm590_vm0, %v589_v0 }
  0x9d   : > { %v176_v30 = vpop.permute.xlu0 %175 }
  0xa5   : > { %548 = vmatmul.mubr.msk.bf16.vlgmr.msra.gmra.mrb[0].mxu0 %vm180_vm3, %v388_v25 }
 0x160   : > { %v275_v26 = vpop.f32.mrb[0].mxu1 }
 0x161   : > { %v531_v27 = vpop.f32.mrb[1].mxu1  ;;  %v551_v31 = vadd.f32 %v275_v26, %v176_v30 }
 0x162   : > { %v278_v28 = vpop.f32.mrb[2].mxu1 }
 0x163   : > { %v532_v29 = vpop.f32.mrb[3].mxu1 }
 0x178   : > { %v431_v32 = vpop.f32.mrb[0].mxu0 }
 0x179   : > { %v552_v33 = vadd.f32 %v551_v31, %v431_v32  ;;  %v549_v34 = vpop.f32.mrb[1].mxu0 }
 0x17a   : > { %v434_v35 = vpop.f32.mrb[2].mxu0 }
 0x17b   : > { %439 = vst.msk [vmem:[%s165_s9] sm:$0xf] %vm438_vm4, %v552_v33  ;;  %v550_v36 = vpop.f32.mrb[3].mxu0 }
 0x17c PF: > { %s13_s12 = sadd.s32 1, %s587_s12  }
 0x17d   : > { %p10_p4 = scmp.ge.s32.totalorder %s13_s12, 4  }
 0x17f   :  { %12 = sbr.rel (!%p10_p4) target bundleno = 1 (0x1), region = 66 }

// kernel: fwd.131
= control target key start
LH: loop header
LB: loop body
LE: loop exit
PB: predicated region body
PF: predicated region fallthrough
CT: control target
= control target key end

     0   :  { %s699_s9 = smov 0   ;;  %s776_s0 = inlined_call_operand.vmem [shape: f32[2,4,22], index: 0, kind: input, shape index: {}]   ;;  %s777_s1 = inlined_call_operand.vmem [shape: f32[7,1,4], index: 1, kind: input, shape index: {}]   ;;  %s778_s2 = inlined_call_operand.vmem [shape: f32[2,1,16], index: 2, kind: output, shape index: {}]  }
   0x1 LB: > { %s554_s10 = sadd.s32 4294967295, %s674_s9   ;;  %p558_p0 = scmp.ge.s32.totalorder %s674_s9, 1  ;;  %s674_s9 = sphi %s699_s9, %s12_s9  }
   0x2   : > { %p111_p1 = scmp.lt.s32.totalorder %s674_s9, 3 }
   0x4   : > { %p112_p2 = pnand %p558_p0, %p111_p1 }
   0x5   : > { %p130_p3 = scmp.lt.s32.totalorder (!%p112_p2), %s554_s10, 1  ;;  %v676_v0 = vmov (!%p112_p2), 0.0   ;;  %vm677_vm0 = vmmov (!%p112_p2), 0   ;;  %s678_s15 = smov (!%p112_p2), 125   ;;  %vm155_vm2 = vcmask (!%p112_p2), 1041408   ;;  %vm151_vm3 = vcmask (!%p112_p2), 31744  }
   0x6   : > { %115 = sbr.rel (%p112_p2) target bundleno = 392 (0x188), region = 28  ;;  %607 = vmatprep.subr.bf16.mxu0 (!%p112_p2), %v676_v0  ;;  %609 = vmatprep.mubr.msk.bf16.mxu0 (!%p112_p2), %vm677_vm0, %v676_v0  ;;  %s679_s16 = smov (!%p112_p2), 124   ;;  %v565_v5 = vld [vmem:[%s777_s1 + $0x3] sm:$0x1] (!%p112_p2)  ;;  %v560_v10 = vld [vmem:[%s777_s1 + $0x1] sm:$0x1] (!%p112_p2) }
   0x7   : > { %589 = vmatprep.subr.bf16.mxu1 (!%p112_p2), %v676_v0  ;;  %591 = vmatprep.mubr.msk.bf16.mxu1 (!%p112_p2), %vm677_vm0, %v676_v0  ;;  %s680_s17 = smov (!%p112_p2), 127   ;;  %s681_s18 = smov (!%p112_p2), 123   ;;  %v299_v9 = vpack.c.bf16 (!%p112_p2), %v565_v5, %v565_v5  ;;  %v147_v14 = vpack.c.bf16 (!%p112_p2), %v560_v10, %v560_v10  ;;  %v567_v16 = vld [vmem:[%s777_s1 + $0x4] sm:$0x1] (!%p112_p2)  ;;  %v143_v19 = vld [vmem:[%s777_s1] sm:$0x1] (!%p112_p2) }
   0x8   : > { %s682_s19 = smov (!%p112_p2), 122   ;;  %s683_s20 = smov (!%p112_p2), 126   ;;  %v351_v18 = vpack.c.bf16 (!%p112_p2), %v567_v16, %v567_v16  ;;  %v144_v22 = vpack.c.bf16 (!%p112_p2), %v143_v19, %v143_v19  ;;  %v569_v24 = vld [vmem:[%s777_s1 + $0x5] sm:$0x1] (!%p112_p2)  ;;  %v563_v27 = vld [vmem:[%s777_s1 + $0x2] sm:$0x1] (!%p112_p2) }
   0x9   : > { %v403_v26 = vpack.c.bf16 (!%p112_p2), %v569_v24, %v569_v24  ;;  %v247_v29 = vpack.c.bf16 (!%p112_p2), %v563_v27, %v563_v27  ;;  %v571_v30 = vld [vmem:[%s777_s1 + $0x6] sm:$0x1] (!%p112_p2)  ;;  %vm505_vm4 = vcmask (!%p112_p2), 122880  }
   0xa   : > { %v455_v31 = vpack.c.bf16 (!%p112_p2), %v571_v30, %v571_v30 }
   0xd   : > { %s780_s10 = smov (!%p130_p3, %s554_s10), 1 }
   0xe   : > { %s559_s11 = sshll.u32 %s780_s10, 2 }
   0xf   : > { %s133_s14 = scalar_lea.vmem %s776_s0, %s559_s11  ;;  %s136_s11 = scalar_lea.vmem %s778_s2, %s780_s10 }
  0x10   : > { %v138_v1 = vld [vmem:[%s133_s14] sm:$0xf] }
  0x11   : > { %vm139_vm1 = vcmp.ge.f32.partialorder %v138_v1, 0.0  ;;  %v140_v2 = vmul.f32 0.1, %v138_v1 }
  0x13   : > { %v141_v3 = vsel %vm139_vm1, %v138_v1, %v140_v2 }
  0x14   : > { %v142_v4 = vpack.c.bf16 %v141_v3, %v141_v3 }
  0x16   : > { %300 = vrot.lane.b32.xlu0 %v142_v4, %s678_s15  ;;  %352 = vrot.lane.b32.xlu1 %v142_v4, %s679_s16  ;;  %v203_v15 = vsel %vm155_vm2, %v142_v4, 0 }
  0x1a   : > { %149 = vrot.lane.b32.xlu0 %v142_v4, %s680_s17  ;;  %404 = vrot.lane.b32.xlu1 %v142_v4, %s681_s18 }
  0x1e   : > { %456 = vrot.lane.b32.xlu1 %v142_v4, %s682_s19  ;;  %248 = vrot.lane.b32.xlu0 %v142_v4, %s683_s20 }
  0x88   : > { %v301_v6 = vpop.permute.xlu0 %300  ;;  %v353_v7 = vpop.permute.xlu1 %352 }
  0x89   : > { %v306_v8 = vsel %vm155_vm2, %v301_v6, 0  ;;  %v358_v11 = vsel %vm155_vm2, %v353_v7, 0 }
  0x8a   : > { %608 = vmatpush3.bf16.msra.mxu0 %v306_v8 }
  0x8b   : > { %613 = vmatprep.subr.bf16.mxu0 %v676_v0 }
  0x8c   : > { %v150_v12 = vpop.permute.xlu0 %149  ;;  %v405_v17 = vpop.permute.xlu1 %404 }
  0x8d   : > { %610 = vmatmul.mubr.msk.bf16.vlgmr.msra.gmra.mrb[0].mxu0 %vm151_vm3, %v299_v9  ;;  %v157_v13 = vsel %vm155_vm2, %v150_v12, 0  ;;  %v410_v20 = vsel %vm155_vm2, %v405_v17, 0 }
  0x8e   : > { %590 = vmatpush3.bf16.msra.mxu1 %v157_v13  ;;  %614 = vmatpush3.bf16.msra.mxu0 %v358_v11 }
  0x8f   : > { %615 = vmatprep.mubr.msk.bf16.mxu0 %vm677_vm0, %v676_v0  ;;  %595 = vmatprep.subr.bf16.mxu1 %v676_v0 }
  0x90   : > { %619 = vmatprep.subr.bf16.mxu0 %v676_v0  ;;  %v249_v21 = vpop.permute.xlu0 %248  ;;  %v457_v25 = vpop.permute.xlu1 %456 }
  0x91   : > { %592 = vmatmul.mubr.msk.bf16.vlgmr.msra.gmra.mrb[0].mxu1 %vm151_vm3, %v147_v14  ;;  %v254_v23 = vsel %vm155_vm2, %v249_v21, 0  ;;  %v462_v28 = vsel %vm155_vm2, %v457_v25, 0 }
  0x92   : > { %596 = vmatpush3.bf16.msra.mxu1 %v203_v15  ;;  %597 = vmatprep.mubr.msk.bf16.mxu1 %vm677_vm0, %v676_v0 }
  0x93   : > { %601 = vmatprep.subr.bf16.mxu1 %v676_v0 }
  0x99   : > { %616 = vmatmul.mubr.msk.bf16.vlgmr.msra.gmra.mrb[0].mxu0 %vm151_vm3, %v351_v18 }
  0x9a   : > { %620 = vmatpush3.bf16.msra.mxu0 %v410_v20  ;;  %621 = vmatprep.mubr.msk.bf16.mxu0 %vm677_vm0, %v676_v0 }
  0x9b   : > { %625 = vmatprep.subr.bf16.mxu0 %v676_v0 }
  0x9d   : > { %598 = vmatmul.mubr.msk.bf16.vlgmr.msra.gmra.mrb[0].mxu1 %vm151_vm3, %v144_v22 }
  0x9e   : > { %602 = vmatpush3.bf16.msra.mxu1 %v254_v23  ;;  %603 = vmatprep.mubr.msk.bf16.mxu1 %vm677_vm0, %v676_v0 }
  0xa5   : > { %622 = vmatmul.mubr.msk.bf16.vlgmr.msra.gmra.mrb[0].mxu0 %vm151_vm3, %v403_v26 }
  0xa6   : > { %626 = vmatpush3.bf16.msra.mxu0 %v462_v28  ;;  %627 = vmatprep.mubr.msk.bf16.mxu0 %vm677_vm0, %v676_v0 }
  0xa9   : > { %604 = vmatmul.mubr.msk.bf16.vlgmr.msra.gmra.mrb[0].mxu1 %vm151_vm3, %v247_v29 }
  0xb1   : > { %628 = vmatmul.mubr.msk.bf16.vlgmr.msra.gmra.mrb[0].mxu0 %vm151_vm3, %v455_v31 }
 0x17c   : > { %v290_v32 = vpop.f32.mrb[0].mxu1 }
 0x17d   : > { %v605_v33 = vpop.f32.mrb[1].mxu1 }
 0x17e   : > { %v293_v34 = vpop.f32.mrb[2].mxu1 }
 0x17f   : > { %v606_v35 = vpop.f32.mrb[3].mxu1 }
 0x184   : > { %v498_v36 = vpop.f32.mrb[0].mxu0 }
 0x185   : > { %v631_v37 = vadd.f32 %v498_v36, %v290_v32  ;;  %v629_v38 = vpop.f32.mrb[1].mxu0 }
 0x186   : > { %v501_v39 = vpop.f32.mrb[2].mxu0 }
 0x187   : > { %506 = vst.msk [vmem:[%s136_s11] sm:$0x1] %vm505_vm4, %v631_v37  ;;  %v630_v40 = vpop.f32.mrb[3].mxu0 }
 0x188 PF: > { %s12_s9 = sadd.s32 1, %s674_s9  }
 0x189   : > { %p9_p4 = scmp.ge.s32.totalorder %s12_s9, 4  }
 0x18b   :  { %11 = sbr.rel (!%p9_p4) target bundleno = 1 (0x1), region = 64 }

// kernel: fwd.153
= control target key start
LH: loop header
LB: loop body
LE: loop exit
PB: predicated region body
PF: predicated region fallthrough
CT: control target
= control target key end

     0   :  { %s434_s12 = smov 0   ;;  %s500_s0 = inlined_call_operand.vmem [shape: f32[2,16,8], index: 0, kind: input, shape index: {}]   ;;  %s501_s1 = inlined_call_operand.vmem [shape: f32[1,48,16], index: 1, kind: input, shape index: {}]   ;;  %s502_s2 = inlined_call_operand.vmem [shape: f32[48,1], index: 2, kind: input, shape index: {}]   ;;  %s503_s3 = inlined_call_operand.vmem [shape: f32[2,48,8], index: 3, kind: output, shape index: {}]  }
   0x1 LB: > { %s355_s13 = sadd.s32 4294967295, %s409_s12   ;;  %p359_p0 = scmp.ge.s32.totalorder %s409_s12, 1  ;;  %s409_s12 = sphi %s434_s12, %s13_s12  }
   0x2   : > { %p137_p1 = scmp.lt.s32.totalorder %s409_s12, 3 }
   0x4   : > { %p138_p2 = pnand %p359_p0, %p137_p1 }
   0x5   : > { %p161_p3 = scmp.lt.s32.totalorder (!%p138_p2), %s355_s13, 1  ;;  %v411_v0 = vmov (!%p138_p2), 0.0   ;;  %vm412_vm0 = vmmov (!%p138_p2), 0   ;;  %v177_v1 = vld [vmem:[%s502_s2 + $0x10] sm:$0xff] (!%p138_p2)  ;;  %v175_v2 = vld [vmem:[%s502_s2] sm:$0xff] (!%p138_p2)  ;;  %v413_v3 = vmov (!%p138_p2), 0  }
   0x6   : > { %141 = sbr.rel (%p138_p2) target bundleno = 247 (0xf7), region = 32  ;;  %373 = vmatprep.subr.bf16.mxu0 (!%p138_p2), %v411_v0  ;;  %387 = vmatprep.subr.bf16.mxu1 (!%p138_p2), %v411_v0  ;;  %v211_v4 = vld [vmem:[%s501_s1] sm:$0xff] (!%p138_p2)  ;;  %v212_v5 = vld [vmem:[%s501_s1 + $0x8] sm:$0xff] (!%p138_p2)  ;;  %v213_v6 = vld [vmem:[%s501_s1 + $0x10] sm:$0xff] (!%p138_p2)  ;;  %vm220_vm1 = vcmask (!%p138_p2), 130048   ;;  %vm293_vm2 = vcmask (!%p138_p2), 64512  }
   0x7   : > { %375 = vmatprep.mubr.msk.bf16.mxu0 (!%p138_p2), %vm412_vm0, %v411_v0  ;;  %379 = vmatprep.mubr.msk.bf16.mxu1 (!%p138_p2), %vm412_vm0, %v411_v0  ;;  %v214_v7 = vld [vmem:[%s501_s1 + $0x18] sm:$0xff] (!%p138_p2)  ;;  %v176_v9 = vld [vmem:[%s502_s2 + $0x8] sm:$0xff] (!%p138_p2)  ;;  %v217_v13 = vpack.c.bf16 (!%p138_p2), %v212_v5, %v211_v4  ;;  %v179_v16 = vld [vmem:[%s502_s2 + $0x20] sm:$0xff] (!%p138_p2) }
   0x8   : > { %402 = vset.pattern.permute.xlu1 (!%p138_p2), %v413_v3  ;;  %401 = vset.pattern.permute.xlu0 (!%p138_p2), %v413_v3  ;;  %v178_v8 = vld [vmem:[%s502_s2 + $0x18] sm:$0xff] (!%p138_p2)  ;;  %v218_v14 = vpack.c.bf16 (!%p138_p2), %v214_v7, %v213_v6  ;;  %v180_v15 = vld [vmem:[%s502_s2 + $0x28] sm:$0xff] (!%p138_p2)  ;;  %v215_v17 = vld [vmem:[%s501_s1 + $0x20] sm:$0xff] (!%p138_p2) }
   0x9   : > { %193 = vperm.xlu1 (!%p138_p2), %402, %v177_v1   ;;  %183 = vperm.xlu0 (!%p138_p2), %401, %v175_v2   ;;  %v216_v18 = vld [vmem:[%s501_s1 + $0x28] sm:$0xff] (!%p138_p2) }
   0xa   : > { %v219_v19 = vpack.c.bf16 (!%p138_p2), %v216_v18, %v215_v17 }
   0xd   : > { %s505_s13 = smov (!%p161_p3, %s355_s13), 1  ;;  %198 = vperm.xlu1 %402, %v178_v8   ;;  %188 = vperm.xlu0 %401, %v176_v9  }
   0xe   : > { %s368_s18 = sshll.u32 %s505_s13, 4  ;;  %s389_s17 = smul.u32 48, %s505_s13 }
   0xf   : > { %s165_s27 = scalar_lea.vmem %s500_s0, %s368_s18 }
  0x10   : > { %v172_v10 = vld [vmem:[%s165_s27] sm:$0xff]  ;;  %v173_v11 = vld [vmem:[%s165_s27 + $0x8] sm:$0xff]  ;;  %s170_s20 = scalar_lea.vmem %s503_s3, %s389_s17 }
  0x11   : > { %v174_v12 = vpack.c.bf16 %v173_v11, %v172_v10  ;;  %208 = vperm.xlu1 %402, %v180_v15   ;;  %203 = vperm.xlu0 %401, %v179_v16  }
  0x13   : > { %374 = vmatpush3.bf16.msra.mxu0 %v174_v12  ;;  %388 = vmatpush3.bf16.msra.mxu1 %v174_v12 }
  0x16   : > { %376 = vmatmul.mubr.msk.bf16.vlgmr.msra.gmra.mrb[0].mxu0 %vm220_vm1, %v217_v13  ;;  %380 = vmatmul.mubr.msk.bf16.vlgmr.msra.gmra.mrb[0].mxu1 %vm220_vm1, %v218_v14 }
  0x17   : > { %383 = vmatprep.mubr.msk.bf16.mxu1 %vm412_vm0, %v411_v0 }
  0x1e   : > { %384 = vmatmul.mubr.msk.bf16.gmra.mrb[4].mxu1 %vm220_vm1, %v219_v19 }
  0x88   : > { %v194_v20 = vpop.permute.xlu1 %193  ;;  %v184_v21 = vpop.permute.xlu0 %183 }
  0x8c   : > { %v199_v22 = vpop.permute.xlu1 %198  ;;  %v189_v23 = vpop.permute.xlu0 %188 }
  0x90   : > { %v204_v36 = vpop.permute.xlu0 %203  ;;  %v209_v40 = vpop.permute.xlu1 %208 }
  0xe9   : > { %v264_v24 = vpop.f32.mrb[0].mxu0  ;;  %v272_v25 = vpop.f32.mrb[0].mxu1 }
  0xea   : > { %v287_v26 = vadd.f32 %v264_v24, %v184_v21  ;;  %v289_v27 = vadd.f32 %v272_v25, %v194_v20  ;;  %v377_v28 = vpop.f32.mrb[1].mxu0  ;;  %v381_v29 = vpop.f32.mrb[1].mxu1 }
  0xeb   : > { %v267_v30 = vpop.f32.mrb[2].mxu0  ;;  %v275_v31 = vpop.f32.mrb[2].mxu1 }
  0xec   : > { %294 = vst.msk [vmem:[%s170_s20] sm:$0xff] %vm293_vm2, %v287_v26  ;;  %296 = vst.msk [vmem:[%s170_s20 + $0x10] sm:$0xff] %vm293_vm2, %v289_v27  ;;  %v288_v32 = vadd.f32 %v267_v30, %v189_v23  ;;  %v290_v33 = vadd.f32 %v275_v31, %v199_v22  ;;  %v382_v34 = vpop.f32.mrb[3].mxu1  ;;  %v378_v35 = vpop.f32.mrb[3].mxu0 }
  0xee   : > { %295 = vst.msk [vmem:[%s170_s20 + $0x8] sm:$0xff] %vm293_vm2, %v288_v32  ;;  %297 = vst.msk [vmem:[%s170_s20 + $0x18] sm:$0xff] %vm293_vm2, %v290_v33 }
  0xf1   : > { %v280_v37 = vpop.f32.mrb[4].mxu1 }
  0xf2   : > { %v291_v38 = vadd.f32 %v280_v37, %v204_v36  ;;  %v385_v39 = vpop.f32.mrb[5].mxu1 }
  0xf3   : > { %v283_v41 = vpop.f32.mrb[6].mxu1 }
  0xf4   : > { %298 = vst.msk [vmem:[%s170_s20 + $0x20] sm:$0xff] %vm293_vm2, %v291_v38  ;;  %v292_v42 = vadd.f32 %v283_v41, %v209_v40  ;;  %v386_v43 = vpop.f32.mrb[7].mxu1 }
  0xf6   : > { %299 = vst.msk [vmem:[%s170_s20 + $0x28] sm:$0xff] %vm293_vm2, %v292_v42 }
  0xf7 PF: > { %s13_s12 = sadd.s32 1, %s409_s12  }
  0xf8   : > { %p10_p4 = scmp.ge.s32.totalorder %s13_s12, 4  }
  0xfa   :  { %12 = sbr.rel (!%p10_p4) target bundleno = 1 (0x1), region = 62 }

// kernel: fwd.152
= control target key start
LH: loop header
LB: loop body
LE: loop exit
PB: predicated region body
PF: predicated region fallthrough
CT: control target
= control target key end

     0   :  { %s454_s12 = smov 0   ;;  %s517_s0 = inlined_call_operand.vmem [shape: f32[2,8,768], index: 0, kind: input, shape index: {}]   ;;  %s518_s1 = inlined_call_operand.vmem [shape: f32[16,768], index: 1, kind: input, shape index: {}]   ;;  %s519_s2 = inlined_call_operand.vmem [shape: f32[16,1], index: 2, kind: input, shape index: {}]   ;;  %s520_s3 = inlined_call_operand.vmem [shape: f32[2,16,8], index: 3, kind: output, shape index: {}]  }
   0x1 LB: > { %s395_s13 = sadd.s32 4294967295, %s431_s12   ;;  %p399_p0 = scmp.ge.s32.totalorder %s431_s12, 1  ;;  %s431_s12 = sphi %s454_s12, %s13_s12  }
   0x2   : > { %p137_p1 = scmp.lt.s32.totalorder %s431_s12, 3 }
   0x4   : > { %p138_p2 = pnand %p399_p0, %p137_p1 }
   0x5   : > { %p161_p3 = scmp.lt.s32.totalorder (!%p138_p2), %s395_s13, 1  ;;  %v181_v0 = vld [vmem:[%s518_s1 + $0x18] sm:$0xff] (!%p138_p2)  ;;  %v187_v1 = vld [vmem:[%s518_s1 + $0x48] sm:$0xff] (!%p138_p2)  ;;  %v433_v5 = vmov (!%p138_p2), 0   ;;  %v202_v7 = vld [vmem:[%s519_s2] sm:$0xff] (!%p138_p2)  ;;  %vm337_vm0 = vcmask (!%p138_p2), 64512  }
   0x6   : > { %141 = sbr.rel (%p138_p2) target bundleno = 257 (0x101), region = 32  ;;  %v193_v2 = vpack.c.bf16 (!%p138_p2), %v187_v1, %v181_v0  ;;  %v179_v3 = vld [vmem:[%s518_s1 + $0x8] sm:$0xff] (!%p138_p2)  ;;  %v185_v4 = vld [vmem:[%s518_s1 + $0x38] sm:$0xff] (!%p138_p2)  ;;  %424 = vset.pattern.permute.xlu0 (!%p138_p2), %v433_v5  ;;  %v180_v19 = vld [vmem:[%s518_s1 + $0x10] sm:$0xff] (!%p138_p2) }
   0x7   : > { %v191_v6 = vpack.c.bf16 (!%p138_p2), %v185_v4, %v179_v3  ;;  %206 = vperm.xlu0 (!%p138_p2), %424, %v202_v7   ;;  %v203_v8 = vld [vmem:[%s519_s2 + $0x8] sm:$0xff] (!%p138_p2)  ;;  %v186_v20 = vld [vmem:[%s518_s1 + $0x40] sm:$0xff] (!%p138_p2)  ;;  %v184_v22 = vld [vmem:[%s518_s1 + $0x30] sm:$0xff] (!%p138_p2) }
   0x8   : > { %287 = vmatprep.mubr.bf16.mxu0 (!%p138_p2), %v193_v2  ;;  %v178_v21 = vld [vmem:[%s518_s1] sm:$0xff] (!%p138_p2)  ;;  %v183_v24 = vld [vmem:[%s518_s1 + $0x28] sm:$0xff] (!%p138_p2)  ;;  %v189_v25 = vld [vmem:[%s518_s1 + $0x58] sm:$0xff] (!%p138_p2)  ;;  %v192_v26 = vpack.c.bf16 (!%p138_p2), %v186_v20, %v180_v19 }
   0x9   : > { %246 = vmatprep.mubr.bf16.mxu1 (!%p138_p2), %v191_v6  ;;  %v190_v27 = vpack.c.bf16 (!%p138_p2), %v184_v22, %v178_v21  ;;  %v195_v29 = vpack.c.bf16 (!%p138_p2), %v189_v25, %v183_v24  ;;  %v182_v30 = vld [vmem:[%s518_s1 + $0x20] sm:$0xff] (!%p138_p2)  ;;  %v188_v31 = vld [vmem:[%s518_s1 + $0x50] sm:$0xff] (!%p138_p2) }
   0xa   : > { %v194_v32 = vpack.c.bf16 (!%p138_p2), %v188_v31, %v182_v30 }
   0xb   : > { %211 = vperm.xlu0 (!%p138_p2), %424, %v203_v8  }
   0xd   : > { %s522_s13 = smov (!%p161_p3, %s395_s13), 1 }
   0xe   : > { %s414_s22 = smul.u32 48, %s522_s13  ;;  %s405_s21 = sshll.u32 %s522_s13, 4 }
   0xf   : > { %s170_s24 = scalar_lea.vmem %s520_s3, %s405_s21 }
  0x10   : > { %s165_s27 = scalar_lea.vmem %s517_s0, %s414_s22 }
  0x11   : > { %v175_v9 = vld [vmem:[%s165_s27 + $0x18] sm:$0xff]  ;;  %v174_v10 = vld [vmem:[%s165_s27 + $0x10] sm:$0xff]  ;;  %v173_v11 = vld [vmem:[%s165_s27 + $0x8] sm:$0xff] }
  0x12   : > { %v199_v12 = vpack.c.bf16 %v175_v9, %v175_v9  ;;  %v198_v13 = vpack.c.bf16 %v174_v10, %v174_v10  ;;  %v197_v14 = vpack.c.bf16 %v173_v11, %v173_v11  ;;  %v172_v15 = vld [vmem:[%s165_s27] sm:$0xff]  ;;  %v177_v16 = vld [vmem:[%s165_s27 + $0x28] sm:$0xff] }
  0x13   : > { %v196_v17 = vpack.c.bf16 %v172_v15, %v172_v15  ;;  %v201_v18 = vpack.c.bf16 %v177_v16, %v177_v16  ;;  %v176_v23 = vld [vmem:[%s165_s27 + $0x20] sm:$0xff] }
  0x14   : > { %255 = vmatprep.subr.bf16.mxu0 %v199_v12  ;;  %214 = vmatprep.subr.bf16.mxu1 %v197_v14  ;;  %v200_v28 = vpack.c.bf16 %v176_v23, %v176_v23 }
  0x15   : > { %256 = vmatpush1.bf16.xpose.msra.mxu0 %v198_v13  ;;  %215 = vmatpush1.bf16.xpose.msra.mxu1 %v196_v17 }
  0x16   : > { %296 = vmatprep.subr.bf16.mxu0 %v201_v18 }
  0x1c   : > { %288 = vmatmul.mubr.bf16.vlgmr.msra.gmra.mrb[0].mxu0 %v192_v26  ;;  %247 = vmatmul.mubr.bf16.vlgmr.msra.gmra.mrb[0].mxu1 %v190_v27 }
  0x1d   : > { %297 = vmatpush1.bf16.xpose.msra.mxu0 %v200_v28  ;;  %328 = vmatprep.mubr.bf16.mxu0 %v195_v29 }
  0x28   : > { %329 = vmatmul.mubr.bf16.vlgmr.msra.gmra.mrb[0].mxu0 %v194_v32 }
  0x86   : > { %v207_v37 = vpop.permute.xlu0 %206 }
  0x8a   : > { %v212_v38 = vpop.permute.xlu0 %211 }
  0xef   : > { %v248_v33 = vpop.f32.mrb[0].mxu1 }
  0xf0   : > { %v250_v34 = vpop.f32.mrb[1].mxu1  ;;  %v249_v39 = vadd.f32 %v248_v33, %v207_v37 }
  0xf1   : > { %v251_v35 = vpop.f32.mrb[2].mxu1 }
  0xf2   : > { %v253_v36 = vpop.f32.mrb[3].mxu1  ;;  %v252_v41 = vadd.f32 %v251_v35, %v212_v38 }
  0xfb   : > { %v330_v40 = vpop.f32.mrb[0].mxu0 }
  0xfc   : > { %v407_v42 = vadd.f32 %v330_v40, %v249_v39  ;;  %v332_v43 = vpop.f32.mrb[1].mxu0 }
  0xfd   : > { %v333_v44 = vpop.f32.mrb[2].mxu0 }
  0xfe   : > { %338 = vst.msk [vmem:[%s170_s24] sm:$0xff] %vm337_vm0, %v407_v42  ;;  %v409_v45 = vadd.f32 %v333_v44, %v252_v41  ;;  %v335_v46 = vpop.f32.mrb[3].mxu0 }
 0x100   : > { %339 = vst.msk [vmem:[%s170_s24 + $0x8] sm:$0xff] %vm337_vm0, %v409_v45 }
 0x101 PF: > { %s13_s12 = sadd.s32 1, %s431_s12  }
 0x102   : > { %p10_p4 = scmp.ge.s32.totalorder %s13_s12, 4  }
 0x104   :  { %12 = sbr.rel (!%p10_p4) target bundleno = 1 (0x1), region = 62 }

// kernel: fwd.154
= control target key start
LH: loop header
LB: loop body
LE: loop exit
PB: predicated region body
PF: predicated region fallthrough
CT: control target
= control target key end

     0   :  { %s797_s0 = inlined_call_operand.vmem [shape: s32[2], index: 0, kind: input, shape index: {}]   ;;  %s798_s1 = inlined_call_operand.vmem [shape: f32[2,48,8], index: 1, kind: input, shape index: {}, may-alias: {1,2,3}]   ;;  %s799_s2 = inlined_call_operand.vmem [shape: f32[2,48,8], index: 2, kind: input, shape index: {}, may-alias: {1,2,3}]   ;;  %s800_s3 = inlined_call_operand.vmem [shape: f32[2,48,8], index: 3, kind: input, shape index: {}, may-alias: {1,2,3}]   ;;  %s801_s4 = inlined_call_operand.vmem [shape: f32[2,16,8], index: 4, kind: output, shape index: {}]  }
   0x1   :  { %s9_s17 = sshll.u32 %s797_s0, 4  ;;  %s10_s17 = int_to_ptr.vmem [resolvable:$true] %s9_s17 }
   0x2   :  { %s627_s18 = scalar_lea.vmem %s10_s17, 16  ;;  %p632_p1 = scmp.lt.s32.totalorder %s10_s17, %s10_s17 }
   0x3   :  { %p628_p0 = scmp.ne.s32.totalorder %s10_s17, %s627_s18  ;;  %p633_p2 = scmp.lt.s32.totalorder %s627_s18, %s627_s18 }
   0x5   :  { %p634_p3 = por %p633_p2, %p632_p1 }
   0x7   :  { %p635_p4 = pnand %p634_p3, %p628_p0 }
   0x9   :  { %638 = shalt.err (!%p635_p4)  }
   0xa   :  { %s681_s19 = smov [#allocation3]  }
   0xb   :  { %12 = dma.vmem_to_smem %s10_s17, 16, %s681_s19, [#allocation2] }
   0xc   :  { %659 = dma.done.wait [#allocation2], 16 }
   0xd   :  { %660 = vsyncadd [#allocation2], 4294967280 }
   0xe   :  { %14 = sfence }
   0xf   :  { %s712_s20 = smov 0   ;;  %s714_s21 = smov 0  }
  0x10   :  { %s716_s22 = smov 0   ;;  %s718_s0 = smov 0  }
  0x11   :  { %s720_s23 = smov 0  }
  0x12 LB: > { %s29_s24 = sadd.s32 1, %s671_s22  ;;  %s32_s25 = sadd.s32 1, %s675_s0  ;;  %s679_s23 = sphi %s720_s23, %s20_s23   ;;  %s675_s0 = sphi %s718_s0, %s805_s0   ;;  %s671_s22 = sphi %s716_s22, %s804_s22   ;;  %s667_s21 = sphi %s714_s21, %s803_s21   ;;  %s663_s20 = sphi %s712_s20, %s802_s20  }
  0x13   : > { %p30_p5 = scmp.ge.s32.totalorder %s29_s24, 2  ;;  %p552_p6 = scmp.ge.s32.totalorder %s679_s23, 1 }
  0x14   : > { %p201_p7 = scmp.lt.s32.totalorder %s679_s23, 5 }
  0x15   : > { %s807_s24 = smov (%p30_p5, %s29_s24), 0  ;;  %s809_s25 = smov (!%p30_p5, %s32_s25), %s675_s0 }
  0x16   : > { %p202_p8 = pnand %p552_p6, %p201_p7  ;;  %p34_p9 = scmp.ge.s32.totalorder %s809_s25, 2 }
  0x17   : > { %p249_p10 = scmp.lt.s32.totalorder (!%p202_p8), %s667_s21, 1  ;;  %p251_p11 = scmp.lt.s32.totalorder (!%p202_p8), %s663_s20, 5  ;;  %v682_v0 = vmov (!%p202_p8), 0.0   ;;  %vm683_vm0 = vmmov (!%p202_p8), 0   ;;  %vm313_vm1 = vcmask (!%p202_p8), 1043456   ;;  %vm309_vm2 = vcmask (!%p202_p8), 64512  }
  0x18   : > { %s811_s25 = smov (%p34_p9, %s809_s25), 0  ;;  %205 = sbr.rel (%p202_p8) target bundleno = 898 (0x382), region = 32 }
  0x19   : > { %566 = vmatprep.subr.bf16.mxu0 (!%p202_p8), %v682_v0  ;;  %s257_s26 = sadd.s32 (!%p202_p8), 2, %s663_s20  ;;  %568 = vmatprep.mubr.msk.bf16.mxu0 (!%p202_p8), %vm683_vm0, %v682_v0  ;;  %s286_s14 = sld [smem:[#allocation3 + %s667_s21]] (!%p202_p8)  ;;  %v357_v8 = vlaneseq (!%p202_p8) }
  0x1a   : > { %572 = vmatprep.subr.bf16.mxu1 (!%p202_p8), %v682_v0  ;;  %574 = vmatprep.mubr.msk.bf16.mxu1 (!%p202_p8), %vm683_vm0, %v682_v0  ;;  %p260_p12 = scmp.lt.s32.totalorder (!%p202_p8), %s257_s26, 5  ;;  %s267_s15 = sadd.s32 (!%p202_p8), 4, %s663_s20 }
  0x1b   : > { %v358_v9 = vshrl.u32 (!%p202_p8), %v357_v8, 7  ;;  %v360_v10 = vand.u32 (!%p202_p8), 127, %v357_v8  ;;  %p270_p13 = scmp.lt.s32.totalorder (!%p202_p8), %s267_s15, 5  ;;  %p279_p0 = scmp.lt.s32.totalorder (!%p202_p8), %s663_s20, 1 }
  0x1f   : > { %s750_s27 = scalar_select %p249_p10, %s667_s21, 1  ;;  %v361_v11 = vstv %s286_s14 }
  0x20   : > { %s252_s28 = scalar_select %p251_p11, %s663_s20, 5  ;;  %vm362_vm3 = vcmp.lt.s32.totalorder %v358_v9, %v361_v11  ;;  %vm363_vm4 = vcmp.lt.s32.totalorder %v360_v10, %v361_v11 }
  0x21   : > { %s754_s29 = smul.u32 6, %s750_s27  ;;  %s813_s26 = smov (!%p260_p12, %s257_s26), 5  ;;  %vm364_vm5 = vmand %vm362_vm3, %vm363_vm4 }
  0x22   : > { %s815_s15 = smov (!%p270_p13, %s267_s15), 5  ;;  %s817_s20 = smov (!%p279_p0, %s663_s20), 1 }
  0x23   : > { %s254_s30 = sadd.s32 %s754_s29, %s252_s28  ;;  %s263_s9 = sadd.s32 %s754_s29, %s813_s26 }
  0x24   : > { %s553_s5 = sshll.u32 %s254_s30, 3  ;;  %s554_s10 = sshll.u32 %s263_s9, 3 }
  0x25   : > { %s256_s8 = scalar_lea.vmem %s798_s1, %s553_s5  ;;  %s265_s13 = scalar_lea.vmem %s799_s2, %s554_s10 }
  0x26   : > { %v287_v1 = vld [vmem:[%s256_s8] sm:$0xff]  ;;  %s273_s16 = sadd.s32 %s754_s29, %s815_s15  ;;  %s556_s26 = sshll.u32 %s750_s27, 1 }
  0x27   : > { %v290_v2 = vmul.f32 0.35355338, %v287_v1  ;;  %v288_v4 = vld [vmem:[%s265_s13] sm:$0xff]  ;;  %s555_s17 = sshll.u32 %s273_s16, 3  ;;  %s282_s28 = sadd.s32 %s556_s26, %s817_s20 }
  0x28   : > { %v292_v5 = vpack.c.bf16 %v288_v4, %v288_v4  ;;  %s275_s21 = scalar_lea.vmem %s800_s3, %s555_s17  ;;  %s557_s29 = sshll.u32 %s282_s28, 3 }
  0x29   : > { %v291_v3 = vpack.c.bf16 %v290_v2, %v290_v2  ;;  %v289_v28 = vld [vmem:[%s275_s21] sm:$0xff]  ;;  %s284_s6 = scalar_lea.vmem %s801_s4, %s557_s29 }
  0x2a   : > { %v315_v6 = vsel %vm313_vm1, %v292_v5, 0  ;;  %v377_v29 = vpack.c.bf16 %v289_v28, %v289_v28 }
  0x2b   : > { %293 = vxpose.xlu0.c.b16.start.end [1/1] (short) (narrow) %v291_v3, 16  ;;  %567 = vmatpush3.bf16.msra.mxu0 %v315_v6 }
  0x91   : > { %v301_v7 = vpop.trf.xlu0 }
  0x92   : > { %569 = vmatmul.mubr.msk.bf16.vlgmr.msra.gmra.mrb[0].mxu0 %vm309_vm2, %v301_v7 }
 0x165   : > { %v351_v12 = vpop.f32.mrb[0].mxu0 }
 0x166   : > { %v365_v13 = vsel %vm364_vm5, %v351_v12, -10000.0  ;;  %v570_v14 = vpop.f32.mrb[1].mxu0 }
 0x167   : > { %v354_v15 = vpop.f32.mrb[2].mxu0  ;;  %v366_v16 = vsel %vm309_vm2, %v365_v13, -inf }
 0x168   : > { %367 = vmax.xlane.f32.xlu0 %v366_v16  ;;  %v571_v17 = vpop.f32.mrb[3].mxu0 }
 0x1f5   : > { %v368_v18 = vpop.xlane.xlu0 %367 }
 0x1f6   : > { %v369_v19 = vsub.f32 %v365_v13, %v368_v18 }
 0x1f8   : > { %v370_v20 = vmul.f32 1.442695, %v369_v19 }
 0x1fa   : > { %623 = vpow2.f32 %v370_v20 }
 0x204   : > { %v624_v21 = vpop.eup %623 }
 0x205   : > { %v372_v22 = vsel %vm309_vm2, %v624_v21, 0.0 }
 0x206   : > { %373 = vadd.xlane.f32.xlu1 %v372_v22 }
 0x293   : > { %v374_v23 = vpop.xlane.xlu1 %373 }
 0x294   : > { %625 = vrcp.f32 %v374_v23 }
 0x29e   : > { %v626_v24 = vpop.eup %625 }
 0x29f   : > { %v376_v25 = vmul.f32 %v626_v24, %v624_v21 }
 0x2a1   : > { %v378_v26 = vpack.c.bf16 %v376_v25, %v376_v25 }
 0x2a3   : > { %v383_v27 = vsel %vm309_vm2, %v378_v26, 0 }
 0x2a4   : > { %573 = vmatpush3.bf16.xpose.msra.mxu1 %v383_v27 }
 0x2ab   : > { %575 = vmatmul.mubr.msk.bf16.vlgmr.msra.gmra.mrb[0].mxu1 %vm309_vm2, %v377_v29 }
 0x37e   : > { %v419_v30 = vpop.f32.mrb[0].mxu1 }
 0x37f   : > { %425 = vst.msk [vmem:[%s284_s6] sm:$0xff] %vm309_vm2, %v419_v30  ;;  %v576_v31 = vpop.f32.mrb[1].mxu1 }
 0x380   : > { %v422_v32 = vpop.f32.mrb[2].mxu1 }
 0x381   : > { %v577_v33 = vpop.f32.mrb[3].mxu1 }
 0x382 PF: > { %s20_s23 = sadd.s32 1, %s679_s23   ;;  %s802_s20 = smov %s671_s22 }
 0x383   : > { %p17_p1 = scmp.ge.s32.totalorder %s20_s23, 6   ;;  %s803_s21 = smov %s675_s0 }
 0x384   : > { %s804_s22 = smov %s807_s24  ;;  %s805_s0 = smov %s811_s25 }
 0x385   :  { %19 = sbr.rel (!%p17_p1) target bundleno = 18 (0x12), region = 68 }

// kernel: fwd.156
= control target key start
LH: loop header
LB: loop body
LE: loop exit
PB: predicated region body
PF: predicated region fallthrough
CT: control target
= control target key end

     0   :  { %s414_s15 = smov 0   ;;  %s457_s0 = inlined_call_operand.vmem [shape: f32[2,16,8], index: 0, kind: input, shape index: {}]   ;;  %s458_s1 = inlined_call_operand.vmem [shape: f32[2,16,8], index: 1, kind: input, shape index: {}]   ;;  %s459_s2 = inlined_call_operand.vmem [shape: f32[16,1], index: 2, kind: input, shape index: {}]   ;;  %s460_s3 = inlined_call_operand.vmem [shape: f32[16,1], index: 3, kind: input, shape index: {}]   ;;  %s461_s4 = inlined_call_operand.vmem [shape: f32[2,16,8], index: 4, kind: output, shape index: {}]  }
   0x1 LB: > { %s351_s16 = sadd.s32 4294967295, %s386_s15   ;;  %p355_p0 = scmp.ge.s32.totalorder %s386_s15, 1  ;;  %s386_s15 = sphi %s414_s15, %s14_s15  }
   0x2   : > { %p172_p1 = scmp.lt.s32.totalorder %s386_s15, 3 }
   0x4   : > { %p173_p2 = pnand %p355_p0, %p172_p1 }
   0x5   : > { %v268_v0 = vld [vmem:[%s460_s3] sm:$0xff] (!%p173_p2)  ;;  %v388_v2 = vmov (!%p173_p2), 0   ;;  %v269_v3 = vld [vmem:[%s460_s3 + $0x8] sm:$0xff] (!%p173_p2)  ;;  %p203_p3 = scmp.lt.s32.totalorder (!%p173_p2), %s351_s16, 1  ;;  %vm224_vm0 = vcmask (!%p173_p2), 64512  }
   0x6   : > { %176 = sbr.rel (%p173_p2) target bundleno = 144 (0x90), region = 36  ;;  %v254_v1 = vld [vmem:[%s459_s2] sm:$0xff] (!%p173_p2)  ;;  %377 = vset.pattern.permute.xlu1 (!%p173_p2), %v388_v2  ;;  %376 = vset.pattern.permute.xlu0 (!%p173_p2), %v388_v2  ;;  %v255_v4 = vld [vmem:[%s459_s2 + $0x8] sm:$0xff] (!%p173_p2) }
   0x7   : > { %272 = vperm.xlu1 (!%p173_p2), %377, %v268_v0   ;;  %258 = vperm.xlu0 (!%p173_p2), %376, %v254_v1  }
   0xb   : > { %277 = vperm.xlu1 (!%p173_p2), %377, %v269_v3   ;;  %263 = vperm.xlu0 (!%p173_p2), %376, %v255_v4  }
   0xd   : > { %s463_s16 = smov (!%p203_p3, %s351_s16), 1 }
   0xe   : > { %s434_s25 = sshll.u32 %s463_s16, 4 }
   0xf   : > { %s207_s28 = scalar_lea.vmem %s457_s0, %s434_s25  ;;  %s212_s5 = scalar_lea.vmem %s458_s1, %s434_s25 }
  0x10   : > { %v218_v5 = vld [vmem:[%s207_s28] sm:$0xff]  ;;  %v219_v6 = vld [vmem:[%s207_s28 + $0x8] sm:$0xff]  ;;  %s217_s8 = scalar_lea.vmem %s461_s4, %s434_s25 }
  0x11   : > { %v220_v7 = vld [vmem:[%s212_s5] sm:$0xff]  ;;  %v221_v8 = vld [vmem:[%s212_s5 + $0x8] sm:$0xff] }
  0x12   : > { %v222_v9 = vadd.f32 %v220_v7, %v218_v5  ;;  %v223_v10 = vadd.f32 %v221_v8, %v219_v6 }
  0x14   : > { %v225_v11 = vsel %vm224_vm0, %v222_v9, 0.0  ;;  %v226_v12 = vsel %vm224_vm0, %v223_v10, 0.0 }
  0x15   : > { %v227_v13 = vadd.f32 %v226_v12, %v225_v11 }
  0x17   : > { %v228_v14 = vrot.slane %v227_v13, 4 }
  0x19   : > { %v229_v15 = vadd.f32 %v228_v14, %v227_v13 }
  0x1b   : > { %v230_v16 = vrot.slane %v229_v15, 2 }
  0x1d   : > { %v231_v17 = vadd.f32 %v230_v16, %v229_v15 }
  0x1f   : > { %v232_v18 = vrot.slane %v231_v17, 1 }
  0x21   : > { %v233_v19 = vadd.f32 %v232_v18, %v231_v17 }
  0x23   : > { %v235_v20 = vmul.f32 0.0625, %v233_v19 }
  0x25   : > { %v236_v21 = vsub.f32 %v222_v9, %v235_v20  ;;  %v237_v22 = vsub.f32 %v223_v10, %v235_v20 }
  0x27   : > { %v238_v23 = vmul.f32 %v236_v21, %v236_v21  ;;  %v239_v24 = vmul.f32 %v237_v22, %v237_v22 }
  0x29   : > { %v240_v25 = vsel %vm224_vm0, %v238_v23, 0.0  ;;  %v241_v26 = vsel %vm224_vm0, %v239_v24, 0.0 }
  0x2a   : > { %v242_v27 = vadd.f32 %v241_v26, %v240_v25 }
  0x2c   : > { %v243_v28 = vrot.slane %v242_v27, 4 }
  0x2e   : > { %v244_v29 = vadd.f32 %v243_v28, %v242_v27 }
  0x30   : > { %v245_v30 = vrot.slane %v244_v29, 2 }
  0x32   : > { %v246_v31 = vadd.f32 %v245_v30, %v244_v29 }
  0x34   : > { %v247_v32 = vrot.slane %v246_v31, 1 }
  0x36   : > { %v248_v33 = vadd.f32 %v247_v32, %v246_v31 }
  0x38   : > { %v249_v34 = vmul.f32 0.0625, %v248_v33 }
  0x3a   : > { %v250_v35 = vadd.f32 1e-05, %v249_v34 }
  0x3c   : > { %378 = vrsqrt.f32 %v250_v35 }
  0x46   : > { %v379_v36 = vpop.eup %378 }
  0x47   : > { %v252_v37 = vmul.f32 %v379_v36, %v236_v21  ;;  %v253_v41 = vmul.f32 %v379_v36, %v237_v22 }
  0x86   : > { %v273_v38 = vpop.permute.xlu1 %272  ;;  %v259_v39 = vpop.permute.xlu0 %258 }
  0x87   : > { %v266_v40 = vmul.f32 %v259_v39, %v252_v37 }
  0x89   : > { %v280_v42 = vadd.f32 %v273_v38, %v266_v40 }
  0x8a   : > { %v264_v43 = vpop.permute.xlu0 %263  ;;  %v278_v45 = vpop.permute.xlu1 %277 }
  0x8b   : > { %282 = vst.msk [vmem:[%s217_s8] sm:$0xff] %vm224_vm0, %v280_v42  ;;  %v267_v44 = vmul.f32 %v264_v43, %v253_v41 }
  0x8d   : > { %v281_v46 = vadd.f32 %v278_v45, %v267_v44 }
  0x8f   : > { %283 = vst.msk [vmem:[%s217_s8 + $0x8] sm:$0xff] %vm224_vm0, %v281_v46 }
  0x90 PF: > { %s14_s15 = sadd.s32 1, %s386_s15  }
  0x91   : > { %p11_p4 = scmp.ge.s32.totalorder %s14_s15, 4  }
  0x93   :  { %13 = sbr.rel (!%p11_p4) target bundleno = 1 (0x1), region = 69 }

// kernel: fwd.157
= control target key start
LH: loop header
LB: loop body
LE: loop exit
PB: predicated region body
PF: predicated region fallthrough
CT: control target
= control target key end

     0   :  { %s574_s12 = smov 0   ;;  %s649_s0 = inlined_call_operand.vmem [shape: f32[2,16,10], index: 0, kind: input, shape index: {}]   ;;  %s650_s1 = inlined_call_operand.vmem [shape: f32[3,32,16], index: 1, kind: input, shape index: {}]   ;;  %s651_s2 = inlined_call_operand.vmem [shape: f32[32,1], index: 2, kind: input, shape index: {}]   ;;  %s652_s3 = inlined_call_operand.vmem [shape: f32[2,32,8], index: 3, kind: output, shape index: {}]  }
   0x1 LB: > { %s464_s13 = sadd.s32 4294967295, %s549_s12   ;;  %p468_p0 = scmp.ge.s32.totalorder %s549_s12, 1  ;;  %s549_s12 = sphi %s574_s12, %s13_s12  }
   0x2   : > { %p137_p1 = scmp.lt.s32.totalorder %s549_s12, 3 }
   0x4   : > { %p138_p2 = pnand %p468_p0, %p137_p1 }
   0x5   : > { %p161_p3 = scmp.lt.s32.totalorder (!%p138_p2), %s464_s13, 1  ;;  %vm205_vm0 = vcmask (!%p138_p2), 130048   ;;  %v475_v0 = vld [vmem:[%s650_s1 + $0x20] sm:$0xff] (!%p138_p2)  ;;  %v476_v1 = vld [vmem:[%s650_s1 + $0x28] sm:$0xff] (!%p138_p2)  ;;  %v201_v6 = vld [vmem:[%s650_s1 + $0x10] sm:$0xff] (!%p138_p2)  ;;  %s551_s30 = smov (!%p138_p2), 127  }
   0x6   : > { %141 = sbr.rel (%p138_p2) target bundleno = 368 (0x170), region = 32  ;;  %v270_v2 = vpack.c.bf16 (!%p138_p2), %v476_v1, %v475_v0  ;;  %v199_v3 = vld [vmem:[%s650_s1] sm:$0xff] (!%p138_p2)  ;;  %v200_v4 = vld [vmem:[%s650_s1 + $0x8] sm:$0xff] (!%p138_p2)  ;;  %v202_v9 = vld [vmem:[%s650_s1 + $0x18] sm:$0xff] (!%p138_p2)  ;;  %s552_s6 = smov (!%p138_p2), 126   ;;  %v553_v13 = vmov (!%p138_p2), 0  }
   0x7   : > { %v203_v5 = vpack.c.bf16 (!%p138_p2), %v200_v4, %v199_v3  ;;  %v204_v11 = vpack.c.bf16 (!%p138_p2), %v202_v9, %v201_v6  ;;  %v175_v12 = vld [vmem:[%s651_s2] sm:$0xff] (!%p138_p2)  ;;  %541 = vset.pattern.permute.xlu1 (!%p138_p2), %v553_v13  ;;  %542 = vset.pattern.permute.xlu0 (!%p138_p2), %v553_v13  ;;  %v177_v14 = vld [vmem:[%s651_s2 + $0x10] sm:$0xff] (!%p138_p2)  ;;  %v176_v15 = vld [vmem:[%s651_s2 + $0x8] sm:$0xff] (!%p138_p2)  ;;  %vm404_vm1 = vcmask (!%p138_p2), 64512  }
   0x8   : > { %508 = vmatprep.mubr.msk.bf16.mxu0 (!%p138_p2), %vm205_vm0, %v270_v2  ;;  %181 = vperm.xlu1 (!%p138_p2), %541, %v175_v12   ;;  %v178_v16 = vld [vmem:[%s651_s2 + $0x18] sm:$0xff] (!%p138_p2)  ;;  %v477_v17 = vld [vmem:[%s650_s1 + $0x30] sm:$0xff] (!%p138_p2)  ;;  %v481_v19 = vld [vmem:[%s650_s1 + $0x40] sm:$0xff] (!%p138_p2) }
   0x9   : > { %502 = vmatprep.mubr.msk.bf16.mxu1 (!%p138_p2), %vm205_vm0, %v203_v5  ;;  %v478_v18 = vld [vmem:[%s650_s1 + $0x38] sm:$0xff] (!%p138_p2)  ;;  %v482_v20 = vld [vmem:[%s650_s1 + $0x48] sm:$0xff] (!%p138_p2)  ;;  %v483_v25 = vld [vmem:[%s650_s1 + $0x50] sm:$0xff] (!%p138_p2) }
   0xa   : > { %v271_v22 = vpack.c.bf16 (!%p138_p2), %v478_v18, %v477_v17  ;;  %v340_v23 = vpack.c.bf16 (!%p138_p2), %v482_v20, %v481_v19  ;;  %v484_v26 = vld [vmem:[%s650_s1 + $0x58] sm:$0xff] (!%p138_p2) }
   0xb   : > { %v341_v27 = vpack.c.bf16 (!%p138_p2), %v484_v26, %v483_v25 }
   0xc   : > { %186 = vperm.xlu1 (!%p138_p2), %541, %v176_v15  }
   0xd   : > { %s654_s13 = smov (!%p161_p3, %s464_s13), 1 }
   0xe   : > { %s489_s22 = sshll.u32 %s654_s13, 4  ;;  %s490_s27 = sshll.u32 %s654_s13, 5 }
   0xf   : > { %s165_s25 = scalar_lea.vmem %s649_s0, %s489_s22 }
  0x10   : > { %v172_v7 = vld [vmem:[%s165_s25] sm:$0xff]  ;;  %v173_v8 = vld [vmem:[%s165_s25 + $0x8] sm:$0xff]  ;;  %196 = vperm.xlu1 %541, %v178_v16  }
  0x11   : > { %v174_v10 = vpack.c.bf16 %v173_v8, %v172_v7 }
  0x13   : > { %273 = vrot.lane.b32.xlu0 %v174_v10, %s551_s30  ;;  %500 = vmatprep.subr.bf16.mxu1 %v174_v10  ;;  %s170_s30 = scalar_lea.vmem %s652_s3, %s490_s27 }
  0x14   : > { %501 = vmatpush3.bf16.msra.mxu1 %v174_v10 }
  0x17   : > { %342 = vrot.lane.b32.xlu0 %v174_v10, %s552_s6  ;;  %503 = vmatmul.mubr.msk.bf16.vlgmr.msra.gmra.mrb[0].mxu1 %vm205_vm0, %v204_v11 }
  0x1b   : > { %191 = vperm.xlu0 %542, %v177_v14  }
  0x85   : > { %v274_v21 = vpop.permute.xlu0 %273 }
  0x86   : > { %506 = vmatprep.subr.bf16.mxu0 %v274_v21 }
  0x87   : > { %507 = vmatpush3.bf16.msra.mxu0 %v274_v21  ;;  %v182_v32 = vpop.permute.xlu1 %181 }
  0x89   : > { %v343_v24 = vpop.permute.xlu0 %342 }
  0x8a   : > { %509 = vmatmul.mubr.msk.bf16.vlgmr.msra.gmra.mrb[0].mxu0 %vm205_vm0, %v271_v22  ;;  %512 = vmatprep.subr.bf16.mxu0 %v343_v24 }
  0x8b   : > { %513 = vmatpush3.bf16.msra.mxu0 %v343_v24  ;;  %514 = vmatprep.mubr.msk.bf16.mxu0 %vm205_vm0, %v340_v23  ;;  %v187_v33 = vpop.permute.xlu1 %186 }
  0x8f   : > { %v197_v36 = vpop.permute.xlu1 %196 }
  0x96   : > { %515 = vmatmul.mubr.msk.bf16.vlgmr.msra.gmra.mrb[0].mxu0 %vm205_vm0, %v341_v27 }
  0x9a   : > { %v192_v34 = vpop.permute.xlu0 %191 }
  0xea   : > { %v504_v28 = vpop.f32.mrb[0].mxu1 }
  0xeb   : > { %v246_v29 = vpop.f32.mrb[1].mxu1  ;;  %v263_v35 = vadd.f32 %v504_v28, %v192_v34 }
  0xec   : > { %v505_v30 = vpop.f32.mrb[2].mxu1  ;;  %v261_v37 = vadd.f32 %v246_v29, %v182_v32 }
  0xed   : > { %v249_v31 = vpop.f32.mrb[3].mxu1  ;;  %v264_v39 = vadd.f32 %v505_v30, %v197_v36 }
  0xee   : > { %v262_v42 = vadd.f32 %v249_v31, %v187_v33 }
 0x169   : > { %v516_v38 = vpop.f32.mrb[0].mxu0 }
 0x16a   : > { %v519_v40 = vadd.f32 %v516_v38, %v263_v35  ;;  %v385_v41 = vpop.f32.mrb[1].mxu0 }
 0x16b   : > { %v521_v43 = vadd.f32 %v385_v41, %v261_v37  ;;  %v517_v44 = vpop.f32.mrb[2].mxu0 }
 0x16c   : > { %407 = vst.msk [vmem:[%s170_s30 + $0x10] sm:$0xff] %vm404_vm1, %v519_v40  ;;  %v523_v45 = vadd.f32 %v517_v44, %v264_v39  ;;  %v388_v46 = vpop.f32.mrb[3].mxu0 }
 0x16d   : > { %405 = vst.msk [vmem:[%s170_s30] sm:$0xff] %vm404_vm1, %v521_v43  ;;  %v525_v47 = vadd.f32 %v388_v46, %v262_v42 }
 0x16e   : > { %408 = vst.msk [vmem:[%s170_s30 + $0x18] sm:$0xff] %vm404_vm1, %v523_v45 }
 0x16f   : > { %406 = vst.msk [vmem:[%s170_s30 + $0x8] sm:$0xff] %vm404_vm1, %v525_v47 }
 0x170 PF: > { %s13_s12 = sadd.s32 1, %s549_s12  }
 0x171   : > { %p10_p4 = scmp.ge.s32.totalorder %s13_s12, 4  }
 0x173   :  { %12 = sbr.rel (!%p10_p4) target bundleno = 1 (0x1), region = 64 }

// kernel: fwd.158
= control target key start
LH: loop header
LB: loop body
LE: loop exit
PB: predicated region body
PF: predicated region fallthrough
CT: control target
= control target key end

     0   :  { %s521_s12 = smov 0   ;;  %s572_s0 = inlined_call_operand.vmem [shape: f32[2,32,10], index: 0, kind: input, shape index: {}]   ;;  %s573_s1 = inlined_call_operand.vmem [shape: f32[3,16,32], index: 1, kind: input, shape index: {}]   ;;  %s574_s2 = inlined_call_operand.vmem [shape: f32[16,1], index: 2, kind: input, shape index: {}]   ;;  %s575_s3 = inlined_call_operand.vmem [shape: f32[2,16,8], index: 3, kind: output, shape index: {}]  }
   0x1 LB: > { %s412_s13 = sadd.s32 4294967295, %s494_s12   ;;  %p416_p0 = scmp.ge.s32.totalorder %s494_s12, 1  ;;  %s494_s12 = sphi %s521_s12, %s13_s12  }
   0x2   : > { %p137_p1 = scmp.lt.s32.totalorder %s494_s12, 3 }
   0x4   : > { %p138_p2 = pnand %p416_p0, %p137_p1 }
   0x5   : > { %p161_p3 = scmp.lt.s32.totalorder (!%p138_p2), %s412_s13, 1  ;;  %v496_v0 = vmov (!%p138_p2), 0.0   ;;  %vm497_vm0 = vmmov (!%p138_p2), 0   ;;  %s498_s18 = smov (!%p138_p2), 127   ;;  %v190_v7 = vld [vmem:[%s573_s1] sm:$0xff] (!%p138_p2)  ;;  %v191_v8 = vld [vmem:[%s573_s1 + $0x8] sm:$0xff] (!%p138_p2) }
   0x6   : > { %141 = sbr.rel (%p138_p2) target bundleno = 370 (0x172), region = 32  ;;  %449 = vmatprep.subr.bf16.mxu0 (!%p138_p2), %v496_v0  ;;  %453 = vmatprep.mubr.msk.bf16.mxu0 (!%p138_p2), %vm497_vm0, %v496_v0  ;;  %s499_s19 = smov (!%p138_p2), 126   ;;  %v192_v9 = vpack.c.bf16 (!%p138_p2), %v191_v8, %v190_v7  ;;  %v178_v10 = vld [vmem:[%s574_s2] sm:$0xff] (!%p138_p2)  ;;  %v179_v11 = vld [vmem:[%s574_s2 + $0x8] sm:$0xff] (!%p138_p2)  ;;  %vm193_vm1 = vcmask (!%p138_p2), 261120   ;;  %v500_v12 = vmov (!%p138_p2), 0  }
   0x7   : > { %441 = vmatprep.subr.bf16.mxu1 (!%p138_p2), %v496_v0  ;;  %445 = vmatprep.mubr.msk.bf16.mxu1 (!%p138_p2), %vm497_vm0, %v496_v0  ;;  %v422_v14 = vld [vmem:[%s573_s1 + $0x10] sm:$0xff] (!%p138_p2)  ;;  %v423_v15 = vld [vmem:[%s573_s1 + $0x18] sm:$0xff] (!%p138_p2)  ;;  %v425_v20 = vld [vmem:[%s573_s1 + $0x20] sm:$0xff] (!%p138_p2)  ;;  %vm354_vm2 = vcmask (!%p138_p2), 64512  }
   0x8   : > { %486 = vset.pattern.permute.xlu0 (!%p138_p2), %v500_v12  ;;  %487 = vset.pattern.permute.xlu1 (!%p138_p2), %v500_v12  ;;  %v243_v18 = vpack.c.bf16 (!%p138_p2), %v423_v15, %v422_v14  ;;  %v426_v21 = vld [vmem:[%s573_s1 + $0x28] sm:$0xff] (!%p138_p2) }
   0x9   : > { %v301_v22 = vpack.c.bf16 (!%p138_p2), %v426_v21, %v425_v20 }
   0xd   : > { %s577_s13 = smov (!%p161_p3, %s412_s13), 1 }
   0xe   : > { %s430_s14 = sshll.u32 %s577_s13, 5  ;;  %s431_s9 = sshll.u32 %s577_s13, 4 }
   0xf   : > { %s165_s17 = scalar_lea.vmem %s572_s0, %s430_s14  ;;  %s170_s14 = scalar_lea.vmem %s575_s3, %s431_s9 }
  0x10   : > { %v172_v1 = vld [vmem:[%s165_s17] sm:$0xff]  ;;  %v173_v2 = vld [vmem:[%s165_s17 + $0x8] sm:$0xff]  ;;  %v174_v3 = vld [vmem:[%s165_s17 + $0x10] sm:$0xff] }
  0x11   : > { %v176_v4 = vpack.c.bf16 %v173_v2, %v172_v1  ;;  %v175_v5 = vld [vmem:[%s165_s17 + $0x18] sm:$0xff] }
  0x12   : > { %v177_v6 = vpack.c.bf16 %v175_v5, %v174_v3 }
  0x13   : > { %246 = vrot.lane.b32.xlu0 %v176_v4, %s498_s18  ;;  %302 = vrot.lane.b32.xlu1 %v176_v4, %s499_s19 }
  0x14   : > { %442 = vmatpush3.bf16.msra.mxu1 %v176_v4 }
  0x15   : > { %443 = vmatprep.subr.bf16.mxu1 %v496_v0 }
  0x17   : > { %248 = vrot.lane.b32.xlu0 %v177_v6, %s498_s18  ;;  %304 = vrot.lane.b32.xlu1 %v177_v6, %s499_s19 }
  0x18   : > { %444 = vmatpush3.bf16.msra.mxu1 %v177_v6 }
  0x1b   : > { %446 = vmatmul.mubr.msk.bf16.vlgmr.msra.gmra.mrb[0].mxu1 %vm193_vm1, %v192_v9  ;;  %182 = vperm.xlu0 %486, %v178_v10  }
  0x1c   : > { %187 = vperm.xlu1 %487, %v179_v11  }
  0x85   : > { %v247_v13 = vpop.permute.xlu0 %246  ;;  %v303_v17 = vpop.permute.xlu1 %302 }
  0x86   : > { %450 = vmatpush3.bf16.msra.mxu0 %v247_v13 }
  0x87   : > { %451 = vmatprep.subr.bf16.mxu0 %v496_v0 }
  0x89   : > { %v249_v16 = vpop.permute.xlu0 %248  ;;  %v305_v19 = vpop.permute.xlu1 %304 }
  0x8a   : > { %452 = vmatpush3.bf16.msra.mxu0 %v249_v16 }
  0x8b   : > { %457 = vmatprep.subr.bf16.mxu0 %v496_v0 }
  0x8d   : > { %454 = vmatmul.mubr.msk.bf16.vlgmr.msra.gmra.mrb[0].mxu0 %vm193_vm1, %v243_v18 }
  0x8e   : > { %458 = vmatpush3.bf16.msra.mxu0 %v303_v17  ;;  %461 = vmatprep.mubr.msk.bf16.mxu0 %vm497_vm0, %v496_v0 }
  0x8f   : > { %459 = vmatprep.subr.bf16.mxu0 %v496_v0 }
  0x92   : > { %460 = vmatpush3.bf16.msra.mxu0 %v305_v19 }
  0x99   : > { %462 = vmatmul.mubr.msk.bf16.vlgmr.msra.gmra.mrb[0].mxu0 %vm193_vm1, %v301_v22 }
  0x9a   : > { %v183_v27 = vpop.permute.xlu0 %182 }
  0x9b   : > { %v188_v29 = vpop.permute.xlu1 %187 }
  0xee   : > { %v231_v23 = vpop.f32.mrb[0].mxu1 }
  0xef   : > { %v447_v24 = vpop.f32.mrb[1].mxu1  ;;  %v238_v28 = vadd.f32 %v231_v23, %v183_v27 }
  0xf0   : > { %v234_v25 = vpop.f32.mrb[2].mxu1 }
  0xf1   : > { %v448_v26 = vpop.f32.mrb[3].mxu1  ;;  %v239_v31 = vadd.f32 %v234_v25, %v188_v29 }
 0x16c   : > { %v345_v30 = vpop.f32.mrb[0].mxu0 }
 0x16d   : > { %v466_v32 = vadd.f32 %v345_v30, %v238_v28  ;;  %v463_v33 = vpop.f32.mrb[1].mxu0 }
 0x16e   : > { %v348_v34 = vpop.f32.mrb[2].mxu0 }
 0x16f   : > { %355 = vst.msk [vmem:[%s170_s14] sm:$0xff] %vm354_vm2, %v466_v32  ;;  %v468_v35 = vadd.f32 %v348_v34, %v239_v31  ;;  %v464_v36 = vpop.f32.mrb[3].mxu0 }
 0x171   : > { %356 = vst.msk [vmem:[%s170_s14 + $0x8] sm:$0xff] %vm354_vm2, %v468_v35 }
 0x172 PF: > { %s13_s12 = sadd.s32 1, %s494_s12  }
 0x173   : > { %p10_p4 = scmp.ge.s32.totalorder %s13_s12, 4  }
 0x175   :  { %12 = sbr.rel (!%p10_p4) target bundleno = 1 (0x1), region = 64 }

</bundles_post_ra>
